<compile_context>
chip_gen: v5e
topology: v5e:2x2
jax: 0.10.0
libtpu: 0.0.40
codegen_flags: <defaults>
</compile_context>

<pallas_src>
import functools

import jax
import jax.numpy as jnp
from jax.experimental import pallas as pl
from jax.experimental.pallas import tpu as pltpu


# ---------------------------------------------------------------------------
# Kernel 1: fused conv(5x5) + bias + ReLU + 2x2 max-pool (one image per step)
# ---------------------------------------------------------------------------
def _conv_pool_kernel(x_ref, w_ref, b_ref, o_ref, *, wp, n_wide, kh, kw, cin):
    # x_ref: (1, 4, cin, lp)   input split into 4 parity phases, spatially flat
    # w_ref: (kh*kw, cout, cin) conv taps
    # b_ref: (cout, 1)
    # o_ref: (1, cout, n_wide)  "wide" pooled output (overhang cols cropped by caller)
    phases = [x_ref[0, p] for p in range(4)]          # each (cin, lp)
    pooled = None
    for ry in range(2):                               # pooling-window row offset
        for cx in range(2):                           # pooling-window col offset
            acc = None
            for dy in range(kh):
                py, qy = (ry + dy) % 2, (ry + dy) // 2
                for dx in range(kw):
                    px, qx = (cx + dx) % 2, (cx + dx) // 2
                    off = qy * wp + qx
                    xs = phases[2 * py + px][:, off:off + n_wide]   # (cin, n_wide)
                    wt = w_ref[dy * kw + dx]                        # (cout, cin)
                    if cin == 1:
                        term = wt * xs                # (cout,1)*(1,n) -> (cout,n)
                    else:
                        term = jnp.dot(wt, xs, preferred_element_type=jnp.float32)
                    acc = term if acc is None else acc + term
            pooled = acc if pooled is None else jnp.maximum(pooled, acc)
    # bias is identical across pooling phases, so max(conv)+bias == max(conv+bias);
    # ReLU is monotonic, so relu(max) == max(relu): matches relu -> maxpool.
    o_ref[0] = jnp.maximum(pooled + b_ref[...], 0.0)


def conv_relu_pool(x_phases, w_taps, bias, *, wp, n_wide):
    """x_phases: (B, 4, cin, lp); w_taps: (25, cout, cin); bias: (cout, 1)."""
    b_sz, _, cin, lp = x_phases.shape
    n_taps, cout, _ = w_taps.shape
    kernel = functools.partial(
        _conv_pool_kernel, wp=wp, n_wide=n_wide, kh=5, kw=5, cin=cin)
    return pl.pallas_call(
        kernel,
        out_shape=jax.ShapeDtypeStruct((b_sz, cout, n_wide), jnp.float32),
        grid=(b_sz,),
        in_specs=[
            pl.BlockSpec((1, 4, cin, lp), lambda b: (b, 0, 0, 0)),
            pl.BlockSpec((n_taps, cout, cin), lambda b: (0, 0, 0)),  # resident
            pl.BlockSpec((cout, 1), lambda b: (0, 0)),               # resident
        ],
        out_specs=pl.BlockSpec((1, cout, n_wide), lambda b: (b, 0, 0)),
        compiler_params=pltpu.CompilerParams(
            dimension_semantics=("parallel",)),
    )(x_phases, w_taps, bias)


# ---------------------------------------------------------------------------
# Kernel 2: fused fc1 -> fc2 -> fc3 (ReLU each), batch on the lane dimension
# ---------------------------------------------------------------------------
def _fc3_kernel(x_ref, w1_ref, b1_ref, w2_ref, b2_ref, w3_ref, b3_ref, o_ref):
    # Transposed layout: (N, K) @ (K, B_tile); intermediates stay in VMEM/vregs.
    h = jnp.dot(w1_ref[...], x_ref[...], preferred_element_type=jnp.float32)
    h = jnp.maximum(h + b1_ref[...], 0.0)                         # (120, TB) f32
    h = jnp.dot(w2_ref[...], h.astype(w2_ref.dtype),
                preferred_element_type=jnp.float32)
    h = jnp.maximum(h + b2_ref[...], 0.0)                         # (84, TB) f32
    h = jnp.dot(w3_ref[...], h.astype(w3_ref.dtype),
                preferred_element_type=jnp.float32)
    o_ref[...] = jnp.maximum(h + b3_ref[...], 0.0)                # (10, TB) f32


def fc_stack(feat, kp):
    """feat: (B, 400) f32 -> (B, 10) f32, fc1+fc2+fc3 fused in one kernel."""
    b_sz = feat.shape[0]
    x_t = feat.T.astype(jnp.bfloat16)                 # (400, B), bf16 for the MXU
    if b_sz > 512:                                    # tile batch for pipelining
        tb = 512
        b_pad = -(-b_sz // tb) * tb
        x_t = jnp.pad(x_t, ((0, 0), (0, b_pad - b_sz)))
    else:
        tb, b_pad = b_sz, b_sz
    out = pl.pallas_call(
        _fc3_kernel,
        out_shape=jax.ShapeDtypeStruct((10, b_pad), jnp.float32),
        grid=(b_pad // tb,),
        in_specs=[
            pl.BlockSpec((400, tb), lambda t: (0, t)),
            pl.BlockSpec((120, 400), lambda t: (0, 0)),   # weights resident in VMEM
            pl.BlockSpec((120, 1), lambda t: (0, 0)),
            pl.BlockSpec((84, 120), lambda t: (0, 0)),
            pl.BlockSpec((84, 1), lambda t: (0, 0)),
            pl.BlockSpec((10, 84), lambda t: (0, 0)),
            pl.BlockSpec((10, 1), lambda t: (0, 0)),
        ],
        out_specs=pl.BlockSpec((10, tb), lambda t: (0, t)),
        compiler_params=pltpu.CompilerParams(
            dimension_semantics=("parallel",)),
    )(x_t, kp["fc1_w"], kp["fc1_b"], kp["fc2_w"], kp["fc2_b"],
      kp["fc3_w"], kp["fc3_b"])
    return out[:, :b_sz].T


# ---------------------------------------------------------------------------
# Parameters (PyTorch layouts) + one-time kernel-layout precompute
# ---------------------------------------------------------------------------
def init_params(key):
    def uniform(k, shape, fan_in):
        bound = 1.0 / jnp.sqrt(jnp.float32(fan_in))
        return jax.random.uniform(k, shape, jnp.float32, -bound, bound)

    ks = jax.random.split(key, 10)
    return {
        "conv1_w": uniform(ks[0], (6, 1, 5, 5), 25),
        "conv1_b": uniform(ks[1], (6,), 25),
        "conv2_w": uniform(ks[2], (16, 6, 5, 5), 150),
        "conv2_b": uniform(ks[3], (16,), 150),
        "fc1_w": uniform(ks[4], (120, 400), 400),     # PyTorch Linear: (out, in)
        "fc1_b": uniform(ks[5], (120,), 400),
        "fc2_w": uniform(ks[6], (84, 120), 120),
        "fc2_b": uniform(ks[7], (84,), 120),
        "fc3_w": uniform(ks[8], (10, 84), 84),
        "fc3_b": uniform(ks[9], (10,), 84),
    }


def prepare_params(p):
    """One-time layout/dtype transforms so no per-step transposes feed kernels."""
    return {
        # conv taps reordered to (tap, out_ch, in_ch); kept f32 (tiny, VPU/MXU)
        "c1_w": jnp.transpose(p["conv1_w"], (2, 3, 0, 1)).reshape(25, 6, 1)
                   .astype(jnp.float32),
        "c1_b": p["conv1_b"].reshape(6, 1).astype(jnp.float32),
        "c2_w": jnp.transpose(p["conv2_w"], (2, 3, 0, 1)).reshape(25, 16, 6)
                   .astype(jnp.float32),
        "c2_b": p["conv2_b"].reshape(16, 1).astype(jnp.float32),
        # FC weights stay (out, in) for the transposed (N,K)@(K,B) kernel;
        # bf16 MXU inputs, f32 accumulation + f32 bias/ReLU epilogue.
        "fc1_w": p["fc1_w"].astype(jnp.bfloat16),
        "fc1_b": p["fc1_b"].reshape(120, 1).astype(jnp.float32),
        "fc2_w": p["fc2_w"].astype(jnp.bfloat16),
        "fc2_b": p["fc2_b"].reshape(84, 1).astype(jnp.float32),
        "fc3_w": p["fc3_w"].astype(jnp.bfloat16),
        "fc3_b": p["fc3_b"].reshape(10, 1).astype(jnp.float32),
    }


# ---------------------------------------------------------------------------
# Forward pass
# ---------------------------------------------------------------------------
def _pool_phase_split(x_nchw):
    """(B, C, 2i+py, 2j+px) -> (B, 4, C, i*(W/2)+j), phase index = py*2+px."""
    b, c, h, w = x_nchw.shape
    x = x_nchw.reshape(b, c, h // 2, 2, w // 2, 2)
    x = x.transpose(0, 3, 5, 1, 2, 4)                 # (B, py, px, C, i, j)
    return x.reshape(b, 4, c, (h // 2) * (w // 2))


def cnn_forward(kp, x):
    """x: (B, 1, 28, 28) float -> (B, 10); matches the PyTorch CNN.forward."""
    b_sz = x.shape[0]
    x = x.astype(jnp.float32)

    # conv1 (pad=2) + ReLU + 2x2 max-pool, fused in one kernel
    xpad = jnp.pad(x, ((0, 0), (0, 0), (2, 2), (2, 2)))        # (B,1,32,32)
    ph1 = _pool_phase_split(xpad)                              # (B,4,1,256)
    ph1 = jnp.pad(ph1, ((0, 0), (0, 0), (0, 0), (0, 16)))      # overhang pad -> 272
    h1w = conv_relu_pool(ph1, kp["c1_w"], kp["c1_b"], wp=16, n_wide=14 * 16)
    h1 = h1w.reshape(b_sz, 6, 14, 16)[:, :, :, :14]            # (B,6,14,14) NCHW

    # conv2 (valid) + ReLU + 2x2 max-pool, fused in one kernel
    ph2 = _pool_phase_split(h1)                                # (B,4,6,49)
    ph2 = jnp.pad(ph2, ((0, 0), (0, 0), (0, 0), (0, 7)))       # overhang pad -> 56
    h2w = conv_relu_pool(ph2, kp["c2_w"], kp["c2_b"], wp=7, n_wide=5 * 7)
    h2 = h2w.reshape(b_sz, 16, 5, 7)[:, :, :, :5]              # (B,16,5,5) NCHW

    # fc1 -> fc2 -> fc3 (ReLU each), fused in one kernel
    feat = h2.reshape(b_sz, 400)                               # torch flatten order
    return fc_stack(feat, kp)


# ---------------------------------------------------------------------------
# Pure-JAX reference (PyTorch semantics) for an in-script correctness check
# ---------------------------------------------------------------------------
def reference_forward(p, x):
    dn = ("NCHW", "OIHW", "NCHW")
    y = jax.lax.conv_general_dilated(x, p["conv1_w"], (1, 1), ((2, 2), (2, 2)),
                                     dimension_numbers=dn)
    y = jax.nn.relu(y + p["conv1_b"].reshape(1, 6, 1, 1))
    y = jax.lax.reduce_window(y, -jnp.inf, jax.lax.max,
                              (1, 1, 2, 2), (1, 1, 2, 2), "VALID")
    y = jax.lax.conv_general_dilated(y, p["conv2_w"], (1, 1), "VALID",
                                     dimension_numbers=dn)
    y = jax.nn.relu(y + p["conv2_b"].reshape(1, 16, 1, 1))
    y = jax.lax.reduce_window(y, -jnp.inf, jax.lax.max,
                              (1, 1, 2, 2), (1, 1, 2, 2), "VALID")
    y = y.reshape(y.shape[0], -1)
    y = jax.nn.relu(y @ p["fc1_w"].T + p["fc1_b"])
    y = jax.nn.relu(y @ p["fc2_w"].T + p["fc2_b"])
    y = jax.nn.relu(y @ p["fc3_w"].T + p["fc3_b"])
    return y


if __name__ == "__main__":
    key = jax.random.PRNGKey(0)
    pkey, xkey = jax.random.split(key)
    torch_params = init_params(pkey)
    kernel_params = prepare_params(torch_params)    # one-time layout transform
    # LeNet forward implies 28x28 single-channel input (fc1 expects 16*5*5).
    x = jax.random.normal(xkey, (2, 1, 28, 28), dtype=jnp.float32)

    out = jax.block_until_ready(jax.jit(cnn_forward)(kernel_params, x))
    assert out.shape == (2, 10), out.shape

    ref = jax.block_until_ready(jax.jit(reference_forward)(torch_params, x))
    max_err = float(jnp.max(jnp.abs(out - ref)))
    assert jnp.allclose(out, ref, rtol=5e-2, atol=5e-2), max_err

    print("KERNEL_OK")
</pallas_src>

<mosaic_0001>
module attributes {stable_mosaic.version = 11 : i64} {
  func.func @_conv_pool_kernel(%arg0: i32, %arg1: memref<1x4x1x272xf32, #tpu.memory_space<vmem>>, %arg2: memref<25x6x1xf32, #tpu.memory_space<vmem>>, %arg3: memref<6x1xf32, #tpu.memory_space<vmem>>, %arg4: memref<1x6x224xf32, #tpu.memory_space<vmem>>) attributes {dimension_semantics = [#tpu.dimension_semantics<parallel>], iteration_bounds = array<i64: 2>, scalar_prefetch = 0 : i64, scratch_operands = 0 : i64, tpu.core_type = #tpu.core_type<tc>, window_params = [{transform_indices = @transform_0, window_bounds = array<i64: 1, 4, 1, 272>}, {pipeline_mode = #tpu.pipeline_mode<synchronous>, transform_indices = @transform_1, window_bounds = array<i64: 25, 6, 1>}, {pipeline_mode = #tpu.pipeline_mode<synchronous>, transform_indices = @transform_2, window_bounds = array<i64: 6, 1>}, {transform_indices = @transform_3, window_bounds = array<i64: 1, 6, 224>}]} {
    %c0 = arith.constant 0 : index
    %c0_0 = arith.constant 0 : index
    %c0_1 = arith.constant 0 : index
    %c0_2 = arith.constant 0 : index
    %0 = vector.load %arg1[%c0, %c0_0, %c0_1, %c0_2] : memref<1x4x1x272xf32, #tpu.memory_space<vmem>>, vector<1x1x1x272xf32>
    %1 = vector.shape_cast %0 : vector<1x1x1x272xf32> to vector<1x272xf32>
    %c0_3 = arith.constant 0 : index
    %c1 = arith.constant 1 : index
    %c0_4 = arith.constant 0 : index
    %c0_5 = arith.constant 0 : index
    %2 = vector.load %arg1[%c0_3, %c1, %c0_4, %c0_5] : memref<1x4x1x272xf32, #tpu.memory_space<vmem>>, vector<1x1x1x272xf32>
    %3 = vector.shape_cast %2 : vector<1x1x1x272xf32> to vector<1x272xf32>
    %c0_6 = arith.constant 0 : index
    %c2 = arith.constant 2 : index
    %c0_7 = arith.constant 0 : index
    %c0_8 = arith.constant 0 : index
    %4 = vector.load %arg1[%c0_6, %c2, %c0_7, %c0_8] : memref<1x4x1x272xf32, #tpu.memory_space<vmem>>, vector<1x1x1x272xf32>
    %5 = vector.shape_cast %4 : vector<1x1x1x272xf32> to vector<1x272xf32>
    %c0_9 = arith.constant 0 : index
    %c3 = arith.constant 3 : index
    %c0_10 = arith.constant 0 : index
    %c0_11 = arith.constant 0 : index
    %6 = vector.load %arg1[%c0_9, %c3, %c0_10, %c0_11] : memref<1x4x1x272xf32, #tpu.memory_space<vmem>>, vector<1x1x1x272xf32>
    %7 = vector.shape_cast %6 : vector<1x1x1x272xf32> to vector<1x272xf32>
    %8 = vector.extract_strided_slice %1 {offsets = [0, 0], sizes = [1, 224], strides = [1, 1]} : vector<1x272xf32> to vector<1x224xf32>
    %c0_12 = arith.constant 0 : index
    %c0_13 = arith.constant 0 : index
    %c0_14 = arith.constant 0 : index
    %9 = vector.load %arg2[%c0_12, %c0_13, %c0_14] : memref<25x6x1xf32, #tpu.memory_space<vmem>>, vector<1x6x1xf32>
    %10 = vector.shape_cast %9 : vector<1x6x1xf32> to vector<6x1xf32>
    %11 = vector.broadcast %10 : vector<6x1xf32> to vector<6x224xf32>
    %12 = vector.broadcast %8 : vector<1x224xf32> to vector<6x224xf32>
    %13 = arith.mulf %11, %12 : vector<6x224xf32>
    %14 = vector.extract_strided_slice %3 {offsets = [0, 0], sizes = [1, 224], strides = [1, 1]} : vector<1x272xf32> to vector<1x224xf32>
    %c1_15 = arith.constant 1 : index
    %c0_16 = arith.constant 0 : index
    %c0_17 = arith.constant 0 : index
    %15 = vector.load %arg2[%c1_15, %c0_16, %c0_17] : memref<25x6x1xf32, #tpu.memory_space<vmem>>, vector<1x6x1xf32>
    %16 = vector.shape_cast %15 : vector<1x6x1xf32> to vector<6x1xf32>
    %17 = vector.broadcast %16 : vector<6x1xf32> to vector<6x224xf32>
    %18 = vector.broadcast %14 : vector<1x224xf32> to vector<6x224xf32>
    %19 = arith.mulf %17, %18 : vector<6x224xf32>
    %20 = arith.addf %13, %19 : vector<6x224xf32>
    %21 = vector.extract_strided_slice %1 {offsets = [0, 1], sizes = [1, 224], strides = [1, 1]} : vector<1x272xf32> to vector<1x224xf32>
    %c2_18 = arith.constant 2 : index
    %c0_19 = arith.constant 0 : index
    %c0_20 = arith.constant 0 : index
    %22 = vector.load %arg2[%c2_18, %c0_19, %c0_20] : memref<25x6x1xf32, #tpu.memory_space<vmem>>, vector<1x6x1xf32>
    %23 = vector.shape_cast %22 : vector<1x6x1xf32> to vector<6x1xf32>
    %24 = vector.broadcast %23 : vector<6x1xf32> to vector<6x224xf32>
    %25 = vector.broadcast %21 : vector<1x224xf32> to vector<6x224xf32>
    %26 = arith.mulf %24, %25 : vector<6x224xf32>
    %27 = arith.addf %20, %26 : vector<6x224xf32>
    %28 = vector.extract_strided_slice %3 {offsets = [0, 1], sizes = [1, 224], strides = [1, 1]} : vector<1x272xf32> to vector<1x224xf32>
    %c3_21 = arith.constant 3 : index
    %c0_22 = arith.constant 0 : index
    %c0_23 = arith.constant 0 : index
    %29 = vector.load %arg2[%c3_21, %c0_22, %c0_23] : memref<25x6x1xf32, #tpu.memory_space<vmem>>, vector<1x6x1xf32>
    %30 = vector.shape_cast %29 : vector<1x6x1xf32> to vector<6x1xf32>
    %31 = vector.broadcast %30 : vector<6x1xf32> to vector<6x224xf32>
    %32 = vector.broadcast %28 : vector<1x224xf32> to vector<6x224xf32>
    %33 = arith.mulf %31, %32 : vector<6x224xf32>
    %34 = arith.addf %27, %33 : vector<6x224xf32>
    %35 = vector.extract_strided_slice %1 {offsets = [0, 2], sizes = [1, 224], strides = [1, 1]} : vector<1x272xf32> to vector<1x224xf32>
    %c4 = arith.constant 4 : index
    %c0_24 = arith.constant 0 : index
    %c0_25 = arith.constant 0 : index
    %36 = vector.load %arg2[%c4, %c0_24, %c0_25] : memref<25x6x1xf32, #tpu.memory_space<vmem>>, vector<1x6x1xf32>
    %37 = vector.shape_cast %36 : vector<1x6x1xf32> to vector<6x1xf32>
    %38 = vector.broadcast %37 : vector<6x1xf32> to vector<6x224xf32>
    %39 = vector.broadcast %35 : vector<1x224xf32> to vector<6x224xf32>
    %40 = arith.mulf %38, %39 : vector<6x224xf32>
    %41 = arith.addf %34, %40 : vector<6x224xf32>
    %42 = vector.extract_strided_slice %5 {offsets = [0, 0], sizes = [1, 224], strides = [1, 1]} : vector<1x272xf32> to vector<1x224xf32>
    %c5 = arith.constant 5 : index
    %c0_26 = arith.constant 0 : index
    %c0_27 = arith.constant 0 : index
    %43 = vector.load %arg2[%c5, %c0_26, %c0_27] : memref<25x6x1xf32, #tpu.memory_space<vmem>>, vector<1x6x1xf32>
    %44 = vector.shape_cast %43 : vector<1x6x1xf32> to vector<6x1xf32>
    %45 = vector.broadcast %44 : vector<6x1xf32> to vector<6x224xf32>
    %46 = vector.broadcast %42 : vector<1x224xf32> to vector<6x224xf32>
    %47 = arith.mulf %45, %46 : vector<6x224xf32>
    %48 = arith.addf %41, %47 : vector<6x224xf32>
    %49 = vector.extract_strided_slice %7 {offsets = [0, 0], sizes = [1, 224], strides = [1, 1]} : vector<1x272xf32> to vector<1x224xf32>
    %c6 = arith.constant 6 : index
    %c0_28 = arith.constant 0 : index
    %c0_29 = arith.constant 0 : index
    %50 = vector.load %arg2[%c6, %c0_28, %c0_29] : memref<25x6x1xf32, #tpu.memory_space<vmem>>, vector<1x6x1xf32>
    %51 = vector.shape_cast %50 : vector<1x6x1xf32> to vector<6x1xf32>
    %52 = vector.broadcast %51 : vector<6x1xf32> to vector<6x224xf32>
    %53 = vector.broadcast %49 : vector<1x224xf32> to vector<6x224xf32>
    %54 = arith.mulf %52, %53 : vector<6x224xf32>
    %55 = arith.addf %48, %54 : vector<6x224xf32>
    %56 = vector.extract_strided_slice %5 {offsets = [0, 1], sizes = [1, 224], strides = [1, 1]} : vector<1x272xf32> to vector<1x224xf32>
    %c7 = arith.constant 7 : index
    %c0_30 = arith.constant 0 : index
    %c0_31 = arith.constant 0 : index
    %57 = vector.load %arg2[%c7, %c0_30, %c0_31] : memref<25x6x1xf32, #tpu.memory_space<vmem>>, vector<1x6x1xf32>
    %58 = vector.shape_cast %57 : vector<1x6x1xf32> to vector<6x1xf32>
    %59 = vector.broadcast %58 : vector<6x1xf32> to vector<6x224xf32>
    %60 = vector.broadcast %56 : vector<1x224xf32> to vector<6x224xf32>
    %61 = arith.mulf %59, %60 : vector<6x224xf32>
    %62 = arith.addf %55, %61 : vector<6x224xf32>
    %63 = vector.extract_strided_slice %7 {offsets = [0, 1], sizes = [1, 224], strides = [1, 1]} : vector<1x272xf32> to vector<1x224xf32>
    %c8 = arith.constant 8 : index
    %c0_32 = arith.constant 0 : index
    %c0_33 = arith.constant 0 : index
    %64 = vector.load %arg2[%c8, %c0_32, %c0_33] : memref<25x6x1xf32, #tpu.memory_space<vmem>>, vector<1x6x1xf32>
    %65 = vector.shape_cast %64 : vector<1x6x1xf32> to vector<6x1xf32>
    %66 = vector.broadcast %65 : vector<6x1xf32> to vector<6x224xf32>
    %67 = vector.broadcast %63 : vector<1x224xf32> to vector<6x224xf32>
    %68 = arith.mulf %66, %67 : vector<6x224xf32>
    %69 = arith.addf %62, %68 : vector<6x224xf32>
    %70 = vector.extract_strided_slice %5 {offsets = [0, 2], sizes = [1, 224], strides = [1, 1]} : vector<1x272xf32> to vector<1x224xf32>
    %c9 = arith.constant 9 : index
    %c0_34 = arith.constant 0 : index
    %c0_35 = arith.constant 0 : index
    %71 = vector.load %arg2[%c9, %c0_34, %c0_35] : memref<25x6x1xf32, #tpu.memory_space<vmem>>, vector<1x6x1xf32>
    %72 = vector.shape_cast %71 : vector<1x6x1xf32> to vector<6x1xf32>
    %73 = vector.broadcast %72 : vector<6x1xf32> to vector<6x224xf32>
    %74 = vector.broadcast %70 : vector<1x224xf32> to vector<6x224xf32>
    %75 = arith.mulf %73, %74 : vector<6x224xf32>
    %76 = arith.addf %69, %75 : vector<6x224xf32>
    %77 = vector.extract_strided_slice %1 {offsets = [0, 16], sizes = [1, 224], strides = [1, 1]} : vector<1x272xf32> to vector<1x224xf32>
    %c10 = arith.constant 10 : index
    %c0_36 = arith.constant 0 : index
    %c0_37 = arith.constant 0 : index
    %78 = vector.load %arg2[%c10, %c0_36, %c0_37] : memref<25x6x1xf32, #tpu.memory_space<vmem>>, vector<1x6x1xf32>
    %79 = vector.shape_cast %78 : vector<1x6x1xf32> to vector<6x1xf32>
    %80 = vector.broadcast %79 : vector<6x1xf32> to vector<6x224xf32>
    %81 = vector.broadcast %77 : vector<1x224xf32> to vector<6x224xf32>
    %82 = arith.mulf %80, %81 : vector<6x224xf32>
    %83 = arith.addf %76, %82 : vector<6x224xf32>
    %84 = vector.extract_strided_slice %3 {offsets = [0, 16], sizes = [1, 224], strides = [1, 1]} : vector<1x272xf32> to vector<1x224xf32>
    %c11 = arith.constant 11 : index
    %c0_38 = arith.constant 0 : index
    %c0_39 = arith.constant 0 : index
    %85 = vector.load %arg2[%c11, %c0_38, %c0_39] : memref<25x6x1xf32, #tpu.memory_space<vmem>>, vector<1x6x1xf32>
    %86 = vector.shape_cast %85 : vector<1x6x1xf32> to vector<6x1xf32>
    %87 = vector.broadcast %86 : vector<6x1xf32> to vector<6x224xf32>
    %88 = vector.broadcast %84 : vector<1x224xf32> to vector<6x224xf32>
    %89 = arith.mulf %87, %88 : vector<6x224xf32>
    %90 = arith.addf %83, %89 : vector<6x224xf32>
    %91 = vector.extract_strided_slice %1 {offsets = [0, 17], sizes = [1, 224], strides = [1, 1]} : vector<1x272xf32> to vector<1x224xf32>
    %c12 = arith.constant 12 : index
    %c0_40 = arith.constant 0 : index
    %c0_41 = arith.constant 0 : index
    %92 = vector.load %arg2[%c12, %c0_40, %c0_41] : memref<25x6x1xf32, #tpu.memory_space<vmem>>, vector<1x6x1xf32>
    %93 = vector.shape_cast %92 : vector<1x6x1xf32> to vector<6x1xf32>
    %94 = vector.broadcast %93 : vector<6x1xf32> to vector<6x224xf32>
    %95 = vector.broadcast %91 : vector<1x224xf32> to vector<6x224xf32>
    %96 = arith.mulf %94, %95 : vector<6x224xf32>
    %97 = arith.addf %90, %96 : vector<6x224xf32>
    %98 = vector.extract_strided_slice %3 {offsets = [0, 17], sizes = [1, 224], strides = [1, 1]} : vector<1x272xf32> to vector<1x224xf32>
    %c13 = arith.constant 13 : index
    %c0_42 = arith.constant 0 : index
    %c0_43 = arith.constant 0 : index
    %99 = vector.load %arg2[%c13, %c0_42, %c0_43] : memref<25x6x1xf32, #tpu.memory_space<vmem>>, vector<1x6x1xf32>
    %100 = vector.shape_cast %99 : vector<1x6x1xf32> to vector<6x1xf32>
    %101 = vector.broadcast %100 : vector<6x1xf32> to vector<6x224xf32>
    %102 = vector.broadcast %98 : vector<1x224xf32> to vector<6x224xf32>
    %103 = arith.mulf %101, %102 : vector<6x224xf32>
    %104 = arith.addf %97, %103 : vector<6x224xf32>
    %105 = vector.extract_strided_slice %1 {offsets = [0, 18], sizes = [1, 224], strides = [1, 1]} : vector<1x272xf32> to vector<1x224xf32>
    %c14 = arith.constant 14 : index
    %c0_44 = arith.constant 0 : index
    %c0_45 = arith.constant 0 : index
    %106 = vector.load %arg2[%c14, %c0_44, %c0_45] : memref<25x6x1xf32, #tpu.memory_space<vmem>>, vector<1x6x1xf32>
    %107 = vector.shape_cast %106 : vector<1x6x1xf32> to vector<6x1xf32>
    %108 = vector.broadcast %107 : vector<6x1xf32> to vector<6x224xf32>
    %109 = vector.broadcast %105 : vector<1x224xf32> to vector<6x224xf32>
    %110 = arith.mulf %108, %109 : vector<6x224xf32>
    %111 = arith.addf %104, %110 : vector<6x224xf32>
    %112 = vector.extract_strided_slice %5 {offsets = [0, 16], sizes = [1, 224], strides = [1, 1]} : vector<1x272xf32> to vector<1x224xf32>
    %c15 = arith.constant 15 : index
    %c0_46 = arith.constant 0 : index
    %c0_47 = arith.constant 0 : index
    %113 = vector.load %arg2[%c15, %c0_46, %c0_47] : memref<25x6x1xf32, #tpu.memory_space<vmem>>, vector<1x6x1xf32>
    %114 = vector.shape_cast %113 : vector<1x6x1xf32> to vector<6x1xf32>
    %115 = vector.broadcast %114 : vector<6x1xf32> to vector<6x224xf32>
    %116 = vector.broadcast %112 : vector<1x224xf32> to vector<6x224xf32>
    %117 = arith.mulf %115, %116 : vector<6x224xf32>
    %118 = arith.addf %111, %117 : vector<6x224xf32>
    %119 = vector.extract_strided_slice %7 {offsets = [0, 16], sizes = [1, 224], strides = [1, 1]} : vector<1x272xf32> to vector<1x224xf32>
    %c16 = arith.constant 16 : index
    %c0_48 = arith.constant 0 : index
    %c0_49 = arith.constant 0 : index
    %120 = vector.load %arg2[%c16, %c0_48, %c0_49] : memref<25x6x1xf32, #tpu.memory_space<vmem>>, vector<1x6x1xf32>
    %121 = vector.shape_cast %120 : vector<1x6x1xf32> to vector<6x1xf32>
    %122 = vector.broadcast %121 : vector<6x1xf32> to vector<6x224xf32>
    %123 = vector.broadcast %119 : vector<1x224xf32> to vector<6x224xf32>
    %124 = arith.mulf %122, %123 : vector<6x224xf32>
    %125 = arith.addf %118, %124 : vector<6x224xf32>
    %126 = vector.extract_strided_slice %5 {offsets = [0, 17], sizes = [1, 224], strides = [1, 1]} : vector<1x272xf32> to vector<1x224xf32>
    %c17 = arith.constant 17 : index
    %c0_50 = arith.constant 0 : index
    %c0_51 = arith.constant 0 : index
    %127 = vector.load %arg2[%c17, %c0_50, %c0_51] : memref<25x6x1xf32, #tpu.memory_space<vmem>>, vector<1x6x1xf32>
    %128 = vector.shape_cast %127 : vector<1x6x1xf32> to vector<6x1xf32>
    %129 = vector.broadcast %128 : vector<6x1xf32> to vector<6x224xf32>
    %130 = vector.broadcast %126 : vector<1x224xf32> to vector<6x224xf32>
    %131 = arith.mulf %129, %130 : vector<6x224xf32>
    %132 = arith.addf %125, %131 : vector<6x224xf32>
    %133 = vector.extract_strided_slice %7 {offsets = [0, 17], sizes = [1, 224], strides = [1, 1]} : vector<1x272xf32> to vector<1x224xf32>
    %c18 = arith.constant 18 : index
    %c0_52 = arith.constant 0 : index
    %c0_53 = arith.constant 0 : index
    %134 = vector.load %arg2[%c18, %c0_52, %c0_53] : memref<25x6x1xf32, #tpu.memory_space<vmem>>, vector<1x6x1xf32>
    %135 = vector.shape_cast %134 : vector<1x6x1xf32> to vector<6x1xf32>
    %136 = vector.broadcast %135 : vector<6x1xf32> to vector<6x224xf32>
    %137 = vector.broadcast %133 : vector<1x224xf32> to vector<6x224xf32>
    %138 = arith.mulf %136, %137 : vector<6x224xf32>
    %139 = arith.addf %132, %138 : vector<6x224xf32>
    %140 = vector.extract_strided_slice %5 {offsets = [0, 18], sizes = [1, 224], strides = [1, 1]} : vector<1x272xf32> to vector<1x224xf32>
    %c19 = arith.constant 19 : index
    %c0_54 = arith.constant 0 : index
    %c0_55 = arith.constant 0 : index
    %141 = vector.load %arg2[%c19, %c0_54, %c0_55] : memref<25x6x1xf32, #tpu.memory_space<vmem>>, vector<1x6x1xf32>
    %142 = vector.shape_cast %141 : vector<1x6x1xf32> to vector<6x1xf32>
    %143 = vector.broadcast %142 : vector<6x1xf32> to vector<6x224xf32>
    %144 = vector.broadcast %140 : vector<1x224xf32> to vector<6x224xf32>
    %145 = arith.mulf %143, %144 : vector<6x224xf32>
    %146 = arith.addf %139, %145 : vector<6x224xf32>
    %147 = vector.extract_strided_slice %1 {offsets = [0, 32], sizes = [1, 224], strides = [1, 1]} : vector<1x272xf32> to vector<1x224xf32>
    %c20 = arith.constant 20 : index
    %c0_56 = arith.constant 0 : index
    %c0_57 = arith.constant 0 : index
    %148 = vector.load %arg2[%c20, %c0_56, %c0_57] : memref<25x6x1xf32, #tpu.memory_space<vmem>>, vector<1x6x1xf32>
    %149 = vector.shape_cast %148 : vector<1x6x1xf32> to vector<6x1xf32>
    %150 = vector.broadcast %149 : vector<6x1xf32> to vector<6x224xf32>
    %151 = vector.broadcast %147 : vector<1x224xf32> to vector<6x224xf32>
    %152 = arith.mulf %150, %151 : vector<6x224xf32>
    %153 = arith.addf %146, %152 : vector<6x224xf32>
    %154 = vector.extract_strided_slice %3 {offsets = [0, 32], sizes = [1, 224], strides = [1, 1]} : vector<1x272xf32> to vector<1x224xf32>
    %c21 = arith.constant 21 : index
    %c0_58 = arith.constant 0 : index
    %c0_59 = arith.constant 0 : index
    %155 = vector.load %arg2[%c21, %c0_58, %c0_59] : memref<25x6x1xf32, #tpu.memory_space<vmem>>, vector<1x6x1xf32>
    %156 = vector.shape_cast %155 : vector<1x6x1xf32> to vector<6x1xf32>
    %157 = vector.broadcast %156 : vector<6x1xf32> to vector<6x224xf32>
    %158 = vector.broadcast %154 : vector<1x224xf32> to vector<6x224xf32>
    %159 = arith.mulf %157, %158 : vector<6x224xf32>
    %160 = arith.addf %153, %159 : vector<6x224xf32>
    %161 = vector.extract_strided_slice %1 {offsets = [0, 33], sizes = [1, 224], strides = [1, 1]} : vector<1x272xf32> to vector<1x224xf32>
    %c22 = arith.constant 22 : index
    %c0_60 = arith.constant 0 : index
    %c0_61 = arith.constant 0 : index
    %162 = vector.load %arg2[%c22, %c0_60, %c0_61] : memref<25x6x1xf32, #tpu.memory_space<vmem>>, vector<1x6x1xf32>
    %163 = vector.shape_cast %162 : vector<1x6x1xf32> to vector<6x1xf32>
    %164 = vector.broadcast %163 : vector<6x1xf32> to vector<6x224xf32>
    %165 = vector.broadcast %161 : vector<1x224xf32> to vector<6x224xf32>
    %166 = arith.mulf %164, %165 : vector<6x224xf32>
    %167 = arith.addf %160, %166 : vector<6x224xf32>
    %168 = vector.extract_strided_slice %3 {offsets = [0, 33], sizes = [1, 224], strides = [1, 1]} : vector<1x272xf32> to vector<1x224xf32>
    %c23 = arith.constant 23 : index
    %c0_62 = arith.constant 0 : index
    %c0_63 = arith.constant 0 : index
    %169 = vector.load %arg2[%c23, %c0_62, %c0_63] : memref<25x6x1xf32, #tpu.memory_space<vmem>>, vector<1x6x1xf32>
    %170 = vector.shape_cast %169 : vector<1x6x1xf32> to vector<6x1xf32>
    %171 = vector.broadcast %170 : vector<6x1xf32> to vector<6x224xf32>
    %172 = vector.broadcast %168 : vector<1x224xf32> to vector<6x224xf32>
    %173 = arith.mulf %171, %172 : vector<6x224xf32>
    %174 = arith.addf %167, %173 : vector<6x224xf32>
    %175 = vector.extract_strided_slice %1 {offsets = [0, 34], sizes = [1, 224], strides = [1, 1]} : vector<1x272xf32> to vector<1x224xf32>
    %c24 = arith.constant 24 : index
    %c0_64 = arith.constant 0 : index
    %c0_65 = arith.constant 0 : index
    %176 = vector.load %arg2[%c24, %c0_64, %c0_65] : memref<25x6x1xf32, #tpu.memory_space<vmem>>, vector<1x6x1xf32>
    %177 = vector.shape_cast %176 : vector<1x6x1xf32> to vector<6x1xf32>
    %178 = vector.broadcast %177 : vector<6x1xf32> to vector<6x224xf32>
    %179 = vector.broadcast %175 : vector<1x224xf32> to vector<6x224xf32>
    %180 = arith.mulf %178, %179 : vector<6x224xf32>
    %181 = arith.addf %174, %180 : vector<6x224xf32>
    %182 = vector.extract_strided_slice %3 {offsets = [0, 0], sizes = [1, 224], strides = [1, 1]} : vector<1x272xf32> to vector<1x224xf32>
    %c0_66 = arith.constant 0 : index
    %c0_67 = arith.constant 0 : index
    %c0_68 = arith.constant 0 : index
    %183 = vector.load %arg2[%c0_66, %c0_67, %c0_68] : memref<25x6x1xf32, #tpu.memory_space<vmem>>, vector<1x6x1xf32>
    %184 = vector.shape_cast %183 : vector<1x6x1xf32> to vector<6x1xf32>
    %185 = vector.broadcast %184 : vector<6x1xf32> to vector<6x224xf32>
    %186 = vector.broadcast %182 : vector<1x224xf32> to vector<6x224xf32>
    %187 = arith.mulf %185, %186 : vector<6x224xf32>
    %188 = vector.extract_strided_slice %1 {offsets = [0, 1], sizes = [1, 224], strides = [1, 1]} : vector<1x272xf32> to vector<1x224xf32>
    %c1_69 = arith.constant 1 : index
    %c0_70 = arith.constant 0 : index
    %c0_71 = arith.constant 0 : index
    %189 = vector.load %arg2[%c1_69, %c0_70, %c0_71] : memref<25x6x1xf32, #tpu.memory_space<vmem>>, vector<1x6x1xf32>
    %190 = vector.shape_cast %189 : vector<1x6x1xf32> to vector<6x1xf32>
    %191 = vector.broadcast %190 : vector<6x1xf32> to vector<6x224xf32>
    %192 = vector.broadcast %188 : vector<1x224xf32> to vector<6x224xf32>
    %193 = arith.mulf %191, %192 : vector<6x224xf32>
    %194 = arith.addf %187, %193 : vector<6x224xf32>
    %195 = vector.extract_strided_slice %3 {offsets = [0, 1], sizes = [1, 224], strides = [1, 1]} : vector<1x272xf32> to vector<1x224xf32>
    %c2_72 = arith.constant 2 : index
    %c0_73 = arith.constant 0 : index
    %c0_74 = arith.constant 0 : index
    %196 = vector.load %arg2[%c2_72, %c0_73, %c0_74] : memref<25x6x1xf32, #tpu.memory_space<vmem>>, vector<1x6x1xf32>
    %197 = vector.shape_cast %196 : vector<1x6x1xf32> to vector<6x1xf32>
    %198 = vector.broadcast %197 : vector<6x1xf32> to vector<6x224xf32>
    %199 = vector.broadcast %195 : vector<1x224xf32> to vector<6x224xf32>
    %200 = arith.mulf %198, %199 : vector<6x224xf32>
    %201 = arith.addf %194, %200 : vector<6x224xf32>
    %202 = vector.extract_strided_slice %1 {offsets = [0, 2], sizes = [1, 224], strides = [1, 1]} : vector<1x272xf32> to vector<1x224xf32>
    %c3_75 = arith.constant 3 : index
    %c0_76 = arith.constant 0 : index
    %c0_77 = arith.constant 0 : index
    %203 = vector.load %arg2[%c3_75, %c0_76, %c0_77] : memref<25x6x1xf32, #tpu.memory_space<vmem>>, vector<1x6x1xf32>
    %204 = vector.shape_cast %203 : vector<1x6x1xf32> to vector<6x1xf32>
    %205 = vector.broadcast %204 : vector<6x1xf32> to vector<6x224xf32>
    %206 = vector.broadcast %202 : vector<1x224xf32> to vector<6x224xf32>
    %207 = arith.mulf %205, %206 : vector<6x224xf32>
    %208 = arith.addf %201, %207 : vector<6x224xf32>
    %209 = vector.extract_strided_slice %3 {offsets = [0, 2], sizes = [1, 224], strides = [1, 1]} : vector<1x272xf32> to vector<1x224xf32>
    %c4_78 = arith.constant 4 : index
    %c0_79 = arith.constant 0 : index
    %c0_80 = arith.constant 0 : index
    %210 = vector.load %arg2[%c4_78, %c0_79, %c0_80] : memref<25x6x1xf32, #tpu.memory_space<vmem>>, vector<1x6x1xf32>
    %211 = vector.shape_cast %210 : vector<1x6x1xf32> to vector<6x1xf32>
    %212 = vector.broadcast %211 : vector<6x1xf32> to vector<6x224xf32>
    %213 = vector.broadcast %209 : vector<1x224xf32> to vector<6x224xf32>
    %214 = arith.mulf %212, %213 : vector<6x224xf32>
    %215 = arith.addf %208, %214 : vector<6x224xf32>
    %216 = vector.extract_strided_slice %7 {offsets = [0, 0], sizes = [1, 224], strides = [1, 1]} : vector<1x272xf32> to vector<1x224xf32>
    %c5_81 = arith.constant 5 : index
    %c0_82 = arith.constant 0 : index
    %c0_83 = arith.constant 0 : index
    %217 = vector.load %arg2[%c5_81, %c0_82, %c0_83] : memref<25x6x1xf32, #tpu.memory_space<vmem>>, vector<1x6x1xf32>
    %218 = vector.shape_cast %217 : vector<1x6x1xf32> to vector<6x1xf32>
    %219 = vector.broadcast %218 : vector<6x1xf32> to vector<6x224xf32>
    %220 = vector.broadcast %216 : vector<1x224xf32> to vector<6x224xf32>
    %221 = arith.mulf %219, %220 : vector<6x224xf32>
    %222 = arith.addf %215, %221 : vector<6x224xf32>
    %223 = vector.extract_strided_slice %5 {offsets = [0, 1], sizes = [1, 224], strides = [1, 1]} : vector<1x272xf32> to vector<1x224xf32>
    %c6_84 = arith.constant 6 : index
    %c0_85 = arith.constant 0 : index
    %c0_86 = arith.constant 0 : index
    %224 = vector.load %arg2[%c6_84, %c0_85, %c0_86] : memref<25x6x1xf32, #tpu.memory_space<vmem>>, vector<1x6x1xf32>
    %225 = vector.shape_cast %224 : vector<1x6x1xf32> to vector<6x1xf32>
    %226 = vector.broadcast %225 : vector<6x1xf32> to vector<6x224xf32>
    %227 = vector.broadcast %223 : vector<1x224xf32> to vector<6x224xf32>
    %228 = arith.mulf %226, %227 : vector<6x224xf32>
    %229 = arith.addf %222, %228 : vector<6x224xf32>
    %230 = vector.extract_strided_slice %7 {offsets = [0, 1], sizes = [1, 224], strides = [1, 1]} : vector<1x272xf32> to vector<1x224xf32>
    %c7_87 = arith.constant 7 : index
    %c0_88 = arith.constant 0 : index
    %c0_89 = arith.constant 0 : index
    %231 = vector.load %arg2[%c7_87, %c0_88, %c0_89] : memref<25x6x1xf32, #tpu.memory_space<vmem>>, vector<1x6x1xf32>
    %232 = vector.shape_cast %231 : vector<1x6x1xf32> to vector<6x1xf32>
    %233 = vector.broadcast %232 : vector<6x1xf32> to vector<6x224xf32>
    %234 = vector.broadcast %230 : vector<1x224xf32> to vector<6x224xf32>
    %235 = arith.mulf %233, %234 : vector<6x224xf32>
    %236 = arith.addf %229, %235 : vector<6x224xf32>
    %237 = vector.extract_strided_slice %5 {offsets = [0, 2], sizes = [1, 224], strides = [1, 1]} : vector<1x272xf32> to vector<1x224xf32>
    %c8_90 = arith.constant 8 : index
    %c0_91 = arith.constant 0 : index
    %c0_92 = arith.constant 0 : index
    %238 = vector.load %arg2[%c8_90, %c0_91, %c0_92] : memref<25x6x1xf32, #tpu.memory_space<vmem>>, vector<1x6x1xf32>
    %239 = vector.shape_cast %238 : vector<1x6x1xf32> to vector<6x1xf32>
    %240 = vector.broadcast %239 : vector<6x1xf32> to vector<6x224xf32>
    %241 = vector.broadcast %237 : vector<1x224xf32> to vector<6x224xf32>
    %242 = arith.mulf %240, %241 : vector<6x224xf32>
    %243 = arith.addf %236, %242 : vector<6x224xf32>
    %244 = vector.extract_strided_slice %7 {offsets = [0, 2], sizes = [1, 224], strides = [1, 1]} : vector<1x272xf32> to vector<1x224xf32>
    %c9_93 = arith.constant 9 : index
    %c0_94 = arith.constant 0 : index
    %c0_95 = arith.constant 0 : index
    %245 = vector.load %arg2[%c9_93, %c0_94, %c0_95] : memref<25x6x1xf32, #tpu.memory_space<vmem>>, vector<1x6x1xf32>
    %246 = vector.shape_cast %245 : vector<1x6x1xf32> to vector<6x1xf32>
    %247 = vector.broadcast %246 : vector<6x1xf32> to vector<6x224xf32>
    %248 = vector.broadcast %244 : vector<1x224xf32> to vector<6x224xf32>
    %249 = arith.mulf %247, %248 : vector<6x224xf32>
    %250 = arith.addf %243, %249 : vector<6x224xf32>
    %251 = vector.extract_strided_slice %3 {offsets = [0, 16], sizes = [1, 224], strides = [1, 1]} : vector<1x272xf32> to vector<1x224xf32>
    %c10_96 = arith.constant 10 : index
    %c0_97 = arith.constant 0 : index
    %c0_98 = arith.constant 0 : index
    %252 = vector.load %arg2[%c10_96, %c0_97, %c0_98] : memref<25x6x1xf32, #tpu.memory_space<vmem>>, vector<1x6x1xf32>
    %253 = vector.shape_cast %252 : vector<1x6x1xf32> to vector<6x1xf32>
    %254 = vector.broadcast %253 : vector<6x1xf32> to vector<6x224xf32>
    %255 = vector.broadcast %251 : vector<1x224xf32> to vector<6x224xf32>
    %256 = arith.mulf %254, %255 : vector<6x224xf32>
    %257 = arith.addf %250, %256 : vector<6x224xf32>
    %258 = vector.extract_strided_slice %1 {offsets = [0, 17], sizes = [1, 224], strides = [1, 1]} : vector<1x272xf32> to vector<1x224xf32>
    %c11_99 = arith.constant 11 : index
    %c0_100 = arith.constant 0 : index
    %c0_101 = arith.constant 0 : index
    %259 = vector.load %arg2[%c11_99, %c0_100, %c0_101] : memref<25x6x1xf32, #tpu.memory_space<vmem>>, vector<1x6x1xf32>
    %260 = vector.shape_cast %259 : vector<1x6x1xf32> to vector<6x1xf32>
    %261 = vector.broadcast %260 : vector<6x1xf32> to vector<6x224xf32>
    %262 = vector.broadcast %258 : vector<1x224xf32> to vector<6x224xf32>
    %263 = arith.mulf %261, %262 : vector<6x224xf32>
    %264 = arith.addf %257, %263 : vector<6x224xf32>
    %265 = vector.extract_strided_slice %3 {offsets = [0, 17], sizes = [1, 224], strides = [1, 1]} : vector<1x272xf32> to vector<1x224xf32>
    %c12_102 = arith.constant 12 : index
    %c0_103 = arith.constant 0 : index
    %c0_104 = arith.constant 0 : index
    %266 = vector.load %arg2[%c12_102, %c0_103, %c0_104] : memref<25x6x1xf32, #tpu.memory_space<vmem>>, vector<1x6x1xf32>
    %267 = vector.shape_cast %266 : vector<1x6x1xf32> to vector<6x1xf32>
    %268 = vector.broadcast %267 : vector<6x1xf32> to vector<6x224xf32>
    %269 = vector.broadcast %265 : vector<1x224xf32> to vector<6x224xf32>
    %270 = arith.mulf %268, %269 : vector<6x224xf32>
    %271 = arith.addf %264, %270 : vector<6x224xf32>
    %272 = vector.extract_strided_slice %1 {offsets = [0, 18], sizes = [1, 224], strides = [1, 1]} : vector<1x272xf32> to vector<1x224xf32>
    %c13_105 = arith.constant 13 : index
    %c0_106 = arith.constant 0 : index
    %c0_107 = arith.constant 0 : index
    %273 = vector.load %arg2[%c13_105, %c0_106, %c0_107] : memref<25x6x1xf32, #tpu.memory_space<vmem>>, vector<1x6x1xf32>
    %274 = vector.shape_cast %273 : vector<1x6x1xf32> to vector<6x1xf32>
    %275 = vector.broadcast %274 : vector<6x1xf32> to vector<6x224xf32>
    %276 = vector.broadcast %272 : vector<1x224xf32> to vector<6x224xf32>
    %277 = arith.mulf %275, %276 : vector<6x224xf32>
    %278 = arith.addf %271, %277 : vector<6x224xf32>
    %279 = vector.extract_strided_slice %3 {offsets = [0, 18], sizes = [1, 224], strides = [1, 1]} : vector<1x272xf32> to vector<1x224xf32>
    %c14_108 = arith.constant 14 : index
    %c0_109 = arith.constant 0 : index
    %c0_110 = arith.constant 0 : index
    %280 = vector.load %arg2[%c14_108, %c0_109, %c0_110] : memref<25x6x1xf32, #tpu.memory_space<vmem>>, vector<1x6x1xf32>
    %281 = vector.shape_cast %280 : vector<1x6x1xf32> to vector<6x1xf32>
    %282 = vector.broadcast %281 : vector<6x1xf32> to vector<6x224xf32>
    %283 = vector.broadcast %279 : vector<1x224xf32> to vector<6x224xf32>
    %284 = arith.mulf %282, %283 : vector<6x224xf32>
    %285 = arith.addf %278, %284 : vector<6x224xf32>
    %286 = vector.extract_strided_slice %7 {offsets = [0, 16], sizes = [1, 224], strides = [1, 1]} : vector<1x272xf32> to vector<1x224xf32>
    %c15_111 = arith.constant 15 : index
    %c0_112 = arith.constant 0 : index
    %c0_113 = arith.constant 0 : index
    %287 = vector.load %arg2[%c15_111, %c0_112, %c0_113] : memref<25x6x1xf32, #tpu.memory_space<vmem>>, vector<1x6x1xf32>
    %288 = vector.shape_cast %287 : vector<1x6x1xf32> to vector<6x1xf32>
    %289 = vector.broadcast %288 : vector<6x1xf32> to vector<6x224xf32>
    %290 = vector.broadcast %286 : vector<1x224xf32> to vector<6x224xf32>
    %291 = arith.mulf %289, %290 : vector<6x224xf32>
    %292 = arith.addf %285, %291 : vector<6x224xf32>
    %293 = vector.extract_strided_slice %5 {offsets = [0, 17], sizes = [1, 224], strides = [1, 1]} : vector<1x272xf32> to vector<1x224xf32>
    %c16_114 = arith.constant 16 : index
    %c0_115 = arith.constant 0 : index
    %c0_116 = arith.constant 0 : index
    %294 = vector.load %arg2[%c16_114, %c0_115, %c0_116] : memref<25x6x1xf32, #tpu.memory_space<vmem>>, vector<1x6x1xf32>
    %295 = vector.shape_cast %294 : vector<1x6x1xf32> to vector<6x1xf32>
    %296 = vector.broadcast %295 : vector<6x1xf32> to vector<6x224xf32>
    %297 = vector.broadcast %293 : vector<1x224xf32> to vector<6x224xf32>
    %298 = arith.mulf %296, %297 : vector<6x224xf32>
    %299 = arith.addf %292, %298 : vector<6x224xf32>
    %300 = vector.extract_strided_slice %7 {offsets = [0, 17], sizes = [1, 224], strides = [1, 1]} : vector<1x272xf32> to vector<1x224xf32>
    %c17_117 = arith.constant 17 : index
    %c0_118 = arith.constant 0 : index
    %c0_119 = arith.constant 0 : index
    %301 = vector.load %arg2[%c17_117, %c0_118, %c0_119] : memref<25x6x1xf32, #tpu.memory_space<vmem>>, vector<1x6x1xf32>
    %302 = vector.shape_cast %301 : vector<1x6x1xf32> to vector<6x1xf32>
    %303 = vector.broadcast %302 : vector<6x1xf32> to vector<6x224xf32>
    %304 = vector.broadcast %300 : vector<1x224xf32> to vector<6x224xf32>
    %305 = arith.mulf %303, %304 : vector<6x224xf32>
    %306 = arith.addf %299, %305 : vector<6x224xf32>
    %307 = vector.extract_strided_slice %5 {offsets = [0, 18], sizes = [1, 224], strides = [1, 1]} : vector<1x272xf32> to vector<1x224xf32>
    %c18_120 = arith.constant 18 : index
    %c0_121 = arith.constant 0 : index
    %c0_122 = arith.constant 0 : index
    %308 = vector.load %arg2[%c18_120, %c0_121, %c0_122] : memref<25x6x1xf32, #tpu.memory_space<vmem>>, vector<1x6x1xf32>
    %309 = vector.shape_cast %308 : vector<1x6x1xf32> to vector<6x1xf32>
    %310 = vector.broadcast %309 : vector<6x1xf32> to vector<6x224xf32>
    %311 = vector.broadcast %307 : vector<1x224xf32> to vector<6x224xf32>
    %312 = arith.mulf %310, %311 : vector<6x224xf32>
    %313 = arith.addf %306, %312 : vector<6x224xf32>
    %314 = vector.extract_strided_slice %7 {offsets = [0, 18], sizes = [1, 224], strides = [1, 1]} : vector<1x272xf32> to vector<1x224xf32>
    %c19_123 = arith.constant 19 : index
    %c0_124 = arith.constant 0 : index
    %c0_125 = arith.constant 0 : index
    %315 = vector.load %arg2[%c19_123, %c0_124, %c0_125] : memref<25x6x1xf32, #tpu.memory_space<vmem>>, vector<1x6x1xf32>
    %316 = vector.shape_cast %315 : vector<1x6x1xf32> to vector<6x1xf32>
    %317 = vector.broadcast %316 : vector<6x1xf32> to vector<6x224xf32>
    %318 = vector.broadcast %314 : vector<1x224xf32> to vector<6x224xf32>
    %319 = arith.mulf %317, %318 : vector<6x224xf32>
    %320 = arith.addf %313, %319 : vector<6x224xf32>
    %321 = vector.extract_strided_slice %3 {offsets = [0, 32], sizes = [1, 224], strides = [1, 1]} : vector<1x272xf32> to vector<1x224xf32>
    %c20_126 = arith.constant 20 : index
    %c0_127 = arith.constant 0 : index
    %c0_128 = arith.constant 0 : index
    %322 = vector.load %arg2[%c20_126, %c0_127, %c0_128] : memref<25x6x1xf32, #tpu.memory_space<vmem>>, vector<1x6x1xf32>
    %323 = vector.shape_cast %322 : vector<1x6x1xf32> to vector<6x1xf32>
    %324 = vector.broadcast %323 : vector<6x1xf32> to vector<6x224xf32>
    %325 = vector.broadcast %321 : vector<1x224xf32> to vector<6x224xf32>
    %326 = arith.mulf %324, %325 : vector<6x224xf32>
    %327 = arith.addf %320, %326 : vector<6x224xf32>
    %328 = vector.extract_strided_slice %1 {offsets = [0, 33], sizes = [1, 224], strides = [1, 1]} : vector<1x272xf32> to vector<1x224xf32>
    %c21_129 = arith.constant 21 : index
    %c0_130 = arith.constant 0 : index
    %c0_131 = arith.constant 0 : index
    %329 = vector.load %arg2[%c21_129, %c0_130, %c0_131] : memref<25x6x1xf32, #tpu.memory_space<vmem>>, vector<1x6x1xf32>
    %330 = vector.shape_cast %329 : vector<1x6x1xf32> to vector<6x1xf32>
    %331 = vector.broadcast %330 : vector<6x1xf32> to vector<6x224xf32>
    %332 = vector.broadcast %328 : vector<1x224xf32> to vector<6x224xf32>
    %333 = arith.mulf %331, %332 : vector<6x224xf32>
    %334 = arith.addf %327, %333 : vector<6x224xf32>
    %335 = vector.extract_strided_slice %3 {offsets = [0, 33], sizes = [1, 224], strides = [1, 1]} : vector<1x272xf32> to vector<1x224xf32>
    %c22_132 = arith.constant 22 : index
    %c0_133 = arith.constant 0 : index
    %c0_134 = arith.constant 0 : index
    %336 = vector.load %arg2[%c22_132, %c0_133, %c0_134] : memref<25x6x1xf32, #tpu.memory_space<vmem>>, vector<1x6x1xf32>
    %337 = vector.shape_cast %336 : vector<1x6x1xf32> to vector<6x1xf32>
    %338 = vector.broadcast %337 : vector<6x1xf32> to vector<6x224xf32>
    %339 = vector.broadcast %335 : vector<1x224xf32> to vector<6x224xf32>
    %340 = arith.mulf %338, %339 : vector<6x224xf32>
    %341 = arith.addf %334, %340 : vector<6x224xf32>
    %342 = vector.extract_strided_slice %1 {offsets = [0, 34], sizes = [1, 224], strides = [1, 1]} : vector<1x272xf32> to vector<1x224xf32>
    %c23_135 = arith.constant 23 : index
    %c0_136 = arith.constant 0 : index
    %c0_137 = arith.constant 0 : index
    %343 = vector.load %arg2[%c23_135, %c0_136, %c0_137] : memref<25x6x1xf32, #tpu.memory_space<vmem>>, vector<1x6x1xf32>
    %344 = vector.shape_cast %343 : vector<1x6x1xf32> to vector<6x1xf32>
    %345 = vector.broadcast %344 : vector<6x1xf32> to vector<6x224xf32>
    %346 = vector.broadcast %342 : vector<1x224xf32> to vector<6x224xf32>
    %347 = arith.mulf %345, %346 : vector<6x224xf32>
    %348 = arith.addf %341, %347 : vector<6x224xf32>
    %349 = vector.extract_strided_slice %3 {offsets = [0, 34], sizes = [1, 224], strides = [1, 1]} : vector<1x272xf32> to vector<1x224xf32>
    %c24_138 = arith.constant 24 : index
    %c0_139 = arith.constant 0 : index
    %c0_140 = arith.constant 0 : index
    %350 = vector.load %arg2[%c24_138, %c0_139, %c0_140] : memref<25x6x1xf32, #tpu.memory_space<vmem>>, vector<1x6x1xf32>
    %351 = vector.shape_cast %350 : vector<1x6x1xf32> to vector<6x1xf32>
    %352 = vector.broadcast %351 : vector<6x1xf32> to vector<6x224xf32>
    %353 = vector.broadcast %349 : vector<1x224xf32> to vector<6x224xf32>
    %354 = arith.mulf %352, %353 : vector<6x224xf32>
    %355 = arith.addf %348, %354 : vector<6x224xf32>
    %356 = arith.maximumf %181, %355 : vector<6x224xf32>
    %357 = vector.extract_strided_slice %5 {offsets = [0, 0], sizes = [1, 224], strides = [1, 1]} : vector<1x272xf32> to vector<1x224xf32>
    %c0_141 = arith.constant 0 : index
    %c0_142 = arith.constant 0 : index
    %c0_143 = arith.constant 0 : index
    %358 = vector.load %arg2[%c0_141, %c0_142, %c0_143] : memref<25x6x1xf32, #tpu.memory_space<vmem>>, vector<1x6x1xf32>
    %359 = vector.shape_cast %358 : vector<1x6x1xf32> to vector<6x1xf32>
    %360 = vector.broadcast %359 : vector<6x1xf32> to vector<6x224xf32>
    %361 = vector.broadcast %357 : vector<1x224xf32> to vector<6x224xf32>
    %362 = arith.mulf %360, %361 : vector<6x224xf32>
    %363 = vector.extract_strided_slice %7 {offsets = [0, 0], sizes = [1, 224], strides = [1, 1]} : vector<1x272xf32> to vector<1x224xf32>
    %c1_144 = arith.constant 1 : index
    %c0_145 = arith.constant 0 : index
    %c0_146 = arith.constant 0 : index
    %364 = vector.load %arg2[%c1_144, %c0_145, %c0_146] : memref<25x6x1xf32, #tpu.memory_space<vmem>>, vector<1x6x1xf32>
    %365 = vector.shape_cast %364 : vector<1x6x1xf32> to vector<6x1xf32>
    %366 = vector.broadcast %365 : vector<6x1xf32> to vector<6x224xf32>
    %367 = vector.broadcast %363 : vector<1x224xf32> to vector<6x224xf32>
    %368 = arith.mulf %366, %367 : vector<6x224xf32>
    %369 = arith.addf %362, %368 : vector<6x224xf32>
    %370 = vector.extract_strided_slice %5 {offsets = [0, 1], sizes = [1, 224], strides = [1, 1]} : vector<1x272xf32> to vector<1x224xf32>
    %c2_147 = arith.constant 2 : index
    %c0_148 = arith.constant 0 : index
    %c0_149 = arith.constant 0 : index
    %371 = vector.load %arg2[%c2_147, %c0_148, %c0_149] : memref<25x6x1xf32, #tpu.memory_space<vmem>>, vector<1x6x1xf32>
    %372 = vector.shape_cast %371 : vector<1x6x1xf32> to vector<6x1xf32>
    %373 = vector.broadcast %372 : vector<6x1xf32> to vector<6x224xf32>
    %374 = vector.broadcast %370 : vector<1x224xf32> to vector<6x224xf32>
    %375 = arith.mulf %373, %374 : vector<6x224xf32>
    %376 = arith.addf %369, %375 : vector<6x224xf32>
    %377 = vector.extract_strided_slice %7 {offsets = [0, 1], sizes = [1, 224], strides = [1, 1]} : vector<1x272xf32> to vector<1x224xf32>
    %c3_150 = arith.constant 3 : index
    %c0_151 = arith.constant 0 : index
    %c0_152 = arith.constant 0 : index
    %378 = vector.load %arg2[%c3_150, %c0_151, %c0_152] : memref<25x6x1xf32, #tpu.memory_space<vmem>>, vector<1x6x1xf32>
    %379 = vector.shape_cast %378 : vector<1x6x1xf32> to vector<6x1xf32>
    %380 = vector.broadcast %379 : vector<6x1xf32> to vector<6x224xf32>
    %381 = vector.broadcast %377 : vector<1x224xf32> to vector<6x224xf32>
    %382 = arith.mulf %380, %381 : vector<6x224xf32>
    %383 = arith.addf %376, %382 : vector<6x224xf32>
    %384 = vector.extract_strided_slice %5 {offsets = [0, 2], sizes = [1, 224], strides = [1, 1]} : vector<1x272xf32> to vector<1x224xf32>
    %c4_153 = arith.constant 4 : index
    %c0_154 = arith.constant 0 : index
    %c0_155 = arith.constant 0 : index
    %385 = vector.load %arg2[%c4_153, %c0_154, %c0_155] : memref<25x6x1xf32, #tpu.memory_space<vmem>>, vector<1x6x1xf32>
    %386 = vector.shape_cast %385 : vector<1x6x1xf32> to vector<6x1xf32>
    %387 = vector.broadcast %386 : vector<6x1xf32> to vector<6x224xf32>
    %388 = vector.broadcast %384 : vector<1x224xf32> to vector<6x224xf32>
    %389 = arith.mulf %387, %388 : vector<6x224xf32>
    %390 = arith.addf %383, %389 : vector<6x224xf32>
    %391 = vector.extract_strided_slice %1 {offsets = [0, 16], sizes = [1, 224], strides = [1, 1]} : vector<1x272xf32> to vector<1x224xf32>
    %c5_156 = arith.constant 5 : index
    %c0_157 = arith.constant 0 : index
    %c0_158 = arith.constant 0 : index
    %392 = vector.load %arg2[%c5_156, %c0_157, %c0_158] : memref<25x6x1xf32, #tpu.memory_space<vmem>>, vector<1x6x1xf32>
    %393 = vector.shape_cast %392 : vector<1x6x1xf32> to vector<6x1xf32>
    %394 = vector.broadcast %393 : vector<6x1xf32> to vector<6x224xf32>
    %395 = vector.broadcast %391 : vector<1x224xf32> to vector<6x224xf32>
    %396 = arith.mulf %394, %395 : vector<6x224xf32>
    %397 = arith.addf %390, %396 : vector<6x224xf32>
    %398 = vector.extract_strided_slice %3 {offsets = [0, 16], sizes = [1, 224], strides = [1, 1]} : vector<1x272xf32> to vector<1x224xf32>
    %c6_159 = arith.constant 6 : index
    %c0_160 = arith.constant 0 : index
    %c0_161 = arith.constant 0 : index
    %399 = vector.load %arg2[%c6_159, %c0_160, %c0_161] : memref<25x6x1xf32, #tpu.memory_space<vmem>>, vector<1x6x1xf32>
    %400 = vector.shape_cast %399 : vector<1x6x1xf32> to vector<6x1xf32>
    %401 = vector.broadcast %400 : vector<6x1xf32> to vector<6x224xf32>
    %402 = vector.broadcast %398 : vector<1x224xf32> to vector<6x224xf32>
    %403 = arith.mulf %401, %402 : vector<6x224xf32>
    %404 = arith.addf %397, %403 : vector<6x224xf32>
    %405 = vector.extract_strided_slice %1 {offsets = [0, 17], sizes = [1, 224], strides = [1, 1]} : vector<1x272xf32> to vector<1x224xf32>
    %c7_162 = arith.constant 7 : index
    %c0_163 = arith.constant 0 : index
    %c0_164 = arith.constant 0 : index
    %406 = vector.load %arg2[%c7_162, %c0_163, %c0_164] : memref<25x6x1xf32, #tpu.memory_space<vmem>>, vector<1x6x1xf32>
    %407 = vector.shape_cast %406 : vector<1x6x1xf32> to vector<6x1xf32>
    %408 = vector.broadcast %407 : vector<6x1xf32> to vector<6x224xf32>
    %409 = vector.broadcast %405 : vector<1x224xf32> to vector<6x224xf32>
    %410 = arith.mulf %408, %409 : vector<6x224xf32>
    %411 = arith.addf %404, %410 : vector<6x224xf32>
    %412 = vector.extract_strided_slice %3 {offsets = [0, 17], sizes = [1, 224], strides = [1, 1]} : vector<1x272xf32> to vector<1x224xf32>
    %c8_165 = arith.constant 8 : index
    %c0_166 = arith.constant 0 : index
    %c0_167 = arith.constant 0 : index
    %413 = vector.load %arg2[%c8_165, %c0_166, %c0_167] : memref<25x6x1xf32, #tpu.memory_space<vmem>>, vector<1x6x1xf32>
    %414 = vector.shape_cast %413 : vector<1x6x1xf32> to vector<6x1xf32>
    %415 = vector.broadcast %414 : vector<6x1xf32> to vector<6x224xf32>
    %416 = vector.broadcast %412 : vector<1x224xf32> to vector<6x224xf32>
    %417 = arith.mulf %415, %416 : vector<6x224xf32>
    %418 = arith.addf %411, %417 : vector<6x224xf32>
    %419 = vector.extract_strided_slice %1 {offsets = [0, 18], sizes = [1, 224], strides = [1, 1]} : vector<1x272xf32> to vector<1x224xf32>
    %c9_168 = arith.constant 9 : index
    %c0_169 = arith.constant 0 : index
    %c0_170 = arith.constant 0 : index
    %420 = vector.load %arg2[%c9_168, %c0_169, %c0_170] : memref<25x6x1xf32, #tpu.memory_space<vmem>>, vector<1x6x1xf32>
    %421 = vector.shape_cast %420 : vector<1x6x1xf32> to vector<6x1xf32>
    %422 = vector.broadcast %421 : vector<6x1xf32> to vector<6x224xf32>
    %423 = vector.broadcast %419 : vector<1x224xf32> to vector<6x224xf32>
    %424 = arith.mulf %422, %423 : vector<6x224xf32>
    %425 = arith.addf %418, %424 : vector<6x224xf32>
    %426 = vector.extract_strided_slice %5 {offsets = [0, 16], sizes = [1, 224], strides = [1, 1]} : vector<1x272xf32> to vector<1x224xf32>
    %c10_171 = arith.constant 10 : index
    %c0_172 = arith.constant 0 : index
    %c0_173 = arith.constant 0 : index
    %427 = vector.load %arg2[%c10_171, %c0_172, %c0_173] : memref<25x6x1xf32, #tpu.memory_space<vmem>>, vector<1x6x1xf32>
    %428 = vector.shape_cast %427 : vector<1x6x1xf32> to vector<6x1xf32>
    %429 = vector.broadcast %428 : vector<6x1xf32> to vector<6x224xf32>
    %430 = vector.broadcast %426 : vector<1x224xf32> to vector<6x224xf32>
    %431 = arith.mulf %429, %430 : vector<6x224xf32>
    %432 = arith.addf %425, %431 : vector<6x224xf32>
    %433 = vector.extract_strided_slice %7 {offsets = [0, 16], sizes = [1, 224], strides = [1, 1]} : vector<1x272xf32> to vector<1x224xf32>
    %c11_174 = arith.constant 11 : index
    %c0_175 = arith.constant 0 : index
    %c0_176 = arith.constant 0 : index
    %434 = vector.load %arg2[%c11_174, %c0_175, %c0_176] : memref<25x6x1xf32, #tpu.memory_space<vmem>>, vector<1x6x1xf32>
    %435 = vector.shape_cast %434 : vector<1x6x1xf32> to vector<6x1xf32>
    %436 = vector.broadcast %435 : vector<6x1xf32> to vector<6x224xf32>
    %437 = vector.broadcast %433 : vector<1x224xf32> to vector<6x224xf32>
    %438 = arith.mulf %436, %437 : vector<6x224xf32>
    %439 = arith.addf %432, %438 : vector<6x224xf32>
    %440 = vector.extract_strided_slice %5 {offsets = [0, 17], sizes = [1, 224], strides = [1, 1]} : vector<1x272xf32> to vector<1x224xf32>
    %c12_177 = arith.constant 12 : index
    %c0_178 = arith.constant 0 : index
    %c0_179 = arith.constant 0 : index
    %441 = vector.load %arg2[%c12_177, %c0_178, %c0_179] : memref<25x6x1xf32, #tpu.memory_space<vmem>>, vector<1x6x1xf32>
    %442 = vector.shape_cast %441 : vector<1x6x1xf32> to vector<6x1xf32>
    %443 = vector.broadcast %442 : vector<6x1xf32> to vector<6x224xf32>
    %444 = vector.broadcast %440 : vector<1x224xf32> to vector<6x224xf32>
    %445 = arith.mulf %443, %444 : vector<6x224xf32>
    %446 = arith.addf %439, %445 : vector<6x224xf32>
    %447 = vector.extract_strided_slice %7 {offsets = [0, 17], sizes = [1, 224], strides = [1, 1]} : vector<1x272xf32> to vector<1x224xf32>
    %c13_180 = arith.constant 13 : index
    %c0_181 = arith.constant 0 : index
    %c0_182 = arith.constant 0 : index
    %448 = vector.load %arg2[%c13_180, %c0_181, %c0_182] : memref<25x6x1xf32, #tpu.memory_space<vmem>>, vector<1x6x1xf32>
    %449 = vector.shape_cast %448 : vector<1x6x1xf32> to vector<6x1xf32>
    %450 = vector.broadcast %449 : vector<6x1xf32> to vector<6x224xf32>
    %451 = vector.broadcast %447 : vector<1x224xf32> to vector<6x224xf32>
    %452 = arith.mulf %450, %451 : vector<6x224xf32>
    %453 = arith.addf %446, %452 : vector<6x224xf32>
    %454 = vector.extract_strided_slice %5 {offsets = [0, 18], sizes = [1, 224], strides = [1, 1]} : vector<1x272xf32> to vector<1x224xf32>
    %c14_183 = arith.constant 14 : index
    %c0_184 = arith.constant 0 : index
    %c0_185 = arith.constant 0 : index
    %455 = vector.load %arg2[%c14_183, %c0_184, %c0_185] : memref<25x6x1xf32, #tpu.memory_space<vmem>>, vector<1x6x1xf32>
    %456 = vector.shape_cast %455 : vector<1x6x1xf32> to vector<6x1xf32>
    %457 = vector.broadcast %456 : vector<6x1xf32> to vector<6x224xf32>
    %458 = vector.broadcast %454 : vector<1x224xf32> to vector<6x224xf32>
    %459 = arith.mulf %457, %458 : vector<6x224xf32>
    %460 = arith.addf %453, %459 : vector<6x224xf32>
    %461 = vector.extract_strided_slice %1 {offsets = [0, 32], sizes = [1, 224], strides = [1, 1]} : vector<1x272xf32> to vector<1x224xf32>
    %c15_186 = arith.constant 15 : index
    %c0_187 = arith.constant 0 : index
    %c0_188 = arith.constant 0 : index
    %462 = vector.load %arg2[%c15_186, %c0_187, %c0_188] : memref<25x6x1xf32, #tpu.memory_space<vmem>>, vector<1x6x1xf32>
    %463 = vector.shape_cast %462 : vector<1x6x1xf32> to vector<6x1xf32>
    %464 = vector.broadcast %463 : vector<6x1xf32> to vector<6x224xf32>
    %465 = vector.broadcast %461 : vector<1x224xf32> to vector<6x224xf32>
    %466 = arith.mulf %464, %465 : vector<6x224xf32>
    %467 = arith.addf %460, %466 : vector<6x224xf32>
    %468 = vector.extract_strided_slice %3 {offsets = [0, 32], sizes = [1, 224], strides = [1, 1]} : vector<1x272xf32> to vector<1x224xf32>
    %c16_189 = arith.constant 16 : index
    %c0_190 = arith.constant 0 : index
    %c0_191 = arith.constant 0 : index
    %469 = vector.load %arg2[%c16_189, %c0_190, %c0_191] : memref<25x6x1xf32, #tpu.memory_space<vmem>>, vector<1x6x1xf32>
    %470 = vector.shape_cast %469 : vector<1x6x1xf32> to vector<6x1xf32>
    %471 = vector.broadcast %470 : vector<6x1xf32> to vector<6x224xf32>
    %472 = vector.broadcast %468 : vector<1x224xf32> to vector<6x224xf32>
    %473 = arith.mulf %471, %472 : vector<6x224xf32>
    %474 = arith.addf %467, %473 : vector<6x224xf32>
    %475 = vector.extract_strided_slice %1 {offsets = [0, 33], sizes = [1, 224], strides = [1, 1]} : vector<1x272xf32> to vector<1x224xf32>
    %c17_192 = arith.constant 17 : index
    %c0_193 = arith.constant 0 : index
    %c0_194 = arith.constant 0 : index
    %476 = vector.load %arg2[%c17_192, %c0_193, %c0_194] : memref<25x6x1xf32, #tpu.memory_space<vmem>>, vector<1x6x1xf32>
    %477 = vector.shape_cast %476 : vector<1x6x1xf32> to vector<6x1xf32>
    %478 = vector.broadcast %477 : vector<6x1xf32> to vector<6x224xf32>
    %479 = vector.broadcast %475 : vector<1x224xf32> to vector<6x224xf32>
    %480 = arith.mulf %478, %479 : vector<6x224xf32>
    %481 = arith.addf %474, %480 : vector<6x224xf32>
    %482 = vector.extract_strided_slice %3 {offsets = [0, 33], sizes = [1, 224], strides = [1, 1]} : vector<1x272xf32> to vector<1x224xf32>
    %c18_195 = arith.constant 18 : index
    %c0_196 = arith.constant 0 : index
    %c0_197 = arith.constant 0 : index
    %483 = vector.load %arg2[%c18_195, %c0_196, %c0_197] : memref<25x6x1xf32, #tpu.memory_space<vmem>>, vector<1x6x1xf32>
    %484 = vector.shape_cast %483 : vector<1x6x1xf32> to vector<6x1xf32>
    %485 = vector.broadcast %484 : vector<6x1xf32> to vector<6x224xf32>
    %486 = vector.broadcast %482 : vector<1x224xf32> to vector<6x224xf32>
    %487 = arith.mulf %485, %486 : vector<6x224xf32>
    %488 = arith.addf %481, %487 : vector<6x224xf32>
    %489 = vector.extract_strided_slice %1 {offsets = [0, 34], sizes = [1, 224], strides = [1, 1]} : vector<1x272xf32> to vector<1x224xf32>
    %c19_198 = arith.constant 19 : index
    %c0_199 = arith.constant 0 : index
    %c0_200 = arith.constant 0 : index
    %490 = vector.load %arg2[%c19_198, %c0_199, %c0_200] : memref<25x6x1xf32, #tpu.memory_space<vmem>>, vector<1x6x1xf32>
    %491 = vector.shape_cast %490 : vector<1x6x1xf32> to vector<6x1xf32>
    %492 = vector.broadcast %491 : vector<6x1xf32> to vector<6x224xf32>
    %493 = vector.broadcast %489 : vector<1x224xf32> to vector<6x224xf32>
    %494 = arith.mulf %492, %493 : vector<6x224xf32>
    %495 = arith.addf %488, %494 : vector<6x224xf32>
    %496 = vector.extract_strided_slice %5 {offsets = [0, 32], sizes = [1, 224], strides = [1, 1]} : vector<1x272xf32> to vector<1x224xf32>
    %c20_201 = arith.constant 20 : index
    %c0_202 = arith.constant 0 : index
    %c0_203 = arith.constant 0 : index
    %497 = vector.load %arg2[%c20_201, %c0_202, %c0_203] : memref<25x6x1xf32, #tpu.memory_space<vmem>>, vector<1x6x1xf32>
    %498 = vector.shape_cast %497 : vector<1x6x1xf32> to vector<6x1xf32>
    %499 = vector.broadcast %498 : vector<6x1xf32> to vector<6x224xf32>
    %500 = vector.broadcast %496 : vector<1x224xf32> to vector<6x224xf32>
    %501 = arith.mulf %499, %500 : vector<6x224xf32>
    %502 = arith.addf %495, %501 : vector<6x224xf32>
    %503 = vector.extract_strided_slice %7 {offsets = [0, 32], sizes = [1, 224], strides = [1, 1]} : vector<1x272xf32> to vector<1x224xf32>
    %c21_204 = arith.constant 21 : index
    %c0_205 = arith.constant 0 : index
    %c0_206 = arith.constant 0 : index
    %504 = vector.load %arg2[%c21_204, %c0_205, %c0_206] : memref<25x6x1xf32, #tpu.memory_space<vmem>>, vector<1x6x1xf32>
    %505 = vector.shape_cast %504 : vector<1x6x1xf32> to vector<6x1xf32>
    %506 = vector.broadcast %505 : vector<6x1xf32> to vector<6x224xf32>
    %507 = vector.broadcast %503 : vector<1x224xf32> to vector<6x224xf32>
    %508 = arith.mulf %506, %507 : vector<6x224xf32>
    %509 = arith.addf %502, %508 : vector<6x224xf32>
    %510 = vector.extract_strided_slice %5 {offsets = [0, 33], sizes = [1, 224], strides = [1, 1]} : vector<1x272xf32> to vector<1x224xf32>
    %c22_207 = arith.constant 22 : index
    %c0_208 = arith.constant 0 : index
    %c0_209 = arith.constant 0 : index
    %511 = vector.load %arg2[%c22_207, %c0_208, %c0_209] : memref<25x6x1xf32, #tpu.memory_space<vmem>>, vector<1x6x1xf32>
    %512 = vector.shape_cast %511 : vector<1x6x1xf32> to vector<6x1xf32>
    %513 = vector.broadcast %512 : vector<6x1xf32> to vector<6x224xf32>
    %514 = vector.broadcast %510 : vector<1x224xf32> to vector<6x224xf32>
    %515 = arith.mulf %513, %514 : vector<6x224xf32>
    %516 = arith.addf %509, %515 : vector<6x224xf32>
    %517 = vector.extract_strided_slice %7 {offsets = [0, 33], sizes = [1, 224], strides = [1, 1]} : vector<1x272xf32> to vector<1x224xf32>
    %c23_210 = arith.constant 23 : index
    %c0_211 = arith.constant 0 : index
    %c0_212 = arith.constant 0 : index
    %518 = vector.load %arg2[%c23_210, %c0_211, %c0_212] : memref<25x6x1xf32, #tpu.memory_space<vmem>>, vector<1x6x1xf32>
    %519 = vector.shape_cast %518 : vector<1x6x1xf32> to vector<6x1xf32>
    %520 = vector.broadcast %519 : vector<6x1xf32> to vector<6x224xf32>
    %521 = vector.broadcast %517 : vector<1x224xf32> to vector<6x224xf32>
    %522 = arith.mulf %520, %521 : vector<6x224xf32>
    %523 = arith.addf %516, %522 : vector<6x224xf32>
    %524 = vector.extract_strided_slice %5 {offsets = [0, 34], sizes = [1, 224], strides = [1, 1]} : vector<1x272xf32> to vector<1x224xf32>
    %c24_213 = arith.constant 24 : index
    %c0_214 = arith.constant 0 : index
    %c0_215 = arith.constant 0 : index
    %525 = vector.load %arg2[%c24_213, %c0_214, %c0_215] : memref<25x6x1xf32, #tpu.memory_space<vmem>>, vector<1x6x1xf32>
    %526 = vector.shape_cast %525 : vector<1x6x1xf32> to vector<6x1xf32>
    %527 = vector.broadcast %526 : vector<6x1xf32> to vector<6x224xf32>
    %528 = vector.broadcast %524 : vector<1x224xf32> to vector<6x224xf32>
    %529 = arith.mulf %527, %528 : vector<6x224xf32>
    %530 = arith.addf %523, %529 : vector<6x224xf32>
    %531 = arith.maximumf %356, %530 : vector<6x224xf32>
    %532 = vector.extract_strided_slice %7 {offsets = [0, 0], sizes = [1, 224], strides = [1, 1]} : vector<1x272xf32> to vector<1x224xf32>
    %c0_216 = arith.constant 0 : index
    %c0_217 = arith.constant 0 : index
    %c0_218 = arith.constant 0 : index
    %533 = vector.load %arg2[%c0_216, %c0_217, %c0_218] : memref<25x6x1xf32, #tpu.memory_space<vmem>>, vector<1x6x1xf32>
    %534 = vector.shape_cast %533 : vector<1x6x1xf32> to vector<6x1xf32>
    %535 = vector.broadcast %534 : vector<6x1xf32> to vector<6x224xf32>
    %536 = vector.broadcast %532 : vector<1x224xf32> to vector<6x224xf32>
    %537 = arith.mulf %535, %536 : vector<6x224xf32>
    %538 = vector.extract_strided_slice %5 {offsets = [0, 1], sizes = [1, 224], strides = [1, 1]} : vector<1x272xf32> to vector<1x224xf32>
    %c1_219 = arith.constant 1 : index
    %c0_220 = arith.constant 0 : index
    %c0_221 = arith.constant 0 : index
    %539 = vector.load %arg2[%c1_219, %c0_220, %c0_221] : memref<25x6x1xf32, #tpu.memory_space<vmem>>, vector<1x6x1xf32>
    %540 = vector.shape_cast %539 : vector<1x6x1xf32> to vector<6x1xf32>
    %541 = vector.broadcast %540 : vector<6x1xf32> to vector<6x224xf32>
    %542 = vector.broadcast %538 : vector<1x224xf32> to vector<6x224xf32>
    %543 = arith.mulf %541, %542 : vector<6x224xf32>
    %544 = arith.addf %537, %543 : vector<6x224xf32>
    %545 = vector.extract_strided_slice %7 {offsets = [0, 1], sizes = [1, 224], strides = [1, 1]} : vector<1x272xf32> to vector<1x224xf32>
    %c2_222 = arith.constant 2 : index
    %c0_223 = arith.constant 0 : index
    %c0_224 = arith.constant 0 : index
    %546 = vector.load %arg2[%c2_222, %c0_223, %c0_224] : memref<25x6x1xf32, #tpu.memory_space<vmem>>, vector<1x6x1xf32>
    %547 = vector.shape_cast %546 : vector<1x6x1xf32> to vector<6x1xf32>
    %548 = vector.broadcast %547 : vector<6x1xf32> to vector<6x224xf32>
    %549 = vector.broadcast %545 : vector<1x224xf32> to vector<6x224xf32>
    %550 = arith.mulf %548, %549 : vector<6x224xf32>
    %551 = arith.addf %544, %550 : vector<6x224xf32>
    %552 = vector.extract_strided_slice %5 {offsets = [0, 2], sizes = [1, 224], strides = [1, 1]} : vector<1x272xf32> to vector<1x224xf32>
    %c3_225 = arith.constant 3 : index
    %c0_226 = arith.constant 0 : index
    %c0_227 = arith.constant 0 : index
    %553 = vector.load %arg2[%c3_225, %c0_226, %c0_227] : memref<25x6x1xf32, #tpu.memory_space<vmem>>, vector<1x6x1xf32>
    %554 = vector.shape_cast %553 : vector<1x6x1xf32> to vector<6x1xf32>
    %555 = vector.broadcast %554 : vector<6x1xf32> to vector<6x224xf32>
    %556 = vector.broadcast %552 : vector<1x224xf32> to vector<6x224xf32>
    %557 = arith.mulf %555, %556 : vector<6x224xf32>
    %558 = arith.addf %551, %557 : vector<6x224xf32>
    %559 = vector.extract_strided_slice %7 {offsets = [0, 2], sizes = [1, 224], strides = [1, 1]} : vector<1x272xf32> to vector<1x224xf32>
    %c4_228 = arith.constant 4 : index
    %c0_229 = arith.constant 0 : index
    %c0_230 = arith.constant 0 : index
    %560 = vector.load %arg2[%c4_228, %c0_229, %c0_230] : memref<25x6x1xf32, #tpu.memory_space<vmem>>, vector<1x6x1xf32>
    %561 = vector.shape_cast %560 : vector<1x6x1xf32> to vector<6x1xf32>
    %562 = vector.broadcast %561 : vector<6x1xf32> to vector<6x224xf32>
    %563 = vector.broadcast %559 : vector<1x224xf32> to vector<6x224xf32>
    %564 = arith.mulf %562, %563 : vector<6x224xf32>
    %565 = arith.addf %558, %564 : vector<6x224xf32>
    %566 = vector.extract_strided_slice %3 {offsets = [0, 16], sizes = [1, 224], strides = [1, 1]} : vector<1x272xf32> to vector<1x224xf32>
    %c5_231 = arith.constant 5 : index
    %c0_232 = arith.constant 0 : index
    %c0_233 = arith.constant 0 : index
    %567 = vector.load %arg2[%c5_231, %c0_232, %c0_233] : memref<25x6x1xf32, #tpu.memory_space<vmem>>, vector<1x6x1xf32>
    %568 = vector.shape_cast %567 : vector<1x6x1xf32> to vector<6x1xf32>
    %569 = vector.broadcast %568 : vector<6x1xf32> to vector<6x224xf32>
    %570 = vector.broadcast %566 : vector<1x224xf32> to vector<6x224xf32>
    %571 = arith.mulf %569, %570 : vector<6x224xf32>
    %572 = arith.addf %565, %571 : vector<6x224xf32>
    %573 = vector.extract_strided_slice %1 {offsets = [0, 17], sizes = [1, 224], strides = [1, 1]} : vector<1x272xf32> to vector<1x224xf32>
    %c6_234 = arith.constant 6 : index
    %c0_235 = arith.constant 0 : index
    %c0_236 = arith.constant 0 : index
    %574 = vector.load %arg2[%c6_234, %c0_235, %c0_236] : memref<25x6x1xf32, #tpu.memory_space<vmem>>, vector<1x6x1xf32>
    %575 = vector.shape_cast %574 : vector<1x6x1xf32> to vector<6x1xf32>
    %576 = vector.broadcast %575 : vector<6x1xf32> to vector<6x224xf32>
    %577 = vector.broadcast %573 : vector<1x224xf32> to vector<6x224xf32>
    %578 = arith.mulf %576, %577 : vector<6x224xf32>
    %579 = arith.addf %572, %578 : vector<6x224xf32>
    %580 = vector.extract_strided_slice %3 {offsets = [0, 17], sizes = [1, 224], strides = [1, 1]} : vector<1x272xf32> to vector<1x224xf32>
    %c7_237 = arith.constant 7 : index
    %c0_238 = arith.constant 0 : index
    %c0_239 = arith.constant 0 : index
    %581 = vector.load %arg2[%c7_237, %c0_238, %c0_239] : memref<25x6x1xf32, #tpu.memory_space<vmem>>, vector<1x6x1xf32>
    %582 = vector.shape_cast %581 : vector<1x6x1xf32> to vector<6x1xf32>
    %583 = vector.broadcast %582 : vector<6x1xf32> to vector<6x224xf32>
    %584 = vector.broadcast %580 : vector<1x224xf32> to vector<6x224xf32>
    %585 = arith.mulf %583, %584 : vector<6x224xf32>
    %586 = arith.addf %579, %585 : vector<6x224xf32>
    %587 = vector.extract_strided_slice %1 {offsets = [0, 18], sizes = [1, 224], strides = [1, 1]} : vector<1x272xf32> to vector<1x224xf32>
    %c8_240 = arith.constant 8 : index
    %c0_241 = arith.constant 0 : index
    %c0_242 = arith.constant 0 : index
    %588 = vector.load %arg2[%c8_240, %c0_241, %c0_242] : memref<25x6x1xf32, #tpu.memory_space<vmem>>, vector<1x6x1xf32>
    %589 = vector.shape_cast %588 : vector<1x6x1xf32> to vector<6x1xf32>
    %590 = vector.broadcast %589 : vector<6x1xf32> to vector<6x224xf32>
    %591 = vector.broadcast %587 : vector<1x224xf32> to vector<6x224xf32>
    %592 = arith.mulf %590, %591 : vector<6x224xf32>
    %593 = arith.addf %586, %592 : vector<6x224xf32>
    %594 = vector.extract_strided_slice %3 {offsets = [0, 18], sizes = [1, 224], strides = [1, 1]} : vector<1x272xf32> to vector<1x224xf32>
    %c9_243 = arith.constant 9 : index
    %c0_244 = arith.constant 0 : index
    %c0_245 = arith.constant 0 : index
    %595 = vector.load %arg2[%c9_243, %c0_244, %c0_245] : memref<25x6x1xf32, #tpu.memory_space<vmem>>, vector<1x6x1xf32>
    %596 = vector.shape_cast %595 : vector<1x6x1xf32> to vector<6x1xf32>
    %597 = vector.broadcast %596 : vector<6x1xf32> to vector<6x224xf32>
    %598 = vector.broadcast %594 : vector<1x224xf32> to vector<6x224xf32>
    %599 = arith.mulf %597, %598 : vector<6x224xf32>
    %600 = arith.addf %593, %599 : vector<6x224xf32>
    %601 = vector.extract_strided_slice %7 {offsets = [0, 16], sizes = [1, 224], strides = [1, 1]} : vector<1x272xf32> to vector<1x224xf32>
    %c10_246 = arith.constant 10 : index
    %c0_247 = arith.constant 0 : index
    %c0_248 = arith.constant 0 : index
    %602 = vector.load %arg2[%c10_246, %c0_247, %c0_248] : memref<25x6x1xf32, #tpu.memory_space<vmem>>, vector<1x6x1xf32>
    %603 = vector.shape_cast %602 : vector<1x6x1xf32> to vector<6x1xf32>
    %604 = vector.broadcast %603 : vector<6x1xf32> to vector<6x224xf32>
    %605 = vector.broadcast %601 : vector<1x224xf32> to vector<6x224xf32>
    %606 = arith.mulf %604, %605 : vector<6x224xf32>
    %607 = arith.addf %600, %606 : vector<6x224xf32>
    %608 = vector.extract_strided_slice %5 {offsets = [0, 17], sizes = [1, 224], strides = [1, 1]} : vector<1x272xf32> to vector<1x224xf32>
    %c11_249 = arith.constant 11 : index
    %c0_250 = arith.constant 0 : index
    %c0_251 = arith.constant 0 : index
    %609 = vector.load %arg2[%c11_249, %c0_250, %c0_251] : memref<25x6x1xf32, #tpu.memory_space<vmem>>, vector<1x6x1xf32>
    %610 = vector.shape_cast %609 : vector<1x6x1xf32> to vector<6x1xf32>
    %611 = vector.broadcast %610 : vector<6x1xf32> to vector<6x224xf32>
    %612 = vector.broadcast %608 : vector<1x224xf32> to vector<6x224xf32>
    %613 = arith.mulf %611, %612 : vector<6x224xf32>
    %614 = arith.addf %607, %613 : vector<6x224xf32>
    %615 = vector.extract_strided_slice %7 {offsets = [0, 17], sizes = [1, 224], strides = [1, 1]} : vector<1x272xf32> to vector<1x224xf32>
    %c12_252 = arith.constant 12 : index
    %c0_253 = arith.constant 0 : index
    %c0_254 = arith.constant 0 : index
    %616 = vector.load %arg2[%c12_252, %c0_253, %c0_254] : memref<25x6x1xf32, #tpu.memory_space<vmem>>, vector<1x6x1xf32>
    %617 = vector.shape_cast %616 : vector<1x6x1xf32> to vector<6x1xf32>
    %618 = vector.broadcast %617 : vector<6x1xf32> to vector<6x224xf32>
    %619 = vector.broadcast %615 : vector<1x224xf32> to vector<6x224xf32>
    %620 = arith.mulf %618, %619 : vector<6x224xf32>
    %621 = arith.addf %614, %620 : vector<6x224xf32>
    %622 = vector.extract_strided_slice %5 {offsets = [0, 18], sizes = [1, 224], strides = [1, 1]} : vector<1x272xf32> to vector<1x224xf32>
    %c13_255 = arith.constant 13 : index
    %c0_256 = arith.constant 0 : index
    %c0_257 = arith.constant 0 : index
    %623 = vector.load %arg2[%c13_255, %c0_256, %c0_257] : memref<25x6x1xf32, #tpu.memory_space<vmem>>, vector<1x6x1xf32>
    %624 = vector.shape_cast %623 : vector<1x6x1xf32> to vector<6x1xf32>
    %625 = vector.broadcast %624 : vector<6x1xf32> to vector<6x224xf32>
    %626 = vector.broadcast %622 : vector<1x224xf32> to vector<6x224xf32>
    %627 = arith.mulf %625, %626 : vector<6x224xf32>
    %628 = arith.addf %621, %627 : vector<6x224xf32>
    %629 = vector.extract_strided_slice %7 {offsets = [0, 18], sizes = [1, 224], strides = [1, 1]} : vector<1x272xf32> to vector<1x224xf32>
    %c14_258 = arith.constant 14 : index
    %c0_259 = arith.constant 0 : index
    %c0_260 = arith.constant 0 : index
    %630 = vector.load %arg2[%c14_258, %c0_259, %c0_260] : memref<25x6x1xf32, #tpu.memory_space<vmem>>, vector<1x6x1xf32>
    %631 = vector.shape_cast %630 : vector<1x6x1xf32> to vector<6x1xf32>
    %632 = vector.broadcast %631 : vector<6x1xf32> to vector<6x224xf32>
    %633 = vector.broadcast %629 : vector<1x224xf32> to vector<6x224xf32>
    %634 = arith.mulf %632, %633 : vector<6x224xf32>
    %635 = arith.addf %628, %634 : vector<6x224xf32>
    %636 = vector.extract_strided_slice %3 {offsets = [0, 32], sizes = [1, 224], strides = [1, 1]} : vector<1x272xf32> to vector<1x224xf32>
    %c15_261 = arith.constant 15 : index
    %c0_262 = arith.constant 0 : index
    %c0_263 = arith.constant 0 : index
    %637 = vector.load %arg2[%c15_261, %c0_262, %c0_263] : memref<25x6x1xf32, #tpu.memory_space<vmem>>, vector<1x6x1xf32>
    %638 = vector.shape_cast %637 : vector<1x6x1xf32> to vector<6x1xf32>
    %639 = vector.broadcast %638 : vector<6x1xf32> to vector<6x224xf32>
    %640 = vector.broadcast %636 : vector<1x224xf32> to vector<6x224xf32>
    %641 = arith.mulf %639, %640 : vector<6x224xf32>
    %642 = arith.addf %635, %641 : vector<6x224xf32>
    %643 = vector.extract_strided_slice %1 {offsets = [0, 33], sizes = [1, 224], strides = [1, 1]} : vector<1x272xf32> to vector<1x224xf32>
    %c16_264 = arith.constant 16 : index
    %c0_265 = arith.constant 0 : index
    %c0_266 = arith.constant 0 : index
    %644 = vector.load %arg2[%c16_264, %c0_265, %c0_266] : memref<25x6x1xf32, #tpu.memory_space<vmem>>, vector<1x6x1xf32>
    %645 = vector.shape_cast %644 : vector<1x6x1xf32> to vector<6x1xf32>
    %646 = vector.broadcast %645 : vector<6x1xf32> to vector<6x224xf32>
    %647 = vector.broadcast %643 : vector<1x224xf32> to vector<6x224xf32>
    %648 = arith.mulf %646, %647 : vector<6x224xf32>
    %649 = arith.addf %642, %648 : vector<6x224xf32>
    %650 = vector.extract_strided_slice %3 {offsets = [0, 33], sizes = [1, 224], strides = [1, 1]} : vector<1x272xf32> to vector<1x224xf32>
    %c17_267 = arith.constant 17 : index
    %c0_268 = arith.constant 0 : index
    %c0_269 = arith.constant 0 : index
    %651 = vector.load %arg2[%c17_267, %c0_268, %c0_269] : memref<25x6x1xf32, #tpu.memory_space<vmem>>, vector<1x6x1xf32>
    %652 = vector.shape_cast %651 : vector<1x6x1xf32> to vector<6x1xf32>
    %653 = vector.broadcast %652 : vector<6x1xf32> to vector<6x224xf32>
    %654 = vector.broadcast %650 : vector<1x224xf32> to vector<6x224xf32>
    %655 = arith.mulf %653, %654 : vector<6x224xf32>
    %656 = arith.addf %649, %655 : vector<6x224xf32>
    %657 = vector.extract_strided_slice %1 {offsets = [0, 34], sizes = [1, 224], strides = [1, 1]} : vector<1x272xf32> to vector<1x224xf32>
    %c18_270 = arith.constant 18 : index
    %c0_271 = arith.constant 0 : index
    %c0_272 = arith.constant 0 : index
    %658 = vector.load %arg2[%c18_270, %c0_271, %c0_272] : memref<25x6x1xf32, #tpu.memory_space<vmem>>, vector<1x6x1xf32>
    %659 = vector.shape_cast %658 : vector<1x6x1xf32> to vector<6x1xf32>
    %660 = vector.broadcast %659 : vector<6x1xf32> to vector<6x224xf32>
    %661 = vector.broadcast %657 : vector<1x224xf32> to vector<6x224xf32>
    %662 = arith.mulf %660, %661 : vector<6x224xf32>
    %663 = arith.addf %656, %662 : vector<6x224xf32>
    %664 = vector.extract_strided_slice %3 {offsets = [0, 34], sizes = [1, 224], strides = [1, 1]} : vector<1x272xf32> to vector<1x224xf32>
    %c19_273 = arith.constant 19 : index
    %c0_274 = arith.constant 0 : index
    %c0_275 = arith.constant 0 : index
    %665 = vector.load %arg2[%c19_273, %c0_274, %c0_275] : memref<25x6x1xf32, #tpu.memory_space<vmem>>, vector<1x6x1xf32>
    %666 = vector.shape_cast %665 : vector<1x6x1xf32> to vector<6x1xf32>
    %667 = vector.broadcast %666 : vector<6x1xf32> to vector<6x224xf32>
    %668 = vector.broadcast %664 : vector<1x224xf32> to vector<6x224xf32>
    %669 = arith.mulf %667, %668 : vector<6x224xf32>
    %670 = arith.addf %663, %669 : vector<6x224xf32>
    %671 = vector.extract_strided_slice %7 {offsets = [0, 32], sizes = [1, 224], strides = [1, 1]} : vector<1x272xf32> to vector<1x224xf32>
    %c20_276 = arith.constant 20 : index
    %c0_277 = arith.constant 0 : index
    %c0_278 = arith.constant 0 : index
    %672 = vector.load %arg2[%c20_276, %c0_277, %c0_278] : memref<25x6x1xf32, #tpu.memory_space<vmem>>, vector<1x6x1xf32>
    %673 = vector.shape_cast %672 : vector<1x6x1xf32> to vector<6x1xf32>
    %674 = vector.broadcast %673 : vector<6x1xf32> to vector<6x224xf32>
    %675 = vector.broadcast %671 : vector<1x224xf32> to vector<6x224xf32>
    %676 = arith.mulf %674, %675 : vector<6x224xf32>
    %677 = arith.addf %670, %676 : vector<6x224xf32>
    %678 = vector.extract_strided_slice %5 {offsets = [0, 33], sizes = [1, 224], strides = [1, 1]} : vector<1x272xf32> to vector<1x224xf32>
    %c21_279 = arith.constant 21 : index
    %c0_280 = arith.constant 0 : index
    %c0_281 = arith.constant 0 : index
    %679 = vector.load %arg2[%c21_279, %c0_280, %c0_281] : memref<25x6x1xf32, #tpu.memory_space<vmem>>, vector<1x6x1xf32>
    %680 = vector.shape_cast %679 : vector<1x6x1xf32> to vector<6x1xf32>
    %681 = vector.broadcast %680 : vector<6x1xf32> to vector<6x224xf32>
    %682 = vector.broadcast %678 : vector<1x224xf32> to vector<6x224xf32>
    %683 = arith.mulf %681, %682 : vector<6x224xf32>
    %684 = arith.addf %677, %683 : vector<6x224xf32>
    %685 = vector.extract_strided_slice %7 {offsets = [0, 33], sizes = [1, 224], strides = [1, 1]} : vector<1x272xf32> to vector<1x224xf32>
    %c22_282 = arith.constant 22 : index
    %c0_283 = arith.constant 0 : index
    %c0_284 = arith.constant 0 : index
    %686 = vector.load %arg2[%c22_282, %c0_283, %c0_284] : memref<25x6x1xf32, #tpu.memory_space<vmem>>, vector<1x6x1xf32>
    %687 = vector.shape_cast %686 : vector<1x6x1xf32> to vector<6x1xf32>
    %688 = vector.broadcast %687 : vector<6x1xf32> to vector<6x224xf32>
    %689 = vector.broadcast %685 : vector<1x224xf32> to vector<6x224xf32>
    %690 = arith.mulf %688, %689 : vector<6x224xf32>
    %691 = arith.addf %684, %690 : vector<6x224xf32>
    %692 = vector.extract_strided_slice %5 {offsets = [0, 34], sizes = [1, 224], strides = [1, 1]} : vector<1x272xf32> to vector<1x224xf32>
    %c23_285 = arith.constant 23 : index
    %c0_286 = arith.constant 0 : index
    %c0_287 = arith.constant 0 : index
    %693 = vector.load %arg2[%c23_285, %c0_286, %c0_287] : memref<25x6x1xf32, #tpu.memory_space<vmem>>, vector<1x6x1xf32>
    %694 = vector.shape_cast %693 : vector<1x6x1xf32> to vector<6x1xf32>
    %695 = vector.broadcast %694 : vector<6x1xf32> to vector<6x224xf32>
    %696 = vector.broadcast %692 : vector<1x224xf32> to vector<6x224xf32>
    %697 = arith.mulf %695, %696 : vector<6x224xf32>
    %698 = arith.addf %691, %697 : vector<6x224xf32>
    %699 = vector.extract_strided_slice %7 {offsets = [0, 34], sizes = [1, 224], strides = [1, 1]} : vector<1x272xf32> to vector<1x224xf32>
    %c24_288 = arith.constant 24 : index
    %c0_289 = arith.constant 0 : index
    %c0_290 = arith.constant 0 : index
    %700 = vector.load %arg2[%c24_288, %c0_289, %c0_290] : memref<25x6x1xf32, #tpu.memory_space<vmem>>, vector<1x6x1xf32>
    %701 = vector.shape_cast %700 : vector<1x6x1xf32> to vector<6x1xf32>
    %702 = vector.broadcast %701 : vector<6x1xf32> to vector<6x224xf32>
    %703 = vector.broadcast %699 : vector<1x224xf32> to vector<6x224xf32>
    %704 = arith.mulf %702, %703 : vector<6x224xf32>
    %705 = arith.addf %698, %704 : vector<6x224xf32>
    %706 = arith.maximumf %531, %705 : vector<6x224xf32>
    %c0_291 = arith.constant 0 : index
    %c0_292 = arith.constant 0 : index
    %707 = vector.load %arg3[%c0_291, %c0_292] : memref<6x1xf32, #tpu.memory_space<vmem>>, vector<6x1xf32>
    %708 = vector.broadcast %707 : vector<6x1xf32> to vector<6x224xf32>
    %709 = arith.addf %706, %708 : vector<6x224xf32>
    %cst = arith.constant 0.000000e+00 : f32
    %710 = vector.broadcast %cst : f32 to vector<6x224xf32>
    %711 = arith.maximumf %709, %710 : vector<6x224xf32>
    %c0_293 = arith.constant 0 : index
    %c0_294 = arith.constant 0 : index
    %c0_295 = arith.constant 0 : index
    %712 = vector.load %arg4[%c0_293, %c0_294, %c0_295] : memref<1x6x224xf32, #tpu.memory_space<vmem>>, vector<1x6x224xf32>
    %713 = vector.shape_cast %712 : vector<1x6x224xf32> to vector<6x224xf32>
    %714 = vector.shape_cast %711 : vector<6x224xf32> to vector<1x6x224xf32>
    tpu.vector_store %arg4[%c0_293, %c0_294, %c0_295], %714 {strides = array<i32>} : memref<1x6x224xf32, #tpu.memory_space<vmem>>, vector<1x6x224xf32>,
    return
  }
  func.func @transform_0(%arg0: i32) -> (i32, i32, i32, i32) {
    %c0_i32 = arith.constant 0 : i32
    %c0_i32_0 = arith.constant 0 : i32
    %c0_i32_1 = arith.constant 0 : i32
    %c0_i32_2 = arith.constant 0 : i32
    return %arg0, %c0_i32, %c0_i32_0, %c0_i32_1 : i32, i32, i32, i32
  }
  func.func @transform_1(%arg0: i32) -> (i32, i32, i32) {
    %c0_i32 = arith.constant 0 : i32
    %c0_i32_0 = arith.constant 0 : i32
    %c0_i32_1 = arith.constant 0 : i32
    %c0_i32_2 = arith.constant 0 : i32
    return %c0_i32, %c0_i32_0, %c0_i32_1 : i32, i32, i32
  }
  func.func @transform_2(%arg0: i32) -> (i32, i32) {
    %c0_i32 = arith.constant 0 : i32
    %c0_i32_0 = arith.constant 0 : i32
    %c0_i32_1 = arith.constant 0 : i32
    return %c0_i32, %c0_i32_0 : i32, i32
  }
  func.func @transform_3(%arg0: i32) -> (i32, i32, i32) {
    %c0_i32 = arith.constant 0 : i32
    %c0_i32_0 = arith.constant 0 : i32
    %c0_i32_1 = arith.constant 0 : i32
    return %arg0, %c0_i32, %c0_i32_0 : i32, i32, i32
  }
}

module attributes {stable_mosaic.version = 11 : i64} {
  func.func @_conv_pool_kernel(%arg0: i32, %arg1: memref<1x4x6x56xf32, #tpu.memory_space<vmem>>, %arg2: memref<25x16x6xf32, #tpu.memory_space<vmem>>, %arg3: memref<16x1xf32, #tpu.memory_space<vmem>>, %arg4: memref<1x16x35xf32, #tpu.memory_space<vmem>>) attributes {dimension_semantics = [#tpu.dimension_semantics<parallel>], iteration_bounds = array<i64: 2>, scalar_prefetch = 0 : i64, scratch_operands = 0 : i64, tpu.core_type = #tpu.core_type<tc>, window_params = [{transform_indices = @transform_0, window_bounds = array<i64: 1, 4, 6, 56>}, {pipeline_mode = #tpu.pipeline_mode<synchronous>, transform_indices = @transform_1, window_bounds = array<i64: 25, 16, 6>}, {pipeline_mode = #tpu.pipeline_mode<synchronous>, transform_indices = @transform_2, window_bounds = array<i64: 16, 1>}, {transform_indices = @transform_3, window_bounds = array<i64: 1, 16, 35>}]} {
    %c0 = arith.constant 0 : index
    %c0_0 = arith.constant 0 : index
    %c0_1 = arith.constant 0 : index
    %c0_2 = arith.constant 0 : index
    %0 = vector.load %arg1[%c0, %c0_0, %c0_1, %c0_2] : memref<1x4x6x56xf32, #tpu.memory_space<vmem>>, vector<1x1x6x56xf32>
    %1 = vector.shape_cast %0 : vector<1x1x6x56xf32> to vector<6x56xf32>
    %c0_3 = arith.constant 0 : index
    %c1 = arith.constant 1 : index
    %c0_4 = arith.constant 0 : index
    %c0_5 = arith.constant 0 : index
    %2 = vector.load %arg1[%c0_3, %c1, %c0_4, %c0_5] : memref<1x4x6x56xf32, #tpu.memory_space<vmem>>, vector<1x1x6x56xf32>
    %3 = vector.shape_cast %2 : vector<1x1x6x56xf32> to vector<6x56xf32>
    %c0_6 = arith.constant 0 : index
    %c2 = arith.constant 2 : index
    %c0_7 = arith.constant 0 : index
    %c0_8 = arith.constant 0 : index
    %4 = vector.load %arg1[%c0_6, %c2, %c0_7, %c0_8] : memref<1x4x6x56xf32, #tpu.memory_space<vmem>>, vector<1x1x6x56xf32>
    %5 = vector.shape_cast %4 : vector<1x1x6x56xf32> to vector<6x56xf32>
    %c0_9 = arith.constant 0 : index
    %c3 = arith.constant 3 : index
    %c0_10 = arith.constant 0 : index
    %c0_11 = arith.constant 0 : index
    %6 = vector.load %arg1[%c0_9, %c3, %c0_10, %c0_11] : memref<1x4x6x56xf32, #tpu.memory_space<vmem>>, vector<1x1x6x56xf32>
    %7 = vector.shape_cast %6 : vector<1x1x6x56xf32> to vector<6x56xf32>
    %8 = vector.extract_strided_slice %1 {offsets = [0, 0], sizes = [6, 35], strides = [1, 1]} : vector<6x56xf32> to vector<6x35xf32>
    %c0_12 = arith.constant 0 : index
    %c0_13 = arith.constant 0 : index
    %c0_14 = arith.constant 0 : index
    %9 = vector.load %arg2[%c0_12, %c0_13, %c0_14] : memref<25x16x6xf32, #tpu.memory_space<vmem>>, vector<1x16x6xf32>
    %10 = vector.shape_cast %9 : vector<1x16x6xf32> to vector<16x6xf32>
    %cst = arith.constant dense<0.000000e+00> : vector<16x35xf32>
    %11 = tpu.matmul %10, %8, %cst {dimension_numbers = #tpu.dot_dimension_numbers<[1], [0], [0], [1], [0, 0, 1, 1], [], []>} : vector<16x6xf32>, vector<6x35xf32>, vector<16x35xf32> -> vector<16x35xf32>
    %12 = vector.extract_strided_slice %3 {offsets = [0, 0], sizes = [6, 35], strides = [1, 1]} : vector<6x56xf32> to vector<6x35xf32>
    %c1_15 = arith.constant 1 : index
    %c0_16 = arith.constant 0 : index
    %c0_17 = arith.constant 0 : index
    %13 = vector.load %arg2[%c1_15, %c0_16, %c0_17] : memref<25x16x6xf32, #tpu.memory_space<vmem>>, vector<1x16x6xf32>
    %14 = vector.shape_cast %13 : vector<1x16x6xf32> to vector<16x6xf32>
    %cst_18 = arith.constant dense<0.000000e+00> : vector<16x35xf32>
    %15 = tpu.matmul %14, %12, %cst_18 {dimension_numbers = #tpu.dot_dimension_numbers<[1], [0], [0], [1], [0, 0, 1, 1], [], []>} : vector<16x6xf32>, vector<6x35xf32>, vector<16x35xf32> -> vector<16x35xf32>
    %16 = arith.addf %11, %15 : vector<16x35xf32>
    %17 = vector.extract_strided_slice %1 {offsets = [0, 1], sizes = [6, 35], strides = [1, 1]} : vector<6x56xf32> to vector<6x35xf32>
    %c2_19 = arith.constant 2 : index
    %c0_20 = arith.constant 0 : index
    %c0_21 = arith.constant 0 : index
    %18 = vector.load %arg2[%c2_19, %c0_20, %c0_21] : memref<25x16x6xf32, #tpu.memory_space<vmem>>, vector<1x16x6xf32>
    %19 = vector.shape_cast %18 : vector<1x16x6xf32> to vector<16x6xf32>
    %cst_22 = arith.constant dense<0.000000e+00> : vector<16x35xf32>
    %20 = tpu.matmul %19, %17, %cst_22 {dimension_numbers = #tpu.dot_dimension_numbers<[1], [0], [0], [1], [0, 0, 1, 1], [], []>} : vector<16x6xf32>, vector<6x35xf32>, vector<16x35xf32> -> vector<16x35xf32>
    %21 = arith.addf %16, %20 : vector<16x35xf32>
    %22 = vector.extract_strided_slice %3 {offsets = [0, 1], sizes = [6, 35], strides = [1, 1]} : vector<6x56xf32> to vector<6x35xf32>
    %c3_23 = arith.constant 3 : index
    %c0_24 = arith.constant 0 : index
    %c0_25 = arith.constant 0 : index
    %23 = vector.load %arg2[%c3_23, %c0_24, %c0_25] : memref<25x16x6xf32, #tpu.memory_space<vmem>>, vector<1x16x6xf32>
    %24 = vector.shape_cast %23 : vector<1x16x6xf32> to vector<16x6xf32>
    %cst_26 = arith.constant dense<0.000000e+00> : vector<16x35xf32>
    %25 = tpu.matmul %24, %22, %cst_26 {dimension_numbers = #tpu.dot_dimension_numbers<[1], [0], [0], [1], [0, 0, 1, 1], [], []>} : vector<16x6xf32>, vector<6x35xf32>, vector<16x35xf32> -> vector<16x35xf32>
    %26 = arith.addf %21, %25 : vector<16x35xf32>
    %27 = vector.extract_strided_slice %1 {offsets = [0, 2], sizes = [6, 35], strides = [1, 1]} : vector<6x56xf32> to vector<6x35xf32>
    %c4 = arith.constant 4 : index
    %c0_27 = arith.constant 0 : index
    %c0_28 = arith.constant 0 : index
    %28 = vector.load %arg2[%c4, %c0_27, %c0_28] : memref<25x16x6xf32, #tpu.memory_space<vmem>>, vector<1x16x6xf32>
    %29 = vector.shape_cast %28 : vector<1x16x6xf32> to vector<16x6xf32>
    %cst_29 = arith.constant dense<0.000000e+00> : vector<16x35xf32>
    %30 = tpu.matmul %29, %27, %cst_29 {dimension_numbers = #tpu.dot_dimension_numbers<[1], [0], [0], [1], [0, 0, 1, 1], [], []>} : vector<16x6xf32>, vector<6x35xf32>, vector<16x35xf32> -> vector<16x35xf32>
    %31 = arith.addf %26, %30 : vector<16x35xf32>
    %32 = vector.extract_strided_slice %5 {offsets = [0, 0], sizes = [6, 35], strides = [1, 1]} : vector<6x56xf32> to vector<6x35xf32>
    %c5 = arith.constant 5 : index
    %c0_30 = arith.constant 0 : index
    %c0_31 = arith.constant 0 : index
    %33 = vector.load %arg2[%c5, %c0_30, %c0_31] : memref<25x16x6xf32, #tpu.memory_space<vmem>>, vector<1x16x6xf32>
    %34 = vector.shape_cast %33 : vector<1x16x6xf32> to vector<16x6xf32>
    %cst_32 = arith.constant dense<0.000000e+00> : vector<16x35xf32>
    %35 = tpu.matmul %34, %32, %cst_32 {dimension_numbers = #tpu.dot_dimension_numbers<[1], [0], [0], [1], [0, 0, 1, 1], [], []>} : vector<16x6xf32>, vector<6x35xf32>, vector<16x35xf32> -> vector<16x35xf32>
    %36 = arith.addf %31, %35 : vector<16x35xf32>
    %37 = vector.extract_strided_slice %7 {offsets = [0, 0], sizes = [6, 35], strides = [1, 1]} : vector<6x56xf32> to vector<6x35xf32>
    %c6 = arith.constant 6 : index
    %c0_33 = arith.constant 0 : index
    %c0_34 = arith.constant 0 : index
    %38 = vector.load %arg2[%c6, %c0_33, %c0_34] : memref<25x16x6xf32, #tpu.memory_space<vmem>>, vector<1x16x6xf32>
    %39 = vector.shape_cast %38 : vector<1x16x6xf32> to vector<16x6xf32>
    %cst_35 = arith.constant dense<0.000000e+00> : vector<16x35xf32>
    %40 = tpu.matmul %39, %37, %cst_35 {dimension_numbers = #tpu.dot_dimension_numbers<[1], [0], [0], [1], [0, 0, 1, 1], [], []>} : vector<16x6xf32>, vector<6x35xf32>, vector<16x35xf32> -> vector<16x35xf32>
    %41 = arith.addf %36, %40 : vector<16x35xf32>
    %42 = vector.extract_strided_slice %5 {offsets = [0, 1], sizes = [6, 35], strides = [1, 1]} : vector<6x56xf32> to vector<6x35xf32>
    %c7 = arith.constant 7 : index
    %c0_36 = arith.constant 0 : index
    %c0_37 = arith.constant 0 : index
    %43 = vector.load %arg2[%c7, %c0_36, %c0_37] : memref<25x16x6xf32, #tpu.memory_space<vmem>>, vector<1x16x6xf32>
    %44 = vector.shape_cast %43 : vector<1x16x6xf32> to vector<16x6xf32>
    %cst_38 = arith.constant dense<0.000000e+00> : vector<16x35xf32>
    %45 = tpu.matmul %44, %42, %cst_38 {dimension_numbers = #tpu.dot_dimension_numbers<[1], [0], [0], [1], [0, 0, 1, 1], [], []>} : vector<16x6xf32>, vector<6x35xf32>, vector<16x35xf32> -> vector<16x35xf32>
    %46 = arith.addf %41, %45 : vector<16x35xf32>
    %47 = vector.extract_strided_slice %7 {offsets = [0, 1], sizes = [6, 35], strides = [1, 1]} : vector<6x56xf32> to vector<6x35xf32>
    %c8 = arith.constant 8 : index
    %c0_39 = arith.constant 0 : index
    %c0_40 = arith.constant 0 : index
    %48 = vector.load %arg2[%c8, %c0_39, %c0_40] : memref<25x16x6xf32, #tpu.memory_space<vmem>>, vector<1x16x6xf32>
    %49 = vector.shape_cast %48 : vector<1x16x6xf32> to vector<16x6xf32>
    %cst_41 = arith.constant dense<0.000000e+00> : vector<16x35xf32>
    %50 = tpu.matmul %49, %47, %cst_41 {dimension_numbers = #tpu.dot_dimension_numbers<[1], [0], [0], [1], [0, 0, 1, 1], [], []>} : vector<16x6xf32>, vector<6x35xf32>, vector<16x35xf32> -> vector<16x35xf32>
    %51 = arith.addf %46, %50 : vector<16x35xf32>
    %52 = vector.extract_strided_slice %5 {offsets = [0, 2], sizes = [6, 35], strides = [1, 1]} : vector<6x56xf32> to vector<6x35xf32>
    %c9 = arith.constant 9 : index
    %c0_42 = arith.constant 0 : index
    %c0_43 = arith.constant 0 : index
    %53 = vector.load %arg2[%c9, %c0_42, %c0_43] : memref<25x16x6xf32, #tpu.memory_space<vmem>>, vector<1x16x6xf32>
    %54 = vector.shape_cast %53 : vector<1x16x6xf32> to vector<16x6xf32>
    %cst_44 = arith.constant dense<0.000000e+00> : vector<16x35xf32>
    %55 = tpu.matmul %54, %52, %cst_44 {dimension_numbers = #tpu.dot_dimension_numbers<[1], [0], [0], [1], [0, 0, 1, 1], [], []>} : vector<16x6xf32>, vector<6x35xf32>, vector<16x35xf32> -> vector<16x35xf32>
    %56 = arith.addf %51, %55 : vector<16x35xf32>
    %57 = vector.extract_strided_slice %1 {offsets = [0, 7], sizes = [6, 35], strides = [1, 1]} : vector<6x56xf32> to vector<6x35xf32>
    %c10 = arith.constant 10 : index
    %c0_45 = arith.constant 0 : index
    %c0_46 = arith.constant 0 : index
    %58 = vector.load %arg2[%c10, %c0_45, %c0_46] : memref<25x16x6xf32, #tpu.memory_space<vmem>>, vector<1x16x6xf32>
    %59 = vector.shape_cast %58 : vector<1x16x6xf32> to vector<16x6xf32>
    %cst_47 = arith.constant dense<0.000000e+00> : vector<16x35xf32>
    %60 = tpu.matmul %59, %57, %cst_47 {dimension_numbers = #tpu.dot_dimension_numbers<[1], [0], [0], [1], [0, 0, 1, 1], [], []>} : vector<16x6xf32>, vector<6x35xf32>, vector<16x35xf32> -> vector<16x35xf32>
    %61 = arith.addf %56, %60 : vector<16x35xf32>
    %62 = vector.extract_strided_slice %3 {offsets = [0, 7], sizes = [6, 35], strides = [1, 1]} : vector<6x56xf32> to vector<6x35xf32>
    %c11 = arith.constant 11 : index
    %c0_48 = arith.constant 0 : index
    %c0_49 = arith.constant 0 : index
    %63 = vector.load %arg2[%c11, %c0_48, %c0_49] : memref<25x16x6xf32, #tpu.memory_space<vmem>>, vector<1x16x6xf32>
    %64 = vector.shape_cast %63 : vector<1x16x6xf32> to vector<16x6xf32>
    %cst_50 = arith.constant dense<0.000000e+00> : vector<16x35xf32>
    %65 = tpu.matmul %64, %62, %cst_50 {dimension_numbers = #tpu.dot_dimension_numbers<[1], [0], [0], [1], [0, 0, 1, 1], [], []>} : vector<16x6xf32>, vector<6x35xf32>, vector<16x35xf32> -> vector<16x35xf32>
    %66 = arith.addf %61, %65 : vector<16x35xf32>
    %67 = vector.extract_strided_slice %1 {offsets = [0, 8], sizes = [6, 35], strides = [1, 1]} : vector<6x56xf32> to vector<6x35xf32>
    %c12 = arith.constant 12 : index
    %c0_51 = arith.constant 0 : index
    %c0_52 = arith.constant 0 : index
    %68 = vector.load %arg2[%c12, %c0_51, %c0_52] : memref<25x16x6xf32, #tpu.memory_space<vmem>>, vector<1x16x6xf32>
    %69 = vector.shape_cast %68 : vector<1x16x6xf32> to vector<16x6xf32>
    %cst_53 = arith.constant dense<0.000000e+00> : vector<16x35xf32>
    %70 = tpu.matmul %69, %67, %cst_53 {dimension_numbers = #tpu.dot_dimension_numbers<[1], [0], [0], [1], [0, 0, 1, 1], [], []>} : vector<16x6xf32>, vector<6x35xf32>, vector<16x35xf32> -> vector<16x35xf32>
    %71 = arith.addf %66, %70 : vector<16x35xf32>
    %72 = vector.extract_strided_slice %3 {offsets = [0, 8], sizes = [6, 35], strides = [1, 1]} : vector<6x56xf32> to vector<6x35xf32>
    %c13 = arith.constant 13 : index
    %c0_54 = arith.constant 0 : index
    %c0_55 = arith.constant 0 : index
    %73 = vector.load %arg2[%c13, %c0_54, %c0_55] : memref<25x16x6xf32, #tpu.memory_space<vmem>>, vector<1x16x6xf32>
    %74 = vector.shape_cast %73 : vector<1x16x6xf32> to vector<16x6xf32>
    %cst_56 = arith.constant dense<0.000000e+00> : vector<16x35xf32>
    %75 = tpu.matmul %74, %72, %cst_56 {dimension_numbers = #tpu.dot_dimension_numbers<[1], [0], [0], [1], [0, 0, 1, 1], [], []>} : vector<16x6xf32>, vector<6x35xf32>, vector<16x35xf32> -> vector<16x35xf32>
    %76 = arith.addf %71, %75 : vector<16x35xf32>
    %77 = vector.extract_strided_slice %1 {offsets = [0, 9], sizes = [6, 35], strides = [1, 1]} : vector<6x56xf32> to vector<6x35xf32>
    %c14 = arith.constant 14 : index
    %c0_57 = arith.constant 0 : index
    %c0_58 = arith.constant 0 : index
    %78 = vector.load %arg2[%c14, %c0_57, %c0_58] : memref<25x16x6xf32, #tpu.memory_space<vmem>>, vector<1x16x6xf32>
    %79 = vector.shape_cast %78 : vector<1x16x6xf32> to vector<16x6xf32>
    %cst_59 = arith.constant dense<0.000000e+00> : vector<16x35xf32>
    %80 = tpu.matmul %79, %77, %cst_59 {dimension_numbers = #tpu.dot_dimension_numbers<[1], [0], [0], [1], [0, 0, 1, 1], [], []>} : vector<16x6xf32>, vector<6x35xf32>, vector<16x35xf32> -> vector<16x35xf32>
    %81 = arith.addf %76, %80 : vector<16x35xf32>
    %82 = vector.extract_strided_slice %5 {offsets = [0, 7], sizes = [6, 35], strides = [1, 1]} : vector<6x56xf32> to vector<6x35xf32>
    %c15 = arith.constant 15 : index
    %c0_60 = arith.constant 0 : index
    %c0_61 = arith.constant 0 : index
    %83 = vector.load %arg2[%c15, %c0_60, %c0_61] : memref<25x16x6xf32, #tpu.memory_space<vmem>>, vector<1x16x6xf32>
    %84 = vector.shape_cast %83 : vector<1x16x6xf32> to vector<16x6xf32>
    %cst_62 = arith.constant dense<0.000000e+00> : vector<16x35xf32>
    %85 = tpu.matmul %84, %82, %cst_62 {dimension_numbers = #tpu.dot_dimension_numbers<[1], [0], [0], [1], [0, 0, 1, 1], [], []>} : vector<16x6xf32>, vector<6x35xf32>, vector<16x35xf32> -> vector<16x35xf32>
    %86 = arith.addf %81, %85 : vector<16x35xf32>
    %87 = vector.extract_strided_slice %7 {offsets = [0, 7], sizes = [6, 35], strides = [1, 1]} : vector<6x56xf32> to vector<6x35xf32>
    %c16 = arith.constant 16 : index
    %c0_63 = arith.constant 0 : index
    %c0_64 = arith.constant 0 : index
    %88 = vector.load %arg2[%c16, %c0_63, %c0_64] : memref<25x16x6xf32, #tpu.memory_space<vmem>>, vector<1x16x6xf32>
    %89 = vector.shape_cast %88 : vector<1x16x6xf32> to vector<16x6xf32>
    %cst_65 = arith.constant dense<0.000000e+00> : vector<16x35xf32>
    %90 = tpu.matmul %89, %87, %cst_65 {dimension_numbers = #tpu.dot_dimension_numbers<[1], [0], [0], [1], [0, 0, 1, 1], [], []>} : vector<16x6xf32>, vector<6x35xf32>, vector<16x35xf32> -> vector<16x35xf32>
    %91 = arith.addf %86, %90 : vector<16x35xf32>
    %92 = vector.extract_strided_slice %5 {offsets = [0, 8], sizes = [6, 35], strides = [1, 1]} : vector<6x56xf32> to vector<6x35xf32>
    %c17 = arith.constant 17 : index
    %c0_66 = arith.constant 0 : index
    %c0_67 = arith.constant 0 : index
    %93 = vector.load %arg2[%c17, %c0_66, %c0_67] : memref<25x16x6xf32, #tpu.memory_space<vmem>>, vector<1x16x6xf32>
    %94 = vector.shape_cast %93 : vector<1x16x6xf32> to vector<16x6xf32>
    %cst_68 = arith.constant dense<0.000000e+00> : vector<16x35xf32>
    %95 = tpu.matmul %94, %92, %cst_68 {dimension_numbers = #tpu.dot_dimension_numbers<[1], [0], [0], [1], [0, 0, 1, 1], [], []>} : vector<16x6xf32>, vector<6x35xf32>, vector<16x35xf32> -> vector<16x35xf32>
    %96 = arith.addf %91, %95 : vector<16x35xf32>
    %97 = vector.extract_strided_slice %7 {offsets = [0, 8], sizes = [6, 35], strides = [1, 1]} : vector<6x56xf32> to vector<6x35xf32>
    %c18 = arith.constant 18 : index
    %c0_69 = arith.constant 0 : index
    %c0_70 = arith.constant 0 : index
    %98 = vector.load %arg2[%c18, %c0_69, %c0_70] : memref<25x16x6xf32, #tpu.memory_space<vmem>>, vector<1x16x6xf32>
    %99 = vector.shape_cast %98 : vector<1x16x6xf32> to vector<16x6xf32>
    %cst_71 = arith.constant dense<0.000000e+00> : vector<16x35xf32>
    %100 = tpu.matmul %99, %97, %cst_71 {dimension_numbers = #tpu.dot_dimension_numbers<[1], [0], [0], [1], [0, 0, 1, 1], [], []>} : vector<16x6xf32>, vector<6x35xf32>, vector<16x35xf32> -> vector<16x35xf32>
    %101 = arith.addf %96, %100 : vector<16x35xf32>
    %102 = vector.extract_strided_slice %5 {offsets = [0, 9], sizes = [6, 35], strides = [1, 1]} : vector<6x56xf32> to vector<6x35xf32>
    %c19 = arith.constant 19 : index
    %c0_72 = arith.constant 0 : index
    %c0_73 = arith.constant 0 : index
    %103 = vector.load %arg2[%c19, %c0_72, %c0_73] : memref<25x16x6xf32, #tpu.memory_space<vmem>>, vector<1x16x6xf32>
    %104 = vector.shape_cast %103 : vector<1x16x6xf32> to vector<16x6xf32>
    %cst_74 = arith.constant dense<0.000000e+00> : vector<16x35xf32>
    %105 = tpu.matmul %104, %102, %cst_74 {dimension_numbers = #tpu.dot_dimension_numbers<[1], [0], [0], [1], [0, 0, 1, 1], [], []>} : vector<16x6xf32>, vector<6x35xf32>, vector<16x35xf32> -> vector<16x35xf32>
    %106 = arith.addf %101, %105 : vector<16x35xf32>
    %107 = vector.extract_strided_slice %1 {offsets = [0, 14], sizes = [6, 35], strides = [1, 1]} : vector<6x56xf32> to vector<6x35xf32>
    %c20 = arith.constant 20 : index
    %c0_75 = arith.constant 0 : index
    %c0_76 = arith.constant 0 : index
    %108 = vector.load %arg2[%c20, %c0_75, %c0_76] : memref<25x16x6xf32, #tpu.memory_space<vmem>>, vector<1x16x6xf32>
    %109 = vector.shape_cast %108 : vector<1x16x6xf32> to vector<16x6xf32>
    %cst_77 = arith.constant dense<0.000000e+00> : vector<16x35xf32>
    %110 = tpu.matmul %109, %107, %cst_77 {dimension_numbers = #tpu.dot_dimension_numbers<[1], [0], [0], [1], [0, 0, 1, 1], [], []>} : vector<16x6xf32>, vector<6x35xf32>, vector<16x35xf32> -> vector<16x35xf32>
    %111 = arith.addf %106, %110 : vector<16x35xf32>
    %112 = vector.extract_strided_slice %3 {offsets = [0, 14], sizes = [6, 35], strides = [1, 1]} : vector<6x56xf32> to vector<6x35xf32>
    %c21 = arith.constant 21 : index
    %c0_78 = arith.constant 0 : index
    %c0_79 = arith.constant 0 : index
    %113 = vector.load %arg2[%c21, %c0_78, %c0_79] : memref<25x16x6xf32, #tpu.memory_space<vmem>>, vector<1x16x6xf32>
    %114 = vector.shape_cast %113 : vector<1x16x6xf32> to vector<16x6xf32>
    %cst_80 = arith.constant dense<0.000000e+00> : vector<16x35xf32>
    %115 = tpu.matmul %114, %112, %cst_80 {dimension_numbers = #tpu.dot_dimension_numbers<[1], [0], [0], [1], [0, 0, 1, 1], [], []>} : vector<16x6xf32>, vector<6x35xf32>, vector<16x35xf32> -> vector<16x35xf32>
    %116 = arith.addf %111, %115 : vector<16x35xf32>
    %117 = vector.extract_strided_slice %1 {offsets = [0, 15], sizes = [6, 35], strides = [1, 1]} : vector<6x56xf32> to vector<6x35xf32>
    %c22 = arith.constant 22 : index
    %c0_81 = arith.constant 0 : index
    %c0_82 = arith.constant 0 : index
    %118 = vector.load %arg2[%c22, %c0_81, %c0_82] : memref<25x16x6xf32, #tpu.memory_space<vmem>>, vector<1x16x6xf32>
    %119 = vector.shape_cast %118 : vector<1x16x6xf32> to vector<16x6xf32>
    %cst_83 = arith.constant dense<0.000000e+00> : vector<16x35xf32>
    %120 = tpu.matmul %119, %117, %cst_83 {dimension_numbers = #tpu.dot_dimension_numbers<[1], [0], [0], [1], [0, 0, 1, 1], [], []>} : vector<16x6xf32>, vector<6x35xf32>, vector<16x35xf32> -> vector<16x35xf32>
    %121 = arith.addf %116, %120 : vector<16x35xf32>
    %122 = vector.extract_strided_slice %3 {offsets = [0, 15], sizes = [6, 35], strides = [1, 1]} : vector<6x56xf32> to vector<6x35xf32>
    %c23 = arith.constant 23 : index
    %c0_84 = arith.constant 0 : index
    %c0_85 = arith.constant 0 : index
    %123 = vector.load %arg2[%c23, %c0_84, %c0_85] : memref<25x16x6xf32, #tpu.memory_space<vmem>>, vector<1x16x6xf32>
    %124 = vector.shape_cast %123 : vector<1x16x6xf32> to vector<16x6xf32>
    %cst_86 = arith.constant dense<0.000000e+00> : vector<16x35xf32>
    %125 = tpu.matmul %124, %122, %cst_86 {dimension_numbers = #tpu.dot_dimension_numbers<[1], [0], [0], [1], [0, 0, 1, 1], [], []>} : vector<16x6xf32>, vector<6x35xf32>, vector<16x35xf32> -> vector<16x35xf32>
    %126 = arith.addf %121, %125 : vector<16x35xf32>
    %127 = vector.extract_strided_slice %1 {offsets = [0, 16], sizes = [6, 35], strides = [1, 1]} : vector<6x56xf32> to vector<6x35xf32>
    %c24 = arith.constant 24 : index
    %c0_87 = arith.constant 0 : index
    %c0_88 = arith.constant 0 : index
    %128 = vector.load %arg2[%c24, %c0_87, %c0_88] : memref<25x16x6xf32, #tpu.memory_space<vmem>>, vector<1x16x6xf32>
    %129 = vector.shape_cast %128 : vector<1x16x6xf32> to vector<16x6xf32>
    %cst_89 = arith.constant dense<0.000000e+00> : vector<16x35xf32>
    %130 = tpu.matmul %129, %127, %cst_89 {dimension_numbers = #tpu.dot_dimension_numbers<[1], [0], [0], [1], [0, 0, 1, 1], [], []>} : vector<16x6xf32>, vector<6x35xf32>, vector<16x35xf32> -> vector<16x35xf32>
    %131 = arith.addf %126, %130 : vector<16x35xf32>
    %132 = vector.extract_strided_slice %3 {offsets = [0, 0], sizes = [6, 35], strides = [1, 1]} : vector<6x56xf32> to vector<6x35xf32>
    %c0_90 = arith.constant 0 : index
    %c0_91 = arith.constant 0 : index
    %c0_92 = arith.constant 0 : index
    %133 = vector.load %arg2[%c0_90, %c0_91, %c0_92] : memref<25x16x6xf32, #tpu.memory_space<vmem>>, vector<1x16x6xf32>
    %134 = vector.shape_cast %133 : vector<1x16x6xf32> to vector<16x6xf32>
    %cst_93 = arith.constant dense<0.000000e+00> : vector<16x35xf32>
    %135 = tpu.matmul %134, %132, %cst_93 {dimension_numbers = #tpu.dot_dimension_numbers<[1], [0], [0], [1], [0, 0, 1, 1], [], []>} : vector<16x6xf32>, vector<6x35xf32>, vector<16x35xf32> -> vector<16x35xf32>
    %136 = vector.extract_strided_slice %1 {offsets = [0, 1], sizes = [6, 35], strides = [1, 1]} : vector<6x56xf32> to vector<6x35xf32>
    %c1_94 = arith.constant 1 : index
    %c0_95 = arith.constant 0 : index
    %c0_96 = arith.constant 0 : index
    %137 = vector.load %arg2[%c1_94, %c0_95, %c0_96] : memref<25x16x6xf32, #tpu.memory_space<vmem>>, vector<1x16x6xf32>
    %138 = vector.shape_cast %137 : vector<1x16x6xf32> to vector<16x6xf32>
    %cst_97 = arith.constant dense<0.000000e+00> : vector<16x35xf32>
    %139 = tpu.matmul %138, %136, %cst_97 {dimension_numbers = #tpu.dot_dimension_numbers<[1], [0], [0], [1], [0, 0, 1, 1], [], []>} : vector<16x6xf32>, vector<6x35xf32>, vector<16x35xf32> -> vector<16x35xf32>
    %140 = arith.addf %135, %139 : vector<16x35xf32>
    %141 = vector.extract_strided_slice %3 {offsets = [0, 1], sizes = [6, 35], strides = [1, 1]} : vector<6x56xf32> to vector<6x35xf32>
    %c2_98 = arith.constant 2 : index
    %c0_99 = arith.constant 0 : index
    %c0_100 = arith.constant 0 : index
    %142 = vector.load %arg2[%c2_98, %c0_99, %c0_100] : memref<25x16x6xf32, #tpu.memory_space<vmem>>, vector<1x16x6xf32>
    %143 = vector.shape_cast %142 : vector<1x16x6xf32> to vector<16x6xf32>
    %cst_101 = arith.constant dense<0.000000e+00> : vector<16x35xf32>
    %144 = tpu.matmul %143, %141, %cst_101 {dimension_numbers = #tpu.dot_dimension_numbers<[1], [0], [0], [1], [0, 0, 1, 1], [], []>} : vector<16x6xf32>, vector<6x35xf32>, vector<16x35xf32> -> vector<16x35xf32>
    %145 = arith.addf %140, %144 : vector<16x35xf32>
    %146 = vector.extract_strided_slice %1 {offsets = [0, 2], sizes = [6, 35], strides = [1, 1]} : vector<6x56xf32> to vector<6x35xf32>
    %c3_102 = arith.constant 3 : index
    %c0_103 = arith.constant 0 : index
    %c0_104 = arith.constant 0 : index
    %147 = vector.load %arg2[%c3_102, %c0_103, %c0_104] : memref<25x16x6xf32, #tpu.memory_space<vmem>>, vector<1x16x6xf32>
    %148 = vector.shape_cast %147 : vector<1x16x6xf32> to vector<16x6xf32>
    %cst_105 = arith.constant dense<0.000000e+00> : vector<16x35xf32>
    %149 = tpu.matmul %148, %146, %cst_105 {dimension_numbers = #tpu.dot_dimension_numbers<[1], [0], [0], [1], [0, 0, 1, 1], [], []>} : vector<16x6xf32>, vector<6x35xf32>, vector<16x35xf32> -> vector<16x35xf32>
    %150 = arith.addf %145, %149 : vector<16x35xf32>
    %151 = vector.extract_strided_slice %3 {offsets = [0, 2], sizes = [6, 35], strides = [1, 1]} : vector<6x56xf32> to vector<6x35xf32>
    %c4_106 = arith.constant 4 : index
    %c0_107 = arith.constant 0 : index
    %c0_108 = arith.constant 0 : index
    %152 = vector.load %arg2[%c4_106, %c0_107, %c0_108] : memref<25x16x6xf32, #tpu.memory_space<vmem>>, vector<1x16x6xf32>
    %153 = vector.shape_cast %152 : vector<1x16x6xf32> to vector<16x6xf32>
    %cst_109 = arith.constant dense<0.000000e+00> : vector<16x35xf32>
    %154 = tpu.matmul %153, %151, %cst_109 {dimension_numbers = #tpu.dot_dimension_numbers<[1], [0], [0], [1], [0, 0, 1, 1], [], []>} : vector<16x6xf32>, vector<6x35xf32>, vector<16x35xf32> -> vector<16x35xf32>
    %155 = arith.addf %150, %154 : vector<16x35xf32>
    %156 = vector.extract_strided_slice %7 {offsets = [0, 0], sizes = [6, 35], strides = [1, 1]} : vector<6x56xf32> to vector<6x35xf32>
    %c5_110 = arith.constant 5 : index
    %c0_111 = arith.constant 0 : index
    %c0_112 = arith.constant 0 : index
    %157 = vector.load %arg2[%c5_110, %c0_111, %c0_112] : memref<25x16x6xf32, #tpu.memory_space<vmem>>, vector<1x16x6xf32>
    %158 = vector.shape_cast %157 : vector<1x16x6xf32> to vector<16x6xf32>
    %cst_113 = arith.constant dense<0.000000e+00> : vector<16x35xf32>
    %159 = tpu.matmul %158, %156, %cst_113 {dimension_numbers = #tpu.dot_dimension_numbers<[1], [0], [0], [1], [0, 0, 1, 1], [], []>} : vector<16x6xf32>, vector<6x35xf32>, vector<16x35xf32> -> vector<16x35xf32>
    %160 = arith.addf %155, %159 : vector<16x35xf32>
    %161 = vector.extract_strided_slice %5 {offsets = [0, 1], sizes = [6, 35], strides = [1, 1]} : vector<6x56xf32> to vector<6x35xf32>
    %c6_114 = arith.constant 6 : index
    %c0_115 = arith.constant 0 : index
    %c0_116 = arith.constant 0 : index
    %162 = vector.load %arg2[%c6_114, %c0_115, %c0_116] : memref<25x16x6xf32, #tpu.memory_space<vmem>>, vector<1x16x6xf32>
    %163 = vector.shape_cast %162 : vector<1x16x6xf32> to vector<16x6xf32>
    %cst_117 = arith.constant dense<0.000000e+00> : vector<16x35xf32>
    %164 = tpu.matmul %163, %161, %cst_117 {dimension_numbers = #tpu.dot_dimension_numbers<[1], [0], [0], [1], [0, 0, 1, 1], [], []>} : vector<16x6xf32>, vector<6x35xf32>, vector<16x35xf32> -> vector<16x35xf32>
    %165 = arith.addf %160, %164 : vector<16x35xf32>
    %166 = vector.extract_strided_slice %7 {offsets = [0, 1], sizes = [6, 35], strides = [1, 1]} : vector<6x56xf32> to vector<6x35xf32>
    %c7_118 = arith.constant 7 : index
    %c0_119 = arith.constant 0 : index
    %c0_120 = arith.constant 0 : index
    %167 = vector.load %arg2[%c7_118, %c0_119, %c0_120] : memref<25x16x6xf32, #tpu.memory_space<vmem>>, vector<1x16x6xf32>
    %168 = vector.shape_cast %167 : vector<1x16x6xf32> to vector<16x6xf32>
    %cst_121 = arith.constant dense<0.000000e+00> : vector<16x35xf32>
    %169 = tpu.matmul %168, %166, %cst_121 {dimension_numbers = #tpu.dot_dimension_numbers<[1], [0], [0], [1], [0, 0, 1, 1], [], []>} : vector<16x6xf32>, vector<6x35xf32>, vector<16x35xf32> -> vector<16x35xf32>
    %170 = arith.addf %165, %169 : vector<16x35xf32>
    %171 = vector.extract_strided_slice %5 {offsets = [0, 2], sizes = [6, 35], strides = [1, 1]} : vector<6x56xf32> to vector<6x35xf32>
    %c8_122 = arith.constant 8 : index
    %c0_123 = arith.constant 0 : index
    %c0_124 = arith.constant 0 : index
    %172 = vector.load %arg2[%c8_122, %c0_123, %c0_124] : memref<25x16x6xf32, #tpu.memory_space<vmem>>, vector<1x16x6xf32>
    %173 = vector.shape_cast %172 : vector<1x16x6xf32> to vector<16x6xf32>
    %cst_125 = arith.constant dense<0.000000e+00> : vector<16x35xf32>
    %174 = tpu.matmul %173, %171, %cst_125 {dimension_numbers = #tpu.dot_dimension_numbers<[1], [0], [0], [1], [0, 0, 1, 1], [], []>} : vector<16x6xf32>, vector<6x35xf32>, vector<16x35xf32> -> vector<16x35xf32>
    %175 = arith.addf %170, %174 : vector<16x35xf32>
    %176 = vector.extract_strided_slice %7 {offsets = [0, 2], sizes = [6, 35], strides = [1, 1]} : vector<6x56xf32> to vector<6x35xf32>
    %c9_126 = arith.constant 9 : index
    %c0_127 = arith.constant 0 : index
    %c0_128 = arith.constant 0 : index
    %177 = vector.load %arg2[%c9_126, %c0_127, %c0_128] : memref<25x16x6xf32, #tpu.memory_space<vmem>>, vector<1x16x6xf32>
    %178 = vector.shape_cast %177 : vector<1x16x6xf32> to vector<16x6xf32>
    %cst_129 = arith.constant dense<0.000000e+00> : vector<16x35xf32>
    %179 = tpu.matmul %178, %176, %cst_129 {dimension_numbers = #tpu.dot_dimension_numbers<[1], [0], [0], [1], [0, 0, 1, 1], [], []>} : vector<16x6xf32>, vector<6x35xf32>, vector<16x35xf32> -> vector<16x35xf32>
    %180 = arith.addf %175, %179 : vector<16x35xf32>
    %181 = vector.extract_strided_slice %3 {offsets = [0, 7], sizes = [6, 35], strides = [1, 1]} : vector<6x56xf32> to vector<6x35xf32>
    %c10_130 = arith.constant 10 : index
    %c0_131 = arith.constant 0 : index
    %c0_132 = arith.constant 0 : index
    %182 = vector.load %arg2[%c10_130, %c0_131, %c0_132] : memref<25x16x6xf32, #tpu.memory_space<vmem>>, vector<1x16x6xf32>
    %183 = vector.shape_cast %182 : vector<1x16x6xf32> to vector<16x6xf32>
    %cst_133 = arith.constant dense<0.000000e+00> : vector<16x35xf32>
    %184 = tpu.matmul %183, %181, %cst_133 {dimension_numbers = #tpu.dot_dimension_numbers<[1], [0], [0], [1], [0, 0, 1, 1], [], []>} : vector<16x6xf32>, vector<6x35xf32>, vector<16x35xf32> -> vector<16x35xf32>
    %185 = arith.addf %180, %184 : vector<16x35xf32>
    %186 = vector.extract_strided_slice %1 {offsets = [0, 8], sizes = [6, 35], strides = [1, 1]} : vector<6x56xf32> to vector<6x35xf32>
    %c11_134 = arith.constant 11 : index
    %c0_135 = arith.constant 0 : index
    %c0_136 = arith.constant 0 : index
    %187 = vector.load %arg2[%c11_134, %c0_135, %c0_136] : memref<25x16x6xf32, #tpu.memory_space<vmem>>, vector<1x16x6xf32>
    %188 = vector.shape_cast %187 : vector<1x16x6xf32> to vector<16x6xf32>
    %cst_137 = arith.constant dense<0.000000e+00> : vector<16x35xf32>
    %189 = tpu.matmul %188, %186, %cst_137 {dimension_numbers = #tpu.dot_dimension_numbers<[1], [0], [0], [1], [0, 0, 1, 1], [], []>} : vector<16x6xf32>, vector<6x35xf32>, vector<16x35xf32> -> vector<16x35xf32>
    %190 = arith.addf %185, %189 : vector<16x35xf32>
    %191 = vector.extract_strided_slice %3 {offsets = [0, 8], sizes = [6, 35], strides = [1, 1]} : vector<6x56xf32> to vector<6x35xf32>
    %c12_138 = arith.constant 12 : index
    %c0_139 = arith.constant 0 : index
    %c0_140 = arith.constant 0 : index
    %192 = vector.load %arg2[%c12_138, %c0_139, %c0_140] : memref<25x16x6xf32, #tpu.memory_space<vmem>>, vector<1x16x6xf32>
    %193 = vector.shape_cast %192 : vector<1x16x6xf32> to vector<16x6xf32>
    %cst_141 = arith.constant dense<0.000000e+00> : vector<16x35xf32>
    %194 = tpu.matmul %193, %191, %cst_141 {dimension_numbers = #tpu.dot_dimension_numbers<[1], [0], [0], [1], [0, 0, 1, 1], [], []>} : vector<16x6xf32>, vector<6x35xf32>, vector<16x35xf32> -> vector<16x35xf32>
    %195 = arith.addf %190, %194 : vector<16x35xf32>
    %196 = vector.extract_strided_slice %1 {offsets = [0, 9], sizes = [6, 35], strides = [1, 1]} : vector<6x56xf32> to vector<6x35xf32>
    %c13_142 = arith.constant 13 : index
    %c0_143 = arith.constant 0 : index
    %c0_144 = arith.constant 0 : index
    %197 = vector.load %arg2[%c13_142, %c0_143, %c0_144] : memref<25x16x6xf32, #tpu.memory_space<vmem>>, vector<1x16x6xf32>
    %198 = vector.shape_cast %197 : vector<1x16x6xf32> to vector<16x6xf32>
    %cst_145 = arith.constant dense<0.000000e+00> : vector<16x35xf32>
    %199 = tpu.matmul %198, %196, %cst_145 {dimension_numbers = #tpu.dot_dimension_numbers<[1], [0], [0], [1], [0, 0, 1, 1], [], []>} : vector<16x6xf32>, vector<6x35xf32>, vector<16x35xf32> -> vector<16x35xf32>
    %200 = arith.addf %195, %199 : vector<16x35xf32>
    %201 = vector.extract_strided_slice %3 {offsets = [0, 9], sizes = [6, 35], strides = [1, 1]} : vector<6x56xf32> to vector<6x35xf32>
    %c14_146 = arith.constant 14 : index
    %c0_147 = arith.constant 0 : index
    %c0_148 = arith.constant 0 : index
    %202 = vector.load %arg2[%c14_146, %c0_147, %c0_148] : memref<25x16x6xf32, #tpu.memory_space<vmem>>, vector<1x16x6xf32>
    %203 = vector.shape_cast %202 : vector<1x16x6xf32> to vector<16x6xf32>
    %cst_149 = arith.constant dense<0.000000e+00> : vector<16x35xf32>
    %204 = tpu.matmul %203, %201, %cst_149 {dimension_numbers = #tpu.dot_dimension_numbers<[1], [0], [0], [1], [0, 0, 1, 1], [], []>} : vector<16x6xf32>, vector<6x35xf32>, vector<16x35xf32> -> vector<16x35xf32>
    %205 = arith.addf %200, %204 : vector<16x35xf32>
    %206 = vector.extract_strided_slice %7 {offsets = [0, 7], sizes = [6, 35], strides = [1, 1]} : vector<6x56xf32> to vector<6x35xf32>
    %c15_150 = arith.constant 15 : index
    %c0_151 = arith.constant 0 : index
    %c0_152 = arith.constant 0 : index
    %207 = vector.load %arg2[%c15_150, %c0_151, %c0_152] : memref<25x16x6xf32, #tpu.memory_space<vmem>>, vector<1x16x6xf32>
    %208 = vector.shape_cast %207 : vector<1x16x6xf32> to vector<16x6xf32>
    %cst_153 = arith.constant dense<0.000000e+00> : vector<16x35xf32>
    %209 = tpu.matmul %208, %206, %cst_153 {dimension_numbers = #tpu.dot_dimension_numbers<[1], [0], [0], [1], [0, 0, 1, 1], [], []>} : vector<16x6xf32>, vector<6x35xf32>, vector<16x35xf32> -> vector<16x35xf32>
    %210 = arith.addf %205, %209 : vector<16x35xf32>
    %211 = vector.extract_strided_slice %5 {offsets = [0, 8], sizes = [6, 35], strides = [1, 1]} : vector<6x56xf32> to vector<6x35xf32>
    %c16_154 = arith.constant 16 : index
    %c0_155 = arith.constant 0 : index
    %c0_156 = arith.constant 0 : index
    %212 = vector.load %arg2[%c16_154, %c0_155, %c0_156] : memref<25x16x6xf32, #tpu.memory_space<vmem>>, vector<1x16x6xf32>
    %213 = vector.shape_cast %212 : vector<1x16x6xf32> to vector<16x6xf32>
    %cst_157 = arith.constant dense<0.000000e+00> : vector<16x35xf32>
    %214 = tpu.matmul %213, %211, %cst_157 {dimension_numbers = #tpu.dot_dimension_numbers<[1], [0], [0], [1], [0, 0, 1, 1], [], []>} : vector<16x6xf32>, vector<6x35xf32>, vector<16x35xf32> -> vector<16x35xf32>
    %215 = arith.addf %210, %214 : vector<16x35xf32>
    %216 = vector.extract_strided_slice %7 {offsets = [0, 8], sizes = [6, 35], strides = [1, 1]} : vector<6x56xf32> to vector<6x35xf32>
    %c17_158 = arith.constant 17 : index
    %c0_159 = arith.constant 0 : index
    %c0_160 = arith.constant 0 : index
    %217 = vector.load %arg2[%c17_158, %c0_159, %c0_160] : memref<25x16x6xf32, #tpu.memory_space<vmem>>, vector<1x16x6xf32>
    %218 = vector.shape_cast %217 : vector<1x16x6xf32> to vector<16x6xf32>
    %cst_161 = arith.constant dense<0.000000e+00> : vector<16x35xf32>
    %219 = tpu.matmul %218, %216, %cst_161 {dimension_numbers = #tpu.dot_dimension_numbers<[1], [0], [0], [1], [0, 0, 1, 1], [], []>} : vector<16x6xf32>, vector<6x35xf32>, vector<16x35xf32> -> vector<16x35xf32>
    %220 = arith.addf %215, %219 : vector<16x35xf32>
    %221 = vector.extract_strided_slice %5 {offsets = [0, 9], sizes = [6, 35], strides = [1, 1]} : vector<6x56xf32> to vector<6x35xf32>
    %c18_162 = arith.constant 18 : index
    %c0_163 = arith.constant 0 : index
    %c0_164 = arith.constant 0 : index
    %222 = vector.load %arg2[%c18_162, %c0_163, %c0_164] : memref<25x16x6xf32, #tpu.memory_space<vmem>>, vector<1x16x6xf32>
    %223 = vector.shape_cast %222 : vector<1x16x6xf32> to vector<16x6xf32>
    %cst_165 = arith.constant dense<0.000000e+00> : vector<16x35xf32>
    %224 = tpu.matmul %223, %221, %cst_165 {dimension_numbers = #tpu.dot_dimension_numbers<[1], [0], [0], [1], [0, 0, 1, 1], [], []>} : vector<16x6xf32>, vector<6x35xf32>, vector<16x35xf32> -> vector<16x35xf32>
    %225 = arith.addf %220, %224 : vector<16x35xf32>
    %226 = vector.extract_strided_slice %7 {offsets = [0, 9], sizes = [6, 35], strides = [1, 1]} : vector<6x56xf32> to vector<6x35xf32>
    %c19_166 = arith.constant 19 : index
    %c0_167 = arith.constant 0 : index
    %c0_168 = arith.constant 0 : index
    %227 = vector.load %arg2[%c19_166, %c0_167, %c0_168] : memref<25x16x6xf32, #tpu.memory_space<vmem>>, vector<1x16x6xf32>
    %228 = vector.shape_cast %227 : vector<1x16x6xf32> to vector<16x6xf32>
    %cst_169 = arith.constant dense<0.000000e+00> : vector<16x35xf32>
    %229 = tpu.matmul %228, %226, %cst_169 {dimension_numbers = #tpu.dot_dimension_numbers<[1], [0], [0], [1], [0, 0, 1, 1], [], []>} : vector<16x6xf32>, vector<6x35xf32>, vector<16x35xf32> -> vector<16x35xf32>
    %230 = arith.addf %225, %229 : vector<16x35xf32>
    %231 = vector.extract_strided_slice %3 {offsets = [0, 14], sizes = [6, 35], strides = [1, 1]} : vector<6x56xf32> to vector<6x35xf32>
    %c20_170 = arith.constant 20 : index
    %c0_171 = arith.constant 0 : index
    %c0_172 = arith.constant 0 : index
    %232 = vector.load %arg2[%c20_170, %c0_171, %c0_172] : memref<25x16x6xf32, #tpu.memory_space<vmem>>, vector<1x16x6xf32>
    %233 = vector.shape_cast %232 : vector<1x16x6xf32> to vector<16x6xf32>
    %cst_173 = arith.constant dense<0.000000e+00> : vector<16x35xf32>
    %234 = tpu.matmul %233, %231, %cst_173 {dimension_numbers = #tpu.dot_dimension_numbers<[1], [0], [0], [1], [0, 0, 1, 1], [], []>} : vector<16x6xf32>, vector<6x35xf32>, vector<16x35xf32> -> vector<16x35xf32>
    %235 = arith.addf %230, %234 : vector<16x35xf32>
    %236 = vector.extract_strided_slice %1 {offsets = [0, 15], sizes = [6, 35], strides = [1, 1]} : vector<6x56xf32> to vector<6x35xf32>
    %c21_174 = arith.constant 21 : index
    %c0_175 = arith.constant 0 : index
    %c0_176 = arith.constant 0 : index
    %237 = vector.load %arg2[%c21_174, %c0_175, %c0_176] : memref<25x16x6xf32, #tpu.memory_space<vmem>>, vector<1x16x6xf32>
    %238 = vector.shape_cast %237 : vector<1x16x6xf32> to vector<16x6xf32>
    %cst_177 = arith.constant dense<0.000000e+00> : vector<16x35xf32>
    %239 = tpu.matmul %238, %236, %cst_177 {dimension_numbers = #tpu.dot_dimension_numbers<[1], [0], [0], [1], [0, 0, 1, 1], [], []>} : vector<16x6xf32>, vector<6x35xf32>, vector<16x35xf32> -> vector<16x35xf32>
    %240 = arith.addf %235, %239 : vector<16x35xf32>
    %241 = vector.extract_strided_slice %3 {offsets = [0, 15], sizes = [6, 35], strides = [1, 1]} : vector<6x56xf32> to vector<6x35xf32>
    %c22_178 = arith.constant 22 : index
    %c0_179 = arith.constant 0 : index
    %c0_180 = arith.constant 0 : index
    %242 = vector.load %arg2[%c22_178, %c0_179, %c0_180] : memref<25x16x6xf32, #tpu.memory_space<vmem>>, vector<1x16x6xf32>
    %243 = vector.shape_cast %242 : vector<1x16x6xf32> to vector<16x6xf32>
    %cst_181 = arith.constant dense<0.000000e+00> : vector<16x35xf32>
    %244 = tpu.matmul %243, %241, %cst_181 {dimension_numbers = #tpu.dot_dimension_numbers<[1], [0], [0], [1], [0, 0, 1, 1], [], []>} : vector<16x6xf32>, vector<6x35xf32>, vector<16x35xf32> -> vector<16x35xf32>
    %245 = arith.addf %240, %244 : vector<16x35xf32>
    %246 = vector.extract_strided_slice %1 {offsets = [0, 16], sizes = [6, 35], strides = [1, 1]} : vector<6x56xf32> to vector<6x35xf32>
    %c23_182 = arith.constant 23 : index
    %c0_183 = arith.constant 0 : index
    %c0_184 = arith.constant 0 : index
    %247 = vector.load %arg2[%c23_182, %c0_183, %c0_184] : memref<25x16x6xf32, #tpu.memory_space<vmem>>, vector<1x16x6xf32>
    %248 = vector.shape_cast %247 : vector<1x16x6xf32> to vector<16x6xf32>
    %cst_185 = arith.constant dense<0.000000e+00> : vector<16x35xf32>
    %249 = tpu.matmul %248, %246, %cst_185 {dimension_numbers = #tpu.dot_dimension_numbers<[1], [0], [0], [1], [0, 0, 1, 1], [], []>} : vector<16x6xf32>, vector<6x35xf32>, vector<16x35xf32> -> vector<16x35xf32>
    %250 = arith.addf %245, %249 : vector<16x35xf32>
    %251 = vector.extract_strided_slice %3 {offsets = [0, 16], sizes = [6, 35], strides = [1, 1]} : vector<6x56xf32> to vector<6x35xf32>
    %c24_186 = arith.constant 24 : index
    %c0_187 = arith.constant 0 : index
    %c0_188 = arith.constant 0 : index
    %252 = vector.load %arg2[%c24_186, %c0_187, %c0_188] : memref<25x16x6xf32, #tpu.memory_space<vmem>>, vector<1x16x6xf32>
    %253 = vector.shape_cast %252 : vector<1x16x6xf32> to vector<16x6xf32>
    %cst_189 = arith.constant dense<0.000000e+00> : vector<16x35xf32>
    %254 = tpu.matmul %253, %251, %cst_189 {dimension_numbers = #tpu.dot_dimension_numbers<[1], [0], [0], [1], [0, 0, 1, 1], [], []>} : vector<16x6xf32>, vector<6x35xf32>, vector<16x35xf32> -> vector<16x35xf32>
    %255 = arith.addf %250, %254 : vector<16x35xf32>
    %256 = arith.maximumf %131, %255 : vector<16x35xf32>
    %257 = vector.extract_strided_slice %5 {offsets = [0, 0], sizes = [6, 35], strides = [1, 1]} : vector<6x56xf32> to vector<6x35xf32>
    %c0_190 = arith.constant 0 : index
    %c0_191 = arith.constant 0 : index
    %c0_192 = arith.constant 0 : index
    %258 = vector.load %arg2[%c0_190, %c0_191, %c0_192] : memref<25x16x6xf32, #tpu.memory_space<vmem>>, vector<1x16x6xf32>
    %259 = vector.shape_cast %258 : vector<1x16x6xf32> to vector<16x6xf32>
    %cst_193 = arith.constant dense<0.000000e+00> : vector<16x35xf32>
    %260 = tpu.matmul %259, %257, %cst_193 {dimension_numbers = #tpu.dot_dimension_numbers<[1], [0], [0], [1], [0, 0, 1, 1], [], []>} : vector<16x6xf32>, vector<6x35xf32>, vector<16x35xf32> -> vector<16x35xf32>
    %261 = vector.extract_strided_slice %7 {offsets = [0, 0], sizes = [6, 35], strides = [1, 1]} : vector<6x56xf32> to vector<6x35xf32>
    %c1_194 = arith.constant 1 : index
    %c0_195 = arith.constant 0 : index
    %c0_196 = arith.constant 0 : index
    %262 = vector.load %arg2[%c1_194, %c0_195, %c0_196] : memref<25x16x6xf32, #tpu.memory_space<vmem>>, vector<1x16x6xf32>
    %263 = vector.shape_cast %262 : vector<1x16x6xf32> to vector<16x6xf32>
    %cst_197 = arith.constant dense<0.000000e+00> : vector<16x35xf32>
    %264 = tpu.matmul %263, %261, %cst_197 {dimension_numbers = #tpu.dot_dimension_numbers<[1], [0], [0], [1], [0, 0, 1, 1], [], []>} : vector<16x6xf32>, vector<6x35xf32>, vector<16x35xf32> -> vector<16x35xf32>
    %265 = arith.addf %260, %264 : vector<16x35xf32>
    %266 = vector.extract_strided_slice %5 {offsets = [0, 1], sizes = [6, 35], strides = [1, 1]} : vector<6x56xf32> to vector<6x35xf32>
    %c2_198 = arith.constant 2 : index
    %c0_199 = arith.constant 0 : index
    %c0_200 = arith.constant 0 : index
    %267 = vector.load %arg2[%c2_198, %c0_199, %c0_200] : memref<25x16x6xf32, #tpu.memory_space<vmem>>, vector<1x16x6xf32>
    %268 = vector.shape_cast %267 : vector<1x16x6xf32> to vector<16x6xf32>
    %cst_201 = arith.constant dense<0.000000e+00> : vector<16x35xf32>
    %269 = tpu.matmul %268, %266, %cst_201 {dimension_numbers = #tpu.dot_dimension_numbers<[1], [0], [0], [1], [0, 0, 1, 1], [], []>} : vector<16x6xf32>, vector<6x35xf32>, vector<16x35xf32> -> vector<16x35xf32>
    %270 = arith.addf %265, %269 : vector<16x35xf32>
    %271 = vector.extract_strided_slice %7 {offsets = [0, 1], sizes = [6, 35], strides = [1, 1]} : vector<6x56xf32> to vector<6x35xf32>
    %c3_202 = arith.constant 3 : index
    %c0_203 = arith.constant 0 : index
    %c0_204 = arith.constant 0 : index
    %272 = vector.load %arg2[%c3_202, %c0_203, %c0_204] : memref<25x16x6xf32, #tpu.memory_space<vmem>>, vector<1x16x6xf32>
    %273 = vector.shape_cast %272 : vector<1x16x6xf32> to vector<16x6xf32>
    %cst_205 = arith.constant dense<0.000000e+00> : vector<16x35xf32>
    %274 = tpu.matmul %273, %271, %cst_205 {dimension_numbers = #tpu.dot_dimension_numbers<[1], [0], [0], [1], [0, 0, 1, 1], [], []>} : vector<16x6xf32>, vector<6x35xf32>, vector<16x35xf32> -> vector<16x35xf32>
    %275 = arith.addf %270, %274 : vector<16x35xf32>
    %276 = vector.extract_strided_slice %5 {offsets = [0, 2], sizes = [6, 35], strides = [1, 1]} : vector<6x56xf32> to vector<6x35xf32>
    %c4_206 = arith.constant 4 : index
    %c0_207 = arith.constant 0 : index
    %c0_208 = arith.constant 0 : index
    %277 = vector.load %arg2[%c4_206, %c0_207, %c0_208] : memref<25x16x6xf32, #tpu.memory_space<vmem>>, vector<1x16x6xf32>
    %278 = vector.shape_cast %277 : vector<1x16x6xf32> to vector<16x6xf32>
    %cst_209 = arith.constant dense<0.000000e+00> : vector<16x35xf32>
    %279 = tpu.matmul %278, %276, %cst_209 {dimension_numbers = #tpu.dot_dimension_numbers<[1], [0], [0], [1], [0, 0, 1, 1], [], []>} : vector<16x6xf32>, vector<6x35xf32>, vector<16x35xf32> -> vector<16x35xf32>
    %280 = arith.addf %275, %279 : vector<16x35xf32>
    %281 = vector.extract_strided_slice %1 {offsets = [0, 7], sizes = [6, 35], strides = [1, 1]} : vector<6x56xf32> to vector<6x35xf32>
    %c5_210 = arith.constant 5 : index
    %c0_211 = arith.constant 0 : index
    %c0_212 = arith.constant 0 : index
    %282 = vector.load %arg2[%c5_210, %c0_211, %c0_212] : memref<25x16x6xf32, #tpu.memory_space<vmem>>, vector<1x16x6xf32>
    %283 = vector.shape_cast %282 : vector<1x16x6xf32> to vector<16x6xf32>
    %cst_213 = arith.constant dense<0.000000e+00> : vector<16x35xf32>
    %284 = tpu.matmul %283, %281, %cst_213 {dimension_numbers = #tpu.dot_dimension_numbers<[1], [0], [0], [1], [0, 0, 1, 1], [], []>} : vector<16x6xf32>, vector<6x35xf32>, vector<16x35xf32> -> vector<16x35xf32>
    %285 = arith.addf %280, %284 : vector<16x35xf32>
    %286 = vector.extract_strided_slice %3 {offsets = [0, 7], sizes = [6, 35], strides = [1, 1]} : vector<6x56xf32> to vector<6x35xf32>
    %c6_214 = arith.constant 6 : index
    %c0_215 = arith.constant 0 : index
    %c0_216 = arith.constant 0 : index
    %287 = vector.load %arg2[%c6_214, %c0_215, %c0_216] : memref<25x16x6xf32, #tpu.memory_space<vmem>>, vector<1x16x6xf32>
    %288 = vector.shape_cast %287 : vector<1x16x6xf32> to vector<16x6xf32>
    %cst_217 = arith.constant dense<0.000000e+00> : vector<16x35xf32>
    %289 = tpu.matmul %288, %286, %cst_217 {dimension_numbers = #tpu.dot_dimension_numbers<[1], [0], [0], [1], [0, 0, 1, 1], [], []>} : vector<16x6xf32>, vector<6x35xf32>, vector<16x35xf32> -> vector<16x35xf32>
    %290 = arith.addf %285, %289 : vector<16x35xf32>
    %291 = vector.extract_strided_slice %1 {offsets = [0, 8], sizes = [6, 35], strides = [1, 1]} : vector<6x56xf32> to vector<6x35xf32>
    %c7_218 = arith.constant 7 : index
    %c0_219 = arith.constant 0 : index
    %c0_220 = arith.constant 0 : index
    %292 = vector.load %arg2[%c7_218, %c0_219, %c0_220] : memref<25x16x6xf32, #tpu.memory_space<vmem>>, vector<1x16x6xf32>
    %293 = vector.shape_cast %292 : vector<1x16x6xf32> to vector<16x6xf32>
    %cst_221 = arith.constant dense<0.000000e+00> : vector<16x35xf32>
    %294 = tpu.matmul %293, %291, %cst_221 {dimension_numbers = #tpu.dot_dimension_numbers<[1], [0], [0], [1], [0, 0, 1, 1], [], []>} : vector<16x6xf32>, vector<6x35xf32>, vector<16x35xf32> -> vector<16x35xf32>
    %295 = arith.addf %290, %294 : vector<16x35xf32>
    %296 = vector.extract_strided_slice %3 {offsets = [0, 8], sizes = [6, 35], strides = [1, 1]} : vector<6x56xf32> to vector<6x35xf32>
    %c8_222 = arith.constant 8 : index
    %c0_223 = arith.constant 0 : index
    %c0_224 = arith.constant 0 : index
    %297 = vector.load %arg2[%c8_222, %c0_223, %c0_224] : memref<25x16x6xf32, #tpu.memory_space<vmem>>, vector<1x16x6xf32>
    %298 = vector.shape_cast %297 : vector<1x16x6xf32> to vector<16x6xf32>
    %cst_225 = arith.constant dense<0.000000e+00> : vector<16x35xf32>
    %299 = tpu.matmul %298, %296, %cst_225 {dimension_numbers = #tpu.dot_dimension_numbers<[1], [0], [0], [1], [0, 0, 1, 1], [], []>} : vector<16x6xf32>, vector<6x35xf32>, vector<16x35xf32> -> vector<16x35xf32>
    %300 = arith.addf %295, %299 : vector<16x35xf32>
    %301 = vector.extract_strided_slice %1 {offsets = [0, 9], sizes = [6, 35], strides = [1, 1]} : vector<6x56xf32> to vector<6x35xf32>
    %c9_226 = arith.constant 9 : index
    %c0_227 = arith.constant 0 : index
    %c0_228 = arith.constant 0 : index
    %302 = vector.load %arg2[%c9_226, %c0_227, %c0_228] : memref<25x16x6xf32, #tpu.memory_space<vmem>>, vector<1x16x6xf32>
    %303 = vector.shape_cast %302 : vector<1x16x6xf32> to vector<16x6xf32>
    %cst_229 = arith.constant dense<0.000000e+00> : vector<16x35xf32>
    %304 = tpu.matmul %303, %301, %cst_229 {dimension_numbers = #tpu.dot_dimension_numbers<[1], [0], [0], [1], [0, 0, 1, 1], [], []>} : vector<16x6xf32>, vector<6x35xf32>, vector<16x35xf32> -> vector<16x35xf32>
    %305 = arith.addf %300, %304 : vector<16x35xf32>
    %306 = vector.extract_strided_slice %5 {offsets = [0, 7], sizes = [6, 35], strides = [1, 1]} : vector<6x56xf32> to vector<6x35xf32>
    %c10_230 = arith.constant 10 : index
    %c0_231 = arith.constant 0 : index
    %c0_232 = arith.constant 0 : index
    %307 = vector.load %arg2[%c10_230, %c0_231, %c0_232] : memref<25x16x6xf32, #tpu.memory_space<vmem>>, vector<1x16x6xf32>
    %308 = vector.shape_cast %307 : vector<1x16x6xf32> to vector<16x6xf32>
    %cst_233 = arith.constant dense<0.000000e+00> : vector<16x35xf32>
    %309 = tpu.matmul %308, %306, %cst_233 {dimension_numbers = #tpu.dot_dimension_numbers<[1], [0], [0], [1], [0, 0, 1, 1], [], []>} : vector<16x6xf32>, vector<6x35xf32>, vector<16x35xf32> -> vector<16x35xf32>
    %310 = arith.addf %305, %309 : vector<16x35xf32>
    %311 = vector.extract_strided_slice %7 {offsets = [0, 7], sizes = [6, 35], strides = [1, 1]} : vector<6x56xf32> to vector<6x35xf32>
    %c11_234 = arith.constant 11 : index
    %c0_235 = arith.constant 0 : index
    %c0_236 = arith.constant 0 : index
    %312 = vector.load %arg2[%c11_234, %c0_235, %c0_236] : memref<25x16x6xf32, #tpu.memory_space<vmem>>, vector<1x16x6xf32>
    %313 = vector.shape_cast %312 : vector<1x16x6xf32> to vector<16x6xf32>
    %cst_237 = arith.constant dense<0.000000e+00> : vector<16x35xf32>
    %314 = tpu.matmul %313, %311, %cst_237 {dimension_numbers = #tpu.dot_dimension_numbers<[1], [0], [0], [1], [0, 0, 1, 1], [], []>} : vector<16x6xf32>, vector<6x35xf32>, vector<16x35xf32> -> vector<16x35xf32>
    %315 = arith.addf %310, %314 : vector<16x35xf32>
    %316 = vector.extract_strided_slice %5 {offsets = [0, 8], sizes = [6, 35], strides = [1, 1]} : vector<6x56xf32> to vector<6x35xf32>
    %c12_238 = arith.constant 12 : index
    %c0_239 = arith.constant 0 : index
    %c0_240 = arith.constant 0 : index
    %317 = vector.load %arg2[%c12_238, %c0_239, %c0_240] : memref<25x16x6xf32, #tpu.memory_space<vmem>>, vector<1x16x6xf32>
    %318 = vector.shape_cast %317 : vector<1x16x6xf32> to vector<16x6xf32>
    %cst_241 = arith.constant dense<0.000000e+00> : vector<16x35xf32>
    %319 = tpu.matmul %318, %316, %cst_241 {dimension_numbers = #tpu.dot_dimension_numbers<[1], [0], [0], [1], [0, 0, 1, 1], [], []>} : vector<16x6xf32>, vector<6x35xf32>, vector<16x35xf32> -> vector<16x35xf32>
    %320 = arith.addf %315, %319 : vector<16x35xf32>
    %321 = vector.extract_strided_slice %7 {offsets = [0, 8], sizes = [6, 35], strides = [1, 1]} : vector<6x56xf32> to vector<6x35xf32>
    %c13_242 = arith.constant 13 : index
    %c0_243 = arith.constant 0 : index
    %c0_244 = arith.constant 0 : index
    %322 = vector.load %arg2[%c13_242, %c0_243, %c0_244] : memref<25x16x6xf32, #tpu.memory_space<vmem>>, vector<1x16x6xf32>
    %323 = vector.shape_cast %322 : vector<1x16x6xf32> to vector<16x6xf32>
    %cst_245 = arith.constant dense<0.000000e+00> : vector<16x35xf32>
    %324 = tpu.matmul %323, %321, %cst_245 {dimension_numbers = #tpu.dot_dimension_numbers<[1], [0], [0], [1], [0, 0, 1, 1], [], []>} : vector<16x6xf32>, vector<6x35xf32>, vector<16x35xf32> -> vector<16x35xf32>
    %325 = arith.addf %320, %324 : vector<16x35xf32>
    %326 = vector.extract_strided_slice %5 {offsets = [0, 9], sizes = [6, 35], strides = [1, 1]} : vector<6x56xf32> to vector<6x35xf32>
    %c14_246 = arith.constant 14 : index
    %c0_247 = arith.constant 0 : index
    %c0_248 = arith.constant 0 : index
    %327 = vector.load %arg2[%c14_246, %c0_247, %c0_248] : memref<25x16x6xf32, #tpu.memory_space<vmem>>, vector<1x16x6xf32>
    %328 = vector.shape_cast %327 : vector<1x16x6xf32> to vector<16x6xf32>
    %cst_249 = arith.constant dense<0.000000e+00> : vector<16x35xf32>
    %329 = tpu.matmul %328, %326, %cst_249 {dimension_numbers = #tpu.dot_dimension_numbers<[1], [0], [0], [1], [0, 0, 1, 1], [], []>} : vector<16x6xf32>, vector<6x35xf32>, vector<16x35xf32> -> vector<16x35xf32>
    %330 = arith.addf %325, %329 : vector<16x35xf32>
    %331 = vector.extract_strided_slice %1 {offsets = [0, 14], sizes = [6, 35], strides = [1, 1]} : vector<6x56xf32> to vector<6x35xf32>
    %c15_250 = arith.constant 15 : index
    %c0_251 = arith.constant 0 : index
    %c0_252 = arith.constant 0 : index
    %332 = vector.load %arg2[%c15_250, %c0_251, %c0_252] : memref<25x16x6xf32, #tpu.memory_space<vmem>>, vector<1x16x6xf32>
    %333 = vector.shape_cast %332 : vector<1x16x6xf32> to vector<16x6xf32>
    %cst_253 = arith.constant dense<0.000000e+00> : vector<16x35xf32>
    %334 = tpu.matmul %333, %331, %cst_253 {dimension_numbers = #tpu.dot_dimension_numbers<[1], [0], [0], [1], [0, 0, 1, 1], [], []>} : vector<16x6xf32>, vector<6x35xf32>, vector<16x35xf32> -> vector<16x35xf32>
    %335 = arith.addf %330, %334 : vector<16x35xf32>
    %336 = vector.extract_strided_slice %3 {offsets = [0, 14], sizes = [6, 35], strides = [1, 1]} : vector<6x56xf32> to vector<6x35xf32>
    %c16_254 = arith.constant 16 : index
    %c0_255 = arith.constant 0 : index
    %c0_256 = arith.constant 0 : index
    %337 = vector.load %arg2[%c16_254, %c0_255, %c0_256] : memref<25x16x6xf32, #tpu.memory_space<vmem>>, vector<1x16x6xf32>
    %338 = vector.shape_cast %337 : vector<1x16x6xf32> to vector<16x6xf32>
    %cst_257 = arith.constant dense<0.000000e+00> : vector<16x35xf32>
    %339 = tpu.matmul %338, %336, %cst_257 {dimension_numbers = #tpu.dot_dimension_numbers<[1], [0], [0], [1], [0, 0, 1, 1], [], []>} : vector<16x6xf32>, vector<6x35xf32>, vector<16x35xf32> -> vector<16x35xf32>
    %340 = arith.addf %335, %339 : vector<16x35xf32>
    %341 = vector.extract_strided_slice %1 {offsets = [0, 15], sizes = [6, 35], strides = [1, 1]} : vector<6x56xf32> to vector<6x35xf32>
    %c17_258 = arith.constant 17 : index
    %c0_259 = arith.constant 0 : index
    %c0_260 = arith.constant 0 : index
    %342 = vector.load %arg2[%c17_258, %c0_259, %c0_260] : memref<25x16x6xf32, #tpu.memory_space<vmem>>, vector<1x16x6xf32>
    %343 = vector.shape_cast %342 : vector<1x16x6xf32> to vector<16x6xf32>
    %cst_261 = arith.constant dense<0.000000e+00> : vector<16x35xf32>
    %344 = tpu.matmul %343, %341, %cst_261 {dimension_numbers = #tpu.dot_dimension_numbers<[1], [0], [0], [1], [0, 0, 1, 1], [], []>} : vector<16x6xf32>, vector<6x35xf32>, vector<16x35xf32> -> vector<16x35xf32>
    %345 = arith.addf %340, %344 : vector<16x35xf32>
    %346 = vector.extract_strided_slice %3 {offsets = [0, 15], sizes = [6, 35], strides = [1, 1]} : vector<6x56xf32> to vector<6x35xf32>
    %c18_262 = arith.constant 18 : index
    %c0_263 = arith.constant 0 : index
    %c0_264 = arith.constant 0 : index
    %347 = vector.load %arg2[%c18_262, %c0_263, %c0_264] : memref<25x16x6xf32, #tpu.memory_space<vmem>>, vector<1x16x6xf32>
    %348 = vector.shape_cast %347 : vector<1x16x6xf32> to vector<16x6xf32>
    %cst_265 = arith.constant dense<0.000000e+00> : vector<16x35xf32>
    %349 = tpu.matmul %348, %346, %cst_265 {dimension_numbers = #tpu.dot_dimension_numbers<[1], [0], [0], [1], [0, 0, 1, 1], [], []>} : vector<16x6xf32>, vector<6x35xf32>, vector<16x35xf32> -> vector<16x35xf32>
    %350 = arith.addf %345, %349 : vector<16x35xf32>
    %351 = vector.extract_strided_slice %1 {offsets = [0, 16], sizes = [6, 35], strides = [1, 1]} : vector<6x56xf32> to vector<6x35xf32>
    %c19_266 = arith.constant 19 : index
    %c0_267 = arith.constant 0 : index
    %c0_268 = arith.constant 0 : index
    %352 = vector.load %arg2[%c19_266, %c0_267, %c0_268] : memref<25x16x6xf32, #tpu.memory_space<vmem>>, vector<1x16x6xf32>
    %353 = vector.shape_cast %352 : vector<1x16x6xf32> to vector<16x6xf32>
    %cst_269 = arith.constant dense<0.000000e+00> : vector<16x35xf32>
    %354 = tpu.matmul %353, %351, %cst_269 {dimension_numbers = #tpu.dot_dimension_numbers<[1], [0], [0], [1], [0, 0, 1, 1], [], []>} : vector<16x6xf32>, vector<6x35xf32>, vector<16x35xf32> -> vector<16x35xf32>
    %355 = arith.addf %350, %354 : vector<16x35xf32>
    %356 = vector.extract_strided_slice %5 {offsets = [0, 14], sizes = [6, 35], strides = [1, 1]} : vector<6x56xf32> to vector<6x35xf32>
    %c20_270 = arith.constant 20 : index
    %c0_271 = arith.constant 0 : index
    %c0_272 = arith.constant 0 : index
    %357 = vector.load %arg2[%c20_270, %c0_271, %c0_272] : memref<25x16x6xf32, #tpu.memory_space<vmem>>, vector<1x16x6xf32>
    %358 = vector.shape_cast %357 : vector<1x16x6xf32> to vector<16x6xf32>
    %cst_273 = arith.constant dense<0.000000e+00> : vector<16x35xf32>
    %359 = tpu.matmul %358, %356, %cst_273 {dimension_numbers = #tpu.dot_dimension_numbers<[1], [0], [0], [1], [0, 0, 1, 1], [], []>} : vector<16x6xf32>, vector<6x35xf32>, vector<16x35xf32> -> vector<16x35xf32>
    %360 = arith.addf %355, %359 : vector<16x35xf32>
    %361 = vector.extract_strided_slice %7 {offsets = [0, 14], sizes = [6, 35], strides = [1, 1]} : vector<6x56xf32> to vector<6x35xf32>
    %c21_274 = arith.constant 21 : index
    %c0_275 = arith.constant 0 : index
    %c0_276 = arith.constant 0 : index
    %362 = vector.load %arg2[%c21_274, %c0_275, %c0_276] : memref<25x16x6xf32, #tpu.memory_space<vmem>>, vector<1x16x6xf32>
    %363 = vector.shape_cast %362 : vector<1x16x6xf32> to vector<16x6xf32>
    %cst_277 = arith.constant dense<0.000000e+00> : vector<16x35xf32>
    %364 = tpu.matmul %363, %361, %cst_277 {dimension_numbers = #tpu.dot_dimension_numbers<[1], [0], [0], [1], [0, 0, 1, 1], [], []>} : vector<16x6xf32>, vector<6x35xf32>, vector<16x35xf32> -> vector<16x35xf32>
    %365 = arith.addf %360, %364 : vector<16x35xf32>
    %366 = vector.extract_strided_slice %5 {offsets = [0, 15], sizes = [6, 35], strides = [1, 1]} : vector<6x56xf32> to vector<6x35xf32>
    %c22_278 = arith.constant 22 : index
    %c0_279 = arith.constant 0 : index
    %c0_280 = arith.constant 0 : index
    %367 = vector.load %arg2[%c22_278, %c0_279, %c0_280] : memref<25x16x6xf32, #tpu.memory_space<vmem>>, vector<1x16x6xf32>
    %368 = vector.shape_cast %367 : vector<1x16x6xf32> to vector<16x6xf32>
    %cst_281 = arith.constant dense<0.000000e+00> : vector<16x35xf32>
    %369 = tpu.matmul %368, %366, %cst_281 {dimension_numbers = #tpu.dot_dimension_numbers<[1], [0], [0], [1], [0, 0, 1, 1], [], []>} : vector<16x6xf32>, vector<6x35xf32>, vector<16x35xf32> -> vector<16x35xf32>
    %370 = arith.addf %365, %369 : vector<16x35xf32>
    %371 = vector.extract_strided_slice %7 {offsets = [0, 15], sizes = [6, 35], strides = [1, 1]} : vector<6x56xf32> to vector<6x35xf32>
    %c23_282 = arith.constant 23 : index
    %c0_283 = arith.constant 0 : index
    %c0_284 = arith.constant 0 : index
    %372 = vector.load %arg2[%c23_282, %c0_283, %c0_284] : memref<25x16x6xf32, #tpu.memory_space<vmem>>, vector<1x16x6xf32>
    %373 = vector.shape_cast %372 : vector<1x16x6xf32> to vector<16x6xf32>
    %cst_285 = arith.constant dense<0.000000e+00> : vector<16x35xf32>
    %374 = tpu.matmul %373, %371, %cst_285 {dimension_numbers = #tpu.dot_dimension_numbers<[1], [0], [0], [1], [0, 0, 1, 1], [], []>} : vector<16x6xf32>, vector<6x35xf32>, vector<16x35xf32> -> vector<16x35xf32>
    %375 = arith.addf %370, %374 : vector<16x35xf32>
    %376 = vector.extract_strided_slice %5 {offsets = [0, 16], sizes = [6, 35], strides = [1, 1]} : vector<6x56xf32> to vector<6x35xf32>
    %c24_286 = arith.constant 24 : index
    %c0_287 = arith.constant 0 : index
    %c0_288 = arith.constant 0 : index
    %377 = vector.load %arg2[%c24_286, %c0_287, %c0_288] : memref<25x16x6xf32, #tpu.memory_space<vmem>>, vector<1x16x6xf32>
    %378 = vector.shape_cast %377 : vector<1x16x6xf32> to vector<16x6xf32>
    %cst_289 = arith.constant dense<0.000000e+00> : vector<16x35xf32>
    %379 = tpu.matmul %378, %376, %cst_289 {dimension_numbers = #tpu.dot_dimension_numbers<[1], [0], [0], [1], [0, 0, 1, 1], [], []>} : vector<16x6xf32>, vector<6x35xf32>, vector<16x35xf32> -> vector<16x35xf32>
    %380 = arith.addf %375, %379 : vector<16x35xf32>
    %381 = arith.maximumf %256, %380 : vector<16x35xf32>
    %382 = vector.extract_strided_slice %7 {offsets = [0, 0], sizes = [6, 35], strides = [1, 1]} : vector<6x56xf32> to vector<6x35xf32>
    %c0_290 = arith.constant 0 : index
    %c0_291 = arith.constant 0 : index
    %c0_292 = arith.constant 0 : index
    %383 = vector.load %arg2[%c0_290, %c0_291, %c0_292] : memref<25x16x6xf32, #tpu.memory_space<vmem>>, vector<1x16x6xf32>
    %384 = vector.shape_cast %383 : vector<1x16x6xf32> to vector<16x6xf32>
    %cst_293 = arith.constant dense<0.000000e+00> : vector<16x35xf32>
    %385 = tpu.matmul %384, %382, %cst_293 {dimension_numbers = #tpu.dot_dimension_numbers<[1], [0], [0], [1], [0, 0, 1, 1], [], []>} : vector<16x6xf32>, vector<6x35xf32>, vector<16x35xf32> -> vector<16x35xf32>
    %386 = vector.extract_strided_slice %5 {offsets = [0, 1], sizes = [6, 35], strides = [1, 1]} : vector<6x56xf32> to vector<6x35xf32>
    %c1_294 = arith.constant 1 : index
    %c0_295 = arith.constant 0 : index
    %c0_296 = arith.constant 0 : index
    %387 = vector.load %arg2[%c1_294, %c0_295, %c0_296] : memref<25x16x6xf32, #tpu.memory_space<vmem>>, vector<1x16x6xf32>
    %388 = vector.shape_cast %387 : vector<1x16x6xf32> to vector<16x6xf32>
    %cst_297 = arith.constant dense<0.000000e+00> : vector<16x35xf32>
    %389 = tpu.matmul %388, %386, %cst_297 {dimension_numbers = #tpu.dot_dimension_numbers<[1], [0], [0], [1], [0, 0, 1, 1], [], []>} : vector<16x6xf32>, vector<6x35xf32>, vector<16x35xf32> -> vector<16x35xf32>
    %390 = arith.addf %385, %389 : vector<16x35xf32>
    %391 = vector.extract_strided_slice %7 {offsets = [0, 1], sizes = [6, 35], strides = [1, 1]} : vector<6x56xf32> to vector<6x35xf32>
    %c2_298 = arith.constant 2 : index
    %c0_299 = arith.constant 0 : index
    %c0_300 = arith.constant 0 : index
    %392 = vector.load %arg2[%c2_298, %c0_299, %c0_300] : memref<25x16x6xf32, #tpu.memory_space<vmem>>, vector<1x16x6xf32>
    %393 = vector.shape_cast %392 : vector<1x16x6xf32> to vector<16x6xf32>
    %cst_301 = arith.constant dense<0.000000e+00> : vector<16x35xf32>
    %394 = tpu.matmul %393, %391, %cst_301 {dimension_numbers = #tpu.dot_dimension_numbers<[1], [0], [0], [1], [0, 0, 1, 1], [], []>} : vector<16x6xf32>, vector<6x35xf32>, vector<16x35xf32> -> vector<16x35xf32>
    %395 = arith.addf %390, %394 : vector<16x35xf32>
    %396 = vector.extract_strided_slice %5 {offsets = [0, 2], sizes = [6, 35], strides = [1, 1]} : vector<6x56xf32> to vector<6x35xf32>
    %c3_302 = arith.constant 3 : index
    %c0_303 = arith.constant 0 : index
    %c0_304 = arith.constant 0 : index
    %397 = vector.load %arg2[%c3_302, %c0_303, %c0_304] : memref<25x16x6xf32, #tpu.memory_space<vmem>>, vector<1x16x6xf32>
    %398 = vector.shape_cast %397 : vector<1x16x6xf32> to vector<16x6xf32>
    %cst_305 = arith.constant dense<0.000000e+00> : vector<16x35xf32>
    %399 = tpu.matmul %398, %396, %cst_305 {dimension_numbers = #tpu.dot_dimension_numbers<[1], [0], [0], [1], [0, 0, 1, 1], [], []>} : vector<16x6xf32>, vector<6x35xf32>, vector<16x35xf32> -> vector<16x35xf32>
    %400 = arith.addf %395, %399 : vector<16x35xf32>
    %401 = vector.extract_strided_slice %7 {offsets = [0, 2], sizes = [6, 35], strides = [1, 1]} : vector<6x56xf32> to vector<6x35xf32>
    %c4_306 = arith.constant 4 : index
    %c0_307 = arith.constant 0 : index
    %c0_308 = arith.constant 0 : index
    %402 = vector.load %arg2[%c4_306, %c0_307, %c0_308] : memref<25x16x6xf32, #tpu.memory_space<vmem>>, vector<1x16x6xf32>
    %403 = vector.shape_cast %402 : vector<1x16x6xf32> to vector<16x6xf32>
    %cst_309 = arith.constant dense<0.000000e+00> : vector<16x35xf32>
    %404 = tpu.matmul %403, %401, %cst_309 {dimension_numbers = #tpu.dot_dimension_numbers<[1], [0], [0], [1], [0, 0, 1, 1], [], []>} : vector<16x6xf32>, vector<6x35xf32>, vector<16x35xf32> -> vector<16x35xf32>
    %405 = arith.addf %400, %404 : vector<16x35xf32>
    %406 = vector.extract_strided_slice %3 {offsets = [0, 7], sizes = [6, 35], strides = [1, 1]} : vector<6x56xf32> to vector<6x35xf32>
    %c5_310 = arith.constant 5 : index
    %c0_311 = arith.constant 0 : index
    %c0_312 = arith.constant 0 : index
    %407 = vector.load %arg2[%c5_310, %c0_311, %c0_312] : memref<25x16x6xf32, #tpu.memory_space<vmem>>, vector<1x16x6xf32>
    %408 = vector.shape_cast %407 : vector<1x16x6xf32> to vector<16x6xf32>
    %cst_313 = arith.constant dense<0.000000e+00> : vector<16x35xf32>
    %409 = tpu.matmul %408, %406, %cst_313 {dimension_numbers = #tpu.dot_dimension_numbers<[1], [0], [0], [1], [0, 0, 1, 1], [], []>} : vector<16x6xf32>, vector<6x35xf32>, vector<16x35xf32> -> vector<16x35xf32>
    %410 = arith.addf %405, %409 : vector<16x35xf32>
    %411 = vector.extract_strided_slice %1 {offsets = [0, 8], sizes = [6, 35], strides = [1, 1]} : vector<6x56xf32> to vector<6x35xf32>
    %c6_314 = arith.constant 6 : index
    %c0_315 = arith.constant 0 : index
    %c0_316 = arith.constant 0 : index
    %412 = vector.load %arg2[%c6_314, %c0_315, %c0_316] : memref<25x16x6xf32, #tpu.memory_space<vmem>>, vector<1x16x6xf32>
    %413 = vector.shape_cast %412 : vector<1x16x6xf32> to vector<16x6xf32>
    %cst_317 = arith.constant dense<0.000000e+00> : vector<16x35xf32>
    %414 = tpu.matmul %413, %411, %cst_317 {dimension_numbers = #tpu.dot_dimension_numbers<[1], [0], [0], [1], [0, 0, 1, 1], [], []>} : vector<16x6xf32>, vector<6x35xf32>, vector<16x35xf32> -> vector<16x35xf32>
    %415 = arith.addf %410, %414 : vector<16x35xf32>
    %416 = vector.extract_strided_slice %3 {offsets = [0, 8], sizes = [6, 35], strides = [1, 1]} : vector<6x56xf32> to vector<6x35xf32>
    %c7_318 = arith.constant 7 : index
    %c0_319 = arith.constant 0 : index
    %c0_320 = arith.constant 0 : index
    %417 = vector.load %arg2[%c7_318, %c0_319, %c0_320] : memref<25x16x6xf32, #tpu.memory_space<vmem>>, vector<1x16x6xf32>
    %418 = vector.shape_cast %417 : vector<1x16x6xf32> to vector<16x6xf32>
    %cst_321 = arith.constant dense<0.000000e+00> : vector<16x35xf32>
    %419 = tpu.matmul %418, %416, %cst_321 {dimension_numbers = #tpu.dot_dimension_numbers<[1], [0], [0], [1], [0, 0, 1, 1], [], []>} : vector<16x6xf32>, vector<6x35xf32>, vector<16x35xf32> -> vector<16x35xf32>
    %420 = arith.addf %415, %419 : vector<16x35xf32>
    %421 = vector.extract_strided_slice %1 {offsets = [0, 9], sizes = [6, 35], strides = [1, 1]} : vector<6x56xf32> to vector<6x35xf32>
    %c8_322 = arith.constant 8 : index
    %c0_323 = arith.constant 0 : index
    %c0_324 = arith.constant 0 : index
    %422 = vector.load %arg2[%c8_322, %c0_323, %c0_324] : memref<25x16x6xf32, #tpu.memory_space<vmem>>, vector<1x16x6xf32>
    %423 = vector.shape_cast %422 : vector<1x16x6xf32> to vector<16x6xf32>
    %cst_325 = arith.constant dense<0.000000e+00> : vector<16x35xf32>
    %424 = tpu.matmul %423, %421, %cst_325 {dimension_numbers = #tpu.dot_dimension_numbers<[1], [0], [0], [1], [0, 0, 1, 1], [], []>} : vector<16x6xf32>, vector<6x35xf32>, vector<16x35xf32> -> vector<16x35xf32>
    %425 = arith.addf %420, %424 : vector<16x35xf32>
    %426 = vector.extract_strided_slice %3 {offsets = [0, 9], sizes = [6, 35], strides = [1, 1]} : vector<6x56xf32> to vector<6x35xf32>
    %c9_326 = arith.constant 9 : index
    %c0_327 = arith.constant 0 : index
    %c0_328 = arith.constant 0 : index
    %427 = vector.load %arg2[%c9_326, %c0_327, %c0_328] : memref<25x16x6xf32, #tpu.memory_space<vmem>>, vector<1x16x6xf32>
    %428 = vector.shape_cast %427 : vector<1x16x6xf32> to vector<16x6xf32>
    %cst_329 = arith.constant dense<0.000000e+00> : vector<16x35xf32>
    %429 = tpu.matmul %428, %426, %cst_329 {dimension_numbers = #tpu.dot_dimension_numbers<[1], [0], [0], [1], [0, 0, 1, 1], [], []>} : vector<16x6xf32>, vector<6x35xf32>, vector<16x35xf32> -> vector<16x35xf32>
    %430 = arith.addf %425, %429 : vector<16x35xf32>
    %431 = vector.extract_strided_slice %7 {offsets = [0, 7], sizes = [6, 35], strides = [1, 1]} : vector<6x56xf32> to vector<6x35xf32>
    %c10_330 = arith.constant 10 : index
    %c0_331 = arith.constant 0 : index
    %c0_332 = arith.constant 0 : index
    %432 = vector.load %arg2[%c10_330, %c0_331, %c0_332] : memref<25x16x6xf32, #tpu.memory_space<vmem>>, vector<1x16x6xf32>
    %433 = vector.shape_cast %432 : vector<1x16x6xf32> to vector<16x6xf32>
    %cst_333 = arith.constant dense<0.000000e+00> : vector<16x35xf32>
    %434 = tpu.matmul %433, %431, %cst_333 {dimension_numbers = #tpu.dot_dimension_numbers<[1], [0], [0], [1], [0, 0, 1, 1], [], []>} : vector<16x6xf32>, vector<6x35xf32>, vector<16x35xf32> -> vector<16x35xf32>
    %435 = arith.addf %430, %434 : vector<16x35xf32>
    %436 = vector.extract_strided_slice %5 {offsets = [0, 8], sizes = [6, 35], strides = [1, 1]} : vector<6x56xf32> to vector<6x35xf32>
    %c11_334 = arith.constant 11 : index
    %c0_335 = arith.constant 0 : index
    %c0_336 = arith.constant 0 : index
    %437 = vector.load %arg2[%c11_334, %c0_335, %c0_336] : memref<25x16x6xf32, #tpu.memory_space<vmem>>, vector<1x16x6xf32>
    %438 = vector.shape_cast %437 : vector<1x16x6xf32> to vector<16x6xf32>
    %cst_337 = arith.constant dense<0.000000e+00> : vector<16x35xf32>
    %439 = tpu.matmul %438, %436, %cst_337 {dimension_numbers = #tpu.dot_dimension_numbers<[1], [0], [0], [1], [0, 0, 1, 1], [], []>} : vector<16x6xf32>, vector<6x35xf32>, vector<16x35xf32> -> vector<16x35xf32>
    %440 = arith.addf %435, %439 : vector<16x35xf32>
    %441 = vector.extract_strided_slice %7 {offsets = [0, 8], sizes = [6, 35], strides = [1, 1]} : vector<6x56xf32> to vector<6x35xf32>
    %c12_338 = arith.constant 12 : index
    %c0_339 = arith.constant 0 : index
    %c0_340 = arith.constant 0 : index
    %442 = vector.load %arg2[%c12_338, %c0_339, %c0_340] : memref<25x16x6xf32, #tpu.memory_space<vmem>>, vector<1x16x6xf32>
    %443 = vector.shape_cast %442 : vector<1x16x6xf32> to vector<16x6xf32>
    %cst_341 = arith.constant dense<0.000000e+00> : vector<16x35xf32>
    %444 = tpu.matmul %443, %441, %cst_341 {dimension_numbers = #tpu.dot_dimension_numbers<[1], [0], [0], [1], [0, 0, 1, 1], [], []>} : vector<16x6xf32>, vector<6x35xf32>, vector<16x35xf32> -> vector<16x35xf32>
    %445 = arith.addf %440, %444 : vector<16x35xf32>
    %446 = vector.extract_strided_slice %5 {offsets = [0, 9], sizes = [6, 35], strides = [1, 1]} : vector<6x56xf32> to vector<6x35xf32>
    %c13_342 = arith.constant 13 : index
    %c0_343 = arith.constant 0 : index
    %c0_344 = arith.constant 0 : index
    %447 = vector.load %arg2[%c13_342, %c0_343, %c0_344] : memref<25x16x6xf32, #tpu.memory_space<vmem>>, vector<1x16x6xf32>
    %448 = vector.shape_cast %447 : vector<1x16x6xf32> to vector<16x6xf32>
    %cst_345 = arith.constant dense<0.000000e+00> : vector<16x35xf32>
    %449 = tpu.matmul %448, %446, %cst_345 {dimension_numbers = #tpu.dot_dimension_numbers<[1], [0], [0], [1], [0, 0, 1, 1], [], []>} : vector<16x6xf32>, vector<6x35xf32>, vector<16x35xf32> -> vector<16x35xf32>
    %450 = arith.addf %445, %449 : vector<16x35xf32>
    %451 = vector.extract_strided_slice %7 {offsets = [0, 9], sizes = [6, 35], strides = [1, 1]} : vector<6x56xf32> to vector<6x35xf32>
    %c14_346 = arith.constant 14 : index
    %c0_347 = arith.constant 0 : index
    %c0_348 = arith.constant 0 : index
    %452 = vector.load %arg2[%c14_346, %c0_347, %c0_348] : memref<25x16x6xf32, #tpu.memory_space<vmem>>, vector<1x16x6xf32>
    %453 = vector.shape_cast %452 : vector<1x16x6xf32> to vector<16x6xf32>
    %cst_349 = arith.constant dense<0.000000e+00> : vector<16x35xf32>
    %454 = tpu.matmul %453, %451, %cst_349 {dimension_numbers = #tpu.dot_dimension_numbers<[1], [0], [0], [1], [0, 0, 1, 1], [], []>} : vector<16x6xf32>, vector<6x35xf32>, vector<16x35xf32> -> vector<16x35xf32>
    %455 = arith.addf %450, %454 : vector<16x35xf32>
    %456 = vector.extract_strided_slice %3 {offsets = [0, 14], sizes = [6, 35], strides = [1, 1]} : vector<6x56xf32> to vector<6x35xf32>
    %c15_350 = arith.constant 15 : index
    %c0_351 = arith.constant 0 : index
    %c0_352 = arith.constant 0 : index
    %457 = vector.load %arg2[%c15_350, %c0_351, %c0_352] : memref<25x16x6xf32, #tpu.memory_space<vmem>>, vector<1x16x6xf32>
    %458 = vector.shape_cast %457 : vector<1x16x6xf32> to vector<16x6xf32>
    %cst_353 = arith.constant dense<0.000000e+00> : vector<16x35xf32>
    %459 = tpu.matmul %458, %456, %cst_353 {dimension_numbers = #tpu.dot_dimension_numbers<[1], [0], [0], [1], [0, 0, 1, 1], [], []>} : vector<16x6xf32>, vector<6x35xf32>, vector<16x35xf32> -> vector<16x35xf32>
    %460 = arith.addf %455, %459 : vector<16x35xf32>
    %461 = vector.extract_strided_slice %1 {offsets = [0, 15], sizes = [6, 35], strides = [1, 1]} : vector<6x56xf32> to vector<6x35xf32>
    %c16_354 = arith.constant 16 : index
    %c0_355 = arith.constant 0 : index
    %c0_356 = arith.constant 0 : index
    %462 = vector.load %arg2[%c16_354, %c0_355, %c0_356] : memref<25x16x6xf32, #tpu.memory_space<vmem>>, vector<1x16x6xf32>
    %463 = vector.shape_cast %462 : vector<1x16x6xf32> to vector<16x6xf32>
    %cst_357 = arith.constant dense<0.000000e+00> : vector<16x35xf32>
    %464 = tpu.matmul %463, %461, %cst_357 {dimension_numbers = #tpu.dot_dimension_numbers<[1], [0], [0], [1], [0, 0, 1, 1], [], []>} : vector<16x6xf32>, vector<6x35xf32>, vector<16x35xf32> -> vector<16x35xf32>
    %465 = arith.addf %460, %464 : vector<16x35xf32>
    %466 = vector.extract_strided_slice %3 {offsets = [0, 15], sizes = [6, 35], strides = [1, 1]} : vector<6x56xf32> to vector<6x35xf32>
    %c17_358 = arith.constant 17 : index
    %c0_359 = arith.constant 0 : index
    %c0_360 = arith.constant 0 : index
    %467 = vector.load %arg2[%c17_358, %c0_359, %c0_360] : memref<25x16x6xf32, #tpu.memory_space<vmem>>, vector<1x16x6xf32>
    %468 = vector.shape_cast %467 : vector<1x16x6xf32> to vector<16x6xf32>
    %cst_361 = arith.constant dense<0.000000e+00> : vector<16x35xf32>
    %469 = tpu.matmul %468, %466, %cst_361 {dimension_numbers = #tpu.dot_dimension_numbers<[1], [0], [0], [1], [0, 0, 1, 1], [], []>} : vector<16x6xf32>, vector<6x35xf32>, vector<16x35xf32> -> vector<16x35xf32>
    %470 = arith.addf %465, %469 : vector<16x35xf32>
    %471 = vector.extract_strided_slice %1 {offsets = [0, 16], sizes = [6, 35], strides = [1, 1]} : vector<6x56xf32> to vector<6x35xf32>
    %c18_362 = arith.constant 18 : index
    %c0_363 = arith.constant 0 : index
    %c0_364 = arith.constant 0 : index
    %472 = vector.load %arg2[%c18_362, %c0_363, %c0_364] : memref<25x16x6xf32, #tpu.memory_space<vmem>>, vector<1x16x6xf32>
    %473 = vector.shape_cast %472 : vector<1x16x6xf32> to vector<16x6xf32>
    %cst_365 = arith.constant dense<0.000000e+00> : vector<16x35xf32>
    %474 = tpu.matmul %473, %471, %cst_365 {dimension_numbers = #tpu.dot_dimension_numbers<[1], [0], [0], [1], [0, 0, 1, 1], [], []>} : vector<16x6xf32>, vector<6x35xf32>, vector<16x35xf32> -> vector<16x35xf32>
    %475 = arith.addf %470, %474 : vector<16x35xf32>
    %476 = vector.extract_strided_slice %3 {offsets = [0, 16], sizes = [6, 35], strides = [1, 1]} : vector<6x56xf32> to vector<6x35xf32>
    %c19_366 = arith.constant 19 : index
    %c0_367 = arith.constant 0 : index
    %c0_368 = arith.constant 0 : index
    %477 = vector.load %arg2[%c19_366, %c0_367, %c0_368] : memref<25x16x6xf32, #tpu.memory_space<vmem>>, vector<1x16x6xf32>
    %478 = vector.shape_cast %477 : vector<1x16x6xf32> to vector<16x6xf32>
    %cst_369 = arith.constant dense<0.000000e+00> : vector<16x35xf32>
    %479 = tpu.matmul %478, %476, %cst_369 {dimension_numbers = #tpu.dot_dimension_numbers<[1], [0], [0], [1], [0, 0, 1, 1], [], []>} : vector<16x6xf32>, vector<6x35xf32>, vector<16x35xf32> -> vector<16x35xf32>
    %480 = arith.addf %475, %479 : vector<16x35xf32>
    %481 = vector.extract_strided_slice %7 {offsets = [0, 14], sizes = [6, 35], strides = [1, 1]} : vector<6x56xf32> to vector<6x35xf32>
    %c20_370 = arith.constant 20 : index
    %c0_371 = arith.constant 0 : index
    %c0_372 = arith.constant 0 : index
    %482 = vector.load %arg2[%c20_370, %c0_371, %c0_372] : memref<25x16x6xf32, #tpu.memory_space<vmem>>, vector<1x16x6xf32>
    %483 = vector.shape_cast %482 : vector<1x16x6xf32> to vector<16x6xf32>
    %cst_373 = arith.constant dense<0.000000e+00> : vector<16x35xf32>
    %484 = tpu.matmul %483, %481, %cst_373 {dimension_numbers = #tpu.dot_dimension_numbers<[1], [0], [0], [1], [0, 0, 1, 1], [], []>} : vector<16x6xf32>, vector<6x35xf32>, vector<16x35xf32> -> vector<16x35xf32>
    %485 = arith.addf %480, %484 : vector<16x35xf32>
    %486 = vector.extract_strided_slice %5 {offsets = [0, 15], sizes = [6, 35], strides = [1, 1]} : vector<6x56xf32> to vector<6x35xf32>
    %c21_374 = arith.constant 21 : index
    %c0_375 = arith.constant 0 : index
    %c0_376 = arith.constant 0 : index
    %487 = vector.load %arg2[%c21_374, %c0_375, %c0_376] : memref<25x16x6xf32, #tpu.memory_space<vmem>>, vector<1x16x6xf32>
    %488 = vector.shape_cast %487 : vector<1x16x6xf32> to vector<16x6xf32>
    %cst_377 = arith.constant dense<0.000000e+00> : vector<16x35xf32>
    %489 = tpu.matmul %488, %486, %cst_377 {dimension_numbers = #tpu.dot_dimension_numbers<[1], [0], [0], [1], [0, 0, 1, 1], [], []>} : vector<16x6xf32>, vector<6x35xf32>, vector<16x35xf32> -> vector<16x35xf32>
    %490 = arith.addf %485, %489 : vector<16x35xf32>
    %491 = vector.extract_strided_slice %7 {offsets = [0, 15], sizes = [6, 35], strides = [1, 1]} : vector<6x56xf32> to vector<6x35xf32>
    %c22_378 = arith.constant 22 : index
    %c0_379 = arith.constant 0 : index
    %c0_380 = arith.constant 0 : index
    %492 = vector.load %arg2[%c22_378, %c0_379, %c0_380] : memref<25x16x6xf32, #tpu.memory_space<vmem>>, vector<1x16x6xf32>
    %493 = vector.shape_cast %492 : vector<1x16x6xf32> to vector<16x6xf32>
    %cst_381 = arith.constant dense<0.000000e+00> : vector<16x35xf32>
    %494 = tpu.matmul %493, %491, %cst_381 {dimension_numbers = #tpu.dot_dimension_numbers<[1], [0], [0], [1], [0, 0, 1, 1], [], []>} : vector<16x6xf32>, vector<6x35xf32>, vector<16x35xf32> -> vector<16x35xf32>
    %495 = arith.addf %490, %494 : vector<16x35xf32>
    %496 = vector.extract_strided_slice %5 {offsets = [0, 16], sizes = [6, 35], strides = [1, 1]} : vector<6x56xf32> to vector<6x35xf32>
    %c23_382 = arith.constant 23 : index
    %c0_383 = arith.constant 0 : index
    %c0_384 = arith.constant 0 : index
    %497 = vector.load %arg2[%c23_382, %c0_383, %c0_384] : memref<25x16x6xf32, #tpu.memory_space<vmem>>, vector<1x16x6xf32>
    %498 = vector.shape_cast %497 : vector<1x16x6xf32> to vector<16x6xf32>
    %cst_385 = arith.constant dense<0.000000e+00> : vector<16x35xf32>
    %499 = tpu.matmul %498, %496, %cst_385 {dimension_numbers = #tpu.dot_dimension_numbers<[1], [0], [0], [1], [0, 0, 1, 1], [], []>} : vector<16x6xf32>, vector<6x35xf32>, vector<16x35xf32> -> vector<16x35xf32>
    %500 = arith.addf %495, %499 : vector<16x35xf32>
    %501 = vector.extract_strided_slice %7 {offsets = [0, 16], sizes = [6, 35], strides = [1, 1]} : vector<6x56xf32> to vector<6x35xf32>
    %c24_386 = arith.constant 24 : index
    %c0_387 = arith.constant 0 : index
    %c0_388 = arith.constant 0 : index
    %502 = vector.load %arg2[%c24_386, %c0_387, %c0_388] : memref<25x16x6xf32, #tpu.memory_space<vmem>>, vector<1x16x6xf32>
    %503 = vector.shape_cast %502 : vector<1x16x6xf32> to vector<16x6xf32>
    %cst_389 = arith.constant dense<0.000000e+00> : vector<16x35xf32>
    %504 = tpu.matmul %503, %501, %cst_389 {dimension_numbers = #tpu.dot_dimension_numbers<[1], [0], [0], [1], [0, 0, 1, 1], [], []>} : vector<16x6xf32>, vector<6x35xf32>, vector<16x35xf32> -> vector<16x35xf32>
    %505 = arith.addf %500, %504 : vector<16x35xf32>
    %506 = arith.maximumf %381, %505 : vector<16x35xf32>
    %c0_390 = arith.constant 0 : index
    %c0_391 = arith.constant 0 : index
    %507 = vector.load %arg3[%c0_390, %c0_391] : memref<16x1xf32, #tpu.memory_space<vmem>>, vector<16x1xf32>
    %508 = vector.broadcast %507 : vector<16x1xf32> to vector<16x35xf32>
    %509 = arith.addf %506, %508 : vector<16x35xf32>
    %cst_392 = arith.constant 0.000000e+00 : f32
    %510 = vector.broadcast %cst_392 : f32 to vector<16x35xf32>
    %511 = arith.maximumf %509, %510 : vector<16x35xf32>
    %c0_393 = arith.constant 0 : index
    %c0_394 = arith.constant 0 : index
    %c0_395 = arith.constant 0 : index
    %512 = vector.load %arg4[%c0_393, %c0_394, %c0_395] : memref<1x16x35xf32, #tpu.memory_space<vmem>>, vector<1x16x35xf32>
    %513 = vector.shape_cast %512 : vector<1x16x35xf32> to vector<16x35xf32>
    %514 = vector.shape_cast %511 : vector<16x35xf32> to vector<1x16x35xf32>
    tpu.vector_store %arg4[%c0_393, %c0_394, %c0_395], %514 {strides = array<i32>} : memref<1x16x35xf32, #tpu.memory_space<vmem>>, vector<1x16x35xf32>,
    return
  }
  func.func @transform_0(%arg0: i32) -> (i32, i32, i32, i32) {
    %c0_i32 = arith.constant 0 : i32
    %c0_i32_0 = arith.constant 0 : i32
    %c0_i32_1 = arith.constant 0 : i32
    %c0_i32_2 = arith.constant 0 : i32
    return %arg0, %c0_i32, %c0_i32_0, %c0_i32_1 : i32, i32, i32, i32
  }
  func.func @transform_1(%arg0: i32) -> (i32, i32, i32) {
    %c0_i32 = arith.constant 0 : i32
    %c0_i32_0 = arith.constant 0 : i32
    %c0_i32_1 = arith.constant 0 : i32
    %c0_i32_2 = arith.constant 0 : i32
    return %c0_i32, %c0_i32_0, %c0_i32_1 : i32, i32, i32
  }
  func.func @transform_2(%arg0: i32) -> (i32, i32) {
    %c0_i32 = arith.constant 0 : i32
    %c0_i32_0 = arith.constant 0 : i32
    %c0_i32_1 = arith.constant 0 : i32
    return %c0_i32, %c0_i32_0 : i32, i32
  }
  func.func @transform_3(%arg0: i32) -> (i32, i32, i32) {
    %c0_i32 = arith.constant 0 : i32
    %c0_i32_0 = arith.constant 0 : i32
    %c0_i32_1 = arith.constant 0 : i32
    return %arg0, %c0_i32, %c0_i32_0 : i32, i32, i32
  }
}

module attributes {stable_mosaic.version = 11 : i64} {
  func.func @_fc3_kernel(%arg0: i32, %arg1: memref<400x2xbf16, #tpu.memory_space<vmem>>, %arg2: memref<120x400xbf16, #tpu.memory_space<vmem>>, %arg3: memref<120x1xf32, #tpu.memory_space<vmem>>, %arg4: memref<84x120xbf16, #tpu.memory_space<vmem>>, %arg5: memref<84x1xf32, #tpu.memory_space<vmem>>, %arg6: memref<10x84xbf16, #tpu.memory_space<vmem>>, %arg7: memref<10x1xf32, #tpu.memory_space<vmem>>, %arg8: memref<10x2xf32, #tpu.memory_space<vmem>>) attributes {dimension_semantics = [#tpu.dimension_semantics<parallel>], iteration_bounds = array<i64: 1>, scalar_prefetch = 0 : i64, scratch_operands = 0 : i64, tpu.core_type = #tpu.core_type<tc>, window_params = [{transform_indices = @transform_0, window_bounds = array<i64: 400, 2>}, {pipeline_mode = #tpu.pipeline_mode<synchronous>, transform_indices = @transform_1, window_bounds = array<i64: 120, 400>}, {pipeline_mode = #tpu.pipeline_mode<synchronous>, transform_indices = @transform_2, window_bounds = array<i64: 120, 1>}, {pipeline_mode = #tpu.pipeline_mode<synchronous>, transform_indices = @transform_3, window_bounds = array<i64: 84, 120>}, {pipeline_mode = #tpu.pipeline_mode<synchronous>, transform_indices = @transform_4, window_bounds = array<i64: 84, 1>}, {pipeline_mode = #tpu.pipeline_mode<synchronous>, transform_indices = @transform_5, window_bounds = array<i64: 10, 84>}, {pipeline_mode = #tpu.pipeline_mode<synchronous>, transform_indices = @transform_6, window_bounds = array<i64: 10, 1>}, {transform_indices = @transform_7, window_bounds = array<i64: 10, 2>}]} {
    %c0 = arith.constant 0 : index
    %c0_0 = arith.constant 0 : index
    %0 = vector.load %arg2[%c0, %c0_0] : memref<120x400xbf16, #tpu.memory_space<vmem>>, vector<120x400xbf16>
    %c0_1 = arith.constant 0 : index
    %c0_2 = arith.constant 0 : index
    %1 = vector.load %arg1[%c0_1, %c0_2] : memref<400x2xbf16, #tpu.memory_space<vmem>>, vector<400x2xbf16>
    %cst = arith.constant dense<0.000000e+00> : vector<120x2xf32>
    %2 = tpu.matmul %0, %1, %cst {dimension_numbers = #tpu.dot_dimension_numbers<[1], [0], [0], [1], [0, 0, 1, 1], [], []>} : vector<120x400xbf16>, vector<400x2xbf16>, vector<120x2xf32> -> vector<120x2xf32>
    %c0_3 = arith.constant 0 : index
    %c0_4 = arith.constant 0 : index
    %3 = vector.load %arg3[%c0_3, %c0_4] : memref<120x1xf32, #tpu.memory_space<vmem>>, vector<120x1xf32>
    %4 = vector.broadcast %3 : vector<120x1xf32> to vector<120x2xf32>
    %5 = arith.addf %2, %4 : vector<120x2xf32>
    %cst_5 = arith.constant 0.000000e+00 : f32
    %6 = vector.broadcast %cst_5 : f32 to vector<120x2xf32>
    %7 = arith.maximumf %5, %6 : vector<120x2xf32>
    %c0_6 = arith.constant 0 : index
    %c0_7 = arith.constant 0 : index
    %8 = vector.load %arg4[%c0_6, %c0_7] : memref<84x120xbf16, #tpu.memory_space<vmem>>, vector<84x120xbf16>
    %9 = arith.truncf %7 : vector<120x2xf32> to vector<120x2xbf16>
    %cst_8 = arith.constant dense<0.000000e+00> : vector<84x2xf32>
    %10 = tpu.matmul %8, %9, %cst_8 {dimension_numbers = #tpu.dot_dimension_numbers<[1], [0], [0], [1], [0, 0, 1, 1], [], []>} : vector<84x120xbf16>, vector<120x2xbf16>, vector<84x2xf32> -> vector<84x2xf32>
    %c0_9 = arith.constant 0 : index
    %c0_10 = arith.constant 0 : index
    %11 = vector.load %arg5[%c0_9, %c0_10] : memref<84x1xf32, #tpu.memory_space<vmem>>, vector<84x1xf32>
    %12 = vector.broadcast %11 : vector<84x1xf32> to vector<84x2xf32>
    %13 = arith.addf %10, %12 : vector<84x2xf32>
    %cst_11 = arith.constant 0.000000e+00 : f32
    %14 = vector.broadcast %cst_11 : f32 to vector<84x2xf32>
    %15 = arith.maximumf %13, %14 : vector<84x2xf32>
    %c0_12 = arith.constant 0 : index
    %c0_13 = arith.constant 0 : index
    %16 = vector.load %arg6[%c0_12, %c0_13] : memref<10x84xbf16, #tpu.memory_space<vmem>>, vector<10x84xbf16>
    %17 = arith.truncf %15 : vector<84x2xf32> to vector<84x2xbf16>
    %cst_14 = arith.constant dense<0.000000e+00> : vector<10x2xf32>
    %18 = tpu.matmul %16, %17, %cst_14 {dimension_numbers = #tpu.dot_dimension_numbers<[1], [0], [0], [1], [0, 0, 1, 1], [], []>} : vector<10x84xbf16>, vector<84x2xbf16>, vector<10x2xf32> -> vector<10x2xf32>
    %c0_15 = arith.constant 0 : index
    %c0_16 = arith.constant 0 : index
    %19 = vector.load %arg7[%c0_15, %c0_16] : memref<10x1xf32, #tpu.memory_space<vmem>>, vector<10x1xf32>
    %20 = vector.broadcast %19 : vector<10x1xf32> to vector<10x2xf32>
    %21 = arith.addf %18, %20 : vector<10x2xf32>
    %cst_17 = arith.constant 0.000000e+00 : f32
    %22 = vector.broadcast %cst_17 : f32 to vector<10x2xf32>
    %23 = arith.maximumf %21, %22 : vector<10x2xf32>
    %c0_18 = arith.constant 0 : index
    %c0_19 = arith.constant 0 : index
    %24 = vector.load %arg8[%c0_18, %c0_19] : memref<10x2xf32, #tpu.memory_space<vmem>>, vector<10x2xf32>
    tpu.vector_store %arg8[%c0_18, %c0_19], %23 {strides = array<i32>} : memref<10x2xf32, #tpu.memory_space<vmem>>, vector<10x2xf32>,
    return
  }
  func.func @transform_0(%arg0: i32) -> (i32, i32) {
    %c0_i32 = arith.constant 0 : i32
    %c0_i32_0 = arith.constant 0 : i32
    return %c0_i32, %arg0 : i32, i32
  }
  func.func @transform_1(%arg0: i32) -> (i32, i32) {
    %c0_i32 = arith.constant 0 : i32
    %c0_i32_0 = arith.constant 0 : i32
    %c0_i32_1 = arith.constant 0 : i32
    return %c0_i32, %c0_i32_0 : i32, i32
  }
  func.func @transform_2(%arg0: i32) -> (i32, i32) {
    %c0_i32 = arith.constant 0 : i32
    %c0_i32_0 = arith.constant 0 : i32
    %c0_i32_1 = arith.constant 0 : i32
    return %c0_i32, %c0_i32_0 : i32, i32
  }
  func.func @transform_3(%arg0: i32) -> (i32, i32) {
    %c0_i32 = arith.constant 0 : i32
    %c0_i32_0 = arith.constant 0 : i32
    %c0_i32_1 = arith.constant 0 : i32
    return %c0_i32, %c0_i32_0 : i32, i32
  }
  func.func @transform_4(%arg0: i32) -> (i32, i32) {
    %c0_i32 = arith.constant 0 : i32
    %c0_i32_0 = arith.constant 0 : i32
    %c0_i32_1 = arith.constant 0 : i32
    return %c0_i32, %c0_i32_0 : i32, i32
  }
  func.func @transform_5(%arg0: i32) -> (i32, i32) {
    %c0_i32 = arith.constant 0 : i32
    %c0_i32_0 = arith.constant 0 : i32
    %c0_i32_1 = arith.constant 0 : i32
    return %c0_i32, %c0_i32_0 : i32, i32
  }
  func.func @transform_6(%arg0: i32) -> (i32, i32) {
    %c0_i32 = arith.constant 0 : i32
    %c0_i32_0 = arith.constant 0 : i32
    %c0_i32_1 = arith.constant 0 : i32
    return %c0_i32, %c0_i32_0 : i32, i32
  }
  func.func @transform_7(%arg0: i32) -> (i32, i32) {
    %c0_i32 = arith.constant 0 : i32
    %c0_i32_0 = arith.constant 0 : i32
    return %c0_i32, %arg0 : i32, i32
  }
}

</mosaic_0001>

<bundles_post_ra>
// kernel: cnn_forward.3
= control target key start
LH: loop header
LB: loop body
LE: loop exit
PB: predicated region body
PF: predicated region fallthrough
CT: control target
= control target key end

     0   :  { %s1871_s12 = smov 0   ;;  %s3027_s0 = inlined_call_operand.vmem [shape: f32[2,4,1,272], index: 0, kind: input, shape index: {}]   ;;  %s3028_s1 = inlined_call_operand.vmem [shape: f32[25,6,1], index: 1, kind: input, shape index: {}]   ;;  %s3029_s2 = inlined_call_operand.vmem [shape: f32[6,1], index: 2, kind: input, shape index: {}]   ;;  %s3030_s3 = inlined_call_operand.vmem [shape: f32[2,6,224], index: 3, kind: output, shape index: {}]  }
   0x1 LB: > { %s1775_s13 = sadd.s32 4294967295, %s1840_s12   ;;  %p1779_p0 = scmp.ge.s32.totalorder %s1840_s12, 1  ;;  %s1840_s12 = sphi %s1871_s12, %s13_s12  }
   0x2   : > { %p136_p1 = scmp.lt.s32.totalorder %s1840_s12, 3 }
   0x4   : > { %p137_p2 = pnand %p1779_p0, %p136_p1 }
   0x6   : > { %140 = sbr.rel (%p137_p2) target bundleno = 1083 (0x43b), region = 32 }
   0xb   : > { %v1786_v0 = vld [vmem:[%s3028_s1 + $0x10] sm:$0x3f]  ;;  %v1842_v1 = vmov 0   ;;  %v1787_v2 = vld [vmem:[%s3028_s1 + $0x18] sm:$0x3f]  ;;  %p159_p3 = scmp.lt.s32.totalorder %s1775_s13, 1 }
   0xc   : > { %1831 = vset.pattern.permute.xlu1 %v1842_v1  ;;  %1832 = vset.pattern.permute.xlu2 %v1842_v1  ;;  %v1791_v3 = vld [vmem:[%s3028_s1 + $0x38] sm:$0x3f]  ;;  %v1788_v4 = vld [vmem:[%s3028_s1 + $0x20] sm:$0x3f]  ;;  %v1789_v6 = vld [vmem:[%s3028_s1 + $0x28] sm:$0x3f] }
   0xd   : > { %208 = vperm.xlu1 %1831, %v1786_v0   ;;  %229 = vperm.xlu2 %1832, %v1787_v2   ;;  %v1792_v5 = vld [vmem:[%s3028_s1 + $0x40] sm:$0x3f]  ;;  %v1793_v7 = vld [vmem:[%s3028_s1 + $0x48] sm:$0x3f]  ;;  %v1794_v8 = vld [vmem:[%s3028_s1 + $0x50] sm:$0x3f] }
   0xe   : > { %1830 = vset.pattern.permute.xlu0 %v1842_v1  ;;  %v1795_v9 = vld [vmem:[%s3028_s1 + $0x58] sm:$0x3f]  ;;  %v1796_v10 = vld [vmem:[%s3028_s1 + $0x60] sm:$0x3f]  ;;  %v1797_v12 = vld [vmem:[%s3028_s1 + $0x68] sm:$0x3f] }
   0xf   : > { %v175_v11 = vld [vmem:[%s3028_s1] sm:$0x3f]  ;;  %v1785_v13 = vld [vmem:[%s3028_s1 + $0x8] sm:$0x3f]  ;;  %v1798_v14 = vld [vmem:[%s3028_s1 + $0x70] sm:$0x3f] }
  0x10   : > { %178 = vperm.xlu0 %1830, %v175_v11   ;;  %v1790_v15 = vld [vmem:[%s3028_s1 + $0x30] sm:$0x3f]  ;;  %v1799_v16 = vld [vmem:[%s3028_s1 + $0x78] sm:$0x3f]  ;;  %s3138_s13 = smov (!%p159_p3, %s1775_s13), 1  ;;  %s1843_s29 = smov 127  }
  0x11   : > { %v1800_v17 = vld [vmem:[%s3028_s1 + $0x80] sm:$0x3f]  ;;  %s1812_s23 = smul.u32 12, %s3138_s13  ;;  %v1801_v19 = vld [vmem:[%s3028_s1 + $0x88] sm:$0x3f]  ;;  %s1844_s30 = smov 126  }
  0x12   : > { %v1802_v49 = vld [vmem:[%s3028_s1 + $0x90] sm:$0x3f]  ;;  %v1803_v53 = vld [vmem:[%s3028_s1 + $0x98] sm:$0x3f]  ;;  %s1845_s8 = smov 112   ;;  %s1846_s15 = smov 111  }
  0x13   : > { %s1940_s26 = scalar_lea.vmem %s3027_s0, %s1812_s23  ;;  %v1804_v57 = vld [vmem:[%s3028_s1 + $0xa0] sm:$0x3f]  ;;  %v1805_v61 = vld [vmem:[%s3028_s1 + $0xa8] sm:$0x3f]  ;;  %v1806_v1 = vld [vmem:[%s3028_s1 + $0xb0] sm:$0x3f] }
  0x14   : > { %v1943_v18 = vld [vmem:[%s1940_s26 + $0x3] sm:$0x7]  ;;  %v1956_v23 = vld [vmem:[%s1940_s26] sm:$0x7]  ;;  %v1979_v31 = vld [vmem:[%s1940_s26 + $0x6] sm:$0x7] }
  0x15   : > { %302 = vperm.xlu1 %1831, %v1791_v3   ;;  %249 = vperm.xlu2 %1832, %v1788_v4   ;;  %v1949_v20 = vperm.slane %v1943_v18, 0  ;;  %v1960_v24 = vperm.slane %v1956_v23, 0  ;;  %v1968_v27 = vperm.slane %v1956_v23, 1  ;;  %v1982_v32 = vperm.slane %v1943_v18, 1  ;;  %v1784_v39 = vld [vmem:[%s1940_s26 + $0x9] sm:$0x7] }
  0x16   : > { %v1985_v33 = vperm.slane %v1979_v31, 0  ;;  %v1988_v34 = vperm.slane %v1979_v31, 1  ;;  %v2002_v40 = vperm.slane %v1784_v39, 0  ;;  %v2004_v41 = vperm.slane %v1784_v39, 1  ;;  %s1847_s18 = smov 110   ;;  %s1848_s19 = smov 96  }
  0x17   : > { %s1849_s20 = smov 95   ;;  %s1850_s25 = smov 94   ;;  %vm219_vm0 = vcmask 1039360   ;;  %vm260_vm1 = vcmask 1031168   ;;  %vm373_vm2 = vcmask 916480   ;;  %vm414_vm3 = vcmask 908288  }
  0x18   : > { %192 = vperm.xlu0 %1830, %v1785_v13   ;;  %vm455_vm4 = vcmask 900096   ;;  %vm576_vm5 = vcmask 785408   ;;  %vm623_vm6 = vcmask 777216   ;;  %vm676_vm7 = vcmask 769024   ;;  %s1811_s28 = sshll.u32 %s3138_s13, 4 }
  0x19   : > { %s167_s4 = scalar_lea.vmem %s3030_s3, %s1811_s28  ;;  %vm1718_vm8 = vcmask 783360  }
  0x1d   : > { %322 = vperm.xlu1 %1831, %v1792_v5   ;;  %270 = vperm.xlu2 %1832, %v1789_v6  }
  0x20   : > { %286 = vperm.xlu0 %1830, %v1790_v15  }
  0x25   : > { %342 = vperm.xlu1 %1831, %v1793_v7  }
  0x2d   : > { %362 = vperm.xlu1 %1831, %v1794_v8  }
  0x35   : > { %383 = vperm.xlu1 %1831, %v1795_v9  }
  0x3d   : > { %403 = vperm.xlu1 %1831, %v1796_v10  }
  0x45   : > { %424 = vperm.xlu1 %1831, %v1797_v12  }
  0x4d   : > { %444 = vperm.xlu1 %1831, %v1798_v14  }
  0x55   : > { %465 = vperm.xlu1 %1831, %v1799_v16  }
  0x5d   : > { %485 = vperm.xlu1 %1831, %v1800_v17  }
  0x65   : > { %505 = vperm.xlu1 %1831, %v1801_v19  }
  0x67   : > { %v1951_v21 = vpop.permute.xlu2 %229 }
  0x68   : > { %v232_v22 = vmul.f32 %v1951_v21, %v1949_v20  ;;  %v233_v36 = vmul.f32 %v1951_v21, %v1982_v32 }
  0x6a   : > { %236 = vrot.lane.b32.xlu0 %v232_v22, %s1843_s29 }
  0x6f   : > { %v1962_v25 = vpop.permute.xlu2 %249 }
  0x70   : > { %v252_v26 = vmul.f32 %v1962_v25, %v1960_v24  ;;  %v253_v45 = vmul.f32 %v1962_v25, %v1968_v27 }
  0x72   : > { %256 = vrot.lane.b32.xlu0 %v252_v26, %s1844_s30 }
  0x77   : > { %v2104_v14 = vpop.permute.xlu2 %270 }
  0x7f   : > { %v1970_v28 = vpop.permute.xlu1 %208 }
  0x80   : > { %v212_v29 = vmul.f32 %v1970_v28, %v1968_v27  ;;  %v211_v30 = vmul.f32 %v1970_v28, %v1960_v24 }
  0x82   : > { %217 = vrot.lane.b32.xlu2 %v212_v29, %s1843_s29  ;;  %215 = vrot.lane.b32.xlu1 %v211_v30, %s1843_s29 }
  0x87   : > { %v1990_v35 = vpop.permute.xlu1 %302 }
  0x88   : > { %v305_v37 = vmul.f32 %v1990_v35, %v1985_v33  ;;  %v306_v38 = vmul.f32 %v1990_v35, %v1988_v34 }
  0x8a   : > { %309 = vrot.lane.b32.xlu2 %v305_v37, %s1843_s29  ;;  %311 = vrot.lane.b32.xlu0 %v306_v38, %s1843_s29 }
  0x8b   : > { %238 = vrot.lane.b32.xlu1 %v233_v36, %s1843_s29 }
  0x8f   : > { %v2006_v42 = vpop.permute.xlu1 %322 }
  0x90   : > { %v325_v43 = vmul.f32 %v2006_v42, %v2002_v40  ;;  %v326_v44 = vmul.f32 %v2006_v42, %v2004_v41 }
  0x92   : > { %329 = vrot.lane.b32.xlu2 %v325_v43, %s1843_s29  ;;  %331 = vrot.lane.b32.xlu0 %v326_v44, %s1843_s29 }
  0x93   : > { %258 = vrot.lane.b32.xlu1 %v253_v45, %s1844_s30 }
  0x97   : > { %v2017_v46 = vpop.permute.xlu1 %342 }
  0x98   : > { %v345_v47 = vmul.f32 %v2017_v46, %v1985_v33  ;;  %v346_v48 = vmul.f32 %v2017_v46, %v1988_v34 }
  0x9a   : > { %349 = vrot.lane.b32.xlu2 %v345_v47, %s1844_s30  ;;  %351 = vrot.lane.b32.xlu0 %v346_v48, %s1844_s30 }
  0x9b   : > { %525 = vperm.xlu1 %1831, %v1802_v49  }
  0x9f   : > { %v2028_v50 = vpop.permute.xlu1 %362 }
  0xa0   : > { %v365_v51 = vmul.f32 %v2028_v50, %v1960_v24  ;;  %v366_v52 = vmul.f32 %v2028_v50, %v1968_v27 }
  0xa2   : > { %369 = vrot.lane.b32.xlu2 %v365_v51, %s1845_s8  ;;  %371 = vrot.lane.b32.xlu0 %v366_v52, %s1845_s8 }
  0xa3   : > { %545 = vperm.xlu1 %1831, %v1803_v53  }
  0xa7   : > { %v2039_v54 = vpop.permute.xlu1 %383 }
  0xa8   : > { %v386_v55 = vmul.f32 %v2039_v54, %v1949_v20  ;;  %v387_v56 = vmul.f32 %v2039_v54, %v1982_v32 }
  0xaa   : > { %390 = vrot.lane.b32.xlu2 %v386_v55, %s1845_s8  ;;  %392 = vrot.lane.b32.xlu0 %v387_v56, %s1845_s8  ;;  %v2157_v55 = vperm.slane %v1956_v23, 2  ;;  %v1807_v23 = vld [vmem:[%s3028_s1 + $0xb8] sm:$0x3f] }
  0xab   : > { %565 = vperm.xlu1 %1831, %v1804_v57  }
  0xaf   : > { %v2050_v58 = vpop.permute.xlu1 %403 }
  0xb0   : > { %v406_v59 = vmul.f32 %v2050_v58, %v1960_v24  ;;  %v407_v60 = vmul.f32 %v2050_v58, %v1968_v27 }
  0xb2   : > { %410 = vrot.lane.b32.xlu2 %v406_v59, %s1846_s15  ;;  %412 = vrot.lane.b32.xlu0 %v407_v60, %s1846_s15 }
  0xb3   : > { %586 = vperm.xlu1 %1831, %v1805_v61  }
  0xb7   : > { %v2061_v62 = vpop.permute.xlu1 %424 }
  0xb8   : > { %v427_v63 = vmul.f32 %v2061_v62, %v1949_v20  ;;  %v428_v0 = vmul.f32 %v2061_v62, %v1982_v32 }
  0xba   : > { %431 = vrot.lane.b32.xlu2 %v427_v63, %s1846_s15  ;;  %433 = vrot.lane.b32.xlu0 %v428_v0, %s1846_s15  ;;  %v2177_v0 = vpop.permute.xlu0 %178 }
  0xbb   : > { %606 = vperm.xlu1 %1831, %v1806_v1  }
  0xbf   : > { %v2072_v2 = vpop.permute.xlu1 %444 }
  0xc0   : > { %v447_v3 = vmul.f32 %v2072_v2, %v1960_v24  ;;  %v448_v4 = vmul.f32 %v2072_v2, %v1968_v27 }
  0xc2   : > { %451 = vrot.lane.b32.xlu2 %v447_v3, %s1847_s18  ;;  %453 = vrot.lane.b32.xlu0 %v448_v4, %s1847_s18  ;;  %v2181_v3 = vpop.permute.xlu0 %192 }
  0xc7   : > { %v2080_v5 = vpop.permute.xlu1 %465 }
  0xc8   : > { %v468_v6 = vmul.f32 %v2080_v5, %v1985_v33  ;;  %v469_v7 = vmul.f32 %v2080_v5, %v1988_v34 }
  0xca   : > { %472 = vrot.lane.b32.xlu2 %v468_v6, %s1845_s8  ;;  %474 = vrot.lane.b32.xlu0 %v469_v7, %s1845_s8  ;;  %v2185_v6 = vpop.permute.xlu0 %286 }
  0xcf   : > { %v2088_v8 = vpop.permute.xlu1 %485 }
  0xd0   : > { %v488_v9 = vmul.f32 %v2088_v8, %v2002_v40  ;;  %v489_v10 = vmul.f32 %v2088_v8, %v2004_v41 }
  0xd2   : > { %492 = vrot.lane.b32.xlu2 %v488_v9, %s1845_s8  ;;  %494 = vrot.lane.b32.xlu0 %v489_v10, %s1845_s8 }
  0xd7   : > { %v2096_v11 = vpop.permute.xlu1 %505 }
  0xd8   : > { %v508_v12 = vmul.f32 %v2096_v11, %v1985_v33  ;;  %v509_v13 = vmul.f32 %v2096_v11, %v1988_v34 }
  0xda   : > { %512 = vrot.lane.b32.xlu2 %v508_v12, %s1846_s15  ;;  %514 = vrot.lane.b32.xlu0 %v509_v13, %s1846_s15 }
  0xdc   : > { %v2106_v15 = vpop.permute.xlu2 %217  ;;  %v2189_v9 = vpop.permute.xlu0 %236 }
  0xe4   : > { %v2112_v19 = vpop.permute.xlu2 %309  ;;  %v2193_v12 = vpop.permute.xlu0 %256 }
  0xe5   : > { %3053 = vst [vmem:[#allocation2_spill] sm:$0xff] %v2112_v19 }
  0xe6   : > { %3066 = vst [vmem:[#allocation15_spill] sm:$0xff] %v2193_v12 }
  0xec   : > { %v2116_v26 = vpop.permute.xlu2 %329 }
  0xed   : > { %3054 = vst [vmem:[#allocation3_spill] sm:$0xff] %v2116_v26 }
  0xf4   : > { %v2108_v16 = vpop.permute.xlu1 %215  ;;  %v2126_v37 = vpop.permute.xlu2 %349 }
  0xf5   : > { %3055 = vst [vmem:[#allocation4_spill] sm:$0xff] %v2126_v37 }
  0xfc   : > { %v2136_v44 = vpop.permute.xlu2 %369 }
  0xfd   : > { %v2110_v17 = vpop.permute.xlu1 %238  ;;  %3056 = vst [vmem:[#allocation5_spill] sm:$0xff] %v2136_v44 }
 0x104   : > { %v2148_v51 = vpop.permute.xlu2 %390 }
 0x105   : > { %v2114_v22 = vpop.permute.xlu1 %258  ;;  %3058 = vst [vmem:[#allocation7_spill] sm:$0xff] %v2148_v51  ;;  %v1016_v51 = vmul.f32 %v1985_v33, %v1970_v28 }
 0x10c   : > { %v2167_v61 = vpop.permute.xlu2 %410 }
 0x10d   : > { %v2118_v29 = vpop.permute.xlu1 %525  ;;  %3060 = vst [vmem:[#allocation9_spill] sm:$0xff] %v2167_v61 }
 0x10e   : > { %v529_v30 = vmul.f32 %v2118_v29, %v2004_v41  ;;  %v528_v36 = vmul.f32 %v2118_v29, %v2002_v40 }
 0x110   : > { %534 = vrot.lane.b32.xlu0 %v529_v30, %s1846_s15  ;;  %532 = vrot.lane.b32.xlu2 %v528_v36, %s1846_s15  ;;  %v2197_v30 = vpop.permute.xlu0 %311 }
 0x111   : > { %3068 = vst [vmem:[#allocation17_spill] sm:$0xff] %v2197_v30 }
 0x114   : > { %v2175_v63 = vpop.permute.xlu2 %431 }
 0x115   : > { %v2128_v38 = vpop.permute.xlu1 %545  ;;  %3061 = vst [vmem:[#allocation10_spill] sm:$0xff] %v2175_v63 }
 0x116   : > { %v549_v39 = vmul.f32 %v2128_v38, %v1988_v34  ;;  %v548_v43 = vmul.f32 %v2128_v38, %v1985_v33 }
 0x118   : > { %554 = vrot.lane.b32.xlu0 %v549_v39, %s1847_s18  ;;  %552 = vrot.lane.b32.xlu2 %v548_v43, %s1847_s18  ;;  %v2201_v39 = vpop.permute.xlu0 %331 }
 0x119   : > { %3070 = vst [vmem:[#allocation19_spill] sm:$0xff] %v2201_v39  ;;  %v683_v39 = vmul.f32 %v1949_v20, %v2177_v0 }
 0x11c   : > { %v2179_v1 = vpop.permute.xlu2 %451 }
 0x11d   : > { %v2138_v45 = vpop.permute.xlu1 %565  ;;  %3062 = vst [vmem:[#allocation11_spill] sm:$0xff] %v2179_v1 }
 0x11e   : > { %3057 = vst [vmem:[#allocation6_spill] sm:$0xff] %v2138_v45  ;;  %v569_v47 = vmul.f32 %v2138_v45, %v1968_v27  ;;  %v568_v48 = vmul.f32 %v2138_v45, %v1960_v24 }
 0x120   : > { %574 = vrot.lane.b32.xlu0 %v569_v47, %s1848_s19  ;;  %572 = vrot.lane.b32.xlu2 %v568_v48, %s1848_s19  ;;  %v2205_v47 = vpop.permute.xlu0 %351 }
 0x121   : > { %3072 = vst [vmem:[#allocation21_spill] sm:$0xff] %v2205_v47 }
 0x124   : > { %v2183_v4 = vpop.permute.xlu2 %472 }
 0x125   : > { %v2146_v49 = vpop.permute.xlu1 %586  ;;  %3063 = vst [vmem:[#allocation12_spill] sm:$0xff] %v2183_v4 }
 0x126   : > { %v590_v52 = vmul.f32 %v2146_v49, %v1982_v32  ;;  %v589_v53 = vmul.f32 %v2146_v49, %v1949_v20 }
 0x128   : > { %595 = vrot.lane.b32.xlu0 %v590_v52, %s1848_s19  ;;  %593 = vrot.lane.b32.xlu2 %v589_v53, %s1848_s19  ;;  %v2209_v52 = vpop.permute.xlu0 %371 }
 0x129   : > { %3074 = vst [vmem:[#allocation23_spill] sm:$0xff] %v2209_v52 }
 0x12c   : > { %v2187_v7 = vpop.permute.xlu2 %492 }
 0x12d   : > { %v2159_v56 = vpop.permute.xlu1 %606  ;;  %3064 = vst [vmem:[#allocation13_spill] sm:$0xff] %v2187_v7 }
 0x12e   : > { %3059 = vst [vmem:[#allocation8_spill] sm:$0xff] %v2159_v56  ;;  %v613_v57 = vmul.f32 %v2157_v55, %v2159_v56  ;;  %v612_v59 = vmul.f32 %v2159_v56, %v1968_v27  ;;  %v611_v60 = vmul.f32 %v2159_v56, %v1960_v24  ;;  %v955_v61 = vmul.f32 %v2159_v56, %v1982_v32 }
 0x130   : > { %621 = vrot.lane.b32.xlu1 %v613_v57, %s1849_s20  ;;  %619 = vrot.lane.b32.xlu0 %v612_v59, %s1849_s20  ;;  %v2214_v57 = vperm.slane %v1943_v18, 2  ;;  %v1808_v18 = vld [vmem:[%s3028_s1 + $0xc0] sm:$0x3f] }
 0x131   : > { %617 = vrot.lane.b32.xlu2 %v611_v60, %s1849_s20 }
 0x134   : > { %v2191_v10 = vpop.permute.xlu2 %512 }
 0x135   : > { %3065 = vst [vmem:[#allocation14_spill] sm:$0xff] %v2191_v10 }
 0x139   : > { %634 = vperm.xlu2 %1832, %v1807_v23  }
 0x16a   : > { %v2195_v13 = vpop.permute.xlu2 %532 }
 0x16b   : > { %3067 = vst [vmem:[#allocation16_spill] sm:$0xff] %v2195_v13 }
 0x172   : > { %v2199_v36 = vpop.permute.xlu2 %552 }
 0x173   : > { %3069 = vst [vmem:[#allocation18_spill] sm:$0xff] %v2199_v36  ;;  %v2224_v36 = vpop.permute.xlu0 %392 }
 0x174   : > { %3076 = vst [vmem:[#allocation25_spill] sm:$0xff] %v2224_v36 }
 0x17a   : > { %v2203_v43 = vpop.permute.xlu2 %572 }
 0x17b   : > { %3071 = vst [vmem:[#allocation20_spill] sm:$0xff] %v2203_v43 }
 0x182   : > { %v2207_v48 = vpop.permute.xlu2 %593 }
 0x183   : > { %3073 = vst [vmem:[#allocation22_spill] sm:$0xff] %v2207_v48 }
 0x18b   : > { %v2211_v53 = vpop.permute.xlu2 %617 }
 0x18c   : > { %3075 = vst [vmem:[#allocation24_spill] sm:$0xff] %v2211_v53  ;;  %v2232_v53 = vpop.permute.xlu0 %412 }
 0x18d   : > { %3077 = vst [vmem:[#allocation26_spill] sm:$0xff] %v2232_v53 }
 0x193   : > { %v2216_v59 = vpop.permute.xlu2 %634 }
 0x194   : > { %v641_v60 = vmul.f32 %v2214_v57, %v2216_v59  ;;  %v640_v23 = vmul.f32 %v2216_v59, %v1982_v32  ;;  %v639_v43 = vmul.f32 %v2216_v59, %v1949_v20  ;;  %v2234_v48 = vpop.permute.xlu0 %433  ;;  %v973_v53 = vmul.f32 %v2216_v59, %v1968_v27 }
 0x195   : > { %3078 = vst [vmem:[#allocation27_spill] sm:$0xff] %v2234_v48 }
 0x196   : > { %649 = vrot.lane.b32.xlu2 %v641_v60, %s1849_s20  ;;  %647 = vrot.lane.b32.xlu1 %v640_v23, %s1849_s20 }
 0x197   : > { %645 = vrot.lane.b32.xlu0 %v639_v43, %s1849_s20 }
 0x19c   : > { %v2236_v13 = vpop.permute.xlu0 %453 }
 0x19d   : > { %3079 = vst [vmem:[#allocation28_spill] sm:$0xff] %v2236_v13  ;;  %v956_v13 = vmul.f32 %v2214_v57, %v2159_v56 }
 0x19f   : > { %661 = vperm.xlu0 %1830, %v1808_v18  }
 0x1a4   : > { %v2238_v10 = vpop.permute.xlu0 %474 }
 0x1a5   : > { %3080 = vst [vmem:[#allocation29_spill] sm:$0xff] %v2238_v10 }
 0x1ac   : > { %v2240_v7 = vpop.permute.xlu0 %494 }
 0x1ad   : > { %3081 = vst [vmem:[#allocation30_spill] sm:$0xff] %v2240_v7  ;;  %v937_v7 = vmul.f32 %v2146_v49, %v1968_v27 }
 0x1b4   : > { %v2242_v60 = vpop.permute.xlu0 %514 }
 0x1b5   : > { %3082 = vst [vmem:[#allocation31_spill] sm:$0xff] %v2242_v60 }
 0x1bc   : > { %v2244_v23 = vpop.permute.xlu0 %534 }
 0x1bd   : > { %3083 = vst [vmem:[#allocation32_spill] sm:$0xff] %v2244_v23 }
 0x1c4   : > { %v2246_v43 = vpop.permute.xlu0 %554 }
 0x1c5   : > { %3084 = vst [vmem:[#allocation33_spill] sm:$0xff] %v2246_v43  ;;  %v923_v43 = vmul.f32 %v2138_v45, %v1949_v20 }
 0x1cc   : > { %v2248_v4 = vpop.permute.xlu0 %574 }
 0x1cd   : > { %3085 = vst [vmem:[#allocation34_spill] sm:$0xff] %v2248_v4  ;;  %v884_v4 = vmul.f32 %v2096_v11, %v2002_v40 }
 0x1d4   : > { %v2250_v1 = vpop.permute.xlu0 %595 }
 0x1d5   : > { %3086 = vst [vmem:[#allocation35_spill] sm:$0xff] %v2250_v1  ;;  %v685_v1 = vmul.f32 %v2181_v3, %v1960_v24 }
 0x1dc   : > { %v2252_v63 = vpop.permute.xlu0 %619 }
 0x1dd   : > { %3087 = vst [vmem:[#allocation36_spill] sm:$0xff] %v2252_v63  ;;  %v686_v63 = vmul.f32 %v2181_v3, %v1968_v27 }
 0x209   : > { %v2254_v18 = vpop.permute.xlu0 %645 }
 0x20a   : > { %3088 = vst [vmem:[#allocation37_spill] sm:$0xff] %v2254_v18  ;;  %v698_v18 = vmul.f32 %v1970_v28, %v1949_v20 }
 0x211   : > { %v2256_v48 = vpop.permute.xlu0 %661 }
 0x212   : > { %v666_v10 = vmul.f32 %v2256_v48, %v2157_v55  ;;  %v665_v60 = vmul.f32 %v2256_v48, %v1968_v27  ;;  %v664_v23 = vmul.f32 %v2256_v48, %v1960_v24  ;;  %v992_v36 = vmul.f32 %v2256_v48, %v2214_v57 }
 0x213   : > { %v991_v44 = vmul.f32 %v2256_v48, %v1982_v32 }
 0x214   : > { %674 = vrot.lane.b32.xlu0 %v666_v10, %s1850_s25  ;;  %672 = vrot.lane.b32.xlu2 %v665_v60, %s1850_s25  ;;  %v712_v10 = vmul.f32 %v1951_v21, %v1968_v27  ;;  %v711_v60 = vmul.f32 %v1951_v21, %v1960_v24 }
 0x215   : > { %670 = vrot.lane.b32.xlu1 %v664_v23, %s1850_s25  ;;  %v699_v23 = vmul.f32 %v1970_v28, %v1982_v32 }
 0x21c   : > { %702 = vrot.lane.b32.xlu0 %v698_v18, %s1843_s29  ;;  %691 = vrot.lane.b32.xlu2 %v686_v63, %s1843_s29  ;;  %v741_v63 = vmul.f32 %v2185_v6, %v1985_v33  ;;  %v724_v18 = vmul.f32 %v1962_v25, %v1949_v20 }
 0x21d   : > { %689 = vrot.lane.b32.xlu1 %v685_v1, %s1843_s29  ;;  %v725_v1 = vmul.f32 %v1962_v25, %v1982_v32 }
 0x224   : > { %717 = vrot.lane.b32.xlu0 %v712_v10, %s1844_s30  ;;  %715 = vrot.lane.b32.xlu2 %v711_v60, %s1844_s30  ;;  %v755_v10 = vmul.f32 %v1990_v35, %v2004_v41  ;;  %v754_v60 = vmul.f32 %v1990_v35, %v2002_v40 }
 0x225   : > { %704 = vrot.lane.b32.xlu1 %v699_v23, %s1843_s29  ;;  %v742_v23 = vmul.f32 %v2185_v6, %v1988_v34 }
 0x22c   : > { %745 = vrot.lane.b32.xlu0 %v741_v63, %s1843_s29  ;;  %730 = vrot.lane.b32.xlu2 %v725_v1, %s1844_s30  ;;  %v780_v63 = vmul.f32 %v2017_v46, %v2002_v40  ;;  %v768_v1 = vmul.f32 %v2006_v42, %v1988_v34 }
 0x22d   : > { %728 = vrot.lane.b32.xlu1 %v724_v18, %s1844_s30  ;;  %v767_v18 = vmul.f32 %v2006_v42, %v1985_v33 }
 0x234   : > { %760 = vrot.lane.b32.xlu0 %v755_v10, %s1843_s29  ;;  %758 = vrot.lane.b32.xlu2 %v754_v60, %s1843_s29  ;;  %v794_v10 = vmul.f32 %v2028_v50, %v1982_v32  ;;  %v793_v60 = vmul.f32 %v2028_v50, %v1949_v20 }
 0x235   : > { %747 = vrot.lane.b32.xlu1 %v742_v23, %s1843_s29  ;;  %v781_v23 = vmul.f32 %v2017_v46, %v2004_v41 }
 0x23c   : > { %784 = vrot.lane.b32.xlu0 %v780_v63, %s1844_s30  ;;  %773 = vrot.lane.b32.xlu2 %v768_v1, %s1844_s30  ;;  %v819_v63 = vmul.f32 %v2050_v58, %v1949_v20  ;;  %v807_v1 = vmul.f32 %v2039_v54, %v1968_v27 }
 0x23d   : > { %771 = vrot.lane.b32.xlu1 %v767_v18, %s1844_s30  ;;  %v806_v18 = vmul.f32 %v2039_v54, %v1960_v24 }
 0x244   : > { %799 = vrot.lane.b32.xlu0 %v794_v10, %s1845_s8  ;;  %797 = vrot.lane.b32.xlu2 %v793_v60, %s1845_s8  ;;  %v833_v10 = vmul.f32 %v2061_v62, %v1968_v27  ;;  %v832_v60 = vmul.f32 %v2061_v62, %v1960_v24 }
 0x245   : > { %786 = vrot.lane.b32.xlu1 %v781_v23, %s1844_s30  ;;  %v820_v23 = vmul.f32 %v2050_v58, %v1982_v32 }
 0x24c   : > { %823 = vrot.lane.b32.xlu0 %v819_v63, %s1846_s15  ;;  %812 = vrot.lane.b32.xlu2 %v807_v1, %s1846_s15  ;;  %v858_v63 = vmul.f32 %v2080_v5, %v2002_v40  ;;  %v846_v1 = vmul.f32 %v2072_v2, %v1982_v32 }
 0x24d   : > { %810 = vrot.lane.b32.xlu1 %v806_v18, %s1846_s15  ;;  %v845_v18 = vmul.f32 %v2072_v2, %v1949_v20 }
 0x254   : > { %838 = vrot.lane.b32.xlu0 %v833_v10, %s1847_s18  ;;  %836 = vrot.lane.b32.xlu2 %v832_v60, %s1847_s18  ;;  %v872_v10 = vmul.f32 %v2088_v8, %v1988_v34  ;;  %v871_v60 = vmul.f32 %v2088_v8, %v1985_v33 }
 0x255   : > { %825 = vrot.lane.b32.xlu1 %v820_v23, %s1846_s15  ;;  %v859_v23 = vmul.f32 %v2080_v5, %v2004_v41 }
 0x25c   : > { %862 = vrot.lane.b32.xlu0 %v858_v63, %s1845_s8  ;;  %851 = vrot.lane.b32.xlu2 %v846_v1, %s1847_s18  ;;  %v2357_v63 = vpop.permute.xlu2 %649  ;;  %v897_v1 = vmul.f32 %v2118_v29, %v1985_v33 }
 0x25d   : > { %849 = vrot.lane.b32.xlu1 %v845_v18, %s1847_s18  ;;  %3089 = vst [vmem:[#allocation38_spill] sm:$0xff] %v2357_v63  ;;  %v885_v18 = vmul.f32 %v2096_v11, %v2004_v41  ;;  %v898_v63 = vmul.f32 %v2118_v29, %v1988_v34 }
 0x264   : > { %877 = vrot.lane.b32.xlu0 %v872_v10, %s1846_s15  ;;  %875 = vrot.lane.b32.xlu2 %v871_v60, %s1846_s15  ;;  %v911_v60 = vmul.f32 %v2128_v38, %v2004_v41 }
 0x265   : > { %864 = vrot.lane.b32.xlu1 %v859_v23, %s1845_s8  ;;  %v910_v23 = vmul.f32 %v2128_v38, %v2002_v40 }
 0x26c   : > { %901 = vrot.lane.b32.xlu0 %v897_v1, %s1847_s18  ;;  %890 = vrot.lane.b32.xlu2 %v885_v18, %s1846_s15  ;;  %v2379_v18 = vpop.permute.xlu1 %621 }
 0x26d   : > { %888 = vrot.lane.b32.xlu1 %v884_v4, %s1846_s15  ;;  %3091 = vst [vmem:[#allocation40_spill] sm:$0xff] %v2379_v18  ;;  %v936_v4 = vmul.f32 %v2146_v49, %v1960_v24  ;;  %v938_v18 = vmul.f32 %v2157_v55, %v2146_v49 }
 0x26e   : > { %v2368_v10 = vpop.permute.xlu2 %672 }
 0x26f   : > { %3090 = vst [vmem:[#allocation39_spill] sm:$0xff] %v2368_v10  ;;  %v924_v10 = vmul.f32 %v2138_v45, %v1982_v32 }
 0x274   : > { %916 = vrot.lane.b32.xlu0 %v911_v60, %s1847_s18  ;;  %914 = vrot.lane.b32.xlu2 %v910_v23, %s1847_s18  ;;  %v954_v23 = vmul.f32 %v2159_v56, %v1949_v20 }
 0x275   : > { %903 = vrot.lane.b32.xlu1 %v898_v63, %s1847_s18  ;;  %v2390_v63 = vpop.permute.xlu1 %647 }
 0x276   : > { %v692_v1 = vpop.permute.xlu2 %691  ;;  %3092 = vst [vmem:[#allocation41_spill] sm:$0xff] %v2390_v63  ;;  %v972_v63 = vmul.f32 %v2216_v59, %v1960_v24 }
 0x27c   : > { %942 = vrot.lane.b32.xlu0 %v936_v4, %s1849_s20  ;;  %929 = vrot.lane.b32.xlu2 %v924_v10, %s1848_s19 }
 0x27d   : > { %927 = vrot.lane.b32.xlu1 %v923_v43, %s1848_s19 }
 0x27e   : > { %v716_v60 = vpop.permute.xlu2 %715 }
 0x284   : > { %960 = vrot.lane.b32.xlu0 %v954_v23, %s1849_s20  ;;  %946 = vrot.lane.b32.xlu2 %v938_v18, %s1849_s20 }
 0x285   : > { %944 = vrot.lane.b32.xlu1 %v937_v7, %s1849_s20 }
 0x286   : > { %v2401_v10 = vpop.permute.xlu0 %674  ;;  %v731_v43 = vpop.permute.xlu2 %730 }
 0x287   : > { %3093 = vst [vmem:[#allocation42_spill] sm:$0xff] %v2401_v10  ;;  %v2403_v4 = vpop.permute.xlu1 %670  ;;  %v974_v10 = vmul.f32 %v2216_v59, %v2157_v55 }
 0x288   : > { %3094 = vst [vmem:[#allocation43_spill] sm:$0xff] %v2403_v4  ;;  %v990_v4 = vmul.f32 %v2256_v48, %v1949_v20 }
 0x28c   : > { %978 = vrot.lane.b32.xlu0 %v972_v63, %s1850_s25  ;;  %964 = vrot.lane.b32.xlu2 %v956_v13, %s1849_s20 }
 0x28d   : > { %962 = vrot.lane.b32.xlu1 %v955_v61, %s1849_s20 }
 0x28e   : > { %v703_v7 = vpop.permute.xlu0 %702  ;;  %v2414_v18 = vpop.permute.xlu2 %758 }
 0x28f   : > { %v690_v23 = vpop.permute.xlu1 %689 }
 0x290   : > { %v693_v47 = vsel %vm219_vm0, %v690_v23, %v692_v1 }
 0x294   : > { %996 = vrot.lane.b32.xlu0 %v990_v4, %s1850_s25  ;;  %982 = vrot.lane.b32.xlu2 %v974_v10, %s1850_s25  ;;  %v684_v4 = vmul.f32 %v1982_v32, %v2177_v0 }
 0x295   : > { %980 = vrot.lane.b32.xlu1 %v973_v53, %s1850_s25 }
 0x296   : > { %v718_v61 = vpop.permute.xlu0 %717  ;;  %v2425_v13 = vpop.permute.xlu2 %773  ;;  %v697_v53 = vadd.f32 %v692_v1, %v684_v4  ;;  %v1017_v4 = vmul.f32 %v1988_v34, %v1970_v28 }
 0x297   : > { %v705_v63 = vpop.permute.xlu1 %704 }
 0x298   : > { %v710_v26 = vadd.f32 %v705_v63, %v697_v53  ;;  %v706_v19 = vsel %vm219_vm0, %v703_v7, %v705_v63  ;;  %v719_v53 = vsel %vm260_vm1, %v716_v60, %v718_v61 }
 0x29a   : > { %v723_v30 = vadd.f32 %v718_v61, %v710_v26  ;;  %v738_v26 = vmul.f32 %v2004_v41, %v2104_v14 }
 0x29c   : > { %1020 = vrot.lane.b32.xlu0 %v1016_v51, %s1843_s29  ;;  %1000 = vrot.lane.b32.xlu2 %v992_v36, %s1850_s25  ;;  %v1030_v51 = vmul.f32 %v2004_v41, %v1951_v21  ;;  %v1029_v36 = vmul.f32 %v2002_v40, %v1951_v21 }
 0x29d   : > { %998 = vrot.lane.b32.xlu1 %v991_v44, %s1850_s25  ;;  %v696_v44 = vadd.f32 %v693_v47, %v683_v39  ;;  %v736_v39 = vadd.f32 %v731_v43, %v723_v30 }
 0x29e   : > { %v746_v10 = vpop.permute.xlu0 %745  ;;  %v798_v52 = vpop.permute.xlu2 %797 }
 0x29f   : > { %v729_v37 = vpop.permute.xlu1 %728  ;;  %v709_v1 = vadd.f32 %v706_v19, %v696_v44  ;;  %v1043_v19 = vmul.f32 %v1988_v34, %v1962_v25  ;;  %v1042_v44 = vmul.f32 %v1985_v33, %v1962_v25 }
 0x2a0   : > { %v732_v12 = vsel %vm260_vm1, %v729_v37, %v731_v43  ;;  %v737_v37 = vmul.f32 %v2002_v40, %v2104_v14 }
 0x2a1   : > { %v722_v47 = vadd.f32 %v719_v53, %v709_v1 }
 0x2a4   : > { %1035 = vrot.lane.b32.xlu0 %v1030_v51, %s1843_s29  ;;  %1033 = vrot.lane.b32.xlu2 %v1029_v36, %s1843_s29  ;;  %v1055_v51 = vmul.f32 %v2104_v14, %v1960_v24  ;;  %v735_v36 = vadd.f32 %v732_v12, %v722_v47 }
 0x2a5   : > { %1022 = vrot.lane.b32.xlu1 %v1017_v4, %s1843_s29  ;;  %v740_v4 = vadd.f32 %v738_v26, %v736_v39  ;;  %v1069_v26 = vmul.f32 %v2185_v6, %v1982_v32 }
 0x2a6   : > { %v761_v23 = vpop.permute.xlu0 %760  ;;  %v813_v7 = vpop.permute.xlu2 %812  ;;  %v739_v1 = vadd.f32 %v737_v37, %v735_v36 }
 0x2a7   : > { %v748_v63 = vpop.permute.xlu1 %747 }
 0x2a8   : > { %v749_v30 = vsel %vm219_vm0, %v746_v10, %v748_v63  ;;  %v753_v60 = vadd.f32 %v748_v63, %v740_v4  ;;  %v762_v10 = vsel %vm219_vm0, %v2414_v18, %v761_v23 }
 0x2a9   : > { %v752_v39 = vadd.f32 %v749_v30, %v739_v1 }
 0x2aa   : > { %v766_v47 = vadd.f32 %v761_v23, %v753_v60 }
 0x2ab   : > { %v765_v63 = vadd.f32 %v762_v10, %v752_v39  ;;  %v1082_v39 = vmul.f32 %v1990_v35, %v1968_v27 }
 0x2ac   : > { %1059 = vrot.lane.b32.xlu0 %v1055_v51, %s1845_s8  ;;  %1048 = vrot.lane.b32.xlu2 %v1043_v19, %s1844_s30  ;;  %v1068_v51 = vmul.f32 %v2185_v6, %v1949_v20  ;;  %v1056_v19 = vmul.f32 %v2104_v14, %v1968_v27  ;;  %v779_v4 = vadd.f32 %v2425_v13, %v766_v47 }
 0x2ad   : > { %1046 = vrot.lane.b32.xlu1 %v1042_v44, %s1844_s30 }
 0x2ae   : > { %v785_v43 = vpop.permute.xlu0 %784  ;;  %v837_v61 = vpop.permute.xlu2 %836 }
 0x2af   : > { %v772_v12 = vpop.permute.xlu1 %771 }
 0x2b0   : > { %v775_v53 = vsel %vm260_vm1, %v772_v12, %v2425_v13 }
 0x2b1   : > { %v778_v37 = vadd.f32 %v775_v53, %v765_v63  ;;  %v1108_v63 = vmul.f32 %v2017_v46, %v1968_v27 }
 0x2b4   : > { %1074 = vrot.lane.b32.xlu0 %v1069_v26, %s1845_s8  ;;  %1072 = vrot.lane.b32.xlu2 %v1068_v51, %s1845_s8  ;;  %v1094_v26 = vmul.f32 %v2006_v42, %v1949_v20  ;;  %v1081_v51 = vmul.f32 %v1990_v35, %v1960_v24 }
 0x2b5   : > { %1061 = vrot.lane.b32.xlu1 %v1056_v19, %s1845_s8 }
 0x2b6   : > { %v800_v36 = vpop.permute.xlu0 %799  ;;  %v852_v44 = vpop.permute.xlu2 %851 }
 0x2b7   : > { %v801_v30 = vsel %vm373_vm2, %v798_v52, %v800_v36  ;;  %v787_v60 = vpop.permute.xlu1 %786 }
 0x2b8   : > { %v788_v1 = vsel %vm260_vm1, %v785_v43, %v787_v60  ;;  %v792_v12 = vadd.f32 %v787_v60, %v779_v4  ;;  %v1095_v4 = vmul.f32 %v2006_v42, %v1982_v32 }
 0x2b9   : > { %v791_v18 = vadd.f32 %v788_v1, %v778_v37 }
 0x2ba   : > { %v805_v23 = vadd.f32 %v800_v36, %v792_v12  ;;  %v1107_v36 = vmul.f32 %v2017_v46, %v1960_v24 }
 0x2bb   : > { %v804_v19 = vadd.f32 %v801_v30, %v791_v18 }
 0x2bc   : > { %1098 = vrot.lane.b32.xlu0 %v1094_v26, %s1846_s15  ;;  %1087 = vrot.lane.b32.xlu2 %v1082_v39, %s1846_s15  ;;  %v818_v52 = vadd.f32 %v813_v7, %v805_v23  ;;  %v1133_v26 = vmul.f32 %v2039_v54, %v2002_v40  ;;  %v1121_v39 = vmul.f32 %v2028_v50, %v1988_v34 }
 0x2bd   : > { %1085 = vrot.lane.b32.xlu1 %v1081_v51, %s1846_s15  ;;  %v1120_v51 = vmul.f32 %v2028_v50, %v1985_v33 }
 0x2be   : > { %v824_v13 = vpop.permute.xlu0 %823  ;;  %v876_v43 = vpop.permute.xlu2 %875 }
 0x2bf   : > { %v811_v53 = vpop.permute.xlu1 %810 }
 0x2c0   : > { %v814_v47 = vsel %vm414_vm3, %v811_v53, %v813_v7 }
 0x2c1   : > { %v817_v10 = vadd.f32 %v814_v47, %v804_v19 }
 0x2c4   : > { %1113 = vrot.lane.b32.xlu0 %v1108_v63, %s1847_s18  ;;  %1111 = vrot.lane.b32.xlu2 %v1107_v36, %s1847_s18  ;;  %v1147_v63 = vmul.f32 %v2050_v58, %v1988_v34  ;;  %v1146_v36 = vmul.f32 %v2050_v58, %v1985_v33 }
 0x2c5   : > { %1100 = vrot.lane.b32.xlu1 %v1095_v4, %s1846_s15  ;;  %v1134_v4 = vmul.f32 %v2039_v54, %v2004_v41 }
 0x2c6   : > { %v839_v37 = vpop.permute.xlu0 %838  ;;  %v891_v30 = vpop.permute.xlu2 %890 }
 0x2c7   : > { %v840_v7 = vsel %vm455_vm4, %v837_v61, %v839_v37  ;;  %v826_v60 = vpop.permute.xlu1 %825 }
 0x2c8   : > { %v827_v1 = vsel %vm414_vm3, %v824_v13, %v826_v60  ;;  %v831_v12 = vadd.f32 %v826_v60, %v818_v52 }
 0x2c9   : > { %v830_v18 = vadd.f32 %v827_v1, %v817_v10 }
 0x2ca   : > { %v844_v23 = vadd.f32 %v839_v37, %v831_v12 }
 0x2cb   : > { %v843_v19 = vadd.f32 %v840_v7, %v830_v18 }
 0x2cc   : > { %1137 = vrot.lane.b32.xlu0 %v1133_v26, %s1845_s8  ;;  %1126 = vrot.lane.b32.xlu2 %v1121_v39, %s1845_s8  ;;  %v857_v61 = vadd.f32 %v852_v44, %v844_v23  ;;  %v1172_v26 = vmul.f32 %v2072_v2, %v1985_v33  ;;  %v1160_v39 = vmul.f32 %v2061_v62, %v2004_v41 }
 0x2cd   : > { %1124 = vrot.lane.b32.xlu1 %v1120_v51, %s1845_s8  ;;  %v1159_v51 = vmul.f32 %v2061_v62, %v2002_v40 }
 0x2ce   : > { %v863_v52 = vpop.permute.xlu0 %862  ;;  %v915_v13 = vpop.permute.xlu2 %914 }
 0x2cf   : > { %v850_v53 = vpop.permute.xlu1 %849 }
 0x2d0   : > { %v853_v47 = vsel %vm455_vm4, %v850_v53, %v852_v44 }
 0x2d1   : > { %v856_v10 = vadd.f32 %v853_v47, %v843_v19 }
 0x2d4   : > { %1152 = vrot.lane.b32.xlu0 %v1147_v63, %s1846_s15  ;;  %1150 = vrot.lane.b32.xlu2 %v1146_v36, %s1846_s15  ;;  %v1186_v63 = vmul.f32 %v2080_v5, %v1968_v27  ;;  %v1185_v36 = vmul.f32 %v2080_v5, %v1960_v24 }
 0x2d5   : > { %1139 = vrot.lane.b32.xlu1 %v1134_v4, %s1845_s8  ;;  %v1173_v4 = vmul.f32 %v2072_v2, %v1988_v34 }
 0x2d6   : > { %v878_v37 = vpop.permute.xlu0 %877  ;;  %v930_v7 = vpop.permute.xlu2 %929 }
 0x2d7   : > { %v879_v44 = vsel %vm414_vm3, %v876_v43, %v878_v37  ;;  %v865_v60 = vpop.permute.xlu1 %864 }
 0x2d8   : > { %v866_v1 = vsel %vm373_vm2, %v863_v52, %v865_v60  ;;  %v870_v12 = vadd.f32 %v865_v60, %v857_v61 }
 0x2d9   : > { %v869_v18 = vadd.f32 %v866_v1, %v856_v10 }
 0x2da   : > { %v883_v23 = vadd.f32 %v878_v37, %v870_v12 }
 0x2db   : > { %v882_v19 = vadd.f32 %v879_v44, %v869_v18 }
 0x2dc   : > { %1176 = vrot.lane.b32.xlu0 %v1172_v26, %s1847_s18  ;;  %1165 = vrot.lane.b32.xlu2 %v1160_v39, %s1846_s15  ;;  %v896_v43 = vadd.f32 %v891_v30, %v883_v23  ;;  %v1211_v26 = vmul.f32 %v2096_v11, %v1960_v24  ;;  %v1199_v39 = vmul.f32 %v2088_v8, %v1982_v32 }
 0x2dd   : > { %1163 = vrot.lane.b32.xlu1 %v1159_v51, %s1846_s15  ;;  %v1198_v51 = vmul.f32 %v2088_v8, %v1949_v20 }
 0x2de   : > { %v902_v61 = vpop.permute.xlu0 %901  ;;  %v947_v52 = vpop.permute.xlu2 %946 }
 0x2df   : > { %v889_v53 = vpop.permute.xlu1 %888 }
 0x2e0   : > { %v892_v47 = vsel %vm414_vm3, %v889_v53, %v891_v30 }
 0x2e1   : > { %v895_v10 = vadd.f32 %v892_v47, %v882_v19 }
 0x2e4   : > { %1191 = vrot.lane.b32.xlu0 %v1186_v63, %s1848_s19  ;;  %1189 = vrot.lane.b32.xlu2 %v1185_v36, %s1848_s19  ;;  %v1229_v63 = vmul.f32 %v2118_v29, %v1949_v20  ;;  %v1213_v36 = vmul.f32 %v2157_v55, %v2096_v11 }
 0x2e5   : > { %1178 = vrot.lane.b32.xlu1 %v1173_v4, %s1847_s18  ;;  %v1212_v4 = vmul.f32 %v2096_v11, %v1968_v27 }
 0x2e6   : > { %v917_v37 = vpop.permute.xlu0 %916  ;;  %v965_v44 = vpop.permute.xlu2 %964 }
 0x2e7   : > { %v918_v30 = vsel %vm455_vm4, %v915_v13, %v917_v37  ;;  %v904_v60 = vpop.permute.xlu1 %903 }
 0x2e8   : > { %v905_v1 = vsel %vm455_vm4, %v902_v61, %v904_v60  ;;  %v909_v12 = vadd.f32 %v904_v60, %v896_v43 }
 0x2e9   : > { %v908_v18 = vadd.f32 %v905_v1, %v895_v10 }
 0x2ea   : > { %v922_v23 = vadd.f32 %v917_v37, %v909_v12 }
 0x2eb   : > { %v921_v19 = vadd.f32 %v918_v30, %v908_v18 }
 0x2ec   : > { %1217 = vrot.lane.b32.xlu0 %v1211_v26, %s1849_s20  ;;  %1204 = vrot.lane.b32.xlu2 %v1199_v39, %s1848_s19  ;;  %v935_v13 = vadd.f32 %v930_v7, %v922_v23  ;;  %v1247_v23 = vmul.f32 %v2128_v38, %v1960_v24  ;;  %v1231_v26 = vmul.f32 %v2214_v57, %v2118_v29 }
 0x2ed   : > { %1202 = vrot.lane.b32.xlu1 %v1198_v51, %s1848_s19  ;;  %v1230_v39 = vmul.f32 %v2118_v29, %v1982_v32 }
 0x2ee   : > { %v943_v43 = vpop.permute.xlu0 %942  ;;  %v983_v61 = vpop.permute.xlu2 %982 }
 0x2ef   : > { %v928_v53 = vpop.permute.xlu1 %927 }
 0x2f0   : > { %v931_v47 = vsel %vm576_vm5, %v928_v53, %v930_v7 }
 0x2f1   : > { %v934_v10 = vadd.f32 %v931_v47, %v921_v19 }
 0x2f4   : > { %1235 = vrot.lane.b32.xlu0 %v1229_v63, %s1849_s20  ;;  %1221 = vrot.lane.b32.xlu2 %v1213_v36, %s1849_s20  ;;  %v1249_v63 = vmul.f32 %v2157_v55, %v2128_v38  ;;  %v1248_v36 = vmul.f32 %v2128_v38, %v1968_v27 }
 0x2f5   : > { %1219 = vrot.lane.b32.xlu1 %v1212_v4, %s1849_s20 }
 0x2f6   : > { %v961_v37 = vpop.permute.xlu0 %960  ;;  %v1001_v30 = vpop.permute.xlu2 %1000 }
 0x2f7   : > { %v945_v7 = vpop.permute.xlu1 %944 }
 0x2f8   : > { %v948_v60 = vsel %vm623_vm6, %v943_v43, %v945_v7  ;;  %v949_v1 = vsel %vm623_vm6, %v945_v7, %v947_v52 }
 0x2f9   : > { %v952_v12 = vadd.f32 %v948_v60, %v934_v10  ;;  %v953_v18 = vadd.f32 %v949_v1, %v935_v13  ;;  %v1265_v10 = vmul.f32 %v2138_v45, %v1985_v33 }
 0x2fc   : > { %1253 = vrot.lane.b32.xlu0 %v1247_v23, %s1850_s25  ;;  %1239 = vrot.lane.b32.xlu2 %v1231_v26, %s1849_s20  ;;  %v1278_v23 = vmul.f32 %v2146_v49, %v2002_v40  ;;  %v1266_v26 = vmul.f32 %v2138_v45, %v1988_v34 }
 0x2fd   : > { %1237 = vrot.lane.b32.xlu1 %v1230_v39, %s1849_s20 }
 0x2fe   : > { %v979_v51 = vpop.permute.xlu0 %978  ;;  %v1034_v19 = vpop.permute.xlu2 %1033 }
 0x2ff   : > { %v963_v52 = vpop.permute.xlu1 %962 }
 0x300   : > { %v966_v13 = vsel %vm623_vm6, %v961_v37, %v963_v52  ;;  %v967_v43 = vsel %vm623_vm6, %v963_v52, %v965_v44 }
 0x301   : > { %v970_v53 = vadd.f32 %v966_v13, %v952_v12  ;;  %v971_v47 = vadd.f32 %v967_v43, %v953_v18  ;;  %v1279_v18 = vmul.f32 %v2146_v49, %v2004_v41  ;;  %v2601_v43 = vperm.slane %v1979_v31, 2 }
 0x302   : > { %v1293_v31 = vmul.f32 %v2159_v56, %v1985_v33 }
 0x304   : > { %1269 = vrot.lane.b32.xlu0 %v1265_v10, %s1848_s19  ;;  %1257 = vrot.lane.b32.xlu2 %v1249_v63, %s1850_s25  ;;  %v1295_v10 = vmul.f32 %v2601_v43, %v2159_v56  ;;  %v1294_v63 = vmul.f32 %v2159_v56, %v1988_v34 }
 0x305   : > { %1255 = vrot.lane.b32.xlu1 %v1248_v36, %s1850_s25  ;;  %v1011_v36 = vmul.f32 %v1988_v34, %v2177_v0 }
 0x306   : > { %v997_v4 = vpop.permute.xlu0 %996  ;;  %v1049_v37 = vpop.permute.xlu2 %1048 }
 0x307   : > { %v981_v44 = vpop.permute.xlu1 %980 }
 0x308   : > { %v984_v7 = vsel %vm676_vm7, %v979_v51, %v981_v44  ;;  %v985_v60 = vsel %vm676_vm7, %v981_v44, %v983_v61  ;;  %v1012_v44 = vmul.f32 %v2002_v40, %v2181_v3 }
 0x309   : > { %v988_v1 = vadd.f32 %v984_v7, %v970_v53  ;;  %v989_v12 = vadd.f32 %v985_v60, %v971_v47 }
 0x30c   : > { %1284 = vrot.lane.b32.xlu0 %v1279_v18, %s1848_s19  ;;  %1282 = vrot.lane.b32.xlu2 %v1278_v23, %s1848_s19 }
 0x30d   : > { %1271 = vrot.lane.b32.xlu1 %v1266_v26, %s1848_s19 }
 0x30e   : > { %v1021_v39 = vpop.permute.xlu0 %1020  ;;  %v1073_v51 = vpop.permute.xlu2 %1072 }
 0x30f   : > { %v999_v61 = vpop.permute.xlu1 %998 }
 0x310   : > { %v1002_v52 = vsel %vm676_vm7, %v997_v4, %v999_v61  ;;  %v1003_v13 = vsel %vm676_vm7, %v999_v61, %v1001_v30  ;;  %v1013_v30 = vmul.f32 %v2004_v41, %v2181_v3  ;;  %v1010_v4 = vmul.f32 %v1985_v33, %v2177_v0 }
 0x311   : > { %v2603_v53 = vadd.f32 %v1002_v52, %v988_v1  ;;  %v2605_v47 = vadd.f32 %v1003_v13, %v989_v12  ;;  %v1833_v52 = vld [vmem:[%s1940_s26 + $0x9] sm:$0x7] }
 0x312   : > { %v1015_v1 = vadd.f32 %v1013_v30, %v1011_v36  ;;  %v1014_v18 = vadd.f32 %v1012_v44, %v1010_v4  ;;  %v2627_v13 = vperm.slane %v1833_v52, 2  ;;  %v1313_v36 = vmul.f32 %v2216_v59, %v2002_v40 }
 0x314   : > { %1303 = vrot.lane.b32.xlu0 %v1295_v10, %s1849_s20  ;;  %1301 = vrot.lane.b32.xlu2 %v1294_v63, %s1849_s20  ;;  %v1315_v10 = vmul.f32 %v2627_v13, %v2216_v59  ;;  %v1314_v63 = vmul.f32 %v2216_v59, %v2004_v41 }
 0x315   : > { %1299 = vrot.lane.b32.xlu1 %v1293_v31, %s1849_s20 }
 0x316   : > { %v1036_v7 = vpop.permute.xlu0 %1035  ;;  %v1088_v60 = vpop.permute.xlu2 %1087 }
 0x317   : > { %v1037_v12 = vsel %vm219_vm0, %v1034_v19, %v1036_v7  ;;  %v1023_v23 = vpop.permute.xlu1 %1022 }
 0x318   : > { %v1024_v26 = vsel %vm219_vm0, %v1021_v39, %v1023_v23  ;;  %v1028_v61 = vadd.f32 %v1023_v23, %v1015_v1  ;;  %v1333_v1 = vmul.f32 %v2601_v43, %v2256_v48 }
 0x319   : > { %v1027_v56 = vadd.f32 %v1024_v26, %v1014_v18  ;;  %v1332_v18 = vmul.f32 %v2256_v48, %v1988_v34 }
 0x31a   : > { %v1041_v45 = vadd.f32 %v1036_v7, %v1028_v61 }
 0x31b   : > { %v1040_v19 = vadd.f32 %v1037_v12, %v1027_v56  ;;  %v1331_v56 = vmul.f32 %v2256_v48, %v1985_v33 }
 0x31c   : > { %1323 = vrot.lane.b32.xlu0 %v1315_v10, %s1849_s20  ;;  %1321 = vrot.lane.b32.xlu2 %v1314_v63, %s1849_s20  ;;  %v1054_v39 = vadd.f32 %v1049_v37, %v1041_v45  ;;  %v1366_v63 = vmul.f32 %v2002_v40, %v1970_v28 }
 0x31d   : > { %1319 = vrot.lane.b32.xlu1 %v1313_v36, %s1849_s20  ;;  %v1354_v36 = vmul.f32 %v1988_v34, %v2181_v3 }
 0x31e   : > { %v1060_v30 = vpop.permute.xlu0 %1059  ;;  %v1112_v31 = vpop.permute.xlu2 %1111 }
 0x31f   : > { %v1047_v4 = vpop.permute.xlu1 %1046 }
 0x320   : > { %v1050_v44 = vsel %vm260_vm1, %v1047_v4, %v1049_v37 }
 0x321   : > { %v1053_v7 = vadd.f32 %v1050_v44, %v1040_v19  ;;  %v1353_v19 = vmul.f32 %v1985_v33, %v2181_v3 }
 0x324   : > { %1341 = vrot.lane.b32.xlu0 %v1333_v1, %s1850_s25  ;;  %1339 = vrot.lane.b32.xlu2 %v1332_v18, %s1850_s25  ;;  %v1380_v18 = vmul.f32 %v1988_v34, %v1951_v21 }
 0x325   : > { %1337 = vrot.lane.b32.xlu1 %v1331_v56, %s1850_s25  ;;  %v1379_v56 = vmul.f32 %v1985_v33, %v1951_v21  ;;  %v1405_v21 = vmul.f32 %v2104_v14, %v1949_v20 }
 0x326   : > { %v1075_v45 = vpop.permute.xlu0 %1074  ;;  %v1127_v12 = vpop.permute.xlu2 %1126 }
 0x327   : > { %v1076_v37 = vsel %vm373_vm2, %v1073_v51, %v1075_v45  ;;  %v1062_v23 = vpop.permute.xlu1 %1061 }
 0x328   : > { %v1063_v26 = vsel %vm373_vm2, %v1060_v30, %v1062_v23  ;;  %v1067_v61 = vadd.f32 %v1062_v23, %v1054_v39 }
 0x329   : > { %v1066_v52 = vadd.f32 %v1063_v26, %v1053_v7 }
 0x32a   : > { %v1080_v10 = vadd.f32 %v1075_v45, %v1067_v61  ;;  %v1367_v45 = vmul.f32 %v2004_v41, %v1970_v28  ;;  %v1393_v28 = vmul.f32 %v2004_v41, %v1962_v25 }
 0x32b   : > { %v1079_v4 = vadd.f32 %v1076_v37, %v1066_v52 }
 0x32c   : > { %1370 = vrot.lane.b32.xlu0 %v1366_v63, %s1843_s29  ;;  %1359 = vrot.lane.b32.xlu2 %v1354_v36, %s1843_s29  ;;  %v1093_v51 = vadd.f32 %v1088_v60, %v1080_v10  ;;  %v1392_v36 = vmul.f32 %v2002_v40, %v1962_v25  ;;  %v1418_v25 = vmul.f32 %v2185_v6, %v1960_v24 }
 0x32d   : > { %1357 = vrot.lane.b32.xlu1 %v1353_v19, %s1843_s29 }
 0x32e   : > { %v1099_v39 = vpop.permute.xlu0 %1098  ;;  %v1151_v30 = vpop.permute.xlu2 %1150 }
 0x32f   : > { %v1086_v44 = vpop.permute.xlu1 %1085 }
 0x330   : > { %v1089_v7 = vsel %vm414_vm3, %v1086_v44, %v1088_v60 }
 0x331   : > { %v1092_v1 = vadd.f32 %v1089_v7, %v1079_v4 }
 0x334   : > { %1385 = vrot.lane.b32.xlu0 %v1380_v18, %s1844_s30  ;;  %1383 = vrot.lane.b32.xlu2 %v1379_v56, %s1844_s30  ;;  %v1406_v18 = vmul.f32 %v2104_v14, %v1982_v32 }
 0x335   : > { %1372 = vrot.lane.b32.xlu1 %v1367_v45, %s1843_s29 }
 0x336   : > { %v1114_v37 = vpop.permute.xlu0 %1113  ;;  %v1166_v23 = vpop.permute.xlu2 %1165 }
 0x337   : > { %v1115_v60 = vsel %vm455_vm4, %v1112_v31, %v1114_v37  ;;  %v1101_v26 = vpop.permute.xlu1 %1100 }
 0x338   : > { %v1102_v61 = vsel %vm414_vm3, %v1099_v39, %v1101_v26  ;;  %v1106_v52 = vadd.f32 %v1101_v26, %v1093_v51 }
 0x339   : > { %v1105_v10 = vadd.f32 %v1102_v61, %v1092_v1  ;;  %v1419_v1 = vmul.f32 %v2185_v6, %v1968_v27 }
 0x33a   : > { %v1119_v63 = vadd.f32 %v1114_v37, %v1106_v52 }
 0x33b   : > { %v1118_v19 = vadd.f32 %v1115_v60, %v1105_v10  ;;  %v1444_v10 = vmul.f32 %v2006_v42, %v1960_v24 }
 0x33c   : > { %1409 = vrot.lane.b32.xlu0 %v1405_v21, %s1845_s8  ;;  %1398 = vrot.lane.b32.xlu2 %v1393_v28, %s1844_s30  ;;  %v1132_v31 = vadd.f32 %v1127_v12, %v1119_v63  ;;  %v1432_v63 = vmul.f32 %v1990_v35, %v1982_v32  ;;  %v1431_v21 = vmul.f32 %v1990_v35, %v1949_v20 }
 0x33d   : > { %1396 = vrot.lane.b32.xlu1 %v1392_v36, %s1844_s30  ;;  %v1457_v35 = vmul.f32 %v2017_v46, %v1949_v20 }
 0x33e   : > { %v1138_v4 = vpop.permute.xlu0 %1137  ;;  %v1190_v51 = vpop.permute.xlu2 %1189 }
 0x33f   : > { %v1125_v39 = vpop.permute.xlu1 %1124 }
 0x340   : > { %v1128_v44 = vsel %vm373_vm2, %v1125_v39, %v1127_v12 }
 0x341   : > { %v1131_v7 = vadd.f32 %v1128_v44, %v1118_v19  ;;  %v1458_v44 = vmul.f32 %v2017_v46, %v1982_v32  ;;  %v187_v46 = vmul.f32 %v1968_v27, %v2177_v0 }
 0x344   : > { %1424 = vrot.lane.b32.xlu0 %v1419_v1, %s1846_s15  ;;  %1422 = vrot.lane.b32.xlu2 %v1418_v25, %s1846_s15 }
 0x345   : > { %1411 = vrot.lane.b32.xlu1 %v1406_v18, %s1845_s8 }
 0x346   : > { %v1153_v56 = vpop.permute.xlu0 %1152  ;;  %v1205_v45 = vpop.permute.xlu2 %1204 }
 0x347   : > { %v1154_v12 = vsel %vm414_vm3, %v1151_v30, %v1153_v56  ;;  %v1140_v37 = vpop.permute.xlu1 %1139 }
 0x348   : > { %v1141_v60 = vsel %vm373_vm2, %v1138_v4, %v1140_v37  ;;  %v1145_v26 = vadd.f32 %v1140_v37, %v1132_v31  ;;  %v200_v37 = vmul.f32 %v1949_v20, %v2181_v3 }
 0x349   : > { %v1144_v61 = vadd.f32 %v1141_v60, %v1131_v7  ;;  %v1445_v7 = vmul.f32 %v2006_v42, %v1968_v27  ;;  %v186_v60 = vmul.f32 %v1960_v24, %v2177_v0 }
 0x34a   : > { %v1158_v52 = vadd.f32 %v1153_v56, %v1145_v26  ;;  %v201_v56 = vmul.f32 %v1982_v32, %v2181_v3 }
 0x34b   : > { %v1157_v28 = vadd.f32 %v1154_v12, %v1144_v61 }
 0x34c   : > { %1448 = vrot.lane.b32.xlu0 %v1444_v10, %s1847_s18  ;;  %1437 = vrot.lane.b32.xlu2 %v1432_v63, %s1846_s15  ;;  %v1171_v30 = vadd.f32 %v1166_v23, %v1158_v52  ;;  %v1471_v52 = vmul.f32 %v2028_v50, %v2004_v41  ;;  %v1470_v10 = vmul.f32 %v2028_v50, %v2002_v40 }
 0x34d   : > { %1435 = vrot.lane.b32.xlu1 %v1431_v21, %s1846_s15  ;;  %v203_v21 = vadd.f32 %v201_v56, %v187_v46  ;;  %v279_v46 = vmul.f32 %v1988_v34, %v2104_v14 }
 0x34e   : > { %v1177_v36 = vpop.permute.xlu0 %1176  ;;  %v1222_v19 = vpop.permute.xlu2 %1221 }
 0x34f   : > { %v1164_v31 = vpop.permute.xlu1 %1163  ;;  %v224_v50 = vadd.f32 %v2106_v15, %v203_v21  ;;  %v1509_v21 = vmul.f32 %v2061_v62, %v1985_v33 }
 0x350   : > { %v1167_v4 = vsel %vm414_vm3, %v1164_v31, %v1166_v23 }
 0x351   : > { %v1170_v39 = vadd.f32 %v1167_v4, %v1157_v28  ;;  %v202_v28 = vadd.f32 %v200_v37, %v186_v60 }
 0x354   : > { %1463 = vrot.lane.b32.xlu0 %v1458_v44, %s1847_s18  ;;  %1461 = vrot.lane.b32.xlu2 %v1457_v35, %s1847_s18 }
 0x355   : > { %1450 = vrot.lane.b32.xlu1 %v1445_v7, %s1847_s18 }
 0x356   : > { %v1192_v1 = vpop.permute.xlu0 %1191  ;;  %v2711_v25 = vpop.permute.xlu2 %1239 }
 0x357   : > { %v1193_v23 = vsel %vm576_vm5, %v1190_v51, %v1192_v1  ;;  %v1179_v18 = vpop.permute.xlu1 %1178  ;;  %v1483_v51 = vmul.f32 %v2039_v54, %v1985_v33 }
 0x358   : > { %v1180_v42 = vsel %vm455_vm4, %v1177_v36, %v1179_v18  ;;  %v1184_v12 = vadd.f32 %v1179_v18, %v1171_v30  ;;  %v220_v30 = vsel %vm219_vm0, %v2108_v16, %v2106_v15  ;;  %v1497_v18 = vmul.f32 %v2050_v58, %v2004_v41 }
 0x359   : > { %v1183_v26 = vadd.f32 %v1180_v42, %v1170_v39  ;;  %v240_v39 = vsel %vm219_vm0, %v2189_v9, %v2110_v17  ;;  %v223_v35 = vadd.f32 %v220_v30, %v202_v28  ;;  %v1496_v15 = vmul.f32 %v2050_v58, %v2002_v40 }
 0x35a   : > { %v1197_v61 = vadd.f32 %v1192_v1, %v1184_v12  ;;  %v244_v1 = vadd.f32 %v2110_v17, %v224_v50  ;;  %v1484_v9 = vmul.f32 %v2039_v54, %v1988_v34  ;;  %v278_v58 = vmul.f32 %v1985_v33, %v2104_v14 }
 0x35b   : > { %v1196_v63 = vadd.f32 %v1193_v23, %v1183_v26  ;;  %v3095_v23 = vld [vmem:[#allocation15_spill] sm:$0xff]  ;;  %v243_v56 = vadd.f32 %v240_v39, %v223_v35  ;;  %v295_v54 = vmul.f32 %v2004_v41, %v2185_v6  ;;  %v1510_v14 = vmul.f32 %v2061_v62, %v1988_v34 }
 0x35c   : > { %1487 = vrot.lane.b32.xlu0 %v1483_v51, %s1846_s15  ;;  %1476 = vrot.lane.b32.xlu2 %v1471_v52, %s1845_s8  ;;  %v1210_v3 = vadd.f32 %v1205_v45, %v1197_v61  ;;  %v261_v16 = vsel %vm260_vm1, %v3095_v23, %v2114_v22  ;;  %v294_v61 = vmul.f32 %v2002_v40, %v2185_v6 }
 0x35d   : > { %1474 = vrot.lane.b32.xlu1 %v1470_v10, %s1845_s8  ;;  %v264_v17 = vadd.f32 %v261_v16, %v243_v56  ;;  %v1536_v23 = vmul.f32 %v2080_v5, %v1982_v32  ;;  %v1535_v16 = vmul.f32 %v2080_v5, %v1949_v20  ;;  %v3099_v56 = vld [vmem:[#allocation3_spill] sm:$0xff]  ;;  %v3100_v5 = vld [vmem:[#allocation21_spill] sm:$0xff] }
 0x35e   : > { %v1218_v36 = vpop.permute.xlu0 %1217  ;;  %v2735_v31 = vpop.permute.xlu2 %1257 }
 0x35f   : > { %v1203_v4 = vpop.permute.xlu1 %1202  ;;  %v280_v51 = vadd.f32 %v278_v58, %v264_v17 }
 0x360   : > { %v1206_v44 = vsel %vm576_vm5, %v1203_v4, %v1205_v45  ;;  %v265_v45 = vadd.f32 %v2114_v22, %v244_v1  ;;  %v3097_v4 = vld [vmem:[#allocation2_spill] sm:$0xff] }
 0x361   : > { %v1209_v7 = vadd.f32 %v1206_v44, %v1196_v63  ;;  %v1522_v63 = vmul.f32 %v2072_v2, %v2002_v40 }
 0x362   : > { %v281_v22 = vadd.f32 %v279_v46, %v265_v45 }
 0x364   : > { %1502 = vrot.lane.b32.xlu0 %v1497_v18, %s1846_s15  ;;  %1500 = vrot.lane.b32.xlu2 %v1496_v15, %s1846_s15  ;;  %v297_v28 = vadd.f32 %v295_v54, %v281_v22  ;;  %v1523_v18 = vmul.f32 %v2072_v2, %v2004_v41  ;;  %v3098_v15 = vld [vmem:[#allocation19_spill] sm:$0xff]  ;;  %v3103_v22 = vld [vmem:[#allocation5_spill] sm:$0xff] }
 0x365   : > { %1489 = vrot.lane.b32.xlu1 %v1484_v9, %s1846_s15  ;;  %v333_v9 = vsel %vm219_vm0, %v3099_v56, %v3098_v15  ;;  %v3102_v54 = vld [vmem:[#allocation23_spill] sm:$0xff] }
 0x366   : > { %v1236_v42 = vpop.permute.xlu0 %1235  ;;  %v2758_v12 = vpop.permute.xlu2 %1282 }
 0x367   : > { %v1220_v37 = vpop.permute.xlu1 %1219 }
 0x368   : > { %v1223_v60 = vsel %vm623_vm6, %v1218_v36, %v1220_v37  ;;  %v1224_v26 = vsel %vm623_vm6, %v1220_v37, %v1222_v19  ;;  %v296_v19 = vadd.f32 %v294_v61, %v280_v51  ;;  %v3096_v36 = vld [vmem:[#allocation17_spill] sm:$0xff] }
 0x369   : > { %v1227_v52 = vadd.f32 %v1223_v60, %v1209_v7  ;;  %v1228_v10 = vadd.f32 %v1224_v26, %v1210_v3  ;;  %v313_v50 = vsel %vm219_vm0, %v3097_v4, %v3096_v36  ;;  %v317_v39 = vadd.f32 %v3096_v36, %v297_v28  ;;  %v3106_v4 = vld [vmem:[#allocation26_spill] sm:$0xff] }
 0x36a   : > { %v316_v35 = vadd.f32 %v313_v50, %v296_v19  ;;  %v374_v60 = vsel %vm373_vm2, %v3103_v22, %v3102_v54  ;;  %v1550_v19 = vmul.f32 %v2157_v55, %v2088_v8  ;;  %v3107_v50 = vld [vmem:[#allocation9_spill] sm:$0xff] }
 0x36b   : > { %v337_v45 = vadd.f32 %v3098_v15, %v317_v39  ;;  %v415_v39 = vsel %vm414_vm3, %v3107_v50, %v3106_v4  ;;  %v3112_v22 = vld [vmem:[#allocation29_spill] sm:$0xff] }
 0x36c   : > { %1526 = vrot.lane.b32.xlu0 %v1522_v63, %s1847_s18  ;;  %1515 = vrot.lane.b32.xlu2 %v1510_v14, %s1847_s18  ;;  %v3104_v14 = vld [vmem:[#allocation25_spill] sm:$0xff] }
 0x36d   : > { %1513 = vrot.lane.b32.xlu1 %v1509_v21, %s1847_s18  ;;  %v357_v37 = vadd.f32 %v3100_v5, %v337_v45  ;;  %v3105_v21 = vld [vmem:[#allocation7_spill] sm:$0xff] }
 0x36e   : > { %v1254_v6 = vpop.permute.xlu0 %1253  ;;  %v2777_v30 = vpop.permute.xlu2 %1301  ;;  %v394_v28 = vsel %vm373_vm2, %v3105_v21, %v3104_v14  ;;  %v3111_v45 = vld [vmem:[#allocation11_spill] sm:$0xff] }
 0x36f   : > { %v1238_v3 = vpop.permute.xlu1 %1237  ;;  %v378_v63 = vadd.f32 %v3102_v54, %v357_v37  ;;  %v1568_v37 = vmul.f32 %v2214_v57, %v2096_v11 }
 0x370   : > { %v1241_v62 = vsel %vm623_vm6, %v1236_v42, %v1238_v3  ;;  %v1242_v44 = vsel %vm623_vm6, %v1238_v3, %v2711_v25  ;;  %v336_v25 = vadd.f32 %v333_v9, %v316_v35  ;;  %v3101_v42 = vld [vmem:[#allocation4_spill] sm:$0xff]  ;;  %v1549_v3 = vmul.f32 %v2088_v8, %v1968_v27  ;;  %v3108_v35 = vld [vmem:[#allocation27_spill] sm:$0xff] }
 0x371   : > { %v1245_v7 = vadd.f32 %v1241_v62, %v1227_v52  ;;  %v1246_v1 = vadd.f32 %v1242_v44, %v1228_v10  ;;  %v353_v2 = vsel %vm260_vm1, %v3101_v42, %v3100_v5  ;;  %v3110_v9 = vld [vmem:[#allocation28_spill] sm:$0xff] }
 0x372   : > { %v356_v51 = vadd.f32 %v353_v2, %v336_v25  ;;  %v456_v25 = vsel %vm455_vm4, %v3111_v45, %v3110_v9 }
 0x374   : > { %1541 = vrot.lane.b32.xlu0 %v1536_v23, %s1848_s19  ;;  %1539 = vrot.lane.b32.xlu2 %v1535_v16, %s1848_s19  ;;  %v377_v36 = vadd.f32 %v374_v60, %v356_v51  ;;  %v3113_v60 = vld [vmem:[#allocation12_spill] sm:$0xff] }
 0x375   : > { %1528 = vrot.lane.b32.xlu1 %v1523_v18, %s1847_s18 }
 0x376   : > { %v1270_v17 = vpop.permute.xlu0 %1269  ;;  %v2799_v46 = vpop.permute.xlu2 %1321  ;;  %v397_v62 = vadd.f32 %v394_v28, %v377_v36  ;;  %v3117_v36 = vld [vmem:[#allocation14_spill] sm:$0xff] }
 0x377   : > { %v1256_v58 = vpop.permute.xlu1 %1255 }
 0x378   : > { %v1259_v26 = vsel %vm676_vm7, %v1254_v6, %v1256_v58  ;;  %v1260_v61 = vsel %vm676_vm7, %v1256_v58, %v2735_v31  ;;  %v1548_v6 = vmul.f32 %v2088_v8, %v1960_v24  ;;  %v398_v31 = vadd.f32 %v3104_v14, %v378_v63  ;;  %v3114_v63 = vld [vmem:[#allocation30_spill] sm:$0xff]  ;;  %v3115_v14 = vld [vmem:[#allocation13_spill] sm:$0xff] }
 0x379   : > { %v1263_v52 = vadd.f32 %v1259_v26, %v1245_v7  ;;  %v1264_v10 = vadd.f32 %v1260_v61, %v1246_v1  ;;  %v3109_v7 = vld [vmem:[#allocation10_spill] sm:$0xff]  ;;  %v418_v16 = vadd.f32 %v415_v39, %v397_v62  ;;  %v1567_v61 = vmul.f32 %v2096_v11, %v1982_v32 }
 0x37a   : > { %v419_v44 = vadd.f32 %v3106_v4, %v398_v31  ;;  %v435_v1 = vsel %vm414_vm3, %v3109_v7, %v3108_v35  ;;  %v496_v21 = vsel %vm373_vm2, %v3115_v14, %v3114_v63  ;;  %v3128_v14 = vld [vmem:[#allocation24_spill] sm:$0xff] }
 0x37b   : > { %v438_v2 = vadd.f32 %v435_v1, %v418_v16 }
 0x37c   : > { %1558 = vrot.lane.b32.xlu0 %v1550_v19, %s1849_s20  ;;  %1556 = vrot.lane.b32.xlu2 %v1549_v3, %s1849_s20  ;;  %v439_v56 = vadd.f32 %v3108_v35, %v419_v44  ;;  %v3116_v3 = vld [vmem:[#allocation31_spill] sm:$0xff]  ;;  %v3118_v44 = vld [vmem:[#allocation32_spill] sm:$0xff] }
 0x37d   : > { %1554 = vrot.lane.b32.xlu1 %v1548_v6, %s1849_s20  ;;  %v459_v51 = vadd.f32 %v456_v25, %v438_v2  ;;  %v3119_v35 = vld [vmem:[#allocation16_spill] sm:$0xff]  ;;  %v1586_v25 = vmul.f32 %v2157_v55, %v2118_v29  ;;  %v1584_v2 = vmul.f32 %v2118_v29, %v1960_v24 }
 0x37e   : > { %v1285_v8 = vpop.permute.xlu0 %1284  ;;  %v2832_v23 = vpop.permute.xlu2 %1339  ;;  %v460_v54 = vadd.f32 %v3110_v9, %v439_v56  ;;  %v536_v7 = vsel %vm414_vm3, %v3119_v35, %v3118_v44  ;;  %v3120_v56 = vld [vmem:[#allocation33_spill] sm:$0xff]  ;;  %v3121_v9 = vld [vmem:[#allocation18_spill] sm:$0xff]  ;;  %v1603_v35 = vmul.f32 %v2128_v38, %v1982_v32 }
 0x37f   : > { %v1286_v18 = vsel %vm576_vm5, %v2758_v12, %v1285_v8  ;;  %v1272_v15 = vpop.permute.xlu1 %1271  ;;  %v476_v12 = vsel %vm373_vm2, %v3113_v60, %v3112_v22  ;;  %v556_v45 = vsel %vm455_vm4, %v3121_v9, %v3120_v56  ;;  %v3125_v60 = vld [vmem:[#allocation22_spill] sm:$0xff] }
 0x380   : > { %v1273_v5 = vsel %vm576_vm5, %v1270_v17, %v1272_v15  ;;  %v1277_v42 = vadd.f32 %v1272_v15, %v1264_v10  ;;  %v1566_v17 = vmul.f32 %v2096_v11, %v1949_v20  ;;  %v479_v28 = vadd.f32 %v476_v12, %v459_v51  ;;  %v3127_v51 = vld [vmem:[#allocation36_spill] sm:$0xff] }
 0x381   : > { %v1276_v58 = vadd.f32 %v1273_v5, %v1263_v52  ;;  %v480_v52 = vadd.f32 %v3112_v22, %v460_v54  ;;  %v516_v11 = vsel %vm414_vm3, %v3117_v36, %v3116_v3  ;;  %v1585_v5 = vmul.f32 %v2118_v29, %v1968_v27  ;;  %v3124_v27 = vld [vmem:[#allocation35_spill] sm:$0xff]  ;;  %v3129_v36 = vld [vmem:[#allocation38_spill] sm:$0xff] }
 0x382   : > { %v1290_v26 = vadd.f32 %v1285_v8, %v1277_v42  ;;  %v499_v4 = vadd.f32 %v496_v21, %v479_v28  ;;  %v597_v12 = vsel %vm576_vm5, %v3125_v60, %v3124_v27  ;;  %v624_v21 = vsel %vm623_vm6, %v3128_v14, %v3127_v51 }
 0x383   : > { %v1289_v10 = vadd.f32 %v1286_v18, %v1276_v58  ;;  %v500_v19 = vadd.f32 %v3114_v63, %v480_v52  ;;  %v3122_v58 = vld [vmem:[#allocation34_spill] sm:$0xff] }
 0x384   : > { %1576 = vrot.lane.b32.xlu0 %v1568_v37, %s1849_s20  ;;  %1574 = vrot.lane.b32.xlu2 %v1567_v61, %s1849_s20  ;;  %v519_v16 = vadd.f32 %v516_v11, %v499_v4  ;;  %v3123_v37 = vld [vmem:[#allocation20_spill] sm:$0xff]  ;;  %v3130_v11 = vld [vmem:[#allocation41_spill] sm:$0xff] }
 0x385   : > { %1572 = vrot.lane.b32.xlu1 %v1566_v17, %s1849_s20  ;;  %v520_v62 = vadd.f32 %v3116_v3, %v500_v19  ;;  %v577_v54 = vsel %vm576_vm5, %v3123_v37, %v3122_v58  ;;  %v3126_v61 = vld [vmem:[#allocation40_spill] sm:$0xff] }
 0x386   : > { %v1304_v6 = vpop.permute.xlu0 %1303  ;;  %v2862_v31 = vpop.permute.xlu2 %1359  ;;  %v539_v42 = vadd.f32 %v536_v7, %v519_v16  ;;  %v625_v17 = vsel %vm623_vm6, %v3127_v51, %v3126_v61  ;;  %v1602_v16 = vmul.f32 %v2128_v38, %v1949_v20  ;;  %v1635_v61 = vmul.f32 %v2601_v43, %v2146_v49 }
 0x387   : > { %v1306_v50 = vsel %vm623_vm6, %v2777_v30, %v1304_v6  ;;  %v1300_v39 = vpop.permute.xlu1 %1299  ;;  %v540_v15 = vadd.f32 %v3118_v44, %v520_v62  ;;  %v652_v6 = vsel %vm623_vm6, %v3130_v11, %v3129_v36  ;;  %v1604_v44 = vmul.f32 %v2214_v57, %v2128_v38 }
 0x388   : > { %v1310_v1 = vadd.f32 %v1306_v50, %v1290_v26  ;;  %v1305_v8 = vsel %vm623_vm6, %v1300_v39, %v2777_v30  ;;  %v559_v22 = vadd.f32 %v556_v45, %v539_v42  ;;  %v3131_v39 = vld [vmem:[#allocation37_spill] sm:$0xff]  ;;  %v1634_v51 = vmul.f32 %v2146_v49, %v1988_v34 }
 0x389   : > { %v1309_v18 = vadd.f32 %v1305_v8, %v1289_v10  ;;  %v560_v30 = vadd.f32 %v3120_v56, %v540_v15  ;;  %v651_v62 = vsel %vm623_vm6, %v3131_v39, %v3130_v11  ;;  %v3134_v15 = vld [vmem:[#allocation43_spill] sm:$0xff] }
 0x38a   : > { %v580_v26 = vadd.f32 %v577_v54, %v559_v22  ;;  %v1633_v54 = vmul.f32 %v2146_v49, %v1985_v33  ;;  %v3135_v22 = vld [vmem:[#allocation6_spill] sm:$0xff] }
 0x38b   : > { %v581_v55 = vadd.f32 %v3122_v58, %v560_v30 }
 0x38c   : > { %1594 = vrot.lane.b32.xlu0 %v1586_v25, %s1850_s25  ;;  %1592 = vrot.lane.b32.xlu2 %v1585_v5, %s1850_s25  ;;  %v600_v3 = vadd.f32 %v597_v12, %v580_v26 }
 0x38d   : > { %1590 = vrot.lane.b32.xlu1 %v1584_v2, %s1850_s25  ;;  %v601_v63 = vadd.f32 %v3124_v27, %v581_v55  ;;  %v1621_v55 = vmul.f32 %v3135_v22, %v2004_v41 }
 0x38e   : > { %v1324_v24 = vpop.permute.xlu0 %1323  ;;  %v1384_v29 = vpop.permute.xlu2 %1383  ;;  %v628_v7 = vadd.f32 %v624_v21, %v600_v3 }
 0x38f   : > { %v1326_v10 = vsel %vm623_vm6, %v2799_v46, %v1324_v24  ;;  %v1320_v52 = vpop.permute.xlu1 %1319  ;;  %v629_v50 = vadd.f32 %v625_v17, %v601_v63  ;;  %v3136_v24 = vld [vmem:[#allocation8_spill] sm:$0xff]  ;;  %v1352_v17 = vmul.f32 %v2004_v41, %v2177_v0 }
 0x390   : > { %v1330_v28 = vadd.f32 %v1326_v10, %v1310_v1  ;;  %v1325_v19 = vsel %vm623_vm6, %v1320_v52, %v2799_v46  ;;  %v3132_v1 = vld [vmem:[#allocation42_spill] sm:$0xff]  ;;  %v3133_v46 = vld [vmem:[#allocation39_spill] sm:$0xff]  ;;  %v655_v57 = vadd.f32 %v651_v62, %v628_v7  ;;  %v1651_v26 = vmul.f32 %v3136_v24, %v2002_v40 }
 0x391   : > { %v1329_v4 = vadd.f32 %v1325_v19, %v1309_v18  ;;  %v678_v8 = vsel %vm676_vm7, %v3133_v46, %v3132_v1  ;;  %v656_v18 = vadd.f32 %v652_v6, %v629_v50  ;;  %v677_v56 = vsel %vm676_vm7, %v3134_v15, %v3133_v46 }
 0x392   : > { %v681_v25 = vadd.f32 %v677_v56, %v655_v57  ;;  %v1351_v10 = vmul.f32 %v2002_v40, %v2177_v0  ;;  %v1365_v52 = vadd.f32 %v2862_v31, %v1352_v17  ;;  %v1669_v6 = vmul.f32 %v2216_v59, %v1985_v33 }
 0x393   : > { %v682_v32 = vadd.f32 %v678_v8, %v656_v18  ;;  %v1653_v0 = vmul.f32 %v2627_v13, %v3136_v24  ;;  %v1671_v7 = vmul.f32 %v2601_v43, %v2216_v59  ;;  %v1670_v1 = vmul.f32 %v2216_v59, %v1988_v34  ;;  %v1707_v43 = vld [vmem:[%s3029_s2] sm:$0x3f] }
 0x394   : > { %1612 = vrot.lane.b32.xlu0 %v1604_v44, %s1850_s25  ;;  %1610 = vrot.lane.b32.xlu2 %v1603_v35, %s1850_s25  ;;  %v1008_v30 = vmax.f32 %v681_v25, %v2603_v53  ;;  %v1687_v35 = vmul.f32 %v2256_v48, %v2002_v40  ;;  %v1689_v59 = vmul.f32 %v2627_v13, %v2256_v48 }
 0x395   : > { %1608 = vrot.lane.b32.xlu1 %v1602_v16, %s1850_s25  ;;  %v1009_v38 = vmax.f32 %v682_v32, %v2605_v47  ;;  %v1620_v47 = vmul.f32 %v3135_v22, %v2002_v40  ;;  %v1688_v57 = vmul.f32 %v2256_v48, %v2004_v41 }
 0x396   : > { %v1342_v9 = vpop.permute.xlu0 %1341  ;;  %v1399_v45 = vpop.permute.xlu2 %1398 }
 0x397   : > { %v1344_v5 = vsel %vm676_vm7, %v2832_v23, %v1342_v9  ;;  %v1338_v20 = vpop.permute.xlu1 %1337 }
 0x398   : > { %v1348_v42 = vadd.f32 %v1344_v5, %v1330_v28  ;;  %v1343_v2 = vsel %vm676_vm7, %v1338_v20, %v2832_v23 }
 0x399   : > { %v1347_v58 = vadd.f32 %v1343_v2, %v1329_v4 }
 0x39a   : > { %v2931_v37 = vmax.f32 %v1009_v38, %v1348_v42 }
 0x39b   : > { %v2937_v27 = vmax.f32 %v1008_v30, %v1347_v58 }
 0x39c   : > { %1639 = vrot.lane.b32.xlu0 %v1633_v54, %s1849_s20  ;;  %1626 = vrot.lane.b32.xlu2 %v1621_v55, %s1848_s19 }
 0x39d   : > { %1624 = vrot.lane.b32.xlu1 %v1620_v47, %s1848_s19 }
 0x39e   : > { %v1371_v53 = vpop.permute.xlu0 %1370  ;;  %v1423_v23 = vpop.permute.xlu2 %1422 }
 0x39f   : > { %v1358_v60 = vpop.permute.xlu1 %1357 }
 0x3a0   : > { %v1361_v12 = vsel %vm219_vm0, %v1358_v60, %v2862_v31  ;;  %v1652_v31 = vmul.f32 %v3136_v24, %v2004_v41 }
 0x3a1   : > { %v1364_v21 = vadd.f32 %v1361_v12, %v1351_v10 }
 0x3a4   : > { %1657 = vrot.lane.b32.xlu0 %v1651_v26, %s1849_s20  ;;  %1643 = vrot.lane.b32.xlu2 %v1635_v61, %s1849_s20 }
 0x3a5   : > { %1641 = vrot.lane.b32.xlu1 %v1634_v51, %s1849_s20 }
 0x3a6   : > { %v1386_v63 = vpop.permute.xlu0 %1385  ;;  %v1438_v14 = vpop.permute.xlu2 %1437 }
 0x3a7   : > { %v1387_v28 = vsel %vm260_vm1, %v1384_v29, %v1386_v63  ;;  %v1373_v49 = vpop.permute.xlu1 %1372 }
 0x3a8   : > { %v1374_v19 = vsel %vm219_vm0, %v1371_v53, %v1373_v49  ;;  %v1378_v3 = vadd.f32 %v1373_v49, %v1365_v52 }
 0x3a9   : > { %v1377_v36 = vadd.f32 %v1374_v19, %v1364_v21 }
 0x3aa   : > { %v1391_v11 = vadd.f32 %v1386_v63, %v1378_v3 }
 0x3ab   : > { %v1390_v4 = vadd.f32 %v1387_v28, %v1377_v36 }
 0x3ac   : > { %1675 = vrot.lane.b32.xlu0 %v1669_v6, %s1850_s25  ;;  %1661 = vrot.lane.b32.xlu2 %v1653_v0, %s1849_s20  ;;  %v1404_v29 = vadd.f32 %v1399_v45, %v1391_v11 }
 0x3ad   : > { %1659 = vrot.lane.b32.xlu1 %v1652_v31, %s1849_s20 }
 0x3ae   : > { %v1410_v50 = vpop.permute.xlu0 %1409  ;;  %v1462_v39 = vpop.permute.xlu2 %1461 }
 0x3af   : > { %v1397_v62 = vpop.permute.xlu1 %1396 }
 0x3b0   : > { %v1400_v44 = vsel %vm260_vm1, %v1397_v62, %v1399_v45 }
 0x3b1   : > { %v1403_v33 = vadd.f32 %v1400_v44, %v1390_v4 }
 0x3b4   : > { %1693 = vrot.lane.b32.xlu0 %v1687_v35, %s1850_s25  ;;  %1679 = vrot.lane.b32.xlu2 %v1671_v7, %s1850_s25 }
 0x3b5   : > { %1677 = vrot.lane.b32.xlu1 %v1670_v1, %s1850_s25 }
 0x3b6   : > { %v1425_v46 = vpop.permute.xlu0 %1424  ;;  %v1477_v16 = vpop.permute.xlu2 %1476 }
 0x3b7   : > { %v1426_v8 = vsel %vm414_vm3, %v1423_v23, %v1425_v46  ;;  %v1412_v18 = vpop.permute.xlu1 %1411 }
 0x3b8   : > { %v1413_v15 = vsel %vm373_vm2, %v1410_v50, %v1412_v18  ;;  %v1417_v40 = vadd.f32 %v1412_v18, %v1404_v29 }
 0x3b9   : > { %v1416_v56 = vadd.f32 %v1413_v15, %v1403_v33 }
 0x3ba   : > { %v1430_v34 = vadd.f32 %v1425_v46, %v1417_v40 }
 0x3bb   : > { %v1429_v32 = vadd.f32 %v1426_v8, %v1416_v56 }
 0x3bc   : > { %1710 = vperm.xlu0 %1830, %v1707_v43   ;;  %1697 = vrot.lane.b32.xlu2 %v1689_v59, %s1850_s25  ;;  %v1443_v9 = vadd.f32 %v1438_v14, %v1430_v34 }
 0x3bd   : > { %1695 = vrot.lane.b32.xlu1 %v1688_v57, %s1850_s25 }
 0x3be   : > { %v1449_v45 = vpop.permute.xlu0 %1448  ;;  %v1501_v20 = vpop.permute.xlu2 %1500 }
 0x3bf   : > { %v1436_v25 = vpop.permute.xlu1 %1435 }
 0x3c0   : > { %v1439_v5 = vsel %vm414_vm3, %v1436_v25, %v1438_v14 }
 0x3c1   : > { %v1442_v38 = vadd.f32 %v1439_v5, %v1429_v32 }
 0x3c6   : > { %v1464_v42 = vpop.permute.xlu0 %1463  ;;  %v1516_v54 = vpop.permute.xlu2 %1515 }
 0x3c7   : > { %v1465_v2 = vsel %vm455_vm4, %v1462_v39, %v1464_v42  ;;  %v1451_v13 = vpop.permute.xlu1 %1450 }
 0x3c8   : > { %v1452_v30 = vsel %vm455_vm4, %v1449_v45, %v1451_v13  ;;  %v1456_v41 = vadd.f32 %v1451_v13, %v1443_v9 }
 0x3c9   : > { %v1455_v48 = vadd.f32 %v1452_v30, %v1442_v38 }
 0x3ca   : > { %v1469_v58 = vadd.f32 %v1464_v42, %v1456_v41 }
 0x3cb   : > { %v1468_v22 = vadd.f32 %v1465_v2, %v1455_v48 }
 0x3cc   : > { %v1482_v55 = vadd.f32 %v1477_v16, %v1469_v58 }
 0x3ce   : > { %v1488_v47 = vpop.permute.xlu0 %1487  ;;  %v1540_v12 = vpop.permute.xlu2 %1539 }
 0x3cf   : > { %v1475_v53 = vpop.permute.xlu1 %1474 }
 0x3d0   : > { %v1478_v23 = vsel %vm373_vm2, %v1475_v53, %v1477_v16 }
 0x3d1   : > { %v1481_v60 = vadd.f32 %v1478_v23, %v1468_v22 }
 0x3d6   : > { %v1503_v24 = vpop.permute.xlu0 %1502  ;;  %v1557_v52 = vpop.permute.xlu2 %1556 }
 0x3d7   : > { %v1490_v26 = vpop.permute.xlu1 %1489  ;;  %v1504_v35 = vsel %vm414_vm3, %v1501_v20, %v1503_v24 }
 0x3d8   : > { %v1491_v61 = vsel %vm414_vm3, %v1488_v47, %v1490_v26  ;;  %v1495_v51 = vadd.f32 %v1490_v26, %v1482_v55 }
 0x3d9   : > { %v1494_v17 = vadd.f32 %v1491_v61, %v1481_v60 }
 0x3da   : > { %v1508_v33 = vadd.f32 %v1503_v24, %v1495_v51 }
 0x3db   : > { %v1507_v46 = vadd.f32 %v1504_v35, %v1494_v17 }
 0x3dc   : > { %v1521_v8 = vadd.f32 %v1516_v54, %v1508_v33 }
 0x3de   : > { %v1527_v10 = vpop.permute.xlu0 %1526  ;;  %v1575_v28 = vpop.permute.xlu2 %1574 }
 0x3df   : > { %v1514_v63 = vpop.permute.xlu1 %1513 }
 0x3e0   : > { %v1517_v7 = vsel %vm455_vm4, %v1514_v63, %v1516_v54 }
 0x3e1   : > { %v1520_v15 = vadd.f32 %v1517_v7, %v1507_v46 }
 0x3e6   : > { %v1542_v14 = vpop.permute.xlu0 %1541  ;;  %v1593_v3 = vpop.permute.xlu2 %1592 }
 0x3e7   : > { %v1529_v21 = vpop.permute.xlu1 %1528  ;;  %v1543_v57 = vsel %vm576_vm5, %v1540_v12, %v1542_v14 }
 0x3e8   : > { %v1530_v18 = vsel %vm455_vm4, %v1527_v10, %v1529_v21  ;;  %v1534_v40 = vadd.f32 %v1529_v21, %v1521_v8 }
 0x3e9   : > { %v1533_v56 = vadd.f32 %v1530_v18, %v1520_v15 }
 0x3ea   : > { %v1547_v59 = vadd.f32 %v1542_v14, %v1534_v40 }
 0x3eb   : > { %v1546_v25 = vadd.f32 %v1543_v57, %v1533_v56 }
 0x3ee   : > { %v1559_v49 = vpop.permute.xlu0 %1558  ;;  %v1611_v6 = vpop.permute.xlu2 %1610 }
 0x3ef   : > { %v1555_v19 = vpop.permute.xlu1 %1554  ;;  %v1561_v34 = vsel %vm623_vm6, %v1557_v52, %v1559_v49 }
 0x3f0   : > { %v1560_v32 = vsel %vm623_vm6, %v1555_v19, %v1557_v52  ;;  %v1565_v45 = vadd.f32 %v1561_v34, %v1547_v59 }
 0x3f1   : > { %v1564_v2 = vadd.f32 %v1560_v32, %v1546_v25 }
 0x3f6   : > { %v1577_v36 = vpop.permute.xlu0 %1576  ;;  %v1627_v29 = vpop.permute.xlu2 %1626 }
 0x3f7   : > { %v1573_v11 = vpop.permute.xlu1 %1572  ;;  %v1579_v9 = vsel %vm623_vm6, %v1575_v28, %v1577_v36 }
 0x3f8   : > { %v1578_v20 = vsel %vm623_vm6, %v1573_v11, %v1575_v28  ;;  %v1583_v13 = vadd.f32 %v1579_v9, %v1565_v45 }
 0x3f9   : > { %v1582_v48 = vadd.f32 %v1578_v20, %v1564_v2 }
 0x3fe   : > { %v1595_v0 = vpop.permute.xlu0 %1594  ;;  %v1644_v44 = vpop.permute.xlu2 %1643 }
 0x3ff   : > { %v1591_v31 = vpop.permute.xlu1 %1590  ;;  %v1597_v38 = vsel %vm676_vm7, %v1593_v3, %v1595_v0 }
 0x400   : > { %v1596_v30 = vsel %vm676_vm7, %v1591_v31, %v1593_v3  ;;  %v1601_v58 = vadd.f32 %v1597_v38, %v1583_v13 }
 0x401   : > { %v1600_v22 = vadd.f32 %v1596_v30, %v1582_v48 }
 0x406   : > { %v1613_v4 = vpop.permute.xlu0 %1612  ;;  %v1662_v43 = vpop.permute.xlu2 %1661 }
 0x407   : > { %v1609_v50 = vpop.permute.xlu1 %1608  ;;  %v1615_v41 = vsel %vm676_vm7, %v1611_v6, %v1613_v4 }
 0x408   : > { %v1614_v54 = vsel %vm676_vm7, %v1609_v50, %v1611_v6  ;;  %v1619_v55 = vadd.f32 %v1615_v41, %v1601_v58 }
 0x409   : > { %v1618_v23 = vadd.f32 %v1614_v54, %v1600_v22 }
 0x40a   : > { %v1632_v61 = vadd.f32 %v1627_v29, %v1619_v55 }
 0x40e   : > { %v1640_v39 = vpop.permute.xlu0 %1639  ;;  %v1680_v47 = vpop.permute.xlu2 %1679 }
 0x40f   : > { %v1625_v62 = vpop.permute.xlu1 %1624 }
 0x410   : > { %v1628_v53 = vsel %vm576_vm5, %v1625_v62, %v1627_v29 }
 0x411   : > { %v1631_v26 = vadd.f32 %v1628_v53, %v1618_v23 }
 0x416   : > { %v1658_v1 = vpop.permute.xlu0 %1657  ;;  %v1698_v19 = vpop.permute.xlu2 %1697 }
 0x417   : > { %v1642_v16 = vpop.permute.xlu1 %1641 }
 0x418   : > { %v1645_v12 = vsel %vm623_vm6, %v1640_v39, %v1642_v16  ;;  %v1646_v24 = vsel %vm623_vm6, %v1642_v16, %v1644_v44 }
 0x419   : > { %v1649_v52 = vadd.f32 %v1645_v12, %v1631_v26  ;;  %v1650_v63 = vadd.f32 %v1646_v24, %v1632_v61 }
 0x41e   : > { %v1676_v42 = vpop.permute.xlu0 %1675 }
 0x41f   : > { %v1660_v5 = vpop.permute.xlu1 %1659 }
 0x420   : > { %v1663_v51 = vsel %vm623_vm6, %v1658_v1, %v1660_v5  ;;  %v1664_v17 = vsel %vm623_vm6, %v1660_v5, %v1662_v43 }
 0x421   : > { %v1667_v28 = vadd.f32 %v1663_v51, %v1649_v52  ;;  %v1668_v49 = vadd.f32 %v1664_v17, %v1650_v63 }
 0x426   : > { %v1694_v10 = vpop.permute.xlu0 %1693 }
 0x427   : > { %v1678_v60 = vpop.permute.xlu1 %1677 }
 0x428   : > { %v1681_v14 = vsel %vm676_vm7, %v1676_v42, %v1678_v60  ;;  %v1682_v21 = vsel %vm676_vm7, %v1678_v60, %v1680_v47 }
 0x429   : > { %v1685_v3 = vadd.f32 %v1681_v14, %v1667_v28  ;;  %v1686_v36 = vadd.f32 %v1682_v21, %v1668_v49 }
 0x42e   : > { %v1711_v39 = vpop.permute.xlu0 %1710 }
 0x42f   : > { %v1696_v11 = vpop.permute.xlu1 %1695 }
 0x430   : > { %v1699_v6 = vsel %vm676_vm7, %v1694_v10, %v1696_v11  ;;  %v1700_v0 = vsel %vm676_vm7, %v1696_v11, %v1698_v19 }
 0x431   : > { %v1703_v31 = vadd.f32 %v1699_v6, %v1685_v3  ;;  %v1704_v4 = vadd.f32 %v1700_v0, %v1686_v36 }
 0x433   : > { %v1705_v29 = vmax.f32 %v2937_v27, %v1703_v31  ;;  %v1706_v50 = vmax.f32 %v2931_v37, %v1704_v4 }
 0x435   : > { %v1713_v62 = vadd.f32 %v1711_v39, %v1705_v29  ;;  %v1714_v44 = vadd.f32 %v1711_v39, %v1706_v50 }
 0x437   : > { %v1715_v33 = vmax.f32 %v1713_v62, 0.0  ;;  %v1716_v35 = vmax.f32 %v1714_v44, 0.0 }
 0x439   : > { %1717 = vst [vmem:[%s167_s4] sm:$0x3f] %v1715_v33 }
 0x43a   : > { %1719 = vst.msk [vmem:[%s167_s4 + $0x8] sm:$0x3f] %vm1718_vm8, %v1716_v35 }
 0x43b PF: > { %s13_s12 = sadd.s32 1, %s1840_s12  }
 0x43c   : > { %p10_p4 = scmp.ge.s32.totalorder %s13_s12, 4  }
 0x43e   :  { %12 = sbr.rel (!%p10_p4) target bundleno = 1 (0x1), region = 89 }

// kernel: cnn_forward.5
= control target key start
LH: loop header
LB: loop body
LE: loop exit
PB: predicated region body
PF: predicated region fallthrough
CT: control target
= control target key end

     0   :  { %v1282_v3 = vmov 0   ;;  %vm493_vm0 = vcmask 130048   ;;  %vm857_vm1 = vcmask 1043456   ;;  %vm838_vm2 = vcmask 982016   ;;  %s1739_s0 = inlined_call_operand.vmem [shape: bf16[400,2], index: 0, kind: input, shape index: {}]   ;;  %s1740_s2 = inlined_call_operand.vmem [shape: f32[120,1], index: 2, kind: input, shape index: {}]   ;;  %s1741_s1 = inlined_call_operand.vmem [shape: bf16[120,400], index: 1, kind: input, shape index: {}]   ;;  %s1742_s4 = inlined_call_operand.vmem [shape: f32[84,1], index: 4, kind: input, shape index: {}]   ;;  %s1743_s6 = inlined_call_operand.vmem [shape: f32[10,1], index: 6, kind: input, shape index: {}]   ;;  %s1744_s3 = inlined_call_operand.vmem [shape: bf16[84,120], index: 3, kind: input, shape index: {}]   ;;  %s1745_s5 = inlined_call_operand.vmem [shape: bf16[10,84], index: 5, kind: input, shape index: {}]   ;;  %s1746_s7 = inlined_call_operand.vmem [shape: f32[10,2], index: 7, kind: output, shape index: {}]  }
   0x1   :  { %v1253_v0 = vld [vmem:[%s1739_s0 + $0x38] sm:$0xff]  ;;  %1280 = vset.pattern.permute.xlu1 %v1282_v3  ;;  %1279 = vset.pattern.permute.xlu0 %v1282_v3  ;;  %v1252_v4 = vld [vmem:[%s1739_s0 + $0x30] sm:$0xff]  ;;  %v120_v7 = vld [vmem:[%s1740_s2 + $0x68] sm:$0xff]  ;;  %vm939_vm3 = vcmask 1041408   ;;  %vm935_vm4 = vcmask 687104   ;;  %vm959_vm5 = vcmask 15360  }
   0x2   :  { %v1261_v1 = vld [vmem:[%s1739_s0 + $0x78] sm:$0xff]  ;;  %1281 = vset.pattern.permute.xlu2 %v1282_v3  ;;  %518 = vmatpush.bf16.msra.mxu0 %v1253_v0  ;;  %v1260_v5 = vld [vmem:[%s1739_s0 + $0x70] sm:$0xff]  ;;  %v1251_v8 = vld [vmem:[%s1739_s0 + $0x28] sm:$0xff]  ;;  %vm961_vm6 = vcmask 9216  }
   0x3   :  { %v1269_v2 = vld [vmem:[%s1739_s0 + $0xb8] sm:$0xff]  ;;  %566 = vmatpush.bf16.msra.mxu1 %v1261_v1  ;;  %v1268_v6 = vld [vmem:[%s1739_s0 + $0xb0] sm:$0xff]  ;;  %189 = vperm.xlu1 %1280, %v120_v7   ;;  %v1259_v9 = vld [vmem:[%s1739_s0 + $0x68] sm:$0xff] }
   0x4   :  { %614 = vmatpush.bf16.msra.mxu2 %v1269_v2  ;;  %v1267_v10 = vld [vmem:[%s1739_s0 + $0xa8] sm:$0xff]  ;;  %v117_v11 = vld [vmem:[%s1740_s2 + $0x50] sm:$0xff]  ;;  %v1250_v12 = vld [vmem:[%s1739_s0 + $0x20] sm:$0xff] }
   0x5   :  { %v1258_v13 = vld [vmem:[%s1739_s0 + $0x60] sm:$0xff]  ;;  %v121_v15 = vld [vmem:[%s1740_s2 + $0x70] sm:$0xff]  ;;  %v118_v16 = vld [vmem:[%s1740_s2 + $0x58] sm:$0xff] }
   0x6   :  { %519 = vmatpush.bf16.msra.mxu0 %v1252_v4  ;;  %v1266_v14 = vld [vmem:[%s1739_s0 + $0xa0] sm:$0xff]  ;;  %194 = vperm.xlu0 %1279, %v121_v15   ;;  %v1249_v17 = vld [vmem:[%s1739_s0 + $0x18] sm:$0xff]  ;;  %v113_v20 = vld [vmem:[%s1740_s2 + $0x30] sm:$0xff] }
   0x7   :  { %567 = vmatpush.bf16.msra.mxu1 %v1260_v5  ;;  %179 = vperm.xlu2 %1281, %v118_v16   ;;  %v1257_v18 = vld [vmem:[%s1739_s0 + $0x58] sm:$0xff]  ;;  %v119_v21 = vld [vmem:[%s1740_s2 + $0x60] sm:$0xff]  ;;  %v1248_v22 = vld [vmem:[%s1739_s0 + $0x10] sm:$0xff] }
   0x8   :  { %615 = vmatpush.bf16.msra.mxu2 %v1268_v6  ;;  %v1265_v19 = vld [vmem:[%s1739_s0 + $0x98] sm:$0xff]  ;;  %v1256_v23 = vld [vmem:[%s1739_s0 + $0x50] sm:$0xff]  ;;  %v115_v24 = vld [vmem:[%s1740_s2 + $0x40] sm:$0xff] }
   0x9   :  { %v1264_v25 = vld [vmem:[%s1739_s0 + $0x90] sm:$0xff]  ;;  %v1270_v26 = vld [vmem:[%s1739_s0 + $0xc0] sm:$0xff]  ;;  %v1247_v27 = vld [vmem:[%s1739_s0 + $0x8] sm:$0xff] }
   0xa   :  { %520 = vmatpush.bf16.msra.mxu0 %v1251_v8  ;;  %1277 = vmatpush.bf16.msra.mxu3 %v1270_v26  ;;  %v1255_v28 = vld [vmem:[%s1739_s0 + $0x48] sm:$0xff]  ;;  %v1246_v30 = vld [vmem:[%s1739_s0] sm:$0xff]  ;;  %v1220_v33 = vld [vmem:[%s1741_s1 + $0xc] sm:$0xf0] }
   0xb   :  { %568 = vmatpush.bf16.msra.mxu1 %v1259_v9  ;;  %174 = vperm.xlu1 %1280, %v117_v11   ;;  %v1263_v29 = vld [vmem:[%s1739_s0 + $0x88] sm:$0xff]  ;;  %v1254_v31 = vld [vmem:[%s1739_s0 + $0x40] sm:$0xff]  ;;  %v971_v37 = vld [vmem:[%s1741_s1 + $0x10] sm:$0xf0] }
   0xc   :  { %616 = vmatpush.bf16.msra.mxu2 %v1267_v10  ;;  %v969_v32 = vld [vmem:[%s1741_s1] sm:$0xf]  ;;  %v112_v34 = vld [vmem:[%s1740_s2 + $0x28] sm:$0xff]  ;;  %v1218_v36 = vld [vmem:[%s1741_s1 + $0x4] sm:$0xf] }
   0xd   :  { %v116_v35 = vld [vmem:[%s1740_s2 + $0x48] sm:$0xff]  ;;  %v114_v38 = vld [vmem:[%s1740_s2 + $0x38] sm:$0xff]  ;;  %v1262_v39 = vld [vmem:[%s1739_s0 + $0x80] sm:$0xff]  ;;  %v970_v42 = vor.u32 %v1220_v33, %v969_v32  ;;  %v974_v43 = vor.u32 %v1218_v36, %v971_v37 }
   0xe   :  { %521 = vmatpush.bf16.msra.mxu0 %v1250_v12  ;;  %184 = vperm.xlu0 %1279, %v119_v21   ;;  %v977_v40 = vld [vmem:[%s1741_s1 + $0x8] sm:$0xf]  ;;  %v1221_v41 = vld [vmem:[%s1741_s1 + $0x14] sm:$0xf0]  ;;  %v1227_v45 = vld [vmem:[%s1741_s1 + $0x4c] sm:$0xf] }
   0xf   :  { %569 = vmatpush.bf16.msra.mxu1 %v1258_v13  ;;  %164 = vperm.xlu2 %1281, %v115_v24   ;;  %v978_v44 = vor.u32 %v1221_v41, %v977_v40  ;;  %v1011_v46 = vld [vmem:[%s1741_s1 + $0x58] sm:$0xf0]  ;;  %v107_v47 = vld [vmem:[%s1740_s2] sm:$0xff]  ;;  %v109_v50 = vld [vmem:[%s1740_s2 + $0x10] sm:$0xff] }
  0x10   :  { %617 = vmatpush.bf16.msra.mxu2 %v1266_v14  ;;  %v111_v48 = vld [vmem:[%s1740_s2 + $0x20] sm:$0xff]  ;;  %v1014_v49 = vor.u32 %v1227_v45, %v1011_v46  ;;  %v1224_v52 = vld [vmem:[%s1741_s1 + $0x2c] sm:$0xf0]  ;;  %v110_v53 = vld [vmem:[%s1740_s2 + $0x18] sm:$0xff] }
  0x11   :  { %v985_v51 = vld [vmem:[%s1741_s1 + $0x20] sm:$0xf]  ;;  %v1222_v54 = vld [vmem:[%s1741_s1 + $0x24] sm:$0xf]  ;;  %v987_v55 = vld [vmem:[%s1741_s1 + $0x30] sm:$0xf0] }
  0x12   :  { %522 = vmatpush.bf16.msra.mxu0 %v1249_v17  ;;  %1181 = vmatmul.msk.bf16.vlgmr.msra.gmra.mxu3 %vm493_vm0, %v1014_v49  ;;  %v108_v56 = vld [vmem:[%s1740_s2 + $0x8] sm:$0xff]  ;;  %v1225_v58 = vld [vmem:[%s1741_s1 + $0x34] sm:$0xf0]  ;;  %v986_v59 = vor.u32 %v1224_v52, %v985_v51  ;;  %v990_v60 = vor.u32 %v1222_v54, %v987_v55  ;;  %v1027_v63 = vld [vmem:[%s1741_s1 + $0x78] sm:$0xf0] }
  0x13   :  { %570 = vmatpush.bf16.msra.mxu1 %v1257_v18  ;;  %154 = vperm.xlu1 %1280, %v113_v20   ;;  %v993_v57 = vld [vmem:[%s1741_s1 + $0x28] sm:$0xf]  ;;  %v1231_v62 = vld [vmem:[%s1741_s1 + $0x6c] sm:$0xf]  ;;  %v1001_v1 = vld [vmem:[%s1741_s1 + $0x40] sm:$0xf] }
  0x14   :  { %618 = vmatpush.bf16.msra.mxu2 %v1265_v19  ;;  %v994_v61 = vor.u32 %v1225_v58, %v993_v57  ;;  %v1030_v0 = vor.u32 %v1231_v62, %v1027_v63  ;;  %v1228_v2 = vld [vmem:[%s1741_s1 + $0x4c] sm:$0xf0]  ;;  %v1226_v3 = vld [vmem:[%s1741_s1 + $0x44] sm:$0xf]  ;;  %v1003_v4 = vld [vmem:[%s1741_s1 + $0x50] sm:$0xf0] }
  0x15   :  { %v1009_v5 = vld [vmem:[%s1741_s1 + $0x48] sm:$0xf]  ;;  %v1229_v6 = vld [vmem:[%s1741_s1 + $0x54] sm:$0xf0]  ;;  %v1002_v7 = vor.u32 %v1228_v2, %v1001_v1  ;;  %v1006_v8 = vor.u32 %v1226_v3, %v1003_v4  ;;  %v1235_v10 = vld [vmem:[%s1741_s1 + $0x8c] sm:$0xf] }
  0x16   :  { %523 = vmatpush.bf16.msra.mxu0 %v1248_v22  ;;  %169 = vperm.xlu0 %1279, %v116_v35   ;;  %v1010_v9 = vor.u32 %v1229_v6, %v1009_v5  ;;  %v1043_v11 = vld [vmem:[%s1741_s1 + $0x98] sm:$0xf0]  ;;  %v1017_v13 = vld [vmem:[%s1741_s1 + $0x60] sm:$0xf]  ;;  %v1232_v14 = vld [vmem:[%s1741_s1 + $0x6c] sm:$0xf0] }
  0x17   :  { %571 = vmatpush.bf16.msra.mxu1 %v1256_v23  ;;  %159 = vperm.xlu2 %1281, %v114_v38   ;;  %v1046_v12 = vor.u32 %v1235_v10, %v1043_v11  ;;  %v1230_v15 = vld [vmem:[%s1741_s1 + $0x64] sm:$0xf]  ;;  %v1019_v16 = vld [vmem:[%s1741_s1 + $0x70] sm:$0xf0]  ;;  %v1025_v17 = vld [vmem:[%s1741_s1 + $0x68] sm:$0xf]  ;;  %v1018_v19 = vor.u32 %v1232_v14, %v1017_v13 }
  0x18   :  { %619 = vmatpush.bf16.msra.mxu2 %v1264_v25  ;;  %v1233_v18 = vld [vmem:[%s1741_s1 + $0x74] sm:$0xf0]  ;;  %v1022_v20 = vor.u32 %v1230_v15, %v1019_v16  ;;  %v1239_v22 = vld [vmem:[%s1741_s1 + $0xac] sm:$0xf]  ;;  %v1059_v23 = vld [vmem:[%s1741_s1 + $0xb8] sm:$0xf0] }
  0x19   :  { %v1026_v21 = vor.u32 %v1233_v18, %v1025_v17  ;;  %v1062_v24 = vor.u32 %v1239_v22, %v1059_v23  ;;  %v754_v25 = vld [vmem:[%s1742_s4 + $0x50] sm:$0xf]  ;;  %v1243_v35 = vld [vmem:[%s1741_s1 + $0xcc] sm:$0xf]  ;;  %v1075_v36 = vld [vmem:[%s1741_s1 + $0xd8] sm:$0xf0] }
  0x1a   :  { %524 = vmatpush.bf16.msra.mxu0 %v1247_v27  ;;  %v1236_v27 = vld [vmem:[%s1741_s1 + $0x8c] sm:$0xf0]  ;;  %v1078_v37 = vor.u32 %v1243_v35, %v1075_v36  ;;  %v749_v40 = vld [vmem:[%s1742_s4 + $0x28] sm:$0xff]  ;;  %v1049_v41 = vld [vmem:[%s1741_s1 + $0xa0] sm:$0xf] }
  0x1b   :  { %572 = vmatpush.bf16.msra.mxu1 %v1255_v28  ;;  %149 = vperm.xlu1 %1280, %v112_v34   ;;  %v1234_v28 = vld [vmem:[%s1741_s1 + $0x84] sm:$0xf]  ;;  %v750_v38 = vld [vmem:[%s1742_s4 + $0x30] sm:$0xff]  ;;  %v1057_v45 = vld [vmem:[%s1741_s1 + $0xa8] sm:$0xf] }
  0x1c   :  { %620 = vmatpush.bf16.msra.mxu2 %v1263_v29  ;;  %v1035_v29 = vld [vmem:[%s1741_s1 + $0x90] sm:$0xf0]  ;;  %v1241_v46 = vld [vmem:[%s1741_s1 + $0xb4] sm:$0xf0]  ;;  %v56_v49 = vld [vmem:[%s1741_s1 + $0xe8] sm:$0xff] }
  0x1d   :  { %v1038_v33 = vor.u32 %v1234_v28, %v1035_v29  ;;  %v286_v51 = vunpack.c.h.b16 %v56_v49  ;;  %v744_v54 = vld [vmem:[%s1742_s4] sm:$0xff]  ;;  %v919_v58 = vld [vmem:[%s1743_s6 + $0x8] sm:$0x3]  ;;  %v1245_v63 = vld [vmem:[%s1741_s1 + $0xd4] sm:$0xf0]  ;;  %v285_v13 = vunpack.c.l.b16 %v56_v49 }
  0x1e   :  { %525 = vmatpush.bf16.msra.mxu0 %v1246_v30  ;;  %144 = vperm.xlu0 %1279, %v111_v48   ;;  %v1041_v30 = vld [vmem:[%s1741_s1 + $0x88] sm:$0xf]  ;;  %v1065_v57 = vld [vmem:[%s1741_s1 + $0xc0] sm:$0xf] }
  0x1f   :  { %573 = vmatpush.bf16.msra.mxu1 %v1254_v31  ;;  %134 = vperm.xlu2 %1281, %v109_v50   ;;  %v1237_v31 = vld [vmem:[%s1741_s1 + $0x94] sm:$0xf0]  ;;  %v1058_v50 = vor.u32 %v1241_v46, %v1057_v45  ;;  %v318_v52 = vpack.c.b16 %v286_v51, %v286_v51  ;;  %v1073_v62 = vld [vmem:[%s1741_s1 + $0xc8] sm:$0xf]  ;;  %v317_v17 = vpack.c.b16 %v285_v13, %v285_v13  ;;  %v918_v22 = vld [vmem:[%s1743_s6] sm:$0xff] }
  0x20   :  { %621 = vmatpush.bf16.msra.mxu2 %v1262_v39  ;;  %v1042_v34 = vor.u32 %v1237_v31, %v1041_v30  ;;  %v752_v39 = vld [vmem:[%s1742_s4 + $0x40] sm:$0xff]  ;;  %v1074_v3 = vor.u32 %v1245_v63, %v1073_v62  ;;  %v753_v5 = vld [vmem:[%s1742_s4 + $0x48] sm:$0xff] }
  0x21   :  { %526 = vmatmul.bf16.vlgmr.msra.gmra.mxu0 %v970_v42  ;;  %v1240_v42 = vld [vmem:[%s1741_s1 + $0xac] sm:$0xf0]  ;;  %v745_v6 = vld [vmem:[%s1742_s4 + $0x8] sm:$0xff] }
  0x22   :  { %574 = vmatmul.bf16.vlgmr.msra.gmra.mxu1 %v974_v43  ;;  %1182 = vmatmul.msk.bf16.gmra.mxu3 %vm493_vm0, %v1030_v0  ;;  %v1238_v43 = vld [vmem:[%s1741_s1 + $0xa4] sm:$0xf] }
  0x23   :  { %669 = vmatpush.bf16.msrb.mxu1 %v1270_v26  ;;  %622 = vmatmul.bf16.vlgmr.msra.gmra.mxu2 %v978_v44  ;;  %v1033_v26 = vld [vmem:[%s1741_s1 + $0x80] sm:$0xf]  ;;  %v1051_v44 = vld [vmem:[%s1741_s1 + $0xb0] sm:$0xf0] }
  0x24   :  { %124 = vperm.xlu1 %1280, %v107_v47   ;;  %v1034_v32 = vor.u32 %v1236_v27, %v1033_v26  ;;  %v1050_v47 = vor.u32 %v1240_v42, %v1049_v41  ;;  %v1054_v48 = vor.u32 %v1238_v43, %v1051_v44  ;;  %v1223_v42 = vld [vmem:[%s1741_s1 + $0x2c] sm:$0xf]  ;;  %v995_v43 = vld [vmem:[%s1741_s1 + $0x38] sm:$0xf0] }
  0x25   :  { %v998_v45 = vor.u32 %v1223_v42, %v995_v43 }
  0x26   :  { %139 = vperm.xlu0 %1279, %v110_v53   ;;  %v751_v53 = vld [vmem:[%s1742_s4 + $0x38] sm:$0xff] }
  0x27   :  { %129 = vperm.xlu2 %1281, %v108_v56   ;;  %v746_v56 = vld [vmem:[%s1742_s4 + $0x10] sm:$0xff] }
  0x2c   :  { %797 = vperm.xlu1 %1280, %v752_v39  }
  0x2e   :  { %807 = vperm.xlu0 %1279, %v754_v25   ;;  %v979_v25 = vld [vmem:[%s1741_s1 + $0x18] sm:$0xf0] }
  0x2f   :  { %802 = vperm.xlu2 %1281, %v753_v5  }
  0x31   :  { %531 = vmatmul.bf16.gmra.mxu0 %v986_v59  ;;  %v1244_v59 = vld [vmem:[%s1741_s1 + $0xcc] sm:$0xf0] }
  0x32   :  { %579 = vmatmul.bf16.gmra.mxu1 %v990_v60  ;;  %1183 = vmatmul.msk.bf16.gmra.mxu3 %vm493_vm0, %v1046_v12  ;;  %v1242_v60 = vld [vmem:[%s1741_s1 + $0xc4] sm:$0xf]  ;;  %v1066_v1 = vor.u32 %v1244_v59, %v1065_v57 }
  0x33   :  { %627 = vmatmul.bf16.gmra.mxu2 %v994_v61  ;;  %v1067_v61 = vld [vmem:[%s1741_s1 + $0xd0] sm:$0xf0]  ;;  %v748_v12 = vld [vmem:[%s1742_s4 + $0x20] sm:$0xff] }
  0x34   :  { %792 = vperm.xlu1 %1280, %v751_v53   ;;  %v1070_v2 = vor.u32 %v1242_v60, %v1067_v61 }
  0x36   :  { %787 = vperm.xlu0 %1279, %v750_v38  }
  0x37   :  { %777 = vperm.xlu2 %1281, %v748_v12  }
  0x3c   :  { %767 = vperm.xlu1 %1280, %v746_v56  }
  0x3e   :  { %782 = vperm.xlu0 %1279, %v749_v40  }
  0x41   :  { %536 = vmatmul.bf16.gmra.mxu0 %v1002_v7 }
  0x42   :  { %584 = vmatmul.bf16.gmra.mxu1 %v1006_v8  ;;  %1184 = vmatmul.msk.bf16.gmra.mxu3 %vm493_vm0, %v1062_v24  ;;  %v55_v8 = vld [vmem:[%s1741_s1 + $0xe0] sm:$0xff]  ;;  %v1219_v24 = vld [vmem:[%s1741_s1 + $0xc] sm:$0xf] }
  0x43   :  { %632 = vmatmul.bf16.gmra.mxu2 %v1010_v9  ;;  %v283_v10 = vunpack.c.l.b16 %v55_v8  ;;  %v284_v11 = vunpack.c.h.b16 %v55_v8  ;;  %v982_v27 = vor.u32 %v1219_v24, %v979_v25 }
  0x44   :  { %762 = vperm.xlu1 %1280, %v745_v6  }
  0x45   :  { %v315_v15 = vpack.c.b16 %v283_v10, %v283_v10  ;;  %v316_v16 = vpack.c.b16 %v284_v11, %v284_v11 }
  0x46   :  { %757 = vperm.xlu0 %1279, %v744_v54  }
  0x4e   :  { %927 = vperm.xlu0 %1279, %v919_v58  }
  0x51   :  { %541 = vmatmul.bf16.gmra.mxu0 %v1018_v19  ;;  %v747_v19 = vld [vmem:[%s1742_s4 + $0x18] sm:$0xff] }
  0x52   :  { %589 = vmatmul.bf16.gmra.mxu1 %v1022_v20  ;;  %1185 = vmatmul.msk.bf16.gmra.mxu3 %vm493_vm0, %v1078_v37 }
  0x53   :  { %637 = vmatmul.bf16.gmra.mxu2 %v1026_v21  ;;  %772 = vperm.xlu2 %1281, %v747_v19  }
  0x5b   :  { %922 = vperm.xlu2 %1281, %v918_v22  }
  0x61   :  { %546 = vmatmul.bf16.gmra.mxu0 %v1034_v32  ;;  %v1634_v0 = vpop.permute.xlu2 %179 }
  0x62   :  { %594 = vmatmul.bf16.gmra.mxu1 %v1038_v33  ;;  %1186 = vmatmul.msk.bf16.gmra.mxu3 %vm493_vm0, %v318_v52 }
  0x63   :  { %642 = vmatmul.bf16.gmra.mxu2 %v1042_v34 }
  0x69   :  { %v1644_v7 = vpop.permute.xlu2 %164 }
  0x71   :  { %551 = vmatmul.bf16.gmra.mxu0 %v1050_v47  ;;  %v1656_v18 = vpop.permute.xlu2 %159 }
  0x72   :  { %599 = vmatmul.bf16.gmra.mxu1 %v1054_v48 }
  0x73   :  { %647 = vmatmul.bf16.gmra.mxu2 %v1058_v50 }
  0x75   :  { %v1608_v55 = vpop.permute.xlu1 %189 }
  0x78   :  { %v1654_v14 = vpop.permute.xlu0 %194 }
  0x79   :  { %v135_v23 = vpop.permute.xlu2 %134 }
  0x7d   :  { %v1636_v4 = vpop.permute.xlu1 %174 }
  0x80   :  { %v1661_v21 = vpop.permute.xlu0 %184 }
  0x81   :  { %556 = vmatmul.bf16.gmra.mxu0 %v1066_v1  ;;  %v130_v33 = vpop.permute.xlu2 %129 }
  0x82   :  { %604 = vmatmul.bf16.gmra.mxu1 %v1070_v2 }
  0x83   :  { %652 = vmatmul.bf16.gmra.mxu2 %v1074_v3 }
  0x85   :  { %v1649_v9 = vpop.permute.xlu1 %154 }
  0x88   :  { %v1672_v31 = vpop.permute.xlu0 %169 }
  0x8d   :  { %v150_v20 = vpop.permute.xlu1 %149 }
  0x90   :  { %v145_v41 = vpop.permute.xlu0 %144 }
  0x91   :  { %561 = vmatmul.bf16.gmra.mxu0 %v315_v15 }
  0x92   :  { %609 = vmatmul.bf16.gmra.mxu1 %v316_v16 }
  0x93   :  { %657 = vmatmul.bf16.gmra.mxu2 %v317_v17 }
  0x95   :  { %v681_v39 = vpop.f32.mrf.mxu3 }
  0x96   :  { %v125_v26 = vpop.permute.xlu1 %124 }
  0x98   :  { %v140_v52 = vpop.permute.xlu0 %139 }
  0x9d   :  { %v683_v50 = vpop.f32.mrf.mxu3 }
  0x9e   :  { %v527_v28 = vpop.f32.mrf.mxu0 }
  0x9f   :  { %v575_v29 = vpop.f32.mrf.mxu1  ;;  %v528_v30 = vadd.f32 %v527_v28, %v125_v26 }
  0xa1   :  { %v576_v32 = vadd.f32 %v575_v29, %v528_v30 }
  0xa2   :  { %1179 = vmatmul.msk.bf16.vlgmr.msrb.gmra.mxu1 %vm493_vm0, %v982_v27 }
  0xa5   :  { %v686_v59 = vpop.f32.mrf.mxu3 }
  0xa6   :  { %v623_v34 = vpop.f32.mrf.mxu2  ;;  %v529_v36 = vpop.f32.mrf.mxu0 }
  0xa7   :  { %v1675_v35 = vadd.f32 %v623_v34, %v576_v32  ;;  %v577_v37 = vpop.f32.mrf.mxu1  ;;  %v530_v38 = vadd.f32 %v529_v36, %v130_v33 }
  0xa9   :  { %v578_v40 = vadd.f32 %v577_v37, %v530_v38 }
  0xad   :  { %v688_v3 = vpop.f32.mrf.mxu3 }
  0xae   :  { %v625_v44 = vpop.f32.mrf.mxu2  ;;  %v532_v47 = vpop.f32.mrf.mxu0 }
  0xaf   :  { %v1683_v46 = vadd.f32 %v625_v44, %v578_v40  ;;  %v580_v48 = vpop.f32.mrf.mxu1  ;;  %v533_v49 = vadd.f32 %v532_v47, %v135_v23 }
  0xb1   :  { %v581_v51 = vadd.f32 %v580_v48, %v533_v49 }
  0xb2   :  { %1180 = vmatmul.msk.bf16.gmra.mxu1 %vm493_vm0, %v998_v45 }
  0xb5   :  { %v691_v13 = vpop.f32.mrf.mxu3 }
  0xb6   :  { %v628_v53 = vpop.f32.mrf.mxu2  ;;  %v534_v56 = vpop.f32.mrf.mxu0 }
  0xb7   :  { %v1686_v54 = vadd.f32 %v628_v53, %v581_v51  ;;  %v582_v57 = vpop.f32.mrf.mxu1  ;;  %v535_v58 = vadd.f32 %v534_v56, %v140_v52 }
  0xb9   :  { %v583_v60 = vadd.f32 %v582_v57, %v535_v58 }
  0xbd   :  { %v693_v25 = vpop.f32.mrf.mxu3 }
  0xbe   :  { %v630_v61 = vpop.f32.mrf.mxu2  ;;  %v537_v63 = vpop.f32.mrf.mxu0 }
  0xbf   :  { %v1688_v62 = vadd.f32 %v630_v61, %v583_v60  ;;  %v585_v1 = vpop.f32.mrf.mxu1  ;;  %v538_v2 = vadd.f32 %v537_v63, %v145_v41 }
  0xc1   :  { %v586_v5 = vadd.f32 %v585_v1, %v538_v2 }
  0xc5   :  { %v696_v37 = vpop.f32.mrf.mxu3 }
  0xc6   :  { %v633_v6 = vpop.f32.mrf.mxu2  ;;  %v539_v10 = vpop.f32.mrf.mxu0 }
  0xc7   :  { %v634_v8 = vadd.f32 %v633_v6, %v586_v5  ;;  %v587_v11 = vpop.f32.mrf.mxu1  ;;  %v540_v12 = vadd.f32 %v539_v10, %v150_v20 }
  0xc9   :  { %v682_v15 = vadd.f32 %v681_v39, %v634_v8  ;;  %v588_v16 = vadd.f32 %v587_v11, %v540_v12 }
  0xcb   :  { %v714_v28 = vmax.f32 %v682_v15, 0.0 }
  0xcd   :  { %v698_v44 = vpop.f32.mrf.mxu3 }
  0xce   :  { %v635_v17 = vpop.f32.mrf.mxu2  ;;  %v542_v22 = vpop.f32.mrf.mxu0 }
  0xcf   :  { %v636_v19 = vadd.f32 %v635_v17, %v588_v16  ;;  %v590_v23 = vpop.f32.mrf.mxu1  ;;  %v543_v24 = vadd.f32 %v542_v22, %v1649_v9 }
  0xd1   :  { %v684_v26 = vadd.f32 %v683_v50, %v636_v19  ;;  %v591_v27 = vadd.f32 %v590_v23, %v543_v24 }
  0xd3   :  { %v715_v29 = vmax.f32 %v684_v26, 0.0 }
  0xd5   :  { %v1691_v30 = vpack.c.bf16 %v715_v29, %v714_v28  ;;  %v701_v56 = vpop.f32.mrf.mxu3 }
  0xd6   :  { %v638_v32 = vpop.f32.mrf.mxu2  ;;  %v544_v34 = vpop.f32.mrf.mxu0 }
  0xd7   :  { %v639_v33 = vadd.f32 %v638_v32, %v591_v27  ;;  %v592_v20 = vpop.f32.mrf.mxu1  ;;  %v545_v36 = vadd.f32 %v544_v34, %v1656_v18 }
  0xd9   :  { %v687_v38 = vadd.f32 %v686_v59, %v639_v33  ;;  %v593_v39 = vadd.f32 %v592_v20, %v545_v36 }
  0xdb   :  { %v716_v48 = vmax.f32 %v687_v38, 0.0 }
  0xdd   :  { %v703_v1 = vpop.f32.mrf.mxu3 }
  0xde   :  { %v640_v40 = vpop.f32.mrf.mxu2  ;;  %v547_v42 = vpop.f32.mrf.mxu0 }
  0xdf   :  { %v641_v41 = vadd.f32 %v640_v40, %v593_v39  ;;  %v595_v9 = vpop.f32.mrf.mxu1  ;;  %v548_v43 = vadd.f32 %v547_v42, %v1644_v7 }
  0xe1   :  { %v689_v45 = vadd.f32 %v688_v3, %v641_v41  ;;  %v596_v47 = vadd.f32 %v595_v9, %v548_v43 }
  0xe3   :  { %v717_v49 = vmax.f32 %v689_v45, 0.0 }
  0xe5   :  { %v1695_v50 = vpack.c.bf16 %v717_v49, %v716_v48  ;;  %v706_v15 = vpop.f32.mrf.mxu3 }
  0xe6   :  { %v643_v51 = vpop.f32.mrf.mxu2  ;;  %v549_v53 = vpop.f32.mrf.mxu0 }
  0xe7   :  { %v644_v52 = vadd.f32 %v643_v51, %v596_v47  ;;  %v597_v18 = vpop.f32.mrf.mxu1  ;;  %v550_v58 = vadd.f32 %v549_v53, %v1672_v31 }
  0xe9   :  { %v692_v57 = vadd.f32 %v691_v13, %v644_v52  ;;  %v598_v59 = vadd.f32 %v597_v18, %v550_v58 }
  0xeb   :  { %v718_v3 = vmax.f32 %v692_v57, 0.0 }
  0xee   :  { %v645_v60 = vpop.f32.mrf.mxu2  ;;  %v552_v63 = vpop.f32.mrf.mxu0 }
  0xef   :  { %v646_v61 = vadd.f32 %v645_v60, %v598_v59  ;;  %v600_v7 = vpop.f32.mrf.mxu1  ;;  %v553_v6 = vadd.f32 %v552_v63, %v1636_v4 }
  0xf1   :  { %v694_v2 = vadd.f32 %v693_v25, %v646_v61  ;;  %v601_v16 = vadd.f32 %v600_v7, %v553_v6  ;;  %v708_v25 = vpop.f32.mrf.mxu3 }
  0xf3   :  { %v719_v5 = vmax.f32 %v694_v2, 0.0 }
  0xf5   :  { %v740_v8 = vpack.c.bf16 %v719_v5, %v718_v3 }
  0xf6   :  { %v648_v10 = vpop.f32.mrf.mxu2  ;;  %v554_v11 = vpop.f32.mrf.mxu0 }
  0xf7   :  { %v602_v12 = vpop.f32.mrf.mxu1  ;;  %v555_v13 = vadd.f32 %v554_v11, %v1634_v0  ;;  %v649_v31 = vadd.f32 %v648_v10, %v601_v16  ;;  %v808_v16 = vpop.permute.xlu0 %807 }
  0xf9   :  { %v603_v17 = vadd.f32 %v602_v12, %v555_v13  ;;  %v697_v22 = vadd.f32 %v696_v37, %v649_v31  ;;  %v798_v13 = vpop.permute.xlu1 %797 }
  0xfb   :  { %v720_v28 = vmax.f32 %v697_v22, 0.0 }
  0xfe   :  { %v650_v19 = vpop.f32.mrf.mxu2  ;;  %v557_v24 = vpop.f32.mrf.mxu0 }
  0xff   :  { %v651_v23 = vadd.f32 %v650_v19, %v603_v17  ;;  %v605_v26 = vpop.f32.mrf.mxu1  ;;  %v558_v37 = vadd.f32 %v557_v24, %v1661_v21  ;;  %v788_v31 = vpop.permute.xlu0 %787 }
 0x100   :  { %v803_v24 = vpop.permute.xlu2 %802 }
 0x101   :  { %v699_v27 = vadd.f32 %v698_v44, %v651_v23  ;;  %v606_v42 = vadd.f32 %v605_v26, %v558_v37  ;;  %v793_v17 = vpop.permute.xlu1 %792 }
 0x103   :  { %v721_v29 = vmax.f32 %v699_v27, 0.0 }
 0x105   :  { %v741_v4 = vpack.c.bf16 %v721_v29, %v720_v28 }
 0x106   :  { %v653_v32 = vpop.f32.mrf.mxu2  ;;  %v559_v33 = vpop.f32.mrf.mxu0 }
 0x107   :  { %v607_v34 = vpop.f32.mrf.mxu1  ;;  %v560_v0 = vadd.f32 %v559_v33, %v1608_v55  ;;  %v654_v48 = vadd.f32 %v653_v32, %v606_v42  ;;  %v783_v19 = vpop.permute.xlu0 %782 }
 0x109   :  { %v608_v40 = vadd.f32 %v607_v34, %v560_v0  ;;  %v702_v53 = vadd.f32 %v701_v56, %v654_v48  ;;  %v768_v22 = vpop.permute.xlu1 %767  ;;  %v778_v34 = vpop.permute.xlu2 %777 }
 0x10b   :  { %v722_v21 = vmax.f32 %v702_v53, 0.0 }
 0x10e   :  { %v655_v20 = vpop.f32.mrf.mxu2  ;;  %v562_v36 = vpop.f32.mrf.mxu0 }
 0x10f   :  { %v610_v38 = vpop.f32.mrf.mxu1  ;;  %v563_v39 = vadd.f32 %v562_v36, %v1654_v14  ;;  %v656_v9 = vadd.f32 %v655_v20, %v608_v40  ;;  %v758_v26 = vpop.permute.xlu0 %757 }
 0x111   :  { %v611_v41 = vadd.f32 %v610_v38, %v563_v39  ;;  %v704_v51 = vadd.f32 %v703_v1, %v656_v9  ;;  %v763_v27 = vpop.permute.xlu1 %762  ;;  %v773_v38 = vpop.permute.xlu2 %772 }
 0x113   :  { %v723_v55 = vmax.f32 %v704_v51, 0.0 }
 0x115   :  { %v742_v59 = vpack.c.bf16 %v723_v55, %v722_v21 }
 0x116   :  { %v658_v43 = vpop.f32.mrf.mxu2  ;;  %v564_v47 = vpop.f32.mrf.mxu0 }
 0x117   :  { %v659_v44 = vadd.f32 %v658_v43, %v611_v41  ;;  %v612_v45 = vpop.f32.mrf.mxu1 }
 0x119   :  { %v707_v49 = vadd.f32 %v706_v15, %v659_v44 }
 0x11b   :  { %v724_v52 = vmax.f32 %v707_v49, 0.0 }
 0x11d   :  { %v743_v18 = vpack.c.bf16 %v724_v52, %v724_v52 }
 0x11e   :  { %v660_v57 = vpop.f32.mrf.mxu2 }
 0x11f   :  { %v671_v14 = vpop.f32.mrf.mxu1  ;;  %v859_v58 = vsel %vm857_vm1, %v743_v18, 0 }
 0x120   :  { %861 = vmatpush.bf16.msrb.mxu3 %v859_v58  ;;  %v672_v60 = vadd.f32 %v671_v14, %v1675_v35 }
 0x122   :  { %v710_v7 = vmax.f32 %v672_v60, 0.0 }
 0x124   :  { %862 = vmatpush.bf16.msrb.mxu3 %v742_v59 }
 0x127   :  { %v673_v61 = vpop.f32.mrf.mxu1 }
 0x128   :  { %v674_v63 = vadd.f32 %v673_v61, %v1683_v46  ;;  %863 = vmatpush.bf16.msrb.mxu3 %v741_v4  ;;  %v1271_v46 = vld [vmem:[%s1744_s3] sm:$0xff] }
 0x12a   :  { %v711_v1 = vmax.f32 %v674_v63, 0.0 }
 0x12c   :  { %864 = vmatpush.bf16.msrb.mxu3 %v740_v8  ;;  %v736_v56 = vpack.c.bf16 %v711_v1, %v710_v7  ;;  %v735_v8 = vld [vmem:[%s1744_s3 + $0x28] sm:$0x3] }
 0x12d   :  { %v831_v12 = vunpack.c.l.b16 %v735_v8 }
 0x12f   :  { %v676_v2 = vpop.f32.mrf.mxu1  ;;  %v837_v15 = vpack.c.b16 %v831_v12, %v831_v12 }
 0x130   :  { %865 = vmatpush.bf16.msrb.mxu3 %v1695_v50  ;;  %v677_v3 = vadd.f32 %v676_v2, %v1686_v54  ;;  %v1273_v54 = vld [vmem:[%s1744_s3 + $0x10] sm:$0xff]  ;;  %v1275_v50 = vld [vmem:[%s1744_s3 + $0x20] sm:$0xff] }
 0x132   :  { %v712_v10 = vmax.f32 %v677_v3, 0.0 }
 0x134   :  { %866 = vmatpush.bf16.msrb.mxu3 %v1691_v30  ;;  %v1272_v30 = vld [vmem:[%s1744_s3 + $0x8] sm:$0xff] }
 0x137   :  { %v678_v5 = vpop.f32.mrf.mxu1 }
 0x138   :  { %v679_v6 = vadd.f32 %v678_v5, %v1688_v62  ;;  %v1274_v62 = vld [vmem:[%s1744_s3 + $0x18] sm:$0xff] }
 0x13a   :  { %v713_v35 = vmax.f32 %v679_v6, 0.0  ;;  %v1215_v6 = vld [vmem:[%s1745_s5] sm:$0xf] }
 0x13c   :  { %v737_v11 = vpack.c.bf16 %v713_v35, %v712_v10  ;;  %v1276_v10 = vld [vmem:[%s1745_s5] sm:$0x10] }
 0x13d   :  { %v1216_v35 = vor.u32 %v1276_v10, %v1215_v6 }
 0x13e   :  { %867 = vmatpush.bf16.msrb.mxu3 %v737_v11  ;;  %v923_v11 = vpop.permute.xlu2 %922 }
 0x142   :  { %868 = vmatpush.bf16.msrb.mxu3 %v736_v56 }
 0x145   :  { %1207 = vmatmul.msk.bf16.vlgmr.msrb.gmra.mxu3 %vm838_vm2, %v1271_v46 }
 0x155   :  { %1208 = vmatmul.msk.bf16.gmra.mxu3 %vm838_vm2, %v1272_v30 }
 0x165   :  { %1209 = vmatmul.msk.bf16.gmra.mxu3 %vm838_vm2, %v1273_v54 }
 0x175   :  { %1210 = vmatmul.msk.bf16.gmra.mxu3 %vm838_vm2, %v1274_v62  ;;  %v928_v62 = vpop.permute.xlu0 %927 }
 0x185   :  { %1211 = vmatmul.msk.bf16.gmra.mxu3 %vm838_vm2, %v1275_v50 }
 0x195   :  { %1212 = vmatmul.msk.bf16.gmra.mxu3 %vm838_vm2, %v837_v15 }
 0x1c8   :  { %v870_v23 = vpop.f32.mrf.mxu3 }
 0x1c9   :  { %v871_v25 = vadd.f32 %v870_v23, %v758_v26 }
 0x1cb   :  { %v899_v4 = vmax.f32 %v871_v25, 0.0 }
 0x1d0   :  { %v872_v28 = vpop.f32.mrf.mxu3 }
 0x1d1   :  { %v873_v29 = vadd.f32 %v872_v28, %v763_v27 }
 0x1d3   :  { %v900_v32 = vmax.f32 %v873_v29, 0.0 }
 0x1d5   :  { %v912_v33 = vpack.c.bf16 %v900_v32, %v899_v4 }
 0x1d8   :  { %v875_v20 = vpop.f32.mrf.mxu3 }
 0x1d9   :  { %v876_v36 = vadd.f32 %v875_v20, %v768_v22 }
 0x1db   :  { %v901_v37 = vmax.f32 %v876_v36, 0.0 }
 0x1e0   :  { %v877_v0 = vpop.f32.mrf.mxu3 }
 0x1e1   :  { %v878_v39 = vadd.f32 %v877_v0, %v773_v38 }
 0x1e3   :  { %v902_v40 = vmax.f32 %v878_v39, 0.0 }
 0x1e5   :  { %v913_v41 = vpack.c.bf16 %v902_v40, %v901_v37 }
 0x1e8   :  { %v880_v42 = vpop.f32.mrf.mxu3 }
 0x1e9   :  { %v881_v7 = vadd.f32 %v880_v42, %v778_v34 }
 0x1eb   :  { %v903_v3 = vmax.f32 %v881_v7, 0.0 }
 0x1f0   :  { %v882_v9 = vpop.f32.mrf.mxu3 }
 0x1f1   :  { %v883_v60 = vadd.f32 %v882_v9, %v783_v19 }
 0x1f3   :  { %v904_v56 = vmax.f32 %v883_v60, 0.0 }
 0x1f5   :  { %v914_v5 = vpack.c.bf16 %v904_v56, %v903_v3 }
 0x1f8   :  { %v885_v43 = vpop.f32.mrf.mxu3 }
 0x1f9   :  { %v886_v58 = vadd.f32 %v885_v43, %v788_v31 }
 0x1fb   :  { %v905_v1 = vmax.f32 %v886_v58, 0.0 }
 0x200   :  { %v887_v44 = vpop.f32.mrf.mxu3 }
 0x201   :  { %v888_v55 = vadd.f32 %v887_v44, %v793_v17 }
 0x203   :  { %v906_v61 = vmax.f32 %v888_v55, 0.0 }
 0x205   :  { %v915_v2 = vpack.c.bf16 %v906_v61, %v905_v1 }
 0x208   :  { %v890_v45 = vpop.f32.mrf.mxu3 }
 0x209   :  { %v891_v53 = vadd.f32 %v890_v45, %v798_v13 }
 0x20b   :  { %v907_v21 = vmax.f32 %v891_v53, 0.0 }
 0x210   :  { %v892_v47 = vpop.f32.mrf.mxu3 }
 0x211   :  { %v893_v51 = vadd.f32 %v892_v47, %v803_v24 }
 0x213   :  { %v908_v57 = vmax.f32 %v893_v51, 0.0 }
 0x215   :  { %v916_v63 = vpack.c.bf16 %v908_v57, %v907_v21 }
 0x218   :  { %v895_v48 = vpop.f32.mrf.mxu3 }
 0x219   :  { %v896_v49 = vadd.f32 %v895_v48, %v808_v16 }
 0x21b   :  { %v909_v52 = vmax.f32 %v896_v49, 0.0 }
 0x21d   :  { %v917_v18 = vpack.c.bf16 %v909_v52, %v909_v52 }
 0x21f   :  { %v941_v14 = vsel %vm939_vm3, %v917_v18, 0 }
 0x220   :  { %v897_v59 = vpop.f32.mrf.mxu3  ;;  %945 = vmatpush.bf16.msrb.mxu0 %v941_v14 }
 0x224   :  { %946 = vmatpush.bf16.msrb.mxu0 %v916_v63 }
 0x228   :  { %947 = vmatpush.bf16.msrb.mxu0 %v915_v2 }
 0x22c   :  { %948 = vmatpush.bf16.msrb.mxu0 %v914_v5 }
 0x230   :  { %949 = vmatpush.bf16.msrb.mxu0 %v913_v41 }
 0x234   :  { %950 = vmatpush.bf16.msrb.mxu0 %v912_v33 }
 0x237   :  { %1217 = vmatmul.msk.bf16.vlgmr.msrb.gmra.mxu0 %vm935_vm4, %v1216_v35 }
 0x2b4   :  { %v952_v46 = vpop.f32.mrf.mxu0 }
 0x2b5   :  { %v953_v30 = vadd.f32 %v952_v46, %v923_v11 }
 0x2b7   :  { %v957_v54 = vmax.f32 %v953_v30, 0.0 }
 0x2b9   :  { %960 = vst.msk [vmem:[%s1746_s7] sm:$0xff] %vm959_vm5, %v957_v54 }
 0x2bc   :  { %v954_v50 = vpop.f32.mrf.mxu0 }
 0x2bd   :  { %v955_v8 = vadd.f32 %v954_v50, %v928_v62 }
 0x2bf   :  { %v958_v12 = vmax.f32 %v955_v8, 0.0 }
 0x2c1   :  { %962 = vst.msk [vmem:[%s1746_s7 + $0x8] sm:$0x3] %vm961_vm6, %v958_v12 }

// kernel: cnn_forward.4
= control target key start
LH: loop header
LB: loop body
LE: loop exit
PB: predicated region body
PF: predicated region fallthrough
CT: control target
= control target key end

     0   :  { %s3530_s12 = smov 0   ;;  %s4527_s0 = inlined_call_operand.vmem [shape: f32[2,4,6,56], index: 0, kind: input, shape index: {}]   ;;  %s4528_s1 = inlined_call_operand.vmem [shape: f32[25,16,6], index: 1, kind: input, shape index: {}]   ;;  %s4529_s2 = inlined_call_operand.vmem [shape: f32[16,1], index: 2, kind: input, shape index: {}]   ;;  %s4530_s3 = inlined_call_operand.vmem [shape: f32[2,16,35], index: 3, kind: output, shape index: {}]  }
   0x1 LB: > { %s3108_s13 = sadd.s32 4294967295, %s3499_s12   ;;  %p3112_p0 = scmp.ge.s32.totalorder %s3499_s12, 1  ;;  %s3499_s12 = sphi %s3530_s12, %s13_s12  }
   0x2   : > { %p137_p1 = scmp.lt.s32.totalorder %s3499_s12, 3 }
   0x4   : > { %p138_p2 = pnand %p3112_p0, %p137_p1 }
   0x6   : > { %141 = sbr.rel (%p138_p2) target bundleno = 674 (0x2a2), region = 32 }
   0xb   : > { %p161_p3 = scmp.lt.s32.totalorder %s3108_s13, 1  ;;  %s3501_s18 = smov 126   ;;  %vm190_vm0 = vcmask 1045504   ;;  %v3562_v4 = vld [vmem:[%s4528_s1 + $0x10] sm:$0xff]  ;;  %vm183_vm1 = vcmask 48128   ;;  %v3567_v5 = vld [vmem:[%s4528_s1] sm:$0xff] }
   0xc   : > { %s3502_s19 = smov 127   ;;  %s3503_s20 = smov 121   ;;  %4589 = vst [vmem:[#allocation2_spill] sm:$0xff] %v3562_v4  ;;  %v3582_v6 = vld [vmem:[%s4528_s1 + $0x18] sm:$0xff]  ;;  %v3589_v7 = vld [vmem:[%s4528_s1 + $0x8] sm:$0xff]  ;;  %v3618_v8 = vld [vmem:[%s4528_s1 + $0x50] sm:$0xff] }
   0xd   : > { %s4677_s13 = smov (!%p161_p3, %s3108_s13), 1  ;;  %s3504_s21 = smov 119   ;;  %4590 = vst [vmem:[#allocation3_spill] sm:$0xff] %v3582_v6  ;;  %v3625_v9 = vld [vmem:[%s4528_s1 + $0x58] sm:$0xff]  ;;  %v3636_v12 = vld [vmem:[%s4528_s1 + $0x20] sm:$0xff]  ;;  %v3664_v16 = vld [vmem:[%s4528_s1 + $0x28] sm:$0xff] }
   0xe   : > { %s3470_s14 = sshll.u32 %s4677_s13, 5  ;;  %s3505_s22 = smov 120   ;;  %4591 = vst [vmem:[#allocation4_spill] sm:$0xff] %v3589_v7  ;;  %v3641_v13 = vld [vmem:[%s4528_s1 + $0x40] sm:$0xff]  ;;  %v3669_v17 = vld [vmem:[%s4528_s1 + $0x30] sm:$0xff]  ;;  %v3680_v21 = vld [vmem:[%s4528_s1 + $0x48] sm:$0xff] }
   0xf   : > { %s165_s17 = scalar_lea.vmem %s4527_s0, %s3470_s14  ;;  %s3506_s4 = smov 113   ;;  %4592 = vst [vmem:[#allocation5_spill] sm:$0xff] %v3618_v8  ;;  %v3695_v22 = vld [vmem:[%s4528_s1 + $0x38] sm:$0xff]  ;;  %v3700_v23 = vld [vmem:[%s4528_s1 + $0x60] sm:$0xff]  ;;  %v3712_v26 = vld [vmem:[%s4528_s1 + $0x90] sm:$0xff]  ;;  %vm3050_vm2 = vcmask 285696  }
  0x10   : > { %v171_v0 = vld [vmem:[%s165_s17] sm:$0x3f]  ;;  %v3545_v1 = vld [vmem:[%s165_s17 + $0x10] sm:$0x3f]  ;;  %v3547_v2 = vld [vmem:[%s165_s17 + $0x8] sm:$0x3f] }
  0x11   : > { %328 = vrot.lane.b32.xlu1 %v171_v0, %s3501_s18  ;;  %252 = vrot.lane.b32.xlu0 %v171_v0, %s3502_s19  ;;  %v3549_v3 = vld [vmem:[%s165_s17 + $0x18] sm:$0x3f]  ;;  %s3507_s5 = smov 114   ;;  %s3508_s6 = smov 112   ;;  %4593 = vst [vmem:[#allocation6_spill] sm:$0xff] %v3625_v9  ;;  %v3707_v25 = vld [vmem:[%s4528_s1 + $0x80] sm:$0xff] }
  0x12   : > { %554 = vrot.lane.b32.xlu2 %v171_v0, %s3503_s20  ;;  %3122 = vmatpush.msk.msra.mxu0 %vm190_vm0, %v3547_v2  ;;  %4595 = vst [vmem:[#allocation8_spill] sm:$0xff] %v3641_v13  ;;  %v3737_v29 = vld [vmem:[%s4528_s1 + $0x68] sm:$0xff]  ;;  %v3742_v30 = vld [vmem:[%s4528_s1 + $0x70] sm:$0xff]  ;;  %v3754_v33 = vld [vmem:[%s4528_s1 + $0x98] sm:$0xff]  ;;  %s3471_s7 = sshll.u32 %s4677_s13, 4 }
  0x13   : > { %3125 = vmatpush.msk.msra.mxu1 %vm190_vm0, %v171_v0  ;;  %3123 = vmatmul.msk.f32.vlgmr.msra.gmra.mxu0 %vm183_vm1, %v3562_v4  ;;  %4596 = vst [vmem:[#allocation9_spill] sm:$0xff] %v3680_v21  ;;  %v3749_v32 = vld [vmem:[%s4528_s1 + $0x88] sm:$0xff]  ;;  %v3775_v36 = vld [vmem:[%s4528_s1 + $0x78] sm:$0xff]  ;;  %v3780_v37 = vld [vmem:[%s4528_s1 + $0xa0] sm:$0xff]  ;;  %s170_s10 = scalar_lea.vmem %s4530_s3, %s3471_s7 }
  0x14   : > { %3126 = vmatmul.msk.f32.vlgmr.msra.gmra.mxu1 %vm183_vm1, %v3567_v5  ;;  %4597 = vst [vmem:[#allocation10_spill] sm:$0xff] %v3695_v22  ;;  %v3787_v39 = vld [vmem:[%s4528_s1 + $0xc0] sm:$0xff]  ;;  %v3792_v40 = vld [vmem:[%s4528_s1 + $0xd0] sm:$0xff]  ;;  %v3815_v43 = vld [vmem:[%s4528_s1 + $0xa8] sm:$0xff] }
  0x15   : > { %3145 = vmatpush.msk.msrb.mxu1 %vm190_vm0, %v3545_v1  ;;  %4598 = vst [vmem:[#allocation11_spill] sm:$0xff] %v3707_v25  ;;  %v3820_v44 = vld [vmem:[%s4528_s1 + $0xb0] sm:$0xff]  ;;  %v3827_v46 = vld [vmem:[%s4528_s1 + $0xc8] sm:$0xff]  ;;  %v3832_v47 = vld [vmem:[%s4528_s1 + $0xd8] sm:$0xff] }
  0x16   : > { %4599 = vst [vmem:[#allocation12_spill] sm:$0xff] %v3712_v26  ;;  %v3851_v49 = vld [vmem:[%s4528_s1 + $0xb8] sm:$0xff]  ;;  %v3856_v50 = vld [vmem:[%s4528_s1 + $0xe0] sm:$0xff]  ;;  %v3868_v53 = vld [vmem:[%s4528_s1 + $0x110] sm:$0xff] }
  0x17   : > { %4600 = vst [vmem:[#allocation13_spill] sm:$0xff] %v3742_v30  ;;  %v3863_v52 = vld [vmem:[%s4528_s1 + $0x100] sm:$0xff]  ;;  %v3891_v55 = vld [vmem:[%s4528_s1 + $0xe8] sm:$0xff]  ;;  %v3896_v56 = vld [vmem:[%s4528_s1 + $0xf0] sm:$0xff] }
  0x18   : > { %4602 = vst [vmem:[#allocation15_spill] sm:$0xff] %v3749_v32  ;;  %v3903_v58 = vld [vmem:[%s4528_s1 + $0x108] sm:$0xff]  ;;  %v3908_v59 = vld [vmem:[%s4528_s1 + $0x118] sm:$0xff]  ;;  %v3928_v61 = vld [vmem:[%s4528_s1 + $0x120] sm:$0xff] }
  0x19   : > { %440 = vrot.lane.b32.xlu1 %v3545_v1, %s3502_s19  ;;  %290 = vrot.lane.b32.xlu0 %v3547_v2, %s3502_s19  ;;  %4603 = vst [vmem:[#allocation16_spill] sm:$0xff] %v3754_v33  ;;  %v3923_v60 = vld [vmem:[%s4528_s1 + $0xf8] sm:$0xff]  ;;  %v3933_v62 = vld [vmem:[%s4528_s1 + $0x140] sm:$0xff] }
  0x1a   : > { %478 = vrot.lane.b32.xlu2 %v3549_v3, %s3502_s19  ;;  %4604 = vst [vmem:[#allocation17_spill] sm:$0xff] %v3775_v36  ;;  %v3938_v63 = vld [vmem:[%s4528_s1 + $0x150] sm:$0xff] }
  0x1b   : > { %3124 = vmatmul.msk.f32.gmra.mxu0 %vm183_vm1, %v3582_v6  ;;  %4605 = vst [vmem:[#allocation18_spill] sm:$0xff] %v3780_v37 }
  0x1c   : > { %3127 = vmatmul.msk.f32.gmra.mxu1 %vm183_vm1, %v3589_v7  ;;  %4606 = vst [vmem:[#allocation19_spill] sm:$0xff] %v3787_v39 }
  0x1d   : > { %4607 = vst [vmem:[#allocation20_spill] sm:$0xff] %v3792_v40 }
  0x1e   : > { %4610 = vst [vmem:[#allocation23_spill] sm:$0xff] %v3815_v43 }
  0x1f   : > { %4611 = vst [vmem:[#allocation24_spill] sm:$0xff] %v3820_v44 }
  0x20   : > { %4612 = vst [vmem:[#allocation25_spill] sm:$0xff] %v3827_v46 }
  0x21   : > { %516 = vrot.lane.b32.xlu1 %v3545_v1, %s3501_s18  ;;  %592 = vrot.lane.b32.xlu0 %v3547_v2, %s3503_s20  ;;  %4613 = vst [vmem:[#allocation26_spill] sm:$0xff] %v3851_v49 }
  0x22   : > { %706 = vrot.lane.b32.xlu2 %v171_v0, %s3504_s21  ;;  %4616 = vst [vmem:[#allocation29_spill] sm:$0xff] %v3896_v56 }
  0x24   : > { %3146 = vmatmul.msk.f32.vlgmr.msrb.gmra.mxu1 %vm183_vm1, %v3618_v8 }
  0x29   : > { %744 = vrot.lane.b32.xlu1 %v3545_v1, %s3503_s20  ;;  %630 = vrot.lane.b32.xlu0 %v171_v0, %s3505_s22 }
  0x2a   : > { %668 = vrot.lane.b32.xlu2 %v3547_v2, %s3505_s22 }
  0x2c   : > { %3147 = vmatmul.msk.f32.gmra.mxu1 %vm183_vm1, %v3625_v9 }
  0x31   : > { %782 = vrot.lane.b32.xlu1 %v3549_v3, %s3503_s20  ;;  %858 = vrot.lane.b32.xlu0 %v3549_v3, %s3505_s22 }
  0x32   : > { %896 = vrot.lane.b32.xlu2 %v3545_v1, %s3504_s21 }
  0x39   : > { %1010 = vrot.lane.b32.xlu1 %v171_v0, %s3506_s4  ;;  %820 = vrot.lane.b32.xlu0 %v3545_v1, %s3505_s22 }
  0x3a   : > { %934 = vrot.lane.b32.xlu2 %v171_v0, %s3507_s5 }
  0x41   : > { %972 = vrot.lane.b32.xlu1 %v3547_v2, %s3507_s5  ;;  %1048 = vrot.lane.b32.xlu0 %v3547_v2, %s3506_s4 }
  0x42   : > { %1086 = vrot.lane.b32.xlu2 %v171_v0, %s3508_s6 }
  0x49   : > { %1217 = vrot.lane.b32.xlu0 %v3547_v2, %s3501_s18  ;;  %1346 = vrot.lane.b32.xlu1 %v3549_v3, %s3501_s18 }
  0x4a   : > { %1475 = vrot.lane.b32.xlu2 %v3547_v2, %s3504_s21 }
  0x51   : > { %1604 = vrot.lane.b32.xlu0 %v3549_v3, %s3504_s21  ;;  %1733 = vrot.lane.b32.xlu1 %v3547_v2, %s3508_s6 }
  0x52   : > { %2260 = vrot.lane.b32.xlu2 %v3545_v1, %s3507_s5 }
  0x59   : > { %2289 = vrot.lane.b32.xlu0 %v3549_v3, %s3507_s5  ;;  %2376 = vrot.lane.b32.xlu1 %v3545_v1, %s3508_s6 }
  0x5a   : > { %2318 = vrot.lane.b32.xlu2 %v3545_v1, %s3506_s4 }
  0x61   : > { %2347 = vrot.lane.b32.xlu0 %v3549_v3, %s3506_s4  ;;  %3003 = vrot.lane.b32.xlu1 %v3549_v3, %s3508_s6 }
  0x6c   : > { %v3629_v10 = vpop.permute.xlu2 %554 }
  0x6d   : > { %4594 = vst [vmem:[#allocation7_spill] sm:$0xff] %v3629_v10 }
  0x74   : > { %v3631_v11 = vpop.permute.xlu2 %478 }
  0x7c   : > { %v3671_v18 = vpop.permute.xlu2 %706 }
  0x83   : > { %v3643_v14 = vpop.permute.xlu1 %328  ;;  %v3645_v15 = vpop.permute.xlu0 %252 }
  0x84   : > { %3130 = vmatpush.msk.msra.mxu2 %vm190_vm0, %v3645_v15  ;;  %3140 = vmatpush.msk.msrb.mxu0 %vm190_vm0, %v3643_v14  ;;  %v3720_v28 = vpop.permute.xlu2 %668 }
  0x85   : > { %3131 = vmatmul.msk.f32.vlgmr.msra.gmra.mxu2 %vm183_vm1, %v3636_v12  ;;  %3141 = vmatmul.msk.f32.vlgmr.msrb.gmra.mxu0 %vm183_vm1, %v3641_v13 }
  0x86   : > { %3150 = vmatpush.msk.msrb.mxu2 %vm190_vm0, %v3549_v3  ;;  %3160 = vmatpush.msk.msra.mxu0 %vm190_vm0, %v3631_v11 }
  0x88   : > { %3170 = vmatpush.msk.msra.mxu2 %vm190_vm0, %v3629_v10  ;;  %v3996_v10 = vld [vmem:[%s4528_s1 + $0x180] sm:$0xff] }
  0x8b   : > { %v3673_v19 = vpop.permute.xlu1 %440  ;;  %v3675_v20 = vpop.permute.xlu0 %290 }
  0x8c   : > { %3135 = vmatpush.msk.msra.mxu3 %vm190_vm0, %v3675_v20  ;;  %v3760_v35 = vpop.permute.xlu2 %896 }
  0x8d   : > { %3132 = vmatmul.msk.f32.gmra.mxu2 %vm183_vm1, %v3664_v16  ;;  %3136 = vmatmul.msk.f32.vlgmr.msra.gmra.mxu3 %vm183_vm1, %v3669_v17 }
  0x8e   : > { %3142 = vmatmul.msk.f32.gmra.mxu0 %vm183_vm1, %v3680_v21  ;;  %3155 = vmatpush.msk.msrb.mxu3 %vm190_vm0, %v3673_v19 }
  0x93   : > { %v3702_v24 = vpop.permute.xlu1 %516  ;;  %v3714_v27 = vpop.permute.xlu0 %592 }
  0x94   : > { %3165 = vmatpush.msk.msra.mxu1 %vm190_vm0, %v3702_v24  ;;  %3175 = vmatpush.msk.msra.mxu3 %vm190_vm0, %v3714_v27  ;;  %v3806_v42 = vpop.permute.xlu2 %934 }
  0x95   : > { %3137 = vmatmul.msk.f32.gmra.mxu3 %vm183_vm1, %v3695_v22  ;;  %3151 = vmatmul.msk.f32.vlgmr.msrb.gmra.mxu2 %vm183_vm1, %v3700_v23  ;;  %4609 = vst [vmem:[#allocation22_spill] sm:$0xff] %v3806_v42 }
  0x96   : > { %3161 = vmatmul.msk.f32.vlgmr.msra.gmra.mxu0 %vm183_vm1, %v3707_v25  ;;  %3166 = vmatmul.msk.f32.vlgmr.msra.gmra.mxu1 %vm183_vm1, %v3712_v26 }
  0x97   : > { %3185 = vmatpush.msk.msrb.mxu1 %vm190_vm0, %v3720_v28  ;;  %3190 = vmatpush.msk.msrb.mxu2 %vm190_vm0, %v3671_v18 }
  0x9b   : > { %v3744_v31 = vpop.permute.xlu1 %744  ;;  %v3756_v34 = vpop.permute.xlu0 %630 }
  0x9c   : > { %4601 = vst [vmem:[#allocation14_spill] sm:$0xff] %v3744_v31  ;;  %3180 = vmatpush.msk.msrb.mxu0 %vm190_vm0, %v3756_v34  ;;  %v3872_v54 = vpop.permute.xlu2 %1086 }
  0x9d   : > { %3152 = vmatmul.msk.f32.gmra.mxu2 %vm183_vm1, %v3737_v29  ;;  %3156 = vmatmul.msk.f32.vlgmr.msrb.gmra.mxu3 %vm183_vm1, %v3742_v30  ;;  %4615 = vst [vmem:[#allocation28_spill] sm:$0xff] %v3872_v54 }
  0x9e   : > { %3162 = vmatmul.msk.f32.gmra.mxu0 %vm183_vm1, %v3749_v32  ;;  %3167 = vmatmul.msk.f32.gmra.mxu1 %vm183_vm1, %v3754_v33 }
  0x9f   : > { %3195 = vmatpush.msk.msrb.mxu3 %vm190_vm0, %v3744_v31  ;;  %v3966_v31 = vld [vmem:[%s4528_s1 + $0x148] sm:$0xff] }
  0xa3   : > { %v3782_v38 = vpop.permute.xlu1 %782  ;;  %v3794_v41 = vpop.permute.xlu0 %858 }
  0xa4   : > { %4608 = vst [vmem:[#allocation21_spill] sm:$0xff] %v3794_v41  ;;  %3200 = vmatpush.msk.msra.mxu0 %vm190_vm0, %v3782_v38 }
  0xa5   : > { %3157 = vmatmul.msk.f32.gmra.mxu3 %vm183_vm1, %v3775_v36  ;;  %3171 = vmatmul.msk.f32.vlgmr.msra.gmra.mxu2 %vm183_vm1, %v3780_v37 }
  0xa6   : > { %3181 = vmatmul.msk.f32.vlgmr.msrb.gmra.mxu0 %vm183_vm1, %v3787_v39  ;;  %3186 = vmatmul.msk.f32.vlgmr.msrb.gmra.mxu1 %vm183_vm1, %v3792_v40 }
  0xa7   : > { %3210 = vmatpush.msk.msra.mxu2 %vm190_vm0, %v3794_v41  ;;  %3220 = vmatpush.msk.msrb.mxu0 %vm190_vm0, %v3806_v42  ;;  %v3961_v42 = vld [vmem:[%s4528_s1 + $0x130] sm:$0xff] }
  0xab   : > { %v3822_v45 = vpop.permute.xlu1 %1010  ;;  %v3834_v48 = vpop.permute.xlu0 %820 }
  0xac   : > { %3205 = vmatpush.msk.msra.mxu1 %vm190_vm0, %v3834_v48 }
  0xad   : > { %3172 = vmatmul.msk.f32.gmra.mxu2 %vm183_vm1, %v3815_v43  ;;  %3176 = vmatmul.msk.f32.vlgmr.msra.gmra.mxu3 %vm183_vm1, %v3820_v44 }
  0xae   : > { %3182 = vmatmul.msk.f32.gmra.mxu0 %vm183_vm1, %v3827_v46  ;;  %3187 = vmatmul.msk.f32.gmra.mxu1 %vm183_vm1, %v3832_v47 }
  0xaf   : > { %3215 = vmatpush.msk.msra.mxu3 %vm190_vm0, %v3760_v35 }
  0xb3   : > { %v3858_v51 = vpop.permute.xlu1 %972  ;;  %v3898_v57 = vpop.permute.xlu0 %1048 }
  0xb4   : > { %4614 = vst [vmem:[#allocation27_spill] sm:$0xff] %v3858_v51  ;;  %3225 = vmatpush.msk.msrb.mxu1 %vm190_vm0, %v3858_v51 }
  0xb5   : > { %3177 = vmatmul.msk.f32.gmra.mxu3 %vm183_vm1, %v3851_v49  ;;  %3191 = vmatmul.msk.f32.vlgmr.msrb.gmra.mxu2 %vm183_vm1, %v3856_v50  ;;  %4617 = vst [vmem:[#allocation30_spill] sm:$0xff] %v3898_v57 }
  0xb6   : > { %3201 = vmatmul.msk.f32.vlgmr.msra.gmra.mxu0 %vm183_vm1, %v3863_v52  ;;  %3206 = vmatmul.msk.f32.vlgmr.msra.gmra.mxu1 %vm183_vm1, %v3868_v53 }
  0xb7   : > { %3243 = vmatpush.msk.msra.mxu1 %vm190_vm0, %v3645_v15  ;;  %3240 = vmatpush.msk.msra.mxu0 %vm190_vm0, %v3872_v54  ;;  %v3956_v15 = vld [vmem:[%s4528_s1 + $0x128] sm:$0xff] }
  0xb8   : > { %3230 = vmatpush.msk.msrb.mxu2 %vm190_vm0, %v3822_v45 }
  0xbb   : > { %v1218_v0 = vpop.permute.xlu0 %1217 }
  0xbd   : > { %3192 = vmatmul.msk.f32.gmra.mxu2 %vm183_vm1, %v3891_v55  ;;  %3196 = vmatmul.msk.f32.vlgmr.msrb.gmra.mxu3 %vm183_vm1, %v3896_v56 }
  0xbe   : > { %3202 = vmatmul.msk.f32.gmra.mxu0 %vm183_vm1, %v3903_v58  ;;  %3207 = vmatmul.msk.f32.gmra.mxu1 %vm183_vm1, %v3908_v59 }
  0xbf   : > { %3235 = vmatpush.msk.msrb.mxu3 %vm190_vm0, %v3898_v57 }
  0xc5   : > { %3197 = vmatmul.msk.f32.gmra.mxu3 %vm183_vm1, %v3923_v60  ;;  %3211 = vmatmul.msk.f32.vlgmr.msra.gmra.mxu2 %vm183_vm1, %v3928_v61 }
  0xc6   : > { %3221 = vmatmul.msk.f32.vlgmr.msrb.gmra.mxu0 %vm183_vm1, %v3933_v62  ;;  %3226 = vmatmul.msk.f32.vlgmr.msrb.gmra.mxu1 %vm183_vm1, %v3938_v63 }
  0xc7   : > { %3252 = vmatpush.msk.msrb.mxu0 %vm190_vm0, %v3643_v14  ;;  %3255 = vmatpush.msk.msrb.mxu1 %vm190_vm0, %v1218_v0  ;;  %v3971_v14 = vld [vmem:[%s4528_s1 + $0x158] sm:$0xff]  ;;  %v3991_v0 = vld [vmem:[%s4528_s1 + $0x160] sm:$0xff] }
  0xc8   : > { %3246 = vmatpush.msk.msra.mxu2 %vm190_vm0, %v3547_v2  ;;  %4618 = vst [vmem:[#allocation31_spill] sm:$0xff] %v3971_v14  ;;  %v3986_v2 = vld [vmem:[%s4528_s1 + $0x138] sm:$0xff] }
  0xc9   : > { %4619 = vst [vmem:[#allocation32_spill] sm:$0xff] %v3991_v0 }
  0xcd   : > { %3212 = vmatmul.msk.f32.gmra.mxu2 %vm183_vm1, %v3956_v15  ;;  %3216 = vmatmul.msk.f32.vlgmr.msra.gmra.mxu3 %vm183_vm1, %v3961_v42 }
  0xce   : > { %3222 = vmatmul.msk.f32.gmra.mxu0 %vm183_vm1, %v3966_v31  ;;  %3227 = vmatmul.msk.f32.gmra.mxu1 %vm183_vm1, %v3971_v14  ;;  %v4040_v14 = vld [vmem:[%s4528_s1 + $0x178] sm:$0xff] }
  0xcf   : > { %3249 = vmatpush.msk.msra.mxu3 %vm190_vm0, %v3675_v20  ;;  %v4015_v20 = vld [vmem:[%s4528_s1 + $0x168] sm:$0xff] }
  0xd0   : > { %4620 = vst [vmem:[#allocation33_spill] sm:$0xff] %v4015_v20 }
  0xd5   : > { %3217 = vmatmul.msk.f32.gmra.mxu3 %vm183_vm1, %v3986_v2  ;;  %3231 = vmatmul.msk.f32.vlgmr.msrb.gmra.mxu2 %vm183_vm1, %v3991_v0  ;;  %v4020_v0 = vld [vmem:[%s4528_s1 + $0x170] sm:$0xff] }
  0xd6   : > { %3241 = vmatmul.msk.f32.vlgmr.msra.gmra.mxu0 %vm183_vm1, %v3996_v10  ;;  %3244 = vmatmul.msk.f32.vlgmr.msra.gmra.mxu1 %vm183_vm1, %v3562_v4  ;;  %v4025_v4 = vld [vmem:[%s4528_s1 + $0x188] sm:$0xff] }
  0xd7   : > { %3264 = vmatpush.msk.msra.mxu0 %vm190_vm0, %v3631_v11  ;;  %3267 = vmatpush.msk.msra.mxu1 %vm190_vm0, %v3702_v24 }
  0xd8   : > { %3258 = vmatpush.msk.msrb.mxu2 %vm190_vm0, %v3549_v3 }
  0xdd   : > { %3232 = vmatmul.msk.f32.gmra.mxu2 %vm183_vm1, %v4015_v20  ;;  %3236 = vmatmul.msk.f32.vlgmr.msrb.gmra.mxu3 %vm183_vm1, %v4020_v0  ;;  %v4046_v20 = vpop.permute.xlu1 %1346 }
  0xde   : > { %3242 = vmatmul.msk.f32.gmra.mxu0 %vm183_vm1, %v4025_v4  ;;  %3245 = vmatmul.msk.f32.gmra.mxu1 %vm183_vm1, %v3582_v6  ;;  %4621 = vst [vmem:[#allocation34_spill] sm:$0xff] %v4046_v20  ;;  %v243_v6 = vpop.f32.mrf.mxu1 }
  0xdf   : > { %3261 = vmatpush.msk.msrb.mxu3 %vm190_vm0, %v3673_v19 }
  0xe5   : > { %3237 = vmatmul.msk.f32.gmra.mxu3 %vm183_vm1, %v4040_v14  ;;  %3247 = vmatmul.msk.f32.vlgmr.msra.gmra.mxu2 %vm183_vm1, %v3567_v5 }
  0xe6   : > { %3253 = vmatmul.msk.f32.vlgmr.msrb.gmra.mxu0 %vm183_vm1, %v3669_v17  ;;  %3256 = vmatmul.msk.f32.vlgmr.msrb.gmra.mxu1 %vm183_vm1, %v3641_v13  ;;  %v211_v13 = vpop.f32.mrf.mxu0 }
  0xe7   : > { %3276 = vmatpush.msk.msrb.mxu0 %vm190_vm0, %v3756_v34  ;;  %3279 = vmatpush.msk.msrb.mxu1 %vm190_vm0, %v3720_v28 }
  0xe8   : > { %3270 = vmatpush.msk.msra.mxu2 %vm190_vm0, %v4046_v20  ;;  %v246_v20 = vpop.f32.mrf.mxu1 }
  0xed   : > { %3248 = vmatmul.msk.f32.gmra.mxu2 %vm183_vm1, %v3589_v7  ;;  %3250 = vmatmul.msk.f32.vlgmr.msra.gmra.mxu3 %vm183_vm1, %v3636_v12  ;;  %v4082_v7 = vpop.permute.xlu2 %1475 }
  0xee   : > { %3254 = vmatmul.msk.f32.gmra.mxu0 %vm183_vm1, %v3695_v22  ;;  %3257 = vmatmul.msk.f32.gmra.mxu1 %vm183_vm1, %v3680_v21  ;;  %v214_v21 = vpop.f32.mrf.mxu0  ;;  %4622 = vst [vmem:[#allocation35_spill] sm:$0xff] %v4082_v7 }
  0xef   : > { %3273 = vmatpush.msk.msra.mxu3 %vm190_vm0, %v3714_v27 }
  0xf5   : > { %3251 = vmatmul.msk.f32.gmra.mxu3 %vm183_vm1, %v3664_v16  ;;  %3259 = vmatmul.msk.f32.vlgmr.msrb.gmra.mxu2 %vm183_vm1, %v3618_v8 }
  0xf6   : > { %3265 = vmatmul.msk.f32.vlgmr.msra.gmra.mxu0 %vm183_vm1, %v3742_v30  ;;  %3268 = vmatmul.msk.f32.vlgmr.msra.gmra.mxu1 %vm183_vm1, %v3707_v25  ;;  %v392_v25 = vpop.f32.mrf.mxu1 }
  0xf7   : > { %3282 = vmatpush.msk.msrb.mxu2 %vm190_vm0, %v3671_v18  ;;  %3288 = vmatpush.msk.msra.mxu0 %vm190_vm0, %v3782_v38 }
  0xf8   : > { %3291 = vmatpush.msk.msra.mxu1 %vm190_vm0, %v3834_v48 }
  0xfd   : > { %3260 = vmatmul.msk.f32.gmra.mxu2 %vm183_vm1, %v3625_v9  ;;  %3262 = vmatmul.msk.f32.vlgmr.msrb.gmra.mxu3 %vm183_vm1, %v3700_v23  ;;  %v4098_v9 = vpop.permute.xlu0 %1604 }
  0xfe   : > { %3266 = vmatmul.msk.f32.gmra.mxu0 %vm183_vm1, %v3775_v36  ;;  %3269 = vmatmul.msk.f32.gmra.mxu1 %vm183_vm1, %v3749_v32  ;;  %4623 = vst [vmem:[#allocation36_spill] sm:$0xff] %v4098_v9  ;;  %v395_v32 = vpop.f32.mrf.mxu1 }
  0xff   : > { %3285 = vmatpush.msk.msrb.mxu3 %vm190_vm0, %v4082_v7 }
 0x102   : > { %v355_v8 = vpop.f32.mrf.mxu0 }
 0x105   : > { %3263 = vmatmul.msk.f32.gmra.mxu3 %vm183_vm1, %v3737_v29  ;;  %3271 = vmatmul.msk.f32.vlgmr.msra.gmra.mxu2 %vm183_vm1, %v3712_v26  ;;  %v244_v26 = vadd.f32 %v243_v6, %v211_v13  ;;  %v247_v13 = vadd.f32 %v246_v20, %v214_v21 }
 0x106   : > { %3277 = vmatmul.msk.f32.vlgmr.msrb.gmra.mxu0 %vm183_vm1, %v3820_v44  ;;  %3280 = vmatmul.msk.f32.vlgmr.msrb.gmra.mxu1 %vm183_vm1, %v3787_v39 }
 0x107   : > { %3294 = vmatpush.msk.msra.mxu2 %vm190_vm0, %v3794_v41  ;;  %3303 = vmatpush.msk.msrb.mxu1 %vm190_vm0, %v3858_v51 }
 0x108   : > { %v279_v7 = vpop.f32.mrf.mxu2  ;;  %3300 = vmatpush.msk.msrb.mxu0 %vm190_vm0, %v4098_v9 }
 0x109   : > { %v285_v39 = vadd.f32 %v279_v7, %v244_v26 }
 0x10b   : > { %v358_v36 = vpop.f32.mrf.mxu0 }
 0x10d   : > { %3272 = vmatmul.msk.f32.gmra.mxu2 %vm183_vm1, %v3754_v33  ;;  %3274 = vmatmul.msk.f32.vlgmr.msra.gmra.mxu3 %vm183_vm1, %v3780_v37 }
 0x10e   : > { %3278 = vmatmul.msk.f32.gmra.mxu0 %vm183_vm1, %v3851_v49  ;;  %3281 = vmatmul.msk.f32.gmra.mxu1 %vm183_vm1, %v3827_v46  ;;  %v4124_v49 = vpop.permute.xlu1 %1733 }
 0x10f   : > { %3297 = vmatpush.msk.msra.mxu3 %vm190_vm0, %v3760_v35  ;;  %4624 = vst [vmem:[#allocation37_spill] sm:$0xff] %v4124_v49 }
 0x110   : > { %v282_v9 = vpop.f32.mrf.mxu2  ;;  %v317_v51 = vpop.f32.mrf.mxu3 }
 0x111   : > { %v323_v6 = vadd.f32 %v317_v51, %v285_v39  ;;  %v286_v7 = vadd.f32 %v282_v9, %v247_v13 }
 0x113   : > { %v361_v44 = vadd.f32 %v355_v8, %v323_v6  ;;  %v505_v41 = vpop.f32.mrf.mxu0  ;;  %v543_v33 = vpop.f32.mrf.mxu1 }
 0x115   : > { %3275 = vmatmul.msk.f32.gmra.mxu3 %vm183_vm1, %v3815_v43  ;;  %3283 = vmatmul.msk.f32.vlgmr.msrb.gmra.mxu2 %vm183_vm1, %v3792_v40  ;;  %v398_v26 = vadd.f32 %v392_v25, %v361_v44 }
 0x116   : > { %3289 = vmatmul.msk.f32.vlgmr.msra.gmra.mxu0 %vm183_vm1, %v3896_v56  ;;  %3292 = vmatmul.msk.f32.vlgmr.msra.gmra.mxu1 %vm183_vm1, %v3863_v52 }
 0x117   : > { %3306 = vmatpush.msk.msrb.mxu2 %vm190_vm0, %v3822_v45  ;;  %3312 = vmatpush.msk.msra.mxu0 %vm190_vm0, %v3872_v54 }
 0x118   : > { %v320_v8 = vpop.f32.mrf.mxu3  ;;  %v429_v21 = vpop.f32.mrf.mxu2  ;;  %3315 = vmatpush.msk.msra.mxu1 %vm190_vm0, %v4124_v49 }
 0x119   : > { %v324_v39 = vadd.f32 %v320_v8, %v286_v7  ;;  %v435_v51 = vadd.f32 %v429_v21, %v398_v26 }
 0x11b   : > { %v362_v20 = vadd.f32 %v358_v36, %v324_v39  ;;  %v508_v6 = vpop.f32.mrf.mxu0  ;;  %v546_v40 = vpop.f32.mrf.mxu1 }
 0x11d   : > { %v399_v46 = vadd.f32 %v395_v32, %v362_v20  ;;  %3284 = vmatmul.msk.f32.gmra.mxu2 %vm183_vm1, %v3832_v47  ;;  %3286 = vmatmul.msk.f32.vlgmr.msrb.gmra.mxu3 %vm183_vm1, %v3856_v50 }
 0x11e   : > { %3290 = vmatmul.msk.f32.gmra.mxu0 %vm183_vm1, %v3923_v60  ;;  %3293 = vmatmul.msk.f32.gmra.mxu1 %vm183_vm1, %v3903_v58 }
 0x11f   : > { %3309 = vmatpush.msk.msrb.mxu3 %vm190_vm0, %v3898_v57 }
 0x120   : > { %v432_v9 = vpop.f32.mrf.mxu2  ;;  %v467_v25 = vpop.f32.mrf.mxu3 }
 0x121   : > { %v436_v36 = vadd.f32 %v432_v9, %v399_v46  ;;  %v473_v44 = vadd.f32 %v467_v25, %v435_v51 }
 0x123   : > { %v511_v32 = vadd.f32 %v505_v41, %v473_v44  ;;  %v657_v13 = vpop.f32.mrf.mxu0  ;;  %v695_v7 = vpop.f32.mrf.mxu1 }
 0x125   : > { %v549_v26 = vadd.f32 %v543_v33, %v511_v32  ;;  %3287 = vmatmul.msk.f32.gmra.mxu3 %vm183_vm1, %v3891_v55  ;;  %3295 = vmatmul.msk.f32.vlgmr.msra.gmra.mxu2 %vm183_vm1, %v3868_v53 }
 0x126   : > { %3301 = vmatmul.msk.f32.vlgmr.msrb.gmra.mxu0 %vm183_vm1, %v3961_v42  ;;  %3304 = vmatmul.msk.f32.vlgmr.msrb.gmra.mxu1 %vm183_vm1, %v3933_v62 }
 0x127   : > { %3324 = vmatpush.msk.msrb.mxu0 %vm190_vm0, %v3673_v19  ;;  %3327 = vmatpush.msk.msrb.mxu1 %vm190_vm0, %v3631_v11 }
 0x128   : > { %v470_v41 = vpop.f32.mrf.mxu3  ;;  %v581_v33 = vpop.f32.mrf.mxu2  ;;  %3318 = vmatpush.msk.msra.mxu2 %vm190_vm0, %v3549_v3 }
 0x129   : > { %v474_v46 = vadd.f32 %v470_v41, %v436_v36  ;;  %v587_v8 = vadd.f32 %v581_v33, %v549_v26 }
 0x12b   : > { %v512_v21 = vadd.f32 %v508_v6, %v474_v46  ;;  %v660_v39 = vpop.f32.mrf.mxu0  ;;  %v698_v51 = vpop.f32.mrf.mxu1 }
 0x12d   : > { %v550_v20 = vadd.f32 %v546_v40, %v512_v21  ;;  %3296 = vmatmul.msk.f32.gmra.mxu2 %vm183_vm1, %v3908_v59  ;;  %3298 = vmatmul.msk.f32.vlgmr.msra.gmra.mxu3 %vm183_vm1, %v3928_v61 }
 0x12e   : > { %3302 = vmatmul.msk.f32.gmra.mxu0 %vm183_vm1, %v3986_v2  ;;  %3305 = vmatmul.msk.f32.gmra.mxu1 %vm183_vm1, %v3966_v31 }
 0x12f   : > { %3321 = vmatpush.msk.msra.mxu3 %vm190_vm0, %v3545_v1 }
 0x130   : > { %v584_v9 = vpop.f32.mrf.mxu2  ;;  %v619_v6 = vpop.f32.mrf.mxu3 }
 0x131   : > { %v588_v25 = vadd.f32 %v584_v9, %v550_v20  ;;  %v625_v36 = vadd.f32 %v619_v6, %v587_v8  ;;  %v4625_v20 = vld [vmem:[#allocation31_spill] sm:$0xff]  ;;  %v4626_v9 = vld [vmem:[#allocation32_spill] sm:$0xff] }
 0x132   : > { %v4627_v6 = vld [vmem:[#allocation7_spill] sm:$0xff] }
 0x133   : > { %v663_v40 = vadd.f32 %v657_v13, %v625_v36  ;;  %v809_v44 = vpop.f32.mrf.mxu0  ;;  %v847_v32 = vpop.f32.mrf.mxu1 }
 0x135   : > { %v701_v26 = vadd.f32 %v695_v7, %v663_v40  ;;  %3299 = vmatmul.msk.f32.gmra.mxu3 %vm183_vm1, %v3956_v15  ;;  %3307 = vmatmul.msk.f32.vlgmr.msrb.gmra.mxu2 %vm183_vm1, %v3938_v63 }
 0x136   : > { %3313 = vmatmul.msk.f32.vlgmr.msra.gmra.mxu0 %vm183_vm1, %v4020_v0  ;;  %3316 = vmatmul.msk.f32.vlgmr.msra.gmra.mxu1 %vm183_vm1, %v3996_v10 }
 0x137   : > { %3330 = vmatpush.msk.msrb.mxu2 %vm190_vm0, %v3702_v24  ;;  %3336 = vmatpush.msk.msra.mxu0 %vm190_vm0, %v3714_v27 }
 0x138   : > { %3339 = vmatpush.msk.msra.mxu1 %vm190_vm0, %v3756_v34  ;;  %v622_v1 = vpop.f32.mrf.mxu3  ;;  %v733_v13 = vpop.f32.mrf.mxu2 }
 0x139   : > { %v626_v7 = vadd.f32 %v622_v1, %v588_v25  ;;  %v739_v41 = vadd.f32 %v733_v13, %v701_v26 }
 0x13b   : > { %v664_v33 = vadd.f32 %v660_v39, %v626_v7  ;;  %v812_v46 = vpop.f32.mrf.mxu0  ;;  %v850_v8 = vpop.f32.mrf.mxu1  ;;  %v4628_v7 = vld [vmem:[#allocation33_spill] sm:$0xff] }
 0x13d   : > { %v702_v21 = vadd.f32 %v698_v51, %v664_v33  ;;  %3308 = vmatmul.msk.f32.gmra.mxu2 %vm183_vm1, %v4625_v20  ;;  %3310 = vmatmul.msk.f32.vlgmr.msrb.gmra.mxu3 %vm183_vm1, %v4626_v9  ;;  %v4629_v33 = vld [vmem:[#allocation2_spill] sm:$0xff] }
 0x13e   : > { %3314 = vmatmul.msk.f32.gmra.mxu0 %vm183_vm1, %v4040_v14  ;;  %3317 = vmatmul.msk.f32.gmra.mxu1 %vm183_vm1, %v4025_v4 }
 0x13f   : > { %3333 = vmatpush.msk.msrb.mxu3 %vm190_vm0, %v4627_v6 }
 0x140   : > { %v736_v25 = vpop.f32.mrf.mxu2  ;;  %v771_v39 = vpop.f32.mrf.mxu3 }
 0x141   : > { %v740_v36 = vadd.f32 %v736_v25, %v702_v21  ;;  %v777_v40 = vadd.f32 %v771_v39, %v739_v41  ;;  %v4630_v41 = vld [vmem:[#allocation14_spill] sm:$0xff] }
 0x143   : > { %v815_v51 = vadd.f32 %v809_v44, %v777_v40  ;;  %v961_v26 = vpop.f32.mrf.mxu0  ;;  %v999_v1 = vpop.f32.mrf.mxu1 }
 0x145   : > { %v853_v13 = vadd.f32 %v847_v32, %v815_v51  ;;  %3311 = vmatmul.msk.f32.gmra.mxu3 %vm183_vm1, %v4628_v7  ;;  %3319 = vmatmul.msk.f32.vlgmr.msra.gmra.mxu2 %vm183_vm1, %v4629_v33  ;;  %v4631_v33 = vld [vmem:[#allocation3_spill] sm:$0xff] }
 0x146   : > { %3325 = vmatmul.msk.f32.vlgmr.msrb.gmra.mxu0 %vm183_vm1, %v3636_v12  ;;  %3328 = vmatmul.msk.f32.vlgmr.msrb.gmra.mxu1 %vm183_vm1, %v3669_v17 }
 0x147   : > { %3342 = vmatpush.msk.msra.mxu2 %vm190_vm0, %v3720_v28  ;;  %3348 = vmatpush.msk.msrb.mxu0 %vm190_vm0, %v4630_v41 }
 0x148   : > { %3351 = vmatpush.msk.msrb.mxu1 %vm190_vm0, %v3782_v38  ;;  %v774_v44 = vpop.f32.mrf.mxu3  ;;  %v885_v32 = vpop.f32.mrf.mxu2 }
 0x149   : > { %v778_v21 = vadd.f32 %v774_v44, %v740_v36  ;;  %v891_v6 = vadd.f32 %v885_v32, %v853_v13 }
 0x14b   : > { %v816_v25 = vadd.f32 %v812_v46, %v778_v21  ;;  %v964_v39 = vpop.f32.mrf.mxu0  ;;  %v1002_v40 = vpop.f32.mrf.mxu1 }
 0x14d   : > { %v854_v51 = vadd.f32 %v850_v8, %v816_v25  ;;  %3320 = vmatmul.msk.f32.gmra.mxu2 %vm183_vm1, %v4631_v33  ;;  %3322 = vmatmul.msk.f32.vlgmr.msra.gmra.mxu3 %vm183_vm1, %v3567_v5  ;;  %v4632_v25 = vld [vmem:[#allocation4_spill] sm:$0xff] }
 0x14e   : > { %3326 = vmatmul.msk.f32.gmra.mxu0 %vm183_vm1, %v3664_v16  ;;  %3329 = vmatmul.msk.f32.gmra.mxu1 %vm183_vm1, %v3695_v22  ;;  %v4633_v33 = vld [vmem:[#allocation8_spill] sm:$0xff]  ;;  %v4637_v22 = vld [vmem:[#allocation17_spill] sm:$0xff] }
 0x14f   : > { %3345 = vmatpush.msk.msra.mxu3 %vm190_vm0, %v3671_v18 }
 0x150   : > { %v888_v36 = vpop.f32.mrf.mxu2  ;;  %v923_v46 = vpop.f32.mrf.mxu3 }
 0x151   : > { %v892_v13 = vadd.f32 %v888_v36, %v854_v51  ;;  %v929_v41 = vadd.f32 %v923_v46, %v891_v6 }
 0x153   : > { %v967_v8 = vadd.f32 %v961_v26, %v929_v41  ;;  %v1113_v44 = vpop.f32.mrf.mxu0  ;;  %v1138_v32 = vpop.f32.mrf.mxu1  ;;  %v4634_v26 = vld [vmem:[#allocation22_spill] sm:$0xff] }
 0x155   : > { %v1005_v21 = vadd.f32 %v999_v1, %v967_v8  ;;  %3323 = vmatmul.msk.f32.gmra.mxu3 %vm183_vm1, %v4632_v25  ;;  %3331 = vmatmul.msk.f32.vlgmr.msrb.gmra.mxu2 %vm183_vm1, %v4633_v33  ;;  %v4635_v33 = vld [vmem:[#allocation9_spill] sm:$0xff] }
 0x156   : > { %3337 = vmatmul.msk.f32.vlgmr.msra.gmra.mxu0 %vm183_vm1, %v3700_v23  ;;  %3340 = vmatmul.msk.f32.vlgmr.msra.gmra.mxu1 %vm183_vm1, %v3742_v30  ;;  %v4636_v30 = vld [vmem:[#allocation5_spill] sm:$0xff] }
 0x157   : > { %3354 = vmatpush.msk.msrb.mxu2 %vm190_vm0, %v3834_v48  ;;  %3360 = vmatpush.msk.msra.mxu0 %vm190_vm0, %v3760_v35 }
 0x158   : > { %3363 = vmatpush.msk.msra.mxu1 %vm190_vm0, %v4634_v26  ;;  %v926_v1 = vpop.f32.mrf.mxu3  ;;  %v1037_v6 = vpop.f32.mrf.mxu2  ;;  %v4638_v26 = vld [vmem:[#allocation21_spill] sm:$0xff] }
 0x159   : > { %v930_v51 = vadd.f32 %v926_v1, %v892_v13  ;;  %v1043_v36 = vadd.f32 %v1037_v6, %v1005_v21 }
 0x15b   : > { %v968_v46 = vadd.f32 %v964_v39, %v930_v51  ;;  %v1116_v41 = vpop.f32.mrf.mxu0  ;;  %v1141_v8 = vpop.f32.mrf.mxu1 }
 0x15d   : > { %v1006_v49 = vadd.f32 %v1002_v40, %v968_v46  ;;  %3332 = vmatmul.msk.f32.gmra.mxu2 %vm183_vm1, %v4635_v33  ;;  %3334 = vmatmul.msk.f32.vlgmr.msrb.gmra.mxu3 %vm183_vm1, %v4636_v30  ;;  %v4640_v46 = vld [vmem:[#allocation6_spill] sm:$0xff]  ;;  %v4641_v33 = vld [vmem:[#allocation11_spill] sm:$0xff] }
 0x15e   : > { %3338 = vmatmul.msk.f32.gmra.mxu0 %vm183_vm1, %v3737_v29  ;;  %3341 = vmatmul.msk.f32.gmra.mxu1 %vm183_vm1, %v4637_v22  ;;  %v4642_v22 = vld [vmem:[#allocation24_spill] sm:$0xff] }
 0x15f   : > { %3357 = vmatpush.msk.msrb.mxu3 %vm190_vm0, %v4638_v26  ;;  %v4643_v26 = vld [vmem:[#allocation27_spill] sm:$0xff] }
 0x160   : > { %v1040_v13 = vpop.f32.mrf.mxu2  ;;  %v1075_v39 = vpop.f32.mrf.mxu3 }
 0x161   : > { %v1044_v21 = vadd.f32 %v1040_v13, %v1006_v49  ;;  %v1081_v1 = vadd.f32 %v1075_v39, %v1043_v36  ;;  %v4258_v39 = vpop.permute.xlu0 %2289 }
 0x163   : > { %v4242_v40 = vadd.f32 %v1113_v44, %v1081_v1  ;;  %v1209_v6 = vpop.f32.mrf.mxu0  ;;  %v1238_v51 = vpop.f32.mrf.mxu1 }
 0x165   : > { %4639 = vst [vmem:[#allocation31_spill] sm:$0xff] %v4242_v40  ;;  %3335 = vmatmul.msk.f32.gmra.mxu3 %vm183_vm1, %v4640_v46  ;;  %3343 = vmatmul.msk.f32.vlgmr.msra.gmra.mxu2 %vm183_vm1, %v4641_v33 }
 0x166   : > { %3349 = vmatmul.msk.f32.vlgmr.msrb.gmra.mxu0 %vm183_vm1, %v3780_v37  ;;  %3352 = vmatmul.msk.f32.vlgmr.msrb.gmra.mxu1 %vm183_vm1, %v4642_v22  ;;  %v2261_v22 = vpop.permute.xlu2 %2260  ;;  %v4645_v37 = vld [vmem:[#allocation15_spill] sm:$0xff] }
 0x167   : > { %3366 = vmatpush.msk.msra.mxu2 %vm190_vm0, %v4643_v26  ;;  %3372 = vmatpush.msk.msrb.mxu0 %vm190_vm0, %v3898_v57  ;;  %v4646_v26 = vld [vmem:[#allocation12_spill] sm:$0xff] }
 0x168   : > { %3375 = vmatpush.msk.msrb.mxu1 %vm190_vm0, %v3872_v54  ;;  %v1078_v49 = vpop.f32.mrf.mxu3  ;;  %v1161_v44 = vpop.f32.mrf.mxu2  ;;  %v4647_v54 = vld [vmem:[#allocation26_spill] sm:$0xff] }
 0x169   : > { %v1082_v36 = vadd.f32 %v1078_v49, %v1044_v21  ;;  %v1162_v13 = vadd.f32 %v1161_v44, %v1138_v32 }
 0x16b   : > { %v4260_v1 = vadd.f32 %v1116_v41, %v1082_v36  ;;  %v1212_v33 = vpop.f32.mrf.mxu0  ;;  %v1241_v40 = vpop.f32.mrf.mxu1 }
 0x16d   : > { %4644 = vst [vmem:[#allocation32_spill] sm:$0xff] %v4260_v1  ;;  %3344 = vmatmul.msk.f32.gmra.mxu2 %vm183_vm1, %v4645_v37  ;;  %3346 = vmatmul.msk.f32.vlgmr.msra.gmra.mxu3 %vm183_vm1, %v4646_v26  ;;  %v4272_v37 = vpop.permute.xlu0 %2347  ;;  %v4648_v26 = vld [vmem:[#allocation16_spill] sm:$0xff] }
 0x16e   : > { %3350 = vmatmul.msk.f32.gmra.mxu0 %vm183_vm1, %v3815_v43  ;;  %3353 = vmatmul.msk.f32.gmra.mxu1 %vm183_vm1, %v4647_v54  ;;  %v4649_v43 = vld [vmem:[#allocation19_spill] sm:$0xff]  ;;  %v4278_v54 = vpop.permute.xlu2 %2318 }
 0x16f   : > { %3369 = vmatpush.msk.msra.mxu3 %vm190_vm0, %v3822_v45 }
 0x170   : > { %v1164_v32 = vpop.f32.mrf.mxu2  ;;  %v1184_v41 = vpop.f32.mrf.mxu3 }
 0x171   : > { %v1165_v21 = vadd.f32 %v1164_v32, %v1141_v8  ;;  %v1190_v49 = vadd.f32 %v1184_v41, %v1162_v13 }
 0x173   : > { %v1215_v44 = vadd.f32 %v1209_v6, %v1190_v49  ;;  %v1313_v36 = vpop.f32.mrf.mxu0  ;;  %v1338_v1 = vpop.f32.mrf.mxu1 }
 0x175   : > { %v1244_v57 = vadd.f32 %v1238_v51, %v1215_v44  ;;  %3347 = vmatmul.msk.f32.gmra.mxu3 %vm183_vm1, %v4648_v26  ;;  %3355 = vmatmul.msk.f32.vlgmr.msrb.gmra.mxu2 %vm183_vm1, %v4649_v43  ;;  %v4650_v43 = vld [vmem:[#allocation25_spill] sm:$0xff] }
 0x176   : > { %3361 = vmatmul.msk.f32.vlgmr.msra.gmra.mxu0 %vm183_vm1, %v3856_v50  ;;  %3364 = vmatmul.msk.f32.vlgmr.msra.gmra.mxu1 %vm183_vm1, %v3896_v56  ;;  %v4651_v56 = vld [vmem:[#allocation20_spill] sm:$0xff] }
 0x177   : > { %3387 = vmatpush.msk.msra.mxu1 %vm190_vm0, %v4272_v37  ;;  %3378 = vmatpush.msk.msrb.mxu2 %vm190_vm0, %v2261_v22 }
 0x178   : > { %v1187_v8 = vpop.f32.mrf.mxu3  ;;  %v1263_v6 = vpop.f32.mrf.mxu2  ;;  %3384 = vmatpush.msk.msra.mxu0 %vm190_vm0, %v4278_v54 }
 0x179   : > { %v1191_v51 = vadd.f32 %v1187_v8, %v1165_v21  ;;  %v1269_v13 = vadd.f32 %v1263_v6, %v1244_v57 }
 0x17b   : > { %v1216_v32 = vadd.f32 %v1212_v33, %v1191_v51  ;;  %v1316_v41 = vpop.f32.mrf.mxu0  ;;  %v1341_v49 = vpop.f32.mrf.mxu1 }
 0x17c   : > { %v4299_v51 = vpop.permute.xlu1 %2376 }
 0x17d   : > { %v1245_v44 = vadd.f32 %v1241_v40, %v1216_v32  ;;  %3356 = vmatmul.msk.f32.gmra.mxu2 %vm183_vm1, %v4650_v43  ;;  %3358 = vmatmul.msk.f32.vlgmr.msrb.gmra.mxu3 %vm183_vm1, %v4651_v56 }
 0x17e   : > { %3362 = vmatmul.msk.f32.gmra.mxu0 %vm183_vm1, %v3891_v55  ;;  %3365 = vmatmul.msk.f32.gmra.mxu1 %vm183_vm1, %v3923_v60 }
 0x17f   : > { %3381 = vmatpush.msk.msrb.mxu3 %vm190_vm0, %v4258_v39 }
 0x180   : > { %v1266_v22 = vpop.f32.mrf.mxu2  ;;  %v1288_v57 = vpop.f32.mrf.mxu3 }
 0x181   : > { %v1270_v33 = vadd.f32 %v1266_v22, %v1245_v44  ;;  %v1294_v21 = vadd.f32 %v1288_v57, %v1269_v13 }
 0x183   : > { %v1319_v40 = vadd.f32 %v1313_v36, %v1294_v21  ;;  %v1417_v8 = vpop.f32.mrf.mxu0  ;;  %v1442_v6 = vpop.f32.mrf.mxu1 }
 0x185   : > { %v1344_v32 = vadd.f32 %v1338_v1, %v1319_v40  ;;  %3359 = vmatmul.msk.f32.gmra.mxu3 %vm183_vm1, %v3832_v47  ;;  %3367 = vmatmul.msk.f32.vlgmr.msra.gmra.mxu2 %vm183_vm1, %v3863_v52 }
 0x186   : > { %3373 = vmatmul.msk.f32.vlgmr.msrb.gmra.mxu0 %vm183_vm1, %v3928_v61  ;;  %3376 = vmatmul.msk.f32.vlgmr.msrb.gmra.mxu1 %vm183_vm1, %v3961_v42 }
 0x187   : > { %3399 = vmatpush.msk.msrb.mxu1 %vm190_vm0, %v3631_v11  ;;  %3390 = vmatpush.msk.msra.mxu2 %vm190_vm0, %v4299_v51 }
 0x188   : > { %v1291_v36 = vpop.f32.mrf.mxu3  ;;  %v1367_v1 = vpop.f32.mrf.mxu2  ;;  %3396 = vmatpush.msk.msrb.mxu0 %vm190_vm0, %v3549_v3 }
 0x189   : > { %v1295_v13 = vadd.f32 %v1291_v36, %v1270_v33  ;;  %v1373_v44 = vadd.f32 %v1367_v1, %v1344_v32 }
 0x18b   : > { %v1320_v22 = vadd.f32 %v1316_v41, %v1295_v13  ;;  %v1420_v57 = vpop.f32.mrf.mxu0  ;;  %v1445_v21 = vpop.f32.mrf.mxu1 }
 0x18d   : > { %v1345_v40 = vadd.f32 %v1341_v49, %v1320_v22  ;;  %3368 = vmatmul.msk.f32.gmra.mxu2 %vm183_vm1, %v3903_v58  ;;  %3370 = vmatmul.msk.f32.vlgmr.msra.gmra.mxu3 %vm183_vm1, %v3868_v53 }
 0x18e   : > { %3374 = vmatmul.msk.f32.gmra.mxu0 %vm183_vm1, %v3956_v15  ;;  %3377 = vmatmul.msk.f32.gmra.mxu1 %vm183_vm1, %v3986_v2 }
 0x18f   : > { %3393 = vmatpush.msk.msra.mxu3 %vm190_vm0, %v3673_v19 }
 0x190   : > { %v1370_v3 = vpop.f32.mrf.mxu2  ;;  %v1392_v11 = vpop.f32.mrf.mxu3 }
 0x191   : > { %v1374_v41 = vadd.f32 %v1370_v3, %v1345_v40  ;;  %v1398_v33 = vadd.f32 %v1392_v11, %v1373_v44 }
 0x193   : > { %v1423_v49 = vadd.f32 %v1417_v8, %v1398_v33  ;;  %v1521_v32 = vpop.f32.mrf.mxu0  ;;  %v1546_v36 = vpop.f32.mrf.mxu1 }
 0x195   : > { %v1448_v1 = vadd.f32 %v1442_v6, %v1423_v49  ;;  %3371 = vmatmul.msk.f32.gmra.mxu3 %vm183_vm1, %v3908_v59  ;;  %3379 = vmatmul.msk.f32.vlgmr.msrb.gmra.mxu2 %vm183_vm1, %v3933_v62 }
 0x196   : > { %3385 = vmatmul.msk.f32.vlgmr.msra.gmra.mxu0 %vm183_vm1, %v4626_v9  ;;  %3388 = vmatmul.msk.f32.vlgmr.msra.gmra.mxu1 %vm183_vm1, %v4020_v0 }
 0x197   : > { %3402 = vmatpush.msk.msrb.mxu2 %vm190_vm0, %v3702_v24  ;;  %3408 = vmatpush.msk.msra.mxu0 %vm190_vm0, %v3714_v27  ;;  %v4652_v24 = vld [vmem:[#allocation34_spill] sm:$0xff] }
 0x198   : > { %3411 = vmatpush.msk.msra.mxu1 %vm190_vm0, %v3756_v34  ;;  %v1395_v19 = vpop.f32.mrf.mxu3  ;;  %v1467_v8 = vpop.f32.mrf.mxu2 }
 0x199   : > { %v1399_v6 = vadd.f32 %v1395_v19, %v1374_v41  ;;  %v1473_v13 = vadd.f32 %v1467_v8, %v1448_v1  ;;  %v4653_v1 = vld [vmem:[#allocation35_spill] sm:$0xff] }
 0x19b   : > { %v1424_v44 = vadd.f32 %v1420_v57, %v1399_v6  ;;  %v1524_v22 = vpop.f32.mrf.mxu0  ;;  %v1549_v40 = vpop.f32.mrf.mxu1 }
 0x19d   : > { %v1449_v3 = vadd.f32 %v1445_v21, %v1424_v44  ;;  %3380 = vmatmul.msk.f32.gmra.mxu2 %vm183_vm1, %v3966_v31  ;;  %3382 = vmatmul.msk.f32.vlgmr.msrb.gmra.mxu3 %vm183_vm1, %v3938_v63 }
 0x19e   : > { %3386 = vmatmul.msk.f32.gmra.mxu0 %vm183_vm1, %v4628_v7  ;;  %3389 = vmatmul.msk.f32.gmra.mxu1 %vm183_vm1, %v4040_v14 }
 0x19f   : > { %3405 = vmatpush.msk.msrb.mxu3 %vm190_vm0, %v4652_v24 }
 0x1a0   : > { %v1470_v27 = vpop.f32.mrf.mxu2  ;;  %v1496_v34 = vpop.f32.mrf.mxu3 }
 0x1a1   : > { %v1474_v57 = vadd.f32 %v1470_v27, %v1449_v3  ;;  %v1502_v11 = vadd.f32 %v1496_v34, %v1473_v13 }
 0x1a3   : > { %v1527_v21 = vadd.f32 %v1521_v32, %v1502_v11  ;;  %v1625_v41 = vpop.f32.mrf.mxu0  ;;  %v1650_v33 = vpop.f32.mrf.mxu1 }
 0x1a5   : > { %v1552_v49 = vadd.f32 %v1546_v36, %v1527_v21  ;;  %3383 = vmatmul.msk.f32.gmra.mxu3 %vm183_vm1, %v4625_v20  ;;  %3391 = vmatmul.msk.f32.vlgmr.msra.gmra.mxu2 %vm183_vm1, %v3996_v10 }
 0x1a6   : > { %3397 = vmatmul.msk.f32.vlgmr.msrb.gmra.mxu0 %vm183_vm1, %v3567_v5  ;;  %3400 = vmatmul.msk.f32.vlgmr.msrb.gmra.mxu1 %vm183_vm1, %v3636_v12  ;;  %v3491_v12 = vld [vmem:[%s4528_s1 + $0x10] sm:$0xff] }
 0x1a7   : > { %3414 = vmatpush.msk.msra.mxu2 %vm190_vm0, %v3720_v28  ;;  %3420 = vmatpush.msk.msrb.mxu0 %vm190_vm0, %v4653_v1 }
 0x1a8   : > { %3423 = vmatpush.msk.msrb.mxu1 %vm190_vm0, %v3782_v38  ;;  %v1499_v32 = vpop.f32.mrf.mxu3  ;;  %v1571_v36 = vpop.f32.mrf.mxu2 }
 0x1a9   : > { %v1503_v19 = vadd.f32 %v1499_v32, %v1474_v57  ;;  %v1577_v8 = vadd.f32 %v1571_v36, %v1552_v49  ;;  %v3492_v57 = vld [vmem:[%s4528_s1 + $0x18] sm:$0xff]  ;;  %v4655_v49 = vld [vmem:[#allocation10_spill] sm:$0xff] }
 0x1ab   : > { %v1528_v6 = vadd.f32 %v1524_v22, %v1503_v19  ;;  %v1628_v13 = vpop.f32.mrf.mxu0  ;;  %v1653_v44 = vpop.f32.mrf.mxu1 }
 0x1ad   : > { %v1553_v5 = vadd.f32 %v1549_v40, %v1528_v6  ;;  %3392 = vmatmul.msk.f32.gmra.mxu2 %vm183_vm1, %v4025_v4  ;;  %3394 = vmatmul.msk.f32.vlgmr.msra.gmra.mxu3 %vm183_vm1, %v3491_v12  ;;  %v4662_v12 = vld [vmem:[#allocation31_spill] sm:$0xff] }
 0x1ae   : > { %3398 = vmatmul.msk.f32.gmra.mxu0 %vm183_vm1, %v4632_v25  ;;  %3401 = vmatmul.msk.f32.gmra.mxu1 %vm183_vm1, %v3664_v16  ;;  %v4654_v16 = vld [vmem:[#allocation36_spill] sm:$0xff] }
 0x1af   : > { %3417 = vmatpush.msk.msra.mxu3 %vm190_vm0, %v3671_v18 }
 0x1b0   : > { %v1574_v28 = vpop.f32.mrf.mxu2  ;;  %v1596_v38 = vpop.f32.mrf.mxu3 }
 0x1b1   : > { %v1578_v22 = vadd.f32 %v1574_v28, %v1553_v5  ;;  %v1602_v40 = vadd.f32 %v1596_v38, %v1577_v8  ;;  %v4659_v5 = vld [vmem:[#allocation13_spill] sm:$0xff]  ;;  %v4663_v38 = vld [vmem:[#allocation27_spill] sm:$0xff] }
 0x1b3   : > { %v1631_v3 = vadd.f32 %v1625_v41, %v1602_v40  ;;  %v1725_v24 = vpop.f32.mrf.mxu0  ;;  %v1754_v27 = vpop.f32.mrf.mxu1  ;;  %v4665_v40 = vld [vmem:[#allocation28_spill] sm:$0xff] }
 0x1b5   : > { %v1656_v34 = vadd.f32 %v1650_v33, %v1631_v3  ;;  %3395 = vmatmul.msk.f32.gmra.mxu3 %vm183_vm1, %v3492_v57  ;;  %3403 = vmatmul.msk.f32.vlgmr.msrb.gmra.mxu2 %vm183_vm1, %v3669_v17 }
 0x1b6   : > { %3409 = vmatmul.msk.f32.vlgmr.msra.gmra.mxu0 %vm183_vm1, %v4636_v30  ;;  %3412 = vmatmul.msk.f32.vlgmr.msra.gmra.mxu1 %vm183_vm1, %v3700_v23  ;;  %v4656_v23 = vld [vmem:[#allocation8_spill] sm:$0xff] }
 0x1b7   : > { %3426 = vmatpush.msk.msrb.mxu2 %vm190_vm0, %v3834_v48  ;;  %3432 = vmatpush.msk.msra.mxu0 %vm190_vm0, %v3760_v35  ;;  %v4657_v35 = vld [vmem:[#allocation21_spill] sm:$0xff] }
 0x1b8   : > { %3435 = vmatpush.msk.msra.mxu1 %vm190_vm0, %v4654_v16  ;;  %v1599_v18 = vpop.f32.mrf.mxu3  ;;  %v1675_v25 = vpop.f32.mrf.mxu2 }
 0x1b9   : > { %v1603_v11 = vadd.f32 %v1599_v18, %v1578_v22  ;;  %v1681_v21 = vadd.f32 %v1675_v25, %v1656_v34  ;;  %v4664_v22 = vld [vmem:[#allocation30_spill] sm:$0xff]  ;;  %v4666_v25 = vld [vmem:[#allocation17_spill] sm:$0xff] }
 0x1bb   : > { %v1632_v17 = vadd.f32 %v1628_v13, %v1603_v11  ;;  %v1728_v41 = vpop.f32.mrf.mxu0  ;;  %v1757_v33 = vpop.f32.mrf.mxu1  ;;  %v4667_v11 = vld [vmem:[#allocation11_spill] sm:$0xff] }
 0x1bd   : > { %v1657_v30 = vadd.f32 %v1653_v44, %v1632_v17  ;;  %3404 = vmatmul.msk.f32.gmra.mxu2 %vm183_vm1, %v4655_v49  ;;  %3406 = vmatmul.msk.f32.vlgmr.msrb.gmra.mxu3 %vm183_vm1, %v4656_v23  ;;  %v4658_v44 = vld [vmem:[#allocation9_spill] sm:$0xff]  ;;  %v4669_v17 = vld [vmem:[#allocation32_spill] sm:$0xff] }
 0x1be   : > { %3410 = vmatmul.msk.f32.gmra.mxu0 %vm183_vm1, %v4640_v46  ;;  %3413 = vmatmul.msk.f32.gmra.mxu1 %vm183_vm1, %v3737_v29  ;;  %v4660_v46 = vld [vmem:[#allocation12_spill] sm:$0xff]  ;;  %v4661_v29 = vld [vmem:[#allocation18_spill] sm:$0xff] }
 0x1bf   : > { %3429 = vmatpush.msk.msrb.mxu3 %vm190_vm0, %v4657_v35 }
 0x1c0   : > { %v1678_v48 = vpop.f32.mrf.mxu2  ;;  %v1700_v1 = vpop.f32.mrf.mxu3 }
 0x1c1   : > { %v1682_v32 = vadd.f32 %v1678_v48, %v1657_v30  ;;  %v1706_v36 = vadd.f32 %v1700_v1, %v1681_v21  ;;  %v4668_v21 = vld [vmem:[#allocation23_spill] sm:$0xff] }
 0x1c3   : > { %v1731_v19 = vadd.f32 %v1725_v24, %v1706_v36  ;;  %v1827_v8 = vpop.f32.mrf.mxu0  ;;  %v1852_v6 = vpop.f32.mrf.mxu1 }
 0x1c5   : > { %v4401_v13 = vadd.f32 %v1754_v27, %v1731_v19  ;;  %3407 = vmatmul.msk.f32.gmra.mxu3 %vm183_vm1, %v4658_v44  ;;  %3415 = vmatmul.msk.f32.vlgmr.msra.gmra.mxu2 %vm183_vm1, %v4659_v5 }
 0x1c6   : > { %3421 = vmatmul.msk.f32.vlgmr.msrb.gmra.mxu0 %vm183_vm1, %v4660_v46  ;;  %3424 = vmatmul.msk.f32.vlgmr.msrb.gmra.mxu1 %vm183_vm1, %v4661_v29  ;;  %v4673_v29 = vld [vmem:[#allocation26_spill] sm:$0xff] }
 0x1c7   : > { %v1762_v28 = vmax.f32 %v4662_v12, %v4401_v13  ;;  %3438 = vmatpush.msk.msra.mxu2 %vm190_vm0, %v4663_v38  ;;  %3444 = vmatpush.msk.msrb.mxu0 %vm190_vm0, %v4664_v22 }
 0x1c8   : > { %3447 = vmatpush.msk.msrb.mxu1 %vm190_vm0, %v4665_v40  ;;  %v1703_v3 = vpop.f32.mrf.mxu3  ;;  %v1781_v24 = vpop.f32.mrf.mxu2 }
 0x1c9   : > { %v1707_v27 = vadd.f32 %v1703_v3, %v1682_v32  ;;  %v4670_v32 = vld [vmem:[#allocation15_spill] sm:$0xff] }
 0x1cb   : > { %v1732_v34 = vadd.f32 %v1728_v41, %v1707_v27  ;;  %v1830_v57 = vpop.f32.mrf.mxu0  ;;  %v1855_v16 = vpop.f32.mrf.mxu1 }
 0x1cd   : > { %v4419_v18 = vadd.f32 %v1757_v33, %v1732_v34  ;;  %3416 = vmatmul.msk.f32.gmra.mxu2 %vm183_vm1, %v4666_v25  ;;  %3418 = vmatmul.msk.f32.vlgmr.msra.gmra.mxu3 %vm183_vm1, %v4667_v11  ;;  %v4675_v34 = vld [vmem:[#allocation29_spill] sm:$0xff] }
 0x1ce   : > { %3422 = vmatmul.msk.f32.gmra.mxu0 %vm183_vm1, %v4648_v26  ;;  %3425 = vmatmul.msk.f32.gmra.mxu1 %vm183_vm1, %v4668_v21  ;;  %v4671_v26 = vld [vmem:[#allocation24_spill] sm:$0xff] }
 0x1cf   : > { %v1763_v30 = vmax.f32 %v4669_v17, %v4419_v18  ;;  %3441 = vmatpush.msk.msra.mxu3 %vm190_vm0, %v3822_v45  ;;  %v4672_v45 = vld [vmem:[#allocation37_spill] sm:$0xff] }
 0x1d0   : > { %v1784_v41 = vpop.f32.mrf.mxu2  ;;  %v1804_v33 = vpop.f32.mrf.mxu3 }
 0x1d1   : > { %v1805_v49 = vadd.f32 %v1804_v33, %v1781_v24 }
 0x1d3   : > { %v1833_v23 = vadd.f32 %v1827_v8, %v1805_v49  ;;  %v1927_v35 = vpop.f32.mrf.mxu0  ;;  %v1952_v48 = vpop.f32.mrf.mxu1 }
 0x1d5   : > { %v1858_v1 = vadd.f32 %v1852_v6, %v1833_v23  ;;  %3419 = vmatmul.msk.f32.gmra.mxu3 %vm183_vm1, %v4670_v32  ;;  %3427 = vmatmul.msk.f32.vlgmr.msrb.gmra.mxu2 %vm183_vm1, %v4671_v26 }
 0x1d6   : > { %3433 = vmatmul.msk.f32.vlgmr.msra.gmra.mxu0 %vm183_vm1, %v4651_v56  ;;  %3436 = vmatmul.msk.f32.vlgmr.msra.gmra.mxu1 %vm183_vm1, %v3856_v50  ;;  %v4674_v50 = vld [vmem:[#allocation19_spill] sm:$0xff] }
 0x1d7   : > { %3450 = vmatpush.msk.msrb.mxu2 %vm190_vm0, %v4672_v45  ;;  %3456 = vmatpush.msk.msra.mxu0 %vm190_vm0, %v4278_v54 }
 0x1d8   : > { %3459 = vmatpush.msk.msra.mxu1 %vm190_vm0, %v4272_v37  ;;  %v1807_v36 = vpop.f32.mrf.mxu3  ;;  %v1877_v19 = vpop.f32.mrf.mxu2 }
 0x1d9   : > { %v1808_v8 = vadd.f32 %v1807_v36, %v1784_v41  ;;  %v1883_v6 = vadd.f32 %v1877_v19, %v1858_v1 }
 0x1db   : > { %v1834_v44 = vadd.f32 %v1830_v57, %v1808_v8  ;;  %v1930_v5 = vpop.f32.mrf.mxu0  ;;  %v1955_v46 = vpop.f32.mrf.mxu1 }
 0x1dd   : > { %v1859_v56 = vadd.f32 %v1855_v16, %v1834_v44  ;;  %3428 = vmatmul.msk.f32.gmra.mxu2 %vm183_vm1, %v4673_v29  ;;  %3430 = vmatmul.msk.f32.vlgmr.msrb.gmra.mxu3 %vm183_vm1, %v4674_v50  ;;  %v3004_v16 = vpop.permute.xlu1 %3003 }
 0x1de   : > { %3453 = vmatpush.msk.msrb.mxu3 %vm190_vm0, %v4258_v39  ;;  %3434 = vmatmul.msk.f32.gmra.mxu0 %vm183_vm1, %v3832_v47 }
 0x1df   : > { %3437 = vmatmul.msk.f32.gmra.mxu1 %vm183_vm1, %v3891_v55 }
 0x1e0   : > { %v1880_v37 = vpop.f32.mrf.mxu2  ;;  %v1902_v54 = vpop.f32.mrf.mxu3 }
 0x1e1   : > { %v1884_v38 = vadd.f32 %v1880_v37, %v1859_v56  ;;  %v1908_v22 = vadd.f32 %v1902_v54, %v1883_v6  ;;  %v3509_v56 = vmov 0  }
 0x1e2   : > { %3490 = vset.pattern.permute.xlu0 %v3509_v56  ;;  %3489 = vset.pattern.permute.xlu2 %v3509_v56 }
 0x1e3   : > { %v1933_v40 = vadd.f32 %v1927_v35, %v1908_v22  ;;  %v2027_v3 = vpop.f32.mrf.mxu0  ;;  %v2052_v24 = vpop.f32.mrf.mxu1 }
 0x1e5   : > { %v1958_v27 = vadd.f32 %v1952_v48, %v1933_v40  ;;  %3431 = vmatmul.msk.f32.gmra.mxu3 %vm183_vm1, %v4650_v43  ;;  %3439 = vmatmul.msk.f32.vlgmr.msra.gmra.mxu2 %vm183_vm1, %v4675_v34 }
 0x1e6   : > { %3462 = vmatpush.msk.msra.mxu2 %vm190_vm0, %v4299_v51  ;;  %3445 = vmatmul.msk.f32.vlgmr.msrb.gmra.mxu0 %vm183_vm1, %v3868_v53 }
 0x1e7   : > { %3448 = vmatmul.msk.f32.vlgmr.msrb.gmra.mxu1 %vm183_vm1, %v3928_v61 }
 0x1e8   : > { %v1905_v47 = vpop.f32.mrf.mxu3  ;;  %v1977_v55 = vpop.f32.mrf.mxu2 }
 0x1e9   : > { %v1909_v39 = vadd.f32 %v1905_v47, %v1884_v38  ;;  %v1983_v57 = vadd.f32 %v1977_v55, %v1958_v27 }
 0x1eb   : > { %v1934_v25 = vadd.f32 %v1930_v5, %v1909_v39  ;;  %v2030_v11 = vpop.f32.mrf.mxu0  ;;  %v2055_v43 = vpop.f32.mrf.mxu1 }
 0x1ed   : > { %v1959_v21 = vadd.f32 %v1955_v46, %v1934_v25  ;;  %3440 = vmatmul.msk.f32.gmra.mxu2 %vm183_vm1, %v3923_v60  ;;  %3442 = vmatmul.msk.f32.vlgmr.msra.gmra.mxu3 %vm183_vm1, %v3863_v52  ;;  %v3035_v46 = vld [vmem:[%s4529_s2 + $0x8] sm:$0xff] }
 0x1ee   : > { %3446 = vmatmul.msk.f32.gmra.mxu0 %vm183_vm1, %v3908_v59  ;;  %3465 = vmatpush.msk.msra.mxu3 %vm190_vm0, %v3004_v16 }
 0x1ef   : > { %3449 = vmatmul.msk.f32.gmra.mxu1 %vm183_vm1, %v3956_v15  ;;  %3043 = vperm.xlu0 %3490, %v3035_v46  }
 0x1f0   : > { %v1980_v53 = vpop.f32.mrf.mxu2  ;;  %v2002_v61 = vpop.f32.mrf.mxu3 }
 0x1f1   : > { %v1984_v51 = vadd.f32 %v1980_v53, %v1959_v21  ;;  %v2008_v41 = vadd.f32 %v2002_v61, %v1983_v57 }
 0x1f3   : > { %v2033_v33 = vadd.f32 %v2027_v3, %v2008_v41  ;;  %v2127_v49 = vpop.f32.mrf.mxu0  ;;  %v2152_v23 = vpop.f32.mrf.mxu1 }
 0x1f5   : > { %v2058_v35 = vadd.f32 %v2052_v24, %v2033_v33  ;;  %3443 = vmatmul.msk.f32.gmra.mxu3 %vm183_vm1, %v3903_v58  ;;  %3451 = vmatmul.msk.f32.vlgmr.msrb.gmra.mxu2 %vm183_vm1, %v3961_v42 }
 0x1f6   : > { %3457 = vmatmul.msk.f32.vlgmr.msra.gmra.mxu0 %vm183_vm1, %v3938_v63 }
 0x1f7   : > { %3460 = vmatmul.msk.f32.vlgmr.msra.gmra.mxu1 %vm183_vm1, %v4626_v9 }
 0x1f8   : > { %v2005_v52 = vpop.f32.mrf.mxu3  ;;  %v2077_v59 = vpop.f32.mrf.mxu2 }
 0x1f9   : > { %v2009_v60 = vadd.f32 %v2005_v52, %v1984_v51  ;;  %v2083_v15 = vadd.f32 %v2077_v59, %v2058_v35 }
 0x1fb   : > { %v2034_v48 = vadd.f32 %v2030_v11, %v2009_v60  ;;  %v2130_v1 = vpop.f32.mrf.mxu0  ;;  %v2155_v32 = vpop.f32.mrf.mxu1 }
 0x1fd   : > { %v2059_v26 = vadd.f32 %v2055_v43, %v2034_v48  ;;  %3452 = vmatmul.msk.f32.gmra.mxu2 %vm183_vm1, %v3986_v2  ;;  %3454 = vmatmul.msk.f32.vlgmr.msrb.gmra.mxu3 %vm183_vm1, %v3933_v62 }
 0x1fe   : > { %3458 = vmatmul.msk.f32.gmra.mxu0 %vm183_vm1, %v4625_v20 }
 0x1ff   : > { %3461 = vmatmul.msk.f32.gmra.mxu1 %vm183_vm1, %v4628_v7 }
 0x200   : > { %v2080_v42 = vpop.f32.mrf.mxu2  ;;  %v2102_v58 = vpop.f32.mrf.mxu3 }
 0x201   : > { %v2084_v63 = vadd.f32 %v2080_v42, %v2059_v26  ;;  %v2108_v9 = vadd.f32 %v2102_v58, %v2083_v15 }
 0x203   : > { %v2133_v45 = vadd.f32 %v2127_v49, %v2108_v9  ;;  %v2227_v36 = vpop.f32.mrf.mxu0  ;;  %v2252_v19 = vpop.f32.mrf.mxu1 }
 0x205   : > { %v2158_v8 = vadd.f32 %v2152_v23, %v2133_v45  ;;  %3455 = vmatmul.msk.f32.gmra.mxu3 %vm183_vm1, %v3966_v31  ;;  %3463 = vmatmul.msk.f32.vlgmr.msra.gmra.mxu2 %vm183_vm1, %v4020_v0 }
 0x208   : > { %v2105_v62 = vpop.f32.mrf.mxu3  ;;  %v2177_v2 = vpop.f32.mrf.mxu2 }
 0x209   : > { %v2109_v20 = vadd.f32 %v2105_v62, %v2084_v63  ;;  %v2183_v6 = vadd.f32 %v2177_v2, %v2158_v8 }
 0x20b   : > { %v2134_v44 = vadd.f32 %v2130_v1, %v2109_v20  ;;  %v2230_v7 = vpop.f32.mrf.mxu0  ;;  %v2255_v5 = vpop.f32.mrf.mxu1 }
 0x20d   : > { %v2159_v29 = vadd.f32 %v2155_v32, %v2134_v44  ;;  %3464 = vmatmul.msk.f32.gmra.mxu2 %vm183_vm1, %v4040_v14  ;;  %3466 = vmatmul.msk.f32.vlgmr.msra.gmra.mxu3 %vm183_vm1, %v3996_v10  ;;  %v3034_v10 = vld [vmem:[%s4529_s2] sm:$0xff] }
 0x20e   : > { %3038 = vperm.xlu2 %3489, %v3034_v10  }
 0x210   : > { %v2180_v31 = vpop.f32.mrf.mxu2  ;;  %v2202_v0 = vpop.f32.mrf.mxu3 }
 0x211   : > { %v2184_v50 = vadd.f32 %v2180_v31, %v2159_v29  ;;  %v2208_v37 = vadd.f32 %v2202_v0, %v2183_v6 }
 0x213   : > { %v2233_v54 = vadd.f32 %v2227_v36, %v2208_v37  ;;  %v2339_v38 = vpop.f32.mrf.mxu0  ;;  %v2368_v22 = vpop.f32.mrf.mxu1 }
 0x215   : > { %v2258_v40 = vadd.f32 %v2252_v19, %v2233_v54  ;;  %3467 = vmatmul.msk.f32.gmra.mxu3 %vm183_vm1, %v4025_v4 }
 0x218   : > { %v2205_v3 = vpop.f32.mrf.mxu3  ;;  %v2281_v24 = vpop.f32.mrf.mxu2 }
 0x219   : > { %v2209_v27 = vadd.f32 %v2205_v3, %v2184_v50  ;;  %v2287_v34 = vadd.f32 %v2281_v24, %v2258_v40 }
 0x21b   : > { %v2234_v14 = vadd.f32 %v2230_v7, %v2209_v27  ;;  %v2342_v47 = vpop.f32.mrf.mxu0  ;;  %v2371_v55 = vpop.f32.mrf.mxu1 }
 0x21d   : > { %v2259_v39 = vadd.f32 %v2255_v5, %v2234_v14 }
 0x220   : > { %v2284_v57 = vpop.f32.mrf.mxu2  ;;  %v2310_v16 = vpop.f32.mrf.mxu3 }
 0x221   : > { %v2288_v25 = vadd.f32 %v2284_v57, %v2259_v39  ;;  %v2316_v11 = vadd.f32 %v2310_v16, %v2287_v34 }
 0x223   : > { %v2345_v43 = vadd.f32 %v2339_v38, %v2316_v11  ;;  %v2447_v21 = vpop.f32.mrf.mxu0  ;;  %v2470_v53 = vpop.f32.mrf.mxu1 }
 0x225   : > { %v2374_v4 = vadd.f32 %v2368_v22, %v2345_v43 }
 0x228   : > { %v2313_v61 = vpop.f32.mrf.mxu3  ;;  %v2397_v51 = vpop.f32.mrf.mxu2 }
 0x229   : > { %v2317_v41 = vadd.f32 %v2313_v61, %v2288_v25  ;;  %v2403_v33 = vadd.f32 %v2397_v51, %v2374_v4 }
 0x22b   : > { %v2346_v49 = vadd.f32 %v2342_v47, %v2317_v41  ;;  %v4511_v23 = vmax.f32 %v1762_v28, %v2403_v33  ;;  %v2450_v35 = vpop.f32.mrf.mxu0  ;;  %v2473_v59 = vpop.f32.mrf.mxu1 }
 0x22d   : > { %v2375_v52 = vadd.f32 %v2371_v55, %v2346_v49 }
 0x230   : > { %v2400_v60 = vpop.f32.mrf.mxu2  ;;  %v2424_v15 = vpop.f32.mrf.mxu3 }
 0x231   : > { %v2404_v48 = vadd.f32 %v2400_v60, %v2375_v52  ;;  %v2448_v8 = vadd.f32 %v2447_v21, %v2424_v15 }
 0x233   : > { %v4516_v1 = vmax.f32 %v1763_v30, %v2404_v48  ;;  %v2545_v32 = vpop.f32.mrf.mxu0  ;;  %v2570_v26 = vpop.f32.mrf.mxu1  ;;  %v2476_v20 = vadd.f32 %v2470_v53, %v2448_v8 }
 0x238   : > { %v2427_v42 = vpop.f32.mrf.mxu3  ;;  %v2495_v58 = vpop.f32.mrf.mxu2 }
 0x239   : > { %v2501_v18 = vadd.f32 %v2495_v58, %v2476_v20  ;;  %v2451_v17 = vadd.f32 %v2450_v35, %v2427_v42 }
 0x23b   : > { %v2548_v63 = vpop.f32.mrf.mxu0  ;;  %v2573_v12 = vpop.f32.mrf.mxu1  ;;  %v2477_v46 = vadd.f32 %v2473_v59, %v2451_v17 }
 0x240   : > { %v2498_v9 = vpop.f32.mrf.mxu2  ;;  %v2520_v13 = vpop.f32.mrf.mxu3 }
 0x241   : > { %v2526_v30 = vadd.f32 %v2520_v13, %v2501_v18  ;;  %v2502_v29 = vadd.f32 %v2498_v9, %v2477_v46 }
 0x243   : > { %v2645_v28 = vpop.f32.mrf.mxu0  ;;  %v2670_v19 = vpop.f32.mrf.mxu1  ;;  %v2551_v56 = vadd.f32 %v2545_v32, %v2526_v30 }
 0x245   : > { %v2576_v0 = vadd.f32 %v2570_v26, %v2551_v56 }
 0x248   : > { %v2523_v45 = vpop.f32.mrf.mxu3  ;;  %v2595_v36 = vpop.f32.mrf.mxu2 }
 0x249   : > { %v2527_v50 = vadd.f32 %v2523_v45, %v2502_v29  ;;  %v2601_v37 = vadd.f32 %v2595_v36, %v2576_v0 }
 0x24b   : > { %v2648_v6 = vpop.f32.mrf.mxu0  ;;  %v2673_v44 = vpop.f32.mrf.mxu1  ;;  %v2552_v40 = vadd.f32 %v2548_v63, %v2527_v50 }
 0x24d   : > { %v2577_v24 = vadd.f32 %v2573_v12, %v2552_v40 }
 0x250   : > { %v2598_v62 = vpop.f32.mrf.mxu2  ;;  %v2620_v2 = vpop.f32.mrf.mxu3 }
 0x251   : > { %v2626_v3 = vadd.f32 %v2620_v2, %v2601_v37  ;;  %v2602_v10 = vadd.f32 %v2598_v62, %v2577_v24 }
 0x253   : > { %v2745_v31 = vpop.f32.mrf.mxu0  ;;  %v2770_v54 = vpop.f32.mrf.mxu1  ;;  %v2651_v27 = vadd.f32 %v2645_v28, %v2626_v3 }
 0x255   : > { %v2676_v55 = vadd.f32 %v2670_v19, %v2651_v27 }
 0x258   : > { %v2623_v7 = vpop.f32.mrf.mxu3  ;;  %v2695_v5 = vpop.f32.mrf.mxu2 }
 0x259   : > { %v2627_v39 = vadd.f32 %v2623_v7, %v2602_v10  ;;  %v2701_v16 = vadd.f32 %v2695_v5, %v2676_v55 }
 0x25b   : > { %v2748_v34 = vpop.f32.mrf.mxu0  ;;  %v2652_v25 = vadd.f32 %v2648_v6, %v2627_v39 }
 0x25c   : > { %v2773_v57 = vpop.f32.mrf.mxu1 }
 0x25d   : > { %v2677_v53 = vadd.f32 %v2673_v44, %v2652_v25 }
 0x260   : > { %v2698_v38 = vpop.f32.mrf.mxu2  ;;  %v2720_v22 = vpop.f32.mrf.mxu3 }
 0x261   : > { %v2726_v11 = vadd.f32 %v2720_v22, %v2701_v16  ;;  %v2702_v51 = vadd.f32 %v2698_v38, %v2677_v53  ;;  %v3044_v24 = vpop.permute.xlu0 %3043 }
 0x263   : > { %v2845_v43 = vpop.f32.mrf.mxu0  ;;  %v2751_v61 = vadd.f32 %v2745_v31, %v2726_v11 }
 0x264   : > { %v2870_v41 = vpop.f32.mrf.mxu1 }
 0x265   : > { %v2776_v33 = vadd.f32 %v2770_v54, %v2751_v61 }
 0x268   : > { %v2723_v14 = vpop.f32.mrf.mxu3  ;;  %v2795_v47 = vpop.f32.mrf.mxu2 }
 0x269   : > { %v2727_v49 = vadd.f32 %v2723_v14, %v2702_v51  ;;  %v2801_v35 = vadd.f32 %v2795_v47, %v2776_v33  ;;  %v3039_v31 = vpop.permute.xlu2 %3038 }
 0x26b   : > { %v2752_v60 = vadd.f32 %v2748_v34, %v2727_v49  ;;  %v2848_v48 = vpop.f32.mrf.mxu0 }
 0x26c   : > { %v2873_v42 = vpop.f32.mrf.mxu1 }
 0x26d   : > { %v2777_v32 = vadd.f32 %v2773_v57, %v2752_v60 }
 0x270   : > { %v2798_v21 = vpop.f32.mrf.mxu2  ;;  %v2820_v4 = vpop.f32.mrf.mxu3 }
 0x271   : > { %v2826_v15 = vadd.f32 %v2820_v4, %v2801_v35  ;;  %v2802_v58 = vadd.f32 %v2798_v21, %v2777_v32 }
 0x273   : > { %v2851_v26 = vadd.f32 %v2845_v43, %v2826_v15  ;;  %v2945_v45 = vpop.f32.mrf.mxu0 }
 0x274   : > { %v2970_v8 = vpop.f32.mrf.mxu1 }
 0x275   : > { %v2876_v13 = vadd.f32 %v2870_v41, %v2851_v26 }
 0x278   : > { %v2823_v52 = vpop.f32.mrf.mxu3  ;;  %v2895_v59 = vpop.f32.mrf.mxu2 }
 0x279   : > { %v2827_v12 = vadd.f32 %v2823_v52, %v2802_v58  ;;  %v2901_v28 = vadd.f32 %v2895_v59, %v2876_v13 }
 0x27b   : > { %v2852_v36 = vadd.f32 %v2848_v48, %v2827_v12  ;;  %v2948_v44 = vpop.f32.mrf.mxu0 }
 0x27c   : > { %v2973_v29 = vpop.f32.mrf.mxu1 }
 0x27d   : > { %v2877_v2 = vadd.f32 %v2873_v42, %v2852_v36 }
 0x280   : > { %v2898_v63 = vpop.f32.mrf.mxu2  ;;  %v2920_v9 = vpop.f32.mrf.mxu3 }
 0x281   : > { %v2926_v19 = vadd.f32 %v2920_v9, %v2901_v28  ;;  %v2902_v18 = vadd.f32 %v2898_v63, %v2877_v2 }
 0x283   : > { %v2951_v20 = vadd.f32 %v2945_v45, %v2926_v19 }
 0x285   : > { %v2976_v17 = vadd.f32 %v2970_v8, %v2951_v20 }
 0x288   : > { %v2923_v62 = vpop.f32.mrf.mxu3  ;;  %v2995_v6 = vpop.f32.mrf.mxu2 }
 0x289   : > { %v2927_v30 = vadd.f32 %v2923_v62, %v2902_v18  ;;  %v3001_v7 = vadd.f32 %v2995_v6, %v2976_v17 }
 0x28b   : > { %v2952_v46 = vadd.f32 %v2948_v44, %v2927_v30 }
 0x28d   : > { %v2977_v37 = vadd.f32 %v2973_v29, %v2952_v46 }
 0x290   : > { %v3024_v5 = vpop.f32.mrf.mxu3  ;;  %v2998_v50 = vpop.f32.mrf.mxu2 }
 0x291   : > { %v3030_v56 = vadd.f32 %v3024_v5, %v3001_v7  ;;  %v3002_v38 = vadd.f32 %v2998_v50, %v2977_v37 }
 0x293   : > { %v3032_v0 = vmax.f32 %v4511_v23, %v3030_v56 }
 0x295   : > { %v3046_v54 = vadd.f32 %v3039_v31, %v3032_v0 }
 0x297   : > { %v3048_v22 = vmax.f32 %v3046_v54, 0.0 }
 0x298   : > { %v3027_v40 = vpop.f32.mrf.mxu3 }
 0x299   : > { %3051 = vst.msk [vmem:[%s170_s10] sm:$0xff] %vm3050_vm2, %v3048_v22  ;;  %v3031_v3 = vadd.f32 %v3027_v40, %v3002_v38 }
 0x29b   : > { %v3033_v27 = vmax.f32 %v4516_v1, %v3031_v3 }
 0x29d   : > { %v3047_v34 = vadd.f32 %v3044_v24, %v3033_v27 }
 0x29f   : > { %v3049_v10 = vmax.f32 %v3047_v34, 0.0 }
 0x2a1   : > { %3052 = vst.msk [vmem:[%s170_s10 + $0x8] sm:$0xff] %vm3050_vm2, %v3049_v10 }
 0x2a2 PF: > { %s13_s12 = sadd.s32 1, %s3499_s12  }
 0x2a3   : > { %p10_p4 = scmp.ge.s32.totalorder %s13_s12, 4  }
 0x2a5   :  { %12 = sbr.rel (!%p10_p4) target bundleno = 1 (0x1), region = 89 }

</bundles_post_ra>
